<compile_context>
chip_gen: v6e
topology: v6e:2x2x1
jax: 0.10.0
libtpu: 0.0.40
codegen_flags: <defaults>
</compile_context>

<pallas_src>
import functools
import math

import jax
import jax.numpy as jnp
from jax.experimental import pallas as pl
from jax.experimental.pallas import tpu as pltpu


def _round_up(x, m):
    return (x + m - 1) // m * m


# ----------------------------- matmul kernels ------------------------------ #

def _matmul_kernel(a_ref, b_ref, o_ref, acc_ref):
    @pl.when(pl.program_id(2) == 0)
    def _():
        acc_ref[...] = jnp.zeros_like(acc_ref)

    acc_ref[...] += jnp.dot(a_ref[...], b_ref[...],
                            preferred_element_type=jnp.float32)

    @pl.when(pl.program_id(2) == pl.num_programs(2) - 1)
    def _():
        o_ref[...] = acc_ref[...].astype(o_ref.dtype)


def _matmul_bias_kernel(a_ref, b_ref, bias_ref, o_ref, acc_ref):
    @pl.when(pl.program_id(2) == 0)
    def _():
        acc_ref[...] = jnp.zeros_like(acc_ref)

    acc_ref[...] += jnp.dot(a_ref[...], b_ref[...],
                            preferred_element_type=jnp.float32)

    @pl.when(pl.program_id(2) == pl.num_programs(2) - 1)
    def _():
        o_ref[...] = (acc_ref[...] + bias_ref[...]).astype(o_ref.dtype)


def pallas_matmul(a, b, bias=None):
    """a:(M,K) x b:(K,N) [+bias (1,N)] -> (M,N) f32, bf16 MXU inputs."""
    m, k = a.shape
    k2, n = b.shape
    assert k == k2
    tm = _round_up(m, 8) if m <= 512 else 512
    tn = _round_up(n, 128) if n <= 256 else 256
    tk = _round_up(k, 128) if k <= 1024 else 512
    mp, kp, np_ = _round_up(m, tm), _round_up(k, tk), _round_up(n, tn)

    a = a.astype(jnp.bfloat16)
    b = b.astype(jnp.bfloat16)
    if (mp, kp) != (m, k):
        a = jnp.pad(a, ((0, mp - m), (0, kp - k)))
    if (kp, np_) != (k, n):
        b = jnp.pad(b, ((0, kp - k), (0, np_ - n)))

    in_specs = [pl.BlockSpec((tm, tk), lambda i, j, kk: (i, kk)),
                pl.BlockSpec((tk, tn), lambda i, j, kk: (kk, j))]
    args = [a, b]
    kernel = _matmul_kernel
    if bias is not None:
        bias = bias.astype(jnp.float32).reshape(1, n)
        if np_ != n:
            bias = jnp.pad(bias, ((0, 0), (0, np_ - n)))
        in_specs.append(pl.BlockSpec((1, tn), lambda i, j, kk: (0, j)))
        args.append(bias)
        kernel = _matmul_bias_kernel

    out = pl.pallas_call(
        kernel,
        out_shape=jax.ShapeDtypeStruct((mp, np_), jnp.float32),
        grid_spec=pltpu.PrefetchScalarGridSpec(
            num_scalar_prefetch=0,
            grid=(mp // tm, np_ // tn, kp // tk),
            in_specs=in_specs,
            out_specs=pl.BlockSpec((tm, tn), lambda i, j, kk: (i, j)),
            scratch_shapes=[pltpu.VMEM((tm, tn), jnp.float32)]),
        compiler_params=pltpu.CompilerParams(
            dimension_semantics=("parallel", "parallel", "arbitrary")),
    )(*args)
    if (mp, np_) != (m, n):
        out = out[:m, :n]
    return out


# ------------------------ direct 3x3 stride-1 conv -------------------------- #

def _conv3x3_kernel(x_ref, w_ref, o_ref, *, m, wp):
    # x_ref: (1, R, Cin) flattened padded sample, w_ref: (9, Cin, TC)
    acc = None
    for t in range(9):
        off = (t // 3) * wp + (t % 3)
        xs = x_ref[0, off:off + m, :].astype(jnp.bfloat16)
        part = jnp.dot(xs, w_ref[t], preferred_element_type=jnp.float32)
        acc = part if acc is None else acc + part
    o_ref[0, :, :] = acc


def _conv3x3_s1_direct(x, w9):
    # x: (N, H, W, Cin) f32; w9: (9, Cin, Cout) bf16; stride 1, pad 1.
    n, h, wd, cin = x.shape
    cout = w9.shape[2]
    wp = wd + 2                       # padded width
    m = h * wp                        # output rows per sample (wrap cols incl.)
    r = (h + 3) * wp                  # flattened padded rows (+1 guard row)
    xp = jnp.pad(x, ((0, 0), (1, 2), (1, 1), (0, 0)))
    xf = xp.reshape(n, r, cin)
    tc = min(cout, 256)
    out = pl.pallas_call(
        functools.partial(_conv3x3_kernel, m=m, wp=wp),
        out_shape=jax.ShapeDtypeStruct((n, m, cout), jnp.float32),
        grid_spec=pltpu.PrefetchScalarGridSpec(
            num_scalar_prefetch=0,
            grid=(n, cout // tc),
            in_specs=[pl.BlockSpec((1, r, cin), lambda b, co: (b, 0, 0)),
                      pl.BlockSpec((9, cin, tc), lambda b, co: (0, 0, co))],
            out_specs=pl.BlockSpec((1, m, tc), lambda b, co: (b, 0, co))),
        compiler_params=pltpu.CompilerParams(
            dimension_semantics=("parallel", "parallel")),
    )(xf, w9)
    # drop wrap-around columns: (N, H, Wp, Cout) -> (N, H, W, Cout)
    return out.reshape(n, h, wp, cout)[:, :, :wd, :]


_DIRECT_CONV3X3_OK = None


def _direct_conv3x3_supported():
    """Compile-probe the direct conv once (eagerly); fall back to im2col."""
    global _DIRECT_CONV3X3_OK
    if _DIRECT_CONV3X3_OK is None:
        try:
            xt = jnp.zeros((1, 8, 8, 64), jnp.float32)
            wt = jnp.zeros((9, 64, 64), jnp.bfloat16)
            jax.block_until_ready(_conv3x3_s1_direct(xt, wt))
            _DIRECT_CONV3X3_OK = True
        except Exception:
            _DIRECT_CONV3X3_OK = False
    return _DIRECT_CONV3X3_OK


# ------------------------- generic conv wrappers ---------------------------- #

def _extract_patches(x, kh, kw, stride, pad):
    # im2col glue (only used for the 7x7 stem and the 3 stride-2 3x3 convs).
    n, h, w, c = x.shape
    xp = jnp.pad(x, ((0, 0), (pad, pad), (pad, pad), (0, 0)))
    oh = (h + 2 * pad - kh) // stride + 1
    ow = (w + 2 * pad - kw) // stride + 1
    cols = []
    for i in range(kh):
        for j in range(kw):
            cols.append(xp[:, i:i + stride * (oh - 1) + 1:stride,
                           j:j + stride * (ow - 1) + 1:stride, :])
    patches = jnp.stack(cols, axis=3)      # (n, oh, ow, kh*kw, c)
    return patches, oh, ow


def conv_kxk(x, w, stride, pad):
    # w: (k*k, cin, cout) bf16, tap-major (matches _extract_patches order).
    kk, cin, cout = w.shape
    k = int(round(math.sqrt(kk)))
    if k == 3 and stride == 1 and pad == 1 and _direct_conv3x3_supported():
        return _conv3x3_s1_direct(x, w)
    n = x.shape[0]
    patches, oh, ow = _extract_patches(x, k, k, stride, pad)
    a = patches.reshape(n * oh * ow, kk * cin)
    y = pallas_matmul(a, w.reshape(kk * cin, cout))
    return y.reshape(n, oh, ow, cout)


def conv1x1(x, w, stride):
    # w: (cin, cout) bf16
    if stride > 1:
        x = x[:, ::stride, ::stride, :]
    n, h, wd, cin = x.shape
    y = pallas_matmul(x.reshape(n * h * wd, cin), w)
    return y.reshape(n, h, wd, w.shape[1])


# ------------------------------ batch norm ---------------------------------- #

def _bn_stats_kernel(x_ref, s_ref, q_ref):
    @pl.when(pl.program_id(0) == 0)
    def _():
        s_ref[...] = jnp.zeros_like(s_ref)
        q_ref[...] = jnp.zeros_like(q_ref)

    x = x_ref[...]
    s_ref[...] += jnp.sum(x, axis=0, keepdims=True)
    q_ref[...] += jnp.sum(x * x, axis=0, keepdims=True)


def _make_bn_apply_kernel(relu: bool, residual: bool):
    if residual:
        def kernel(x_ref, a_ref, b_ref, r_ref, o_ref):
            y = x_ref[...] * a_ref[...] + b_ref[...] + r_ref[...]
            if relu:
                y = jnp.maximum(y, 0.0)
            o_ref[...] = y
    else:
        def kernel(x_ref, a_ref, b_ref, o_ref):
            y = x_ref[...] * a_ref[...] + b_ref[...]
            if relu:
                y = jnp.maximum(y, 0.0)
            o_ref[...] = y
    return kernel


def batchnorm2d(x, gamma, beta, *, relu, residual=None, eps=1e-5):
    # Train-mode BN: per-batch mean / biased variance (matches PyTorch .train()).
    n, h, w, c = x.shape
    m = n * h * w
    tr = min(1024, _round_up(m, 8))
    mp = _round_up(m, tr)

    def pad_rows(t):
        t = t.reshape(m, c)
        return jnp.pad(t, ((0, mp - m), (0, 0))) if mp != m else t

    x2 = pad_rows(x)
    row_spec = pl.BlockSpec((tr, c), lambda i: (i, 0))
    chan_spec = pl.BlockSpec((1, c), lambda i: (0, 0))

    ssum, ssq = pl.pallas_call(
        _bn_stats_kernel,
        out_shape=(jax.ShapeDtypeStruct((1, c), jnp.float32),
                   jax.ShapeDtypeStruct((1, c), jnp.float32)),
        grid_spec=pltpu.PrefetchScalarGridSpec(
            num_scalar_prefetch=0,
            grid=(mp // tr,),
            in_specs=[row_spec],
            out_specs=(chan_spec, chan_spec)),
        compiler_params=pltpu.CompilerParams(
            dimension_semantics=("arbitrary",)),
    )(x2)

    mean = ssum / float(m)
    var = jnp.maximum(ssq / float(m) - mean * mean, 0.0)
    scale = gamma * jax.lax.rsqrt(var + eps)          # (1, c)
    shift = beta - mean * scale                       # (1, c)

    args = [x2, scale, shift]
    in_specs = [row_spec, chan_spec, chan_spec]
    if residual is not None:
        args.append(pad_rows(residual))
        in_specs.append(row_spec)

    y = pl.pallas_call(
        _make_bn_apply_kernel(relu, residual is not None),
        out_shape=jax.ShapeDtypeStruct((mp, c), jnp.float32),
        grid_spec=pltpu.PrefetchScalarGridSpec(
            num_scalar_prefetch=0,
            grid=(mp // tr,),
            in_specs=in_specs,
            out_specs=row_spec),
        compiler_params=pltpu.CompilerParams(
            dimension_semantics=("parallel",)),
    )(*args)
    return y[:m].reshape(n, h, w, c)


# -------------------------------- pooling ----------------------------------- #

def maxpool2d_3x3_s2_p1(x):
    # Shifted-maximum glue (one fused XLA pass under the outer jit).
    n, h, w, c = x.shape
    oh = (h + 2 - 3) // 2 + 1
    ow = (w + 2 - 3) // 2 + 1
    xp = jnp.pad(x, ((0, 0), (1, 1), (1, 1), (0, 0)),
                 constant_values=-jnp.inf)
    y = None
    for di in range(3):
        for dj in range(3):
            s = xp[:, di:di + 2 * (oh - 1) + 1:2,
                   dj:dj + 2 * (ow - 1) + 1:2, :]
            y = s if y is None else jnp.maximum(y, s)
    return y


def _avgpool_kernel(x_ref, o_ref):
    o_ref[...] = jnp.mean(x_ref[...], axis=1)


def global_avgpool(x):
    # AdaptiveAvgPool2d((1,1)) + flatten; tiny by construction.
    n, h, w, c = x.shape
    vmem = pl.BlockSpec(memory_space=pltpu.MemorySpace.VMEM)
    return pl.pallas_call(
        _avgpool_kernel,
        out_shape=jax.ShapeDtypeStruct((n, c), jnp.float32),
        in_specs=[vmem],
        out_specs=vmem,
    )(x.reshape(n, h * w, c))


def linear(x, w, b):
    # x: (N, 512), w: (512, out) bf16, b: (1, out) f32
    return pallas_matmul(x, w, bias=b)


# --------------------------- parameters & model ----------------------------- #

def _he_conv(key, cout, cin, k):
    fan_in = cin * k * k
    w = (jax.random.normal(key, (cout, cin, k, k), jnp.float32)
         * math.sqrt(2.0 / fan_in))
    # kernel-ready layout: tap-major (k*k, cin, cout), bf16 for the MXU.
    return (jnp.transpose(w, (2, 3, 1, 0))
            .reshape(k * k, cin, cout).astype(jnp.bfloat16))


def init_resnet34_params(key, num_classes=18):
    keys = iter(jax.random.split(key, 64))
    p = {'conv1_w': _he_conv(next(keys), 64, 3, 7),
         'bn1_g': jnp.ones((1, 64), jnp.float32),
         'bn1_b': jnp.zeros((1, 64), jnp.float32),
         'layers': []}
    inplanes = 64
    for planes, n_blocks, stride in ((64, 3, 1), (128, 4, 2),
                                     (256, 6, 2), (512, 3, 2)):
        blocks = []
        for bi in range(n_blocks):
            s = stride if bi == 0 else 1
            blk = {
                'conv1_w': _he_conv(next(keys), planes, inplanes, 3),
                'bn1_g': jnp.ones((1, planes), jnp.float32),
                'bn1_b': jnp.zeros((1, planes), jnp.float32),
                'conv2_w': _he_conv(next(keys), planes, planes, 3),
                'bn2_g': jnp.ones((1, planes), jnp.float32),
                'bn2_b': jnp.zeros((1, planes), jnp.float32),
            }
            if s != 1 or inplanes != planes:
                blk['down_w'] = _he_conv(next(keys), planes, inplanes,
                                         1).reshape(inplanes, planes)
                blk['down_g'] = jnp.ones((1, planes), jnp.float32)
                blk['down_b'] = jnp.zeros((1, planes), jnp.float32)
            blocks.append(blk)
            inplanes = planes
        p['layers'].append(blocks)
    kw_, kb_ = jax.random.split(next(keys))
    bound = 1.0 / math.sqrt(512.0)
    p['fc_w'] = jax.random.uniform(kw_, (num_classes, 512), jnp.float32,
                                   -bound, bound).T.astype(jnp.bfloat16)
    p['fc_b'] = jax.random.uniform(kb_, (num_classes,), jnp.float32,
                                   -bound, bound).reshape(1, num_classes)
    return p


def basic_block(x, blk, stride):
    identity = x
    out = conv_kxk(x, blk['conv1_w'], stride=stride, pad=1)
    out = batchnorm2d(out, blk['bn1_g'], blk['bn1_b'], relu=True)
    out = conv_kxk(out, blk['conv2_w'], stride=1, pad=1)
    if 'down_w' in blk:
        identity = conv1x1(x, blk['down_w'], stride)
        identity = batchnorm2d(identity, blk['down_g'], blk['down_b'],
                               relu=False)
    # bn2 -> += identity -> ReLU (fused in one apply kernel)
    return batchnorm2d(out, blk['bn2_g'], blk['bn2_b'], relu=True,
                       residual=identity)


def resnet34_forward(x_nchw, params):
    x = jnp.transpose(x_nchw, (0, 2, 3, 1)).astype(jnp.float32)   # -> NHWC
    x = conv_kxk(x, params['conv1_w'], stride=2, pad=3)            # 7x7 s2 p3
    x = batchnorm2d(x, params['bn1_g'], params['bn1_b'], relu=True)
    x = maxpool2d_3x3_s2_p1(x)                                     # 3x3 s2 p1
    for li, blocks in enumerate(params['layers']):
        for bi, blk in enumerate(blocks):
            stride = 2 if (li > 0 and bi == 0) else 1
            x = basic_block(x, blk, stride)
    x = global_avgpool(x)                                          # (N, 512)
    return linear(x, params['fc_w'], params['fc_b'])               # (N, 18)


# ---------------------------------- main ------------------------------------ #

if __name__ == "__main__":
    key = jax.random.PRNGKey(0)
    pkey, xkey = jax.random.split(key)
    params = init_resnet34_params(pkey, num_classes=18)
    # NCHW input, like the PyTorch module. Spatial 32 keeps every stage >= 1x1.
    x = jax.random.normal(xkey, (2, 3, 32, 32), jnp.float32)

    _direct_conv3x3_supported()   # resolve the 3x3 conv path eagerly (pre-jit)

    fwd = jax.jit(resnet34_forward)
    logits = jax.block_until_ready(fwd(x, params))
    assert logits.shape == (2, 18), logits.shape
    assert bool(jnp.all(jnp.isfinite(logits)))
    print("KERNEL_OK")
</pallas_src>

<mosaic_0001>
module attributes {stable_mosaic.version = 11 : i64} {
  func.func @_conv3x3_kernel(%arg0: i32, %arg1: i32, %arg2: memref<1x110x64xf32, #tpu.memory_space<vmem>>, %arg3: memref<9x64x64xbf16, #tpu.memory_space<vmem>>, %arg4: memref<1x80x64xf32, #tpu.memory_space<vmem>>) attributes {dimension_semantics = [#tpu.dimension_semantics<parallel>, #tpu.dimension_semantics<parallel>], iteration_bounds = array<i64: 1, 1>, scalar_prefetch = 0 : i64, scratch_operands = 0 : i64, tpu.core_type = #tpu.core_type<tc>, window_params = [{transform_indices = @transform_0, window_bounds = array<i64: 1, 110, 64>}, {transform_indices = @transform_1, window_bounds = array<i64: 9, 64, 64>}, {transform_indices = @transform_2, window_bounds = array<i64: 1, 80, 64>}]} {
    %c0 = arith.constant 0 : index
    %c0_0 = arith.constant 0 : index
    %c0_1 = arith.constant 0 : index
    %0 = vector.load %arg2[%c0, %c0_0, %c0_1] : memref<1x110x64xf32, #tpu.memory_space<vmem>>, vector<1x80x64xf32>
    %1 = vector.shape_cast %0 : vector<1x80x64xf32> to vector<80x64xf32>
    %2 = arith.truncf %1 : vector<80x64xf32> to vector<80x64xbf16>
    %c0_2 = arith.constant 0 : index
    %c0_3 = arith.constant 0 : index
    %c0_4 = arith.constant 0 : index
    %3 = vector.load %arg3[%c0_2, %c0_3, %c0_4] : memref<9x64x64xbf16, #tpu.memory_space<vmem>>, vector<1x64x64xbf16>
    %4 = vector.shape_cast %3 : vector<1x64x64xbf16> to vector<64x64xbf16>
    %cst = arith.constant dense<0.000000e+00> : vector<80x64xf32>
    %5 = tpu.matmul %2, %4, %cst {dimension_numbers = #tpu.dot_dimension_numbers<[1], [0], [0], [1], [0, 0, 1, 1], [], []>} : vector<80x64xbf16>, vector<64x64xbf16>, vector<80x64xf32> -> vector<80x64xf32>
    %c0_5 = arith.constant 0 : index
    %c1 = arith.constant 1 : index
    %c0_6 = arith.constant 0 : index
    %6 = vector.load %arg2[%c0_5, %c1, %c0_6] : memref<1x110x64xf32, #tpu.memory_space<vmem>>, vector<1x80x64xf32>
    %7 = vector.shape_cast %6 : vector<1x80x64xf32> to vector<80x64xf32>
    %8 = arith.truncf %7 : vector<80x64xf32> to vector<80x64xbf16>
    %c1_7 = arith.constant 1 : index
    %c0_8 = arith.constant 0 : index
    %c0_9 = arith.constant 0 : index
    %9 = vector.load %arg3[%c1_7, %c0_8, %c0_9] : memref<9x64x64xbf16, #tpu.memory_space<vmem>>, vector<1x64x64xbf16>
    %10 = vector.shape_cast %9 : vector<1x64x64xbf16> to vector<64x64xbf16>
    %cst_10 = arith.constant dense<0.000000e+00> : vector<80x64xf32>
    %11 = tpu.matmul %8, %10, %cst_10 {dimension_numbers = #tpu.dot_dimension_numbers<[1], [0], [0], [1], [0, 0, 1, 1], [], []>} : vector<80x64xbf16>, vector<64x64xbf16>, vector<80x64xf32> -> vector<80x64xf32>
    %12 = arith.addf %5, %11 : vector<80x64xf32>
    %c0_11 = arith.constant 0 : index
    %c2 = arith.constant 2 : index
    %c0_12 = arith.constant 0 : index
    %13 = vector.load %arg2[%c0_11, %c2, %c0_12] : memref<1x110x64xf32, #tpu.memory_space<vmem>>, vector<1x80x64xf32>
    %14 = vector.shape_cast %13 : vector<1x80x64xf32> to vector<80x64xf32>
    %15 = arith.truncf %14 : vector<80x64xf32> to vector<80x64xbf16>
    %c2_13 = arith.constant 2 : index
    %c0_14 = arith.constant 0 : index
    %c0_15 = arith.constant 0 : index
    %16 = vector.load %arg3[%c2_13, %c0_14, %c0_15] : memref<9x64x64xbf16, #tpu.memory_space<vmem>>, vector<1x64x64xbf16>
    %17 = vector.shape_cast %16 : vector<1x64x64xbf16> to vector<64x64xbf16>
    %cst_16 = arith.constant dense<0.000000e+00> : vector<80x64xf32>
    %18 = tpu.matmul %15, %17, %cst_16 {dimension_numbers = #tpu.dot_dimension_numbers<[1], [0], [0], [1], [0, 0, 1, 1], [], []>} : vector<80x64xbf16>, vector<64x64xbf16>, vector<80x64xf32> -> vector<80x64xf32>
    %19 = arith.addf %12, %18 : vector<80x64xf32>
    %c0_17 = arith.constant 0 : index
    %c10 = arith.constant 10 : index
    %c0_18 = arith.constant 0 : index
    %20 = vector.load %arg2[%c0_17, %c10, %c0_18] : memref<1x110x64xf32, #tpu.memory_space<vmem>>, vector<1x80x64xf32>
    %21 = vector.shape_cast %20 : vector<1x80x64xf32> to vector<80x64xf32>
    %22 = arith.truncf %21 : vector<80x64xf32> to vector<80x64xbf16>
    %c3 = arith.constant 3 : index
    %c0_19 = arith.constant 0 : index
    %c0_20 = arith.constant 0 : index
    %23 = vector.load %arg3[%c3, %c0_19, %c0_20] : memref<9x64x64xbf16, #tpu.memory_space<vmem>>, vector<1x64x64xbf16>
    %24 = vector.shape_cast %23 : vector<1x64x64xbf16> to vector<64x64xbf16>
    %cst_21 = arith.constant dense<0.000000e+00> : vector<80x64xf32>
    %25 = tpu.matmul %22, %24, %cst_21 {dimension_numbers = #tpu.dot_dimension_numbers<[1], [0], [0], [1], [0, 0, 1, 1], [], []>} : vector<80x64xbf16>, vector<64x64xbf16>, vector<80x64xf32> -> vector<80x64xf32>
    %26 = arith.addf %19, %25 : vector<80x64xf32>
    %c0_22 = arith.constant 0 : index
    %c11 = arith.constant 11 : index
    %c0_23 = arith.constant 0 : index
    %27 = vector.load %arg2[%c0_22, %c11, %c0_23] : memref<1x110x64xf32, #tpu.memory_space<vmem>>, vector<1x80x64xf32>
    %28 = vector.shape_cast %27 : vector<1x80x64xf32> to vector<80x64xf32>
    %29 = arith.truncf %28 : vector<80x64xf32> to vector<80x64xbf16>
    %c4 = arith.constant 4 : index
    %c0_24 = arith.constant 0 : index
    %c0_25 = arith.constant 0 : index
    %30 = vector.load %arg3[%c4, %c0_24, %c0_25] : memref<9x64x64xbf16, #tpu.memory_space<vmem>>, vector<1x64x64xbf16>
    %31 = vector.shape_cast %30 : vector<1x64x64xbf16> to vector<64x64xbf16>
    %cst_26 = arith.constant dense<0.000000e+00> : vector<80x64xf32>
    %32 = tpu.matmul %29, %31, %cst_26 {dimension_numbers = #tpu.dot_dimension_numbers<[1], [0], [0], [1], [0, 0, 1, 1], [], []>} : vector<80x64xbf16>, vector<64x64xbf16>, vector<80x64xf32> -> vector<80x64xf32>
    %33 = arith.addf %26, %32 : vector<80x64xf32>
    %c0_27 = arith.constant 0 : index
    %c12 = arith.constant 12 : index
    %c0_28 = arith.constant 0 : index
    %34 = vector.load %arg2[%c0_27, %c12, %c0_28] : memref<1x110x64xf32, #tpu.memory_space<vmem>>, vector<1x80x64xf32>
    %35 = vector.shape_cast %34 : vector<1x80x64xf32> to vector<80x64xf32>
    %36 = arith.truncf %35 : vector<80x64xf32> to vector<80x64xbf16>
    %c5 = arith.constant 5 : index
    %c0_29 = arith.constant 0 : index
    %c0_30 = arith.constant 0 : index
    %37 = vector.load %arg3[%c5, %c0_29, %c0_30] : memref<9x64x64xbf16, #tpu.memory_space<vmem>>, vector<1x64x64xbf16>
    %38 = vector.shape_cast %37 : vector<1x64x64xbf16> to vector<64x64xbf16>
    %cst_31 = arith.constant dense<0.000000e+00> : vector<80x64xf32>
    %39 = tpu.matmul %36, %38, %cst_31 {dimension_numbers = #tpu.dot_dimension_numbers<[1], [0], [0], [1], [0, 0, 1, 1], [], []>} : vector<80x64xbf16>, vector<64x64xbf16>, vector<80x64xf32> -> vector<80x64xf32>
    %40 = arith.addf %33, %39 : vector<80x64xf32>
    %c0_32 = arith.constant 0 : index
    %c20 = arith.constant 20 : index
    %c0_33 = arith.constant 0 : index
    %41 = vector.load %arg2[%c0_32, %c20, %c0_33] : memref<1x110x64xf32, #tpu.memory_space<vmem>>, vector<1x80x64xf32>
    %42 = vector.shape_cast %41 : vector<1x80x64xf32> to vector<80x64xf32>
    %43 = arith.truncf %42 : vector<80x64xf32> to vector<80x64xbf16>
    %c6 = arith.constant 6 : index
    %c0_34 = arith.constant 0 : index
    %c0_35 = arith.constant 0 : index
    %44 = vector.load %arg3[%c6, %c0_34, %c0_35] : memref<9x64x64xbf16, #tpu.memory_space<vmem>>, vector<1x64x64xbf16>
    %45 = vector.shape_cast %44 : vector<1x64x64xbf16> to vector<64x64xbf16>
    %cst_36 = arith.constant dense<0.000000e+00> : vector<80x64xf32>
    %46 = tpu.matmul %43, %45, %cst_36 {dimension_numbers = #tpu.dot_dimension_numbers<[1], [0], [0], [1], [0, 0, 1, 1], [], []>} : vector<80x64xbf16>, vector<64x64xbf16>, vector<80x64xf32> -> vector<80x64xf32>
    %47 = arith.addf %40, %46 : vector<80x64xf32>
    %c0_37 = arith.constant 0 : index
    %c21 = arith.constant 21 : index
    %c0_38 = arith.constant 0 : index
    %48 = vector.load %arg2[%c0_37, %c21, %c0_38] : memref<1x110x64xf32, #tpu.memory_space<vmem>>, vector<1x80x64xf32>
    %49 = vector.shape_cast %48 : vector<1x80x64xf32> to vector<80x64xf32>
    %50 = arith.truncf %49 : vector<80x64xf32> to vector<80x64xbf16>
    %c7 = arith.constant 7 : index
    %c0_39 = arith.constant 0 : index
    %c0_40 = arith.constant 0 : index
    %51 = vector.load %arg3[%c7, %c0_39, %c0_40] : memref<9x64x64xbf16, #tpu.memory_space<vmem>>, vector<1x64x64xbf16>
    %52 = vector.shape_cast %51 : vector<1x64x64xbf16> to vector<64x64xbf16>
    %cst_41 = arith.constant dense<0.000000e+00> : vector<80x64xf32>
    %53 = tpu.matmul %50, %52, %cst_41 {dimension_numbers = #tpu.dot_dimension_numbers<[1], [0], [0], [1], [0, 0, 1, 1], [], []>} : vector<80x64xbf16>, vector<64x64xbf16>, vector<80x64xf32> -> vector<80x64xf32>
    %54 = arith.addf %47, %53 : vector<80x64xf32>
    %c0_42 = arith.constant 0 : index
    %c22 = arith.constant 22 : index
    %c0_43 = arith.constant 0 : index
    %55 = vector.load %arg2[%c0_42, %c22, %c0_43] : memref<1x110x64xf32, #tpu.memory_space<vmem>>, vector<1x80x64xf32>
    %56 = vector.shape_cast %55 : vector<1x80x64xf32> to vector<80x64xf32>
    %57 = arith.truncf %56 : vector<80x64xf32> to vector<80x64xbf16>
    %c8 = arith.constant 8 : index
    %c0_44 = arith.constant 0 : index
    %c0_45 = arith.constant 0 : index
    %58 = vector.load %arg3[%c8, %c0_44, %c0_45] : memref<9x64x64xbf16, #tpu.memory_space<vmem>>, vector<1x64x64xbf16>
    %59 = vector.shape_cast %58 : vector<1x64x64xbf16> to vector<64x64xbf16>
    %cst_46 = arith.constant dense<0.000000e+00> : vector<80x64xf32>
    %60 = tpu.matmul %57, %59, %cst_46 {dimension_numbers = #tpu.dot_dimension_numbers<[1], [0], [0], [1], [0, 0, 1, 1], [], []>} : vector<80x64xbf16>, vector<64x64xbf16>, vector<80x64xf32> -> vector<80x64xf32>
    %61 = arith.addf %54, %60 : vector<80x64xf32>
    %c0_47 = arith.constant 0 : index
    %c0_48 = arith.constant 0 : index
    %c0_49 = arith.constant 0 : index
    %62 = vector.load %arg4[%c0_47, %c0_48, %c0_49] : memref<1x80x64xf32, #tpu.memory_space<vmem>>, vector<1x80x64xf32>
    %63 = vector.shape_cast %62 : vector<1x80x64xf32> to vector<80x64xf32>
    %64 = vector.shape_cast %61 : vector<80x64xf32> to vector<1x80x64xf32>
    tpu.vector_store %arg4[%c0_47, %c0_48, %c0_49], %64 {strides = array<i32>} : memref<1x80x64xf32, #tpu.memory_space<vmem>>, vector<1x80x64xf32>,
    return
  }
  func.func @transform_0(%arg0: i32, %arg1: i32) -> (i32, i32, i32) {
    %c0_i32 = arith.constant 0 : i32
    %c0_i32_0 = arith.constant 0 : i32
    %c0_i32_1 = arith.constant 0 : i32
    return %arg0, %c0_i32, %c0_i32_0 : i32, i32, i32
  }
  func.func @transform_1(%arg0: i32, %arg1: i32) -> (i32, i32, i32) {
    %c0_i32 = arith.constant 0 : i32
    %c0_i32_0 = arith.constant 0 : i32
    %c0_i32_1 = arith.constant 0 : i32
    return %c0_i32, %c0_i32_0, %arg1 : i32, i32, i32
  }
  func.func @transform_2(%arg0: i32, %arg1: i32) -> (i32, i32, i32) {
    %c0_i32 = arith.constant 0 : i32
    %c0_i32_0 = arith.constant 0 : i32
    return %arg0, %c0_i32, %arg1 : i32, i32, i32
  }
}

module attributes {stable_mosaic.version = 11 : i64} {
  func.func @_bn_stats_kernel(%arg0: i32, %arg1: memref<512x64xf32, #tpu.memory_space<vmem>>, %arg2: memref<1x64xf32, #tpu.memory_space<vmem>>, %arg3: memref<1x64xf32, #tpu.memory_space<vmem>>) attributes {dimension_semantics = [#tpu.dimension_semantics<arbitrary>], iteration_bounds = array<i64: 1>, scalar_prefetch = 0 : i64, scratch_operands = 0 : i64, tpu.core_type = #tpu.core_type<tc>, window_params = [{transform_indices = @transform_0, window_bounds = array<i64: 512, 64>}, {pipeline_mode = #tpu.pipeline_mode<synchronous>, transform_indices = @transform_1, window_bounds = array<i64: 1, 64>}, {pipeline_mode = #tpu.pipeline_mode<synchronous>, transform_indices = @transform_2, window_bounds = array<i64: 1, 64>}]} {
    %c0_i32 = arith.constant 0 : i32
    %0 = arith.cmpi eq, %arg0, %c0_i32 : i32
    %1 = arith.extui %0 : i1 to i32
    %c0_i32_0 = arith.constant 0 : i32
    %2 = arith.cmpi ne, %1, %c0_i32_0 : i32
    scf.if %2 {
      %cst_11 = arith.constant 0.000000e+00 : f32
      %15 = vector.broadcast %cst_11 : f32 to vector<1x64xf32>
      %c0_12 = arith.constant 0 : index
      %c0_13 = arith.constant 0 : index
      %16 = vector.load %arg2[%c0_12, %c0_13] : memref<1x64xf32, #tpu.memory_space<vmem>>, vector<1x64xf32>
      tpu.vector_store %arg2[%c0_12, %c0_13], %15 {strides = array<i32>} : memref<1x64xf32, #tpu.memory_space<vmem>>, vector<1x64xf32>,
      %cst_14 = arith.constant 0.000000e+00 : f32
      %17 = vector.broadcast %cst_14 : f32 to vector<1x64xf32>
      %c0_15 = arith.constant 0 : index
      %c0_16 = arith.constant 0 : index
      %18 = vector.load %arg3[%c0_15, %c0_16] : memref<1x64xf32, #tpu.memory_space<vmem>>, vector<1x64xf32>
      tpu.vector_store %arg3[%c0_15, %c0_16], %17 {strides = array<i32>} : memref<1x64xf32, #tpu.memory_space<vmem>>, vector<1x64xf32>,
    } else {
    }
    %c0 = arith.constant 0 : index
    %c0_1 = arith.constant 0 : index
    %3 = vector.load %arg1[%c0, %c0_1] : memref<512x64xf32, #tpu.memory_space<vmem>>, vector<512x64xf32>
    %c0_2 = arith.constant 0 : index
    %c0_3 = arith.constant 0 : index
    %4 = vector.load %arg2[%c0_2, %c0_3] : memref<1x64xf32, #tpu.memory_space<vmem>>, vector<1x64xf32>
    %cst = arith.constant dense<0.000000e+00> : vector<64xf32>
    %5 = vector.multi_reduction <add>, %3, %cst [0] : vector<512x64xf32> to vector<64xf32>
    %6 = vector.shape_cast %5 : vector<64xf32> to vector<1x64xf32>
    %7 = arith.addf %4, %6 : vector<1x64xf32>
    %c0_4 = arith.constant 0 : index
    %c0_5 = arith.constant 0 : index
    %8 = vector.load %arg2[%c0_4, %c0_5] : memref<1x64xf32, #tpu.memory_space<vmem>>, vector<1x64xf32>
    tpu.vector_store %arg2[%c0_4, %c0_5], %7 {strides = array<i32>} : memref<1x64xf32, #tpu.memory_space<vmem>>, vector<1x64xf32>,
    %c0_6 = arith.constant 0 : index
    %c0_7 = arith.constant 0 : index
    %9 = vector.load %arg3[%c0_6, %c0_7] : memref<1x64xf32, #tpu.memory_space<vmem>>, vector<1x64xf32>
    %10 = arith.mulf %3, %3 : vector<512x64xf32>
    %cst_8 = arith.constant dense<0.000000e+00> : vector<64xf32>
    %11 = vector.multi_reduction <add>, %10, %cst_8 [0] : vector<512x64xf32> to vector<64xf32>
    %12 = vector.shape_cast %11 : vector<64xf32> to vector<1x64xf32>
    %13 = arith.addf %9, %12 : vector<1x64xf32>
    %c0_9 = arith.constant 0 : index
    %c0_10 = arith.constant 0 : index
    %14 = vector.load %arg3[%c0_9, %c0_10] : memref<1x64xf32, #tpu.memory_space<vmem>>, vector<1x64xf32>
    tpu.vector_store %arg3[%c0_9, %c0_10], %13 {strides = array<i32>} : memref<1x64xf32, #tpu.memory_space<vmem>>, vector<1x64xf32>,
    return
  }
  func.func @transform_0(%arg0: i32) -> (i32, i32) {
    %c0_i32 = arith.constant 0 : i32
    %c0_i32_0 = arith.constant 0 : i32
    return %arg0, %c0_i32 : i32, i32
  }
  func.func @transform_1(%arg0: i32) -> (i32, i32) {
    %c0_i32 = arith.constant 0 : i32
    %c0_i32_0 = arith.constant 0 : i32
    %c0_i32_1 = arith.constant 0 : i32
    return %c0_i32, %c0_i32_0 : i32, i32
  }
  func.func @transform_2(%arg0: i32) -> (i32, i32) {
    %c0_i32 = arith.constant 0 : i32
    %c0_i32_0 = arith.constant 0 : i32
    %c0_i32_1 = arith.constant 0 : i32
    return %c0_i32, %c0_i32_0 : i32, i32
  }
}

module attributes {stable_mosaic.version = 11 : i64} {
  func.func @_matmul_kernel(%arg0: i32, %arg1: i32, %arg2: i32, %arg3: memref<512x256xbf16, #tpu.memory_space<vmem>>, %arg4: memref<256x128xbf16, #tpu.memory_space<vmem>>, %arg5: memref<512x128xf32, #tpu.memory_space<vmem>>, %arg6: memref<512x128xf32, #tpu.memory_space<vmem>>) attributes {dimension_semantics = [#tpu.dimension_semantics<parallel>, #tpu.dimension_semantics<parallel>, #tpu.dimension_semantics<arbitrary>], iteration_bounds = array<i64: 1, 1, 1>, scalar_prefetch = 0 : i64, scratch_operands = 1 : i64, tpu.core_type = #tpu.core_type<tc>, window_params = [{transform_indices = @transform_0, window_bounds = array<i64: 512, 256>}, {transform_indices = @transform_1, window_bounds = array<i64: 256, 128>}, {transform_indices = @transform_2, window_bounds = array<i64: 512, 128>}]} {
    %c0_i32 = arith.constant 0 : i32
    %0 = arith.cmpi eq, %arg2, %c0_i32 : i32
    %1 = arith.extui %0 : i1 to i32
    %c0_i32_0 = arith.constant 0 : i32
    %2 = arith.cmpi ne, %1, %c0_i32_0 : i32
    scf.if %2 {
      %cst_10 = arith.constant 0.000000e+00 : f32
      %12 = vector.broadcast %cst_10 : f32 to vector<512x128xf32>
      %c0_11 = arith.constant 0 : index
      %c0_12 = arith.constant 0 : index
      %13 = vector.load %arg6[%c0_11, %c0_12] : memref<512x128xf32, #tpu.memory_space<vmem>>, vector<512x128xf32>
      tpu.vector_store %arg6[%c0_11, %c0_12], %12 {strides = array<i32>} : memref<512x128xf32, #tpu.memory_space<vmem>>, vector<512x128xf32>,
    } else {
    }
    %c0 = arith.constant 0 : index
    %c0_1 = arith.constant 0 : index
    %3 = vector.load %arg6[%c0, %c0_1] : memref<512x128xf32, #tpu.memory_space<vmem>>, vector<512x128xf32>
    %c0_2 = arith.constant 0 : index
    %c0_3 = arith.constant 0 : index
    %4 = vector.load %arg3[%c0_2, %c0_3] : memref<512x256xbf16, #tpu.memory_space<vmem>>, vector<512x256xbf16>
    %c0_4 = arith.constant 0 : index
    %c0_5 = arith.constant 0 : index
    %5 = vector.load %arg4[%c0_4, %c0_5] : memref<256x128xbf16, #tpu.memory_space<vmem>>, vector<256x128xbf16>
    %cst = arith.constant dense<0.000000e+00> : vector<512x128xf32>
    %6 = tpu.matmul %4, %5, %cst {dimension_numbers = #tpu.dot_dimension_numbers<[1], [0], [0], [1], [0, 0, 1, 1], [], []>} : vector<512x256xbf16>, vector<256x128xbf16>, vector<512x128xf32> -> vector<512x128xf32>
    %7 = arith.addf %3, %6 : vector<512x128xf32>
    %c0_6 = arith.constant 0 : index
    %c0_7 = arith.constant 0 : index
    %8 = vector.load %arg6[%c0_6, %c0_7] : memref<512x128xf32, #tpu.memory_space<vmem>>, vector<512x128xf32>
    tpu.vector_store %arg6[%c0_6, %c0_7], %7 {strides = array<i32>} : memref<512x128xf32, #tpu.memory_space<vmem>>, vector<512x128xf32>,
    %c0_i32_8 = arith.constant 0 : i32
    %9 = arith.cmpi eq, %arg2, %c0_i32_8 : i32
    %10 = arith.extui %9 : i1 to i32
    %c0_i32_9 = arith.constant 0 : i32
    %11 = arith.cmpi ne, %10, %c0_i32_9 : i32
    scf.if %11 {
      %c0_10 = arith.constant 0 : index
      %c0_11 = arith.constant 0 : index
      %12 = vector.load %arg6[%c0_10, %c0_11] : memref<512x128xf32, #tpu.memory_space<vmem>>, vector<512x128xf32>
      %c0_12 = arith.constant 0 : index
      %c0_13 = arith.constant 0 : index
      %13 = vector.load %arg5[%c0_12, %c0_13] : memref<512x128xf32, #tpu.memory_space<vmem>>, vector<512x128xf32>
      tpu.vector_store %arg5[%c0_12, %c0_13], %12 {strides = array<i32>} : memref<512x128xf32, #tpu.memory_space<vmem>>, vector<512x128xf32>,
    } else {
    }
    return
  }
  func.func @transform_0(%arg0: i32, %arg1: i32, %arg2: i32) -> (i32, i32) {
    %c0_i32 = arith.constant 0 : i32
    return %arg0, %arg2 : i32, i32
  }
  func.func @transform_1(%arg0: i32, %arg1: i32, %arg2: i32) -> (i32, i32) {
    %c0_i32 = arith.constant 0 : i32
    return %arg2, %arg1 : i32, i32
  }
  func.func @transform_2(%arg0: i32, %arg1: i32, %arg2: i32) -> (i32, i32) {
    %c0_i32 = arith.constant 0 : i32
    return %arg0, %arg1 : i32, i32
  }
}

module attributes {stable_mosaic.version = 11 : i64} {
  func.func @kernel(%arg0: i32, %arg1: memref<512x64xf32, #tpu.memory_space<vmem>>, %arg2: memref<1x64xf32, #tpu.memory_space<vmem>>, %arg3: memref<1x64xf32, #tpu.memory_space<vmem>>, %arg4: memref<512x64xf32, #tpu.memory_space<vmem>>) attributes {dimension_semantics = [#tpu.dimension_semantics<parallel>], iteration_bounds = array<i64: 1>, scalar_prefetch = 0 : i64, scratch_operands = 0 : i64, tpu.core_type = #tpu.core_type<tc>, window_params = [{transform_indices = @transform_0, window_bounds = array<i64: 512, 64>}, {pipeline_mode = #tpu.pipeline_mode<synchronous>, transform_indices = @transform_1, window_bounds = array<i64: 1, 64>}, {pipeline_mode = #tpu.pipeline_mode<synchronous>, transform_indices = @transform_2, window_bounds = array<i64: 1, 64>}, {transform_indices = @transform_3, window_bounds = array<i64: 512, 64>}]} {
    %c0 = arith.constant 0 : index
    %c0_0 = arith.constant 0 : index
    %0 = vector.load %arg1[%c0, %c0_0] : memref<512x64xf32, #tpu.memory_space<vmem>>, vector<512x64xf32>
    %c0_1 = arith.constant 0 : index
    %c0_2 = arith.constant 0 : index
    %1 = vector.load %arg2[%c0_1, %c0_2] : memref<1x64xf32, #tpu.memory_space<vmem>>, vector<1x64xf32>
    %2 = vector.broadcast %1 : vector<1x64xf32> to vector<512x64xf32>
    %3 = arith.mulf %0, %2 : vector<512x64xf32>
    %c0_3 = arith.constant 0 : index
    %c0_4 = arith.constant 0 : index
    %4 = vector.load %arg3[%c0_3, %c0_4] : memref<1x64xf32, #tpu.memory_space<vmem>>, vector<1x64xf32>
    %5 = vector.broadcast %4 : vector<1x64xf32> to vector<512x64xf32>
    %6 = arith.addf %3, %5 : vector<512x64xf32>
    %cst = arith.constant 0.000000e+00 : f32
    %7 = vector.broadcast %cst : f32 to vector<512x64xf32>
    %8 = arith.maximumf %6, %7 : vector<512x64xf32>
    %c0_5 = arith.constant 0 : index
    %c0_6 = arith.constant 0 : index
    %9 = vector.load %arg4[%c0_5, %c0_6] : memref<512x64xf32, #tpu.memory_space<vmem>>, vector<512x64xf32>
    tpu.vector_store %arg4[%c0_5, %c0_6], %8 {strides = array<i32>} : memref<512x64xf32, #tpu.memory_space<vmem>>, vector<512x64xf32>,
    return
  }
  func.func @transform_0(%arg0: i32) -> (i32, i32) {
    %c0_i32 = arith.constant 0 : i32
    %c0_i32_0 = arith.constant 0 : i32
    return %arg0, %c0_i32 : i32, i32
  }
  func.func @transform_1(%arg0: i32) -> (i32, i32) {
    %c0_i32 = arith.constant 0 : i32
    %c0_i32_0 = arith.constant 0 : i32
    %c0_i32_1 = arith.constant 0 : i32
    return %c0_i32, %c0_i32_0 : i32, i32
  }
  func.func @transform_2(%arg0: i32) -> (i32, i32) {
    %c0_i32 = arith.constant 0 : i32
    %c0_i32_0 = arith.constant 0 : i32
    %c0_i32_1 = arith.constant 0 : i32
    return %c0_i32, %c0_i32_0 : i32, i32
  }
  func.func @transform_3(%arg0: i32) -> (i32, i32) {
    %c0_i32 = arith.constant 0 : i32
    %c0_i32_0 = arith.constant 0 : i32
    return %arg0, %c0_i32 : i32, i32
  }
}

module attributes {stable_mosaic.version = 11 : i64} {
  func.func @_matmul_kernel(%arg0: i32, %arg1: i32, %arg2: i32, %arg3: memref<128x640xbf16, #tpu.memory_space<vmem>>, %arg4: memref<640x128xbf16, #tpu.memory_space<vmem>>, %arg5: memref<128x128xf32, #tpu.memory_space<vmem>>, %arg6: memref<128x128xf32, #tpu.memory_space<vmem>>) attributes {dimension_semantics = [#tpu.dimension_semantics<parallel>, #tpu.dimension_semantics<parallel>, #tpu.dimension_semantics<arbitrary>], iteration_bounds = array<i64: 1, 1, 1>, scalar_prefetch = 0 : i64, scratch_operands = 1 : i64, tpu.core_type = #tpu.core_type<tc>, window_params = [{transform_indices = @transform_0, window_bounds = array<i64: 128, 640>}, {transform_indices = @transform_1, window_bounds = array<i64: 640, 128>}, {transform_indices = @transform_2, window_bounds = array<i64: 128, 128>}]} {
    %c0_i32 = arith.constant 0 : i32
    %0 = arith.cmpi eq, %arg2, %c0_i32 : i32
    %1 = arith.extui %0 : i1 to i32
    %c0_i32_0 = arith.constant 0 : i32
    %2 = arith.cmpi ne, %1, %c0_i32_0 : i32
    scf.if %2 {
      %cst_10 = arith.constant 0.000000e+00 : f32
      %12 = vector.broadcast %cst_10 : f32 to vector<128x128xf32>
      %c0_11 = arith.constant 0 : index
      %c0_12 = arith.constant 0 : index
      %13 = vector.load %arg6[%c0_11, %c0_12] : memref<128x128xf32, #tpu.memory_space<vmem>>, vector<128x128xf32>
      tpu.vector_store %arg6[%c0_11, %c0_12], %12 {strides = array<i32>} : memref<128x128xf32, #tpu.memory_space<vmem>>, vector<128x128xf32>,
    } else {
    }
    %c0 = arith.constant 0 : index
    %c0_1 = arith.constant 0 : index
    %3 = vector.load %arg6[%c0, %c0_1] : memref<128x128xf32, #tpu.memory_space<vmem>>, vector<128x128xf32>
    %c0_2 = arith.constant 0 : index
    %c0_3 = arith.constant 0 : index
    %4 = vector.load %arg3[%c0_2, %c0_3] : memref<128x640xbf16, #tpu.memory_space<vmem>>, vector<128x640xbf16>
    %c0_4 = arith.constant 0 : index
    %c0_5 = arith.constant 0 : index
    %5 = vector.load %arg4[%c0_4, %c0_5] : memref<640x128xbf16, #tpu.memory_space<vmem>>, vector<640x128xbf16>
    %cst = arith.constant dense<0.000000e+00> : vector<128x128xf32>
    %6 = tpu.matmul %4, %5, %cst {dimension_numbers = #tpu.dot_dimension_numbers<[1], [0], [0], [1], [0, 0, 1, 1], [], []>} : vector<128x640xbf16>, vector<640x128xbf16>, vector<128x128xf32> -> vector<128x128xf32>
    %7 = arith.addf %3, %6 : vector<128x128xf32>
    %c0_6 = arith.constant 0 : index
    %c0_7 = arith.constant 0 : index
    %8 = vector.load %arg6[%c0_6, %c0_7] : memref<128x128xf32, #tpu.memory_space<vmem>>, vector<128x128xf32>
    tpu.vector_store %arg6[%c0_6, %c0_7], %7 {strides = array<i32>} : memref<128x128xf32, #tpu.memory_space<vmem>>, vector<128x128xf32>,
    %c0_i32_8 = arith.constant 0 : i32
    %9 = arith.cmpi eq, %arg2, %c0_i32_8 : i32
    %10 = arith.extui %9 : i1 to i32
    %c0_i32_9 = arith.constant 0 : i32
    %11 = arith.cmpi ne, %10, %c0_i32_9 : i32
    scf.if %11 {
      %c0_10 = arith.constant 0 : index
      %c0_11 = arith.constant 0 : index
      %12 = vector.load %arg6[%c0_10, %c0_11] : memref<128x128xf32, #tpu.memory_space<vmem>>, vector<128x128xf32>
      %c0_12 = arith.constant 0 : index
      %c0_13 = arith.constant 0 : index
      %13 = vector.load %arg5[%c0_12, %c0_13] : memref<128x128xf32, #tpu.memory_space<vmem>>, vector<128x128xf32>
      tpu.vector_store %arg5[%c0_12, %c0_13], %12 {strides = array<i32>} : memref<128x128xf32, #tpu.memory_space<vmem>>, vector<128x128xf32>,
    } else {
    }
    return
  }
  func.func @transform_0(%arg0: i32, %arg1: i32, %arg2: i32) -> (i32, i32) {
    %c0_i32 = arith.constant 0 : i32
    return %arg0, %arg2 : i32, i32
  }
  func.func @transform_1(%arg0: i32, %arg1: i32, %arg2: i32) -> (i32, i32) {
    %c0_i32 = arith.constant 0 : i32
    return %arg2, %arg1 : i32, i32
  }
  func.func @transform_2(%arg0: i32, %arg1: i32, %arg2: i32) -> (i32, i32) {
    %c0_i32 = arith.constant 0 : i32
    return %arg0, %arg1 : i32, i32
  }
}

module attributes {stable_mosaic.version = 11 : i64} {
  func.func @_bn_stats_kernel(%arg0: i32, %arg1: memref<128x64xf32, #tpu.memory_space<vmem>>, %arg2: memref<1x64xf32, #tpu.memory_space<vmem>>, %arg3: memref<1x64xf32, #tpu.memory_space<vmem>>) attributes {dimension_semantics = [#tpu.dimension_semantics<arbitrary>], iteration_bounds = array<i64: 1>, scalar_prefetch = 0 : i64, scratch_operands = 0 : i64, tpu.core_type = #tpu.core_type<tc>, window_params = [{transform_indices = @transform_0, window_bounds = array<i64: 128, 64>}, {pipeline_mode = #tpu.pipeline_mode<synchronous>, transform_indices = @transform_1, window_bounds = array<i64: 1, 64>}, {pipeline_mode = #tpu.pipeline_mode<synchronous>, transform_indices = @transform_2, window_bounds = array<i64: 1, 64>}]} {
    %c0_i32 = arith.constant 0 : i32
    %0 = arith.cmpi eq, %arg0, %c0_i32 : i32
    %1 = arith.extui %0 : i1 to i32
    %c0_i32_0 = arith.constant 0 : i32
    %2 = arith.cmpi ne, %1, %c0_i32_0 : i32
    scf.if %2 {
      %cst_11 = arith.constant 0.000000e+00 : f32
      %15 = vector.broadcast %cst_11 : f32 to vector<1x64xf32>
      %c0_12 = arith.constant 0 : index
      %c0_13 = arith.constant 0 : index
      %16 = vector.load %arg2[%c0_12, %c0_13] : memref<1x64xf32, #tpu.memory_space<vmem>>, vector<1x64xf32>
      tpu.vector_store %arg2[%c0_12, %c0_13], %15 {strides = array<i32>} : memref<1x64xf32, #tpu.memory_space<vmem>>, vector<1x64xf32>,
      %cst_14 = arith.constant 0.000000e+00 : f32
      %17 = vector.broadcast %cst_14 : f32 to vector<1x64xf32>
      %c0_15 = arith.constant 0 : index
      %c0_16 = arith.constant 0 : index
      %18 = vector.load %arg3[%c0_15, %c0_16] : memref<1x64xf32, #tpu.memory_space<vmem>>, vector<1x64xf32>
      tpu.vector_store %arg3[%c0_15, %c0_16], %17 {strides = array<i32>} : memref<1x64xf32, #tpu.memory_space<vmem>>, vector<1x64xf32>,
    } else {
    }
    %c0 = arith.constant 0 : index
    %c0_1 = arith.constant 0 : index
    %3 = vector.load %arg1[%c0, %c0_1] : memref<128x64xf32, #tpu.memory_space<vmem>>, vector<128x64xf32>
    %c0_2 = arith.constant 0 : index
    %c0_3 = arith.constant 0 : index
    %4 = vector.load %arg2[%c0_2, %c0_3] : memref<1x64xf32, #tpu.memory_space<vmem>>, vector<1x64xf32>
    %cst = arith.constant dense<0.000000e+00> : vector<64xf32>
    %5 = vector.multi_reduction <add>, %3, %cst [0] : vector<128x64xf32> to vector<64xf32>
    %6 = vector.shape_cast %5 : vector<64xf32> to vector<1x64xf32>
    %7 = arith.addf %4, %6 : vector<1x64xf32>
    %c0_4 = arith.constant 0 : index
    %c0_5 = arith.constant 0 : index
    %8 = vector.load %arg2[%c0_4, %c0_5] : memref<1x64xf32, #tpu.memory_space<vmem>>, vector<1x64xf32>
    tpu.vector_store %arg2[%c0_4, %c0_5], %7 {strides = array<i32>} : memref<1x64xf32, #tpu.memory_space<vmem>>, vector<1x64xf32>,
    %c0_6 = arith.constant 0 : index
    %c0_7 = arith.constant 0 : index
    %9 = vector.load %arg3[%c0_6, %c0_7] : memref<1x64xf32, #tpu.memory_space<vmem>>, vector<1x64xf32>
    %10 = arith.mulf %3, %3 : vector<128x64xf32>
    %cst_8 = arith.constant dense<0.000000e+00> : vector<64xf32>
    %11 = vector.multi_reduction <add>, %10, %cst_8 [0] : vector<128x64xf32> to vector<64xf32>
    %12 = vector.shape_cast %11 : vector<64xf32> to vector<1x64xf32>
    %13 = arith.addf %9, %12 : vector<1x64xf32>
    %c0_9 = arith.constant 0 : index
    %c0_10 = arith.constant 0 : index
    %14 = vector.load %arg3[%c0_9, %c0_10] : memref<1x64xf32, #tpu.memory_space<vmem>>, vector<1x64xf32>
    tpu.vector_store %arg3[%c0_9, %c0_10], %13 {strides = array<i32>} : memref<1x64xf32, #tpu.memory_space<vmem>>, vector<1x64xf32>,
    return
  }
  func.func @transform_0(%arg0: i32) -> (i32, i32) {
    %c0_i32 = arith.constant 0 : i32
    %c0_i32_0 = arith.constant 0 : i32
    return %arg0, %c0_i32 : i32, i32
  }
  func.func @transform_1(%arg0: i32) -> (i32, i32) {
    %c0_i32 = arith.constant 0 : i32
    %c0_i32_0 = arith.constant 0 : i32
    %c0_i32_1 = arith.constant 0 : i32
    return %c0_i32, %c0_i32_0 : i32, i32
  }
  func.func @transform_2(%arg0: i32) -> (i32, i32) {
    %c0_i32 = arith.constant 0 : i32
    %c0_i32_0 = arith.constant 0 : i32
    %c0_i32_1 = arith.constant 0 : i32
    return %c0_i32, %c0_i32_0 : i32, i32
  }
}

module attributes {stable_mosaic.version = 11 : i64} {
  func.func @kernel(%arg0: i32, %arg1: memref<128x64xf32, #tpu.memory_space<vmem>>, %arg2: memref<1x64xf32, #tpu.memory_space<vmem>>, %arg3: memref<1x64xf32, #tpu.memory_space<vmem>>, %arg4: memref<128x64xf32, #tpu.memory_space<vmem>>) attributes {dimension_semantics = [#tpu.dimension_semantics<parallel>], iteration_bounds = array<i64: 1>, scalar_prefetch = 0 : i64, scratch_operands = 0 : i64, tpu.core_type = #tpu.core_type<tc>, window_params = [{transform_indices = @transform_0, window_bounds = array<i64: 128, 64>}, {pipeline_mode = #tpu.pipeline_mode<synchronous>, transform_indices = @transform_1, window_bounds = array<i64: 1, 64>}, {pipeline_mode = #tpu.pipeline_mode<synchronous>, transform_indices = @transform_2, window_bounds = array<i64: 1, 64>}, {transform_indices = @transform_3, window_bounds = array<i64: 128, 64>}]} {
    %c0 = arith.constant 0 : index
    %c0_0 = arith.constant 0 : index
    %0 = vector.load %arg1[%c0, %c0_0] : memref<128x64xf32, #tpu.memory_space<vmem>>, vector<128x64xf32>
    %c0_1 = arith.constant 0 : index
    %c0_2 = arith.constant 0 : index
    %1 = vector.load %arg2[%c0_1, %c0_2] : memref<1x64xf32, #tpu.memory_space<vmem>>, vector<1x64xf32>
    %2 = vector.broadcast %1 : vector<1x64xf32> to vector<128x64xf32>
    %3 = arith.mulf %0, %2 : vector<128x64xf32>
    %c0_3 = arith.constant 0 : index
    %c0_4 = arith.constant 0 : index
    %4 = vector.load %arg3[%c0_3, %c0_4] : memref<1x64xf32, #tpu.memory_space<vmem>>, vector<1x64xf32>
    %5 = vector.broadcast %4 : vector<1x64xf32> to vector<128x64xf32>
    %6 = arith.addf %3, %5 : vector<128x64xf32>
    %cst = arith.constant 0.000000e+00 : f32
    %7 = vector.broadcast %cst : f32 to vector<128x64xf32>
    %8 = arith.maximumf %6, %7 : vector<128x64xf32>
    %c0_5 = arith.constant 0 : index
    %c0_6 = arith.constant 0 : index
    %9 = vector.load %arg4[%c0_5, %c0_6] : memref<128x64xf32, #tpu.memory_space<vmem>>, vector<128x64xf32>
    tpu.vector_store %arg4[%c0_5, %c0_6], %8 {strides = array<i32>} : memref<128x64xf32, #tpu.memory_space<vmem>>, vector<128x64xf32>,
    return
  }
  func.func @transform_0(%arg0: i32) -> (i32, i32) {
    %c0_i32 = arith.constant 0 : i32
    %c0_i32_0 = arith.constant 0 : i32
    return %arg0, %c0_i32 : i32, i32
  }
  func.func @transform_1(%arg0: i32) -> (i32, i32) {
    %c0_i32 = arith.constant 0 : i32
    %c0_i32_0 = arith.constant 0 : i32
    %c0_i32_1 = arith.constant 0 : i32
    return %c0_i32, %c0_i32_0 : i32, i32
  }
  func.func @transform_2(%arg0: i32) -> (i32, i32) {
    %c0_i32 = arith.constant 0 : i32
    %c0_i32_0 = arith.constant 0 : i32
    %c0_i32_1 = arith.constant 0 : i32
    return %c0_i32, %c0_i32_0 : i32, i32
  }
  func.func @transform_3(%arg0: i32) -> (i32, i32) {
    %c0_i32 = arith.constant 0 : i32
    %c0_i32_0 = arith.constant 0 : i32
    return %arg0, %c0_i32 : i32, i32
  }
}

module attributes {stable_mosaic.version = 11 : i64} {
  func.func @kernel(%arg0: i32, %arg1: memref<128x64xf32, #tpu.memory_space<vmem>>, %arg2: memref<1x64xf32, #tpu.memory_space<vmem>>, %arg3: memref<1x64xf32, #tpu.memory_space<vmem>>, %arg4: memref<128x64xf32, #tpu.memory_space<vmem>>, %arg5: memref<128x64xf32, #tpu.memory_space<vmem>>) attributes {dimension_semantics = [#tpu.dimension_semantics<parallel>], iteration_bounds = array<i64: 1>, scalar_prefetch = 0 : i64, scratch_operands = 0 : i64, tpu.core_type = #tpu.core_type<tc>, window_params = [{transform_indices = @transform_0, window_bounds = array<i64: 128, 64>}, {pipeline_mode = #tpu.pipeline_mode<synchronous>, transform_indices = @transform_1, window_bounds = array<i64: 1, 64>}, {pipeline_mode = #tpu.pipeline_mode<synchronous>, transform_indices = @transform_2, window_bounds = array<i64: 1, 64>}, {transform_indices = @transform_3, window_bounds = array<i64: 128, 64>}, {transform_indices = @transform_4, window_bounds = array<i64: 128, 64>}]} {
    %c0 = arith.constant 0 : index
    %c0_0 = arith.constant 0 : index
    %0 = vector.load %arg1[%c0, %c0_0] : memref<128x64xf32, #tpu.memory_space<vmem>>, vector<128x64xf32>
    %c0_1 = arith.constant 0 : index
    %c0_2 = arith.constant 0 : index
    %1 = vector.load %arg2[%c0_1, %c0_2] : memref<1x64xf32, #tpu.memory_space<vmem>>, vector<1x64xf32>
    %2 = vector.broadcast %1 : vector<1x64xf32> to vector<128x64xf32>
    %3 = arith.mulf %0, %2 : vector<128x64xf32>
    %c0_3 = arith.constant 0 : index
    %c0_4 = arith.constant 0 : index
    %4 = vector.load %arg3[%c0_3, %c0_4] : memref<1x64xf32, #tpu.memory_space<vmem>>, vector<1x64xf32>
    %5 = vector.broadcast %4 : vector<1x64xf32> to vector<128x64xf32>
    %6 = arith.addf %3, %5 : vector<128x64xf32>
    %c0_5 = arith.constant 0 : index
    %c0_6 = arith.constant 0 : index
    %7 = vector.load %arg4[%c0_5, %c0_6] : memref<128x64xf32, #tpu.memory_space<vmem>>, vector<128x64xf32>
    %8 = arith.addf %6, %7 : vector<128x64xf32>
    %cst = arith.constant 0.000000e+00 : f32
    %9 = vector.broadcast %cst : f32 to vector<128x64xf32>
    %10 = arith.maximumf %8, %9 : vector<128x64xf32>
    %c0_7 = arith.constant 0 : index
    %c0_8 = arith.constant 0 : index
    %11 = vector.load %arg5[%c0_7, %c0_8] : memref<128x64xf32, #tpu.memory_space<vmem>>, vector<128x64xf32>
    tpu.vector_store %arg5[%c0_7, %c0_8], %10 {strides = array<i32>} : memref<128x64xf32, #tpu.memory_space<vmem>>, vector<128x64xf32>,
    return
  }
  func.func @transform_0(%arg0: i32) -> (i32, i32) {
    %c0_i32 = arith.constant 0 : i32
    %c0_i32_0 = arith.constant 0 : i32
    return %arg0, %c0_i32 : i32, i32
  }
  func.func @transform_1(%arg0: i32) -> (i32, i32) {
    %c0_i32 = arith.constant 0 : i32
    %c0_i32_0 = arith.constant 0 : i32
    %c0_i32_1 = arith.constant 0 : i32
    return %c0_i32, %c0_i32_0 : i32, i32
  }
  func.func @transform_2(%arg0: i32) -> (i32, i32) {
    %c0_i32 = arith.constant 0 : i32
    %c0_i32_0 = arith.constant 0 : i32
    %c0_i32_1 = arith.constant 0 : i32
    return %c0_i32, %c0_i32_0 : i32, i32
  }
  func.func @transform_3(%arg0: i32) -> (i32, i32) {
    %c0_i32 = arith.constant 0 : i32
    %c0_i32_0 = arith.constant 0 : i32
    return %arg0, %c0_i32 : i32, i32
  }
  func.func @transform_4(%arg0: i32) -> (i32, i32) {
    %c0_i32 = arith.constant 0 : i32
    %c0_i32_0 = arith.constant 0 : i32
    return %arg0, %c0_i32 : i32, i32
  }
}

module attributes {stable_mosaic.version = 11 : i64} {
  func.func @_bn_stats_kernel(%arg0: i32, %arg1: memref<32x128xf32, #tpu.memory_space<vmem>>, %arg2: memref<1x128xf32, #tpu.memory_space<vmem>>, %arg3: memref<1x128xf32, #tpu.memory_space<vmem>>) attributes {dimension_semantics = [#tpu.dimension_semantics<arbitrary>], iteration_bounds = array<i64: 1>, scalar_prefetch = 0 : i64, scratch_operands = 0 : i64, tpu.core_type = #tpu.core_type<tc>, window_params = [{transform_indices = @transform_0, window_bounds = array<i64: 32, 128>}, {pipeline_mode = #tpu.pipeline_mode<synchronous>, transform_indices = @transform_1, window_bounds = array<i64: 1, 128>}, {pipeline_mode = #tpu.pipeline_mode<synchronous>, transform_indices = @transform_2, window_bounds = array<i64: 1, 128>}]} {
    %c0_i32 = arith.constant 0 : i32
    %0 = arith.cmpi eq, %arg0, %c0_i32 : i32
    %1 = arith.extui %0 : i1 to i32
    %c0_i32_0 = arith.constant 0 : i32
    %2 = arith.cmpi ne, %1, %c0_i32_0 : i32
    scf.if %2 {
      %cst_11 = arith.constant 0.000000e+00 : f32
      %15 = vector.broadcast %cst_11 : f32 to vector<1x128xf32>
      %c0_12 = arith.constant 0 : index
      %c0_13 = arith.constant 0 : index
      %16 = vector.load %arg2[%c0_12, %c0_13] : memref<1x128xf32, #tpu.memory_space<vmem>>, vector<1x128xf32>
      tpu.vector_store %arg2[%c0_12, %c0_13], %15 {strides = array<i32>} : memref<1x128xf32, #tpu.memory_space<vmem>>, vector<1x128xf32>,
      %cst_14 = arith.constant 0.000000e+00 : f32
      %17 = vector.broadcast %cst_14 : f32 to vector<1x128xf32>
      %c0_15 = arith.constant 0 : index
      %c0_16 = arith.constant 0 : index
      %18 = vector.load %arg3[%c0_15, %c0_16] : memref<1x128xf32, #tpu.memory_space<vmem>>, vector<1x128xf32>
      tpu.vector_store %arg3[%c0_15, %c0_16], %17 {strides = array<i32>} : memref<1x128xf32, #tpu.memory_space<vmem>>, vector<1x128xf32>,
    } else {
    }
    %c0 = arith.constant 0 : index
    %c0_1 = arith.constant 0 : index
    %3 = vector.load %arg1[%c0, %c0_1] : memref<32x128xf32, #tpu.memory_space<vmem>>, vector<32x128xf32>
    %c0_2 = arith.constant 0 : index
    %c0_3 = arith.constant 0 : index
    %4 = vector.load %arg2[%c0_2, %c0_3] : memref<1x128xf32, #tpu.memory_space<vmem>>, vector<1x128xf32>
    %cst = arith.constant dense<0.000000e+00> : vector<128xf32>
    %5 = vector.multi_reduction <add>, %3, %cst [0] : vector<32x128xf32> to vector<128xf32>
    %6 = vector.shape_cast %5 : vector<128xf32> to vector<1x128xf32>
    %7 = arith.addf %4, %6 : vector<1x128xf32>
    %c0_4 = arith.constant 0 : index
    %c0_5 = arith.constant 0 : index
    %8 = vector.load %arg2[%c0_4, %c0_5] : memref<1x128xf32, #tpu.memory_space<vmem>>, vector<1x128xf32>
    tpu.vector_store %arg2[%c0_4, %c0_5], %7 {strides = array<i32>} : memref<1x128xf32, #tpu.memory_space<vmem>>, vector<1x128xf32>,
    %c0_6 = arith.constant 0 : index
    %c0_7 = arith.constant 0 : index
    %9 = vector.load %arg3[%c0_6, %c0_7] : memref<1x128xf32, #tpu.memory_space<vmem>>, vector<1x128xf32>
    %10 = arith.mulf %3, %3 : vector<32x128xf32>
    %cst_8 = arith.constant dense<0.000000e+00> : vector<128xf32>
    %11 = vector.multi_reduction <add>, %10, %cst_8 [0] : vector<32x128xf32> to vector<128xf32>
    %12 = vector.shape_cast %11 : vector<128xf32> to vector<1x128xf32>
    %13 = arith.addf %9, %12 : vector<1x128xf32>
    %c0_9 = arith.constant 0 : index
    %c0_10 = arith.constant 0 : index
    %14 = vector.load %arg3[%c0_9, %c0_10] : memref<1x128xf32, #tpu.memory_space<vmem>>, vector<1x128xf32>
    tpu.vector_store %arg3[%c0_9, %c0_10], %13 {strides = array<i32>} : memref<1x128xf32, #tpu.memory_space<vmem>>, vector<1x128xf32>,
    return
  }
  func.func @transform_0(%arg0: i32) -> (i32, i32) {
    %c0_i32 = arith.constant 0 : i32
    %c0_i32_0 = arith.constant 0 : i32
    return %arg0, %c0_i32 : i32, i32
  }
  func.func @transform_1(%arg0: i32) -> (i32, i32) {
    %c0_i32 = arith.constant 0 : i32
    %c0_i32_0 = arith.constant 0 : i32
    %c0_i32_1 = arith.constant 0 : i32
    return %c0_i32, %c0_i32_0 : i32, i32
  }
  func.func @transform_2(%arg0: i32) -> (i32, i32) {
    %c0_i32 = arith.constant 0 : i32
    %c0_i32_0 = arith.constant 0 : i32
    %c0_i32_1 = arith.constant 0 : i32
    return %c0_i32, %c0_i32_0 : i32, i32
  }
}

module attributes {stable_mosaic.version = 11 : i64} {
  func.func @kernel(%arg0: i32, %arg1: memref<32x128xf32, #tpu.memory_space<vmem>>, %arg2: memref<1x128xf32, #tpu.memory_space<vmem>>, %arg3: memref<1x128xf32, #tpu.memory_space<vmem>>, %arg4: memref<32x128xf32, #tpu.memory_space<vmem>>) attributes {dimension_semantics = [#tpu.dimension_semantics<parallel>], iteration_bounds = array<i64: 1>, scalar_prefetch = 0 : i64, scratch_operands = 0 : i64, tpu.core_type = #tpu.core_type<tc>, window_params = [{transform_indices = @transform_0, window_bounds = array<i64: 32, 128>}, {pipeline_mode = #tpu.pipeline_mode<synchronous>, transform_indices = @transform_1, window_bounds = array<i64: 1, 128>}, {pipeline_mode = #tpu.pipeline_mode<synchronous>, transform_indices = @transform_2, window_bounds = array<i64: 1, 128>}, {transform_indices = @transform_3, window_bounds = array<i64: 32, 128>}]} {
    %c0 = arith.constant 0 : index
    %c0_0 = arith.constant 0 : index
    %0 = vector.load %arg1[%c0, %c0_0] : memref<32x128xf32, #tpu.memory_space<vmem>>, vector<32x128xf32>
    %c0_1 = arith.constant 0 : index
    %c0_2 = arith.constant 0 : index
    %1 = vector.load %arg2[%c0_1, %c0_2] : memref<1x128xf32, #tpu.memory_space<vmem>>, vector<1x128xf32>
    %2 = vector.broadcast %1 : vector<1x128xf32> to vector<32x128xf32>
    %3 = arith.mulf %0, %2 : vector<32x128xf32>
    %c0_3 = arith.constant 0 : index
    %c0_4 = arith.constant 0 : index
    %4 = vector.load %arg3[%c0_3, %c0_4] : memref<1x128xf32, #tpu.memory_space<vmem>>, vector<1x128xf32>
    %5 = vector.broadcast %4 : vector<1x128xf32> to vector<32x128xf32>
    %6 = arith.addf %3, %5 : vector<32x128xf32>
    %c0_5 = arith.constant 0 : index
    %c0_6 = arith.constant 0 : index
    %7 = vector.load %arg4[%c0_5, %c0_6] : memref<32x128xf32, #tpu.memory_space<vmem>>, vector<32x128xf32>
    tpu.vector_store %arg4[%c0_5, %c0_6], %6 {strides = array<i32>} : memref<32x128xf32, #tpu.memory_space<vmem>>, vector<32x128xf32>,
    return
  }
  func.func @transform_0(%arg0: i32) -> (i32, i32) {
    %c0_i32 = arith.constant 0 : i32
    %c0_i32_0 = arith.constant 0 : i32
    return %arg0, %c0_i32 : i32, i32
  }
  func.func @transform_1(%arg0: i32) -> (i32, i32) {
    %c0_i32 = arith.constant 0 : i32
    %c0_i32_0 = arith.constant 0 : i32
    %c0_i32_1 = arith.constant 0 : i32
    return %c0_i32, %c0_i32_0 : i32, i32
  }
  func.func @transform_2(%arg0: i32) -> (i32, i32) {
    %c0_i32 = arith.constant 0 : i32
    %c0_i32_0 = arith.constant 0 : i32
    %c0_i32_1 = arith.constant 0 : i32
    return %c0_i32, %c0_i32_0 : i32, i32
  }
  func.func @transform_3(%arg0: i32) -> (i32, i32) {
    %c0_i32 = arith.constant 0 : i32
    %c0_i32_0 = arith.constant 0 : i32
    return %arg0, %c0_i32 : i32, i32
  }
}

module attributes {stable_mosaic.version = 11 : i64} {
  func.func @_matmul_kernel(%arg0: i32, %arg1: i32, %arg2: i32, %arg3: memref<32x128xbf16, #tpu.memory_space<vmem>>, %arg4: memref<128x128xbf16, #tpu.memory_space<vmem>>, %arg5: memref<32x128xf32, #tpu.memory_space<vmem>>, %arg6: memref<32x128xf32, #tpu.memory_space<vmem>>) attributes {dimension_semantics = [#tpu.dimension_semantics<parallel>, #tpu.dimension_semantics<parallel>, #tpu.dimension_semantics<arbitrary>], iteration_bounds = array<i64: 1, 1, 1>, scalar_prefetch = 0 : i64, scratch_operands = 1 : i64, tpu.core_type = #tpu.core_type<tc>, window_params = [{transform_indices = @transform_0, window_bounds = array<i64: 32, 128>}, {transform_indices = @transform_1, window_bounds = array<i64: 128, 128>}, {transform_indices = @transform_2, window_bounds = array<i64: 32, 128>}]} {
    %c0_i32 = arith.constant 0 : i32
    %0 = arith.cmpi eq, %arg2, %c0_i32 : i32
    %1 = arith.extui %0 : i1 to i32
    %c0_i32_0 = arith.constant 0 : i32
    %2 = arith.cmpi ne, %1, %c0_i32_0 : i32
    scf.if %2 {
      %cst_10 = arith.constant 0.000000e+00 : f32
      %12 = vector.broadcast %cst_10 : f32 to vector<32x128xf32>
      %c0_11 = arith.constant 0 : index
      %c0_12 = arith.constant 0 : index
      %13 = vector.load %arg6[%c0_11, %c0_12] : memref<32x128xf32, #tpu.memory_space<vmem>>, vector<32x128xf32>
      tpu.vector_store %arg6[%c0_11, %c0_12], %12 {strides = array<i32>} : memref<32x128xf32, #tpu.memory_space<vmem>>, vector<32x128xf32>,
    } else {
    }
    %c0 = arith.constant 0 : index
    %c0_1 = arith.constant 0 : index
    %3 = vector.load %arg6[%c0, %c0_1] : memref<32x128xf32, #tpu.memory_space<vmem>>, vector<32x128xf32>
    %c0_2 = arith.constant 0 : index
    %c0_3 = arith.constant 0 : index
    %4 = vector.load %arg3[%c0_2, %c0_3] : memref<32x128xbf16, #tpu.memory_space<vmem>>, vector<32x128xbf16>
    %c0_4 = arith.constant 0 : index
    %c0_5 = arith.constant 0 : index
    %5 = vector.load %arg4[%c0_4, %c0_5] : memref<128x128xbf16, #tpu.memory_space<vmem>>, vector<128x128xbf16>
    %cst = arith.constant dense<0.000000e+00> : vector<32x128xf32>
    %6 = tpu.matmul %4, %5, %cst {dimension_numbers = #tpu.dot_dimension_numbers<[1], [0], [0], [1], [0, 0, 1, 1], [], []>} : vector<32x128xbf16>, vector<128x128xbf16>, vector<32x128xf32> -> vector<32x128xf32>
    %7 = arith.addf %3, %6 : vector<32x128xf32>
    %c0_6 = arith.constant 0 : index
    %c0_7 = arith.constant 0 : index
    %8 = vector.load %arg6[%c0_6, %c0_7] : memref<32x128xf32, #tpu.memory_space<vmem>>, vector<32x128xf32>
    tpu.vector_store %arg6[%c0_6, %c0_7], %7 {strides = array<i32>} : memref<32x128xf32, #tpu.memory_space<vmem>>, vector<32x128xf32>,
    %c0_i32_8 = arith.constant 0 : i32
    %9 = arith.cmpi eq, %arg2, %c0_i32_8 : i32
    %10 = arith.extui %9 : i1 to i32
    %c0_i32_9 = arith.constant 0 : i32
    %11 = arith.cmpi ne, %10, %c0_i32_9 : i32
    scf.if %11 {
      %c0_10 = arith.constant 0 : index
      %c0_11 = arith.constant 0 : index
      %12 = vector.load %arg6[%c0_10, %c0_11] : memref<32x128xf32, #tpu.memory_space<vmem>>, vector<32x128xf32>
      %c0_12 = arith.constant 0 : index
      %c0_13 = arith.constant 0 : index
      %13 = vector.load %arg5[%c0_12, %c0_13] : memref<32x128xf32, #tpu.memory_space<vmem>>, vector<32x128xf32>
      tpu.vector_store %arg5[%c0_12, %c0_13], %12 {strides = array<i32>} : memref<32x128xf32, #tpu.memory_space<vmem>>, vector<32x128xf32>,
    } else {
    }
    return
  }
  func.func @transform_0(%arg0: i32, %arg1: i32, %arg2: i32) -> (i32, i32) {
    %c0_i32 = arith.constant 0 : i32
    return %arg0, %arg2 : i32, i32
  }
  func.func @transform_1(%arg0: i32, %arg1: i32, %arg2: i32) -> (i32, i32) {
    %c0_i32 = arith.constant 0 : i32
    return %arg2, %arg1 : i32, i32
  }
  func.func @transform_2(%arg0: i32, %arg1: i32, %arg2: i32) -> (i32, i32) {
    %c0_i32 = arith.constant 0 : i32
    return %arg0, %arg1 : i32, i32
  }
}

module attributes {stable_mosaic.version = 11 : i64} {
  func.func @_matmul_kernel(%arg0: i32, %arg1: i32, %arg2: i32, %arg3: memref<32x640xbf16, #tpu.memory_space<vmem>>, %arg4: memref<640x128xbf16, #tpu.memory_space<vmem>>, %arg5: memref<32x128xf32, #tpu.memory_space<vmem>>, %arg6: memref<32x128xf32, #tpu.memory_space<vmem>>) attributes {dimension_semantics = [#tpu.dimension_semantics<parallel>, #tpu.dimension_semantics<parallel>, #tpu.dimension_semantics<arbitrary>], iteration_bounds = array<i64: 1, 1, 1>, scalar_prefetch = 0 : i64, scratch_operands = 1 : i64, tpu.core_type = #tpu.core_type<tc>, window_params = [{transform_indices = @transform_0, window_bounds = array<i64: 32, 640>}, {transform_indices = @transform_1, window_bounds = array<i64: 640, 128>}, {transform_indices = @transform_2, window_bounds = array<i64: 32, 128>}]} {
    %c0_i32 = arith.constant 0 : i32
    %0 = arith.cmpi eq, %arg2, %c0_i32 : i32
    %1 = arith.extui %0 : i1 to i32
    %c0_i32_0 = arith.constant 0 : i32
    %2 = arith.cmpi ne, %1, %c0_i32_0 : i32
    scf.if %2 {
      %cst_10 = arith.constant 0.000000e+00 : f32
      %12 = vector.broadcast %cst_10 : f32 to vector<32x128xf32>
      %c0_11 = arith.constant 0 : index
      %c0_12 = arith.constant 0 : index
      %13 = vector.load %arg6[%c0_11, %c0_12] : memref<32x128xf32, #tpu.memory_space<vmem>>, vector<32x128xf32>
      tpu.vector_store %arg6[%c0_11, %c0_12], %12 {strides = array<i32>} : memref<32x128xf32, #tpu.memory_space<vmem>>, vector<32x128xf32>,
    } else {
    }
    %c0 = arith.constant 0 : index
    %c0_1 = arith.constant 0 : index
    %3 = vector.load %arg6[%c0, %c0_1] : memref<32x128xf32, #tpu.memory_space<vmem>>, vector<32x128xf32>
    %c0_2 = arith.constant 0 : index
    %c0_3 = arith.constant 0 : index
    %4 = vector.load %arg3[%c0_2, %c0_3] : memref<32x640xbf16, #tpu.memory_space<vmem>>, vector<32x640xbf16>
    %c0_4 = arith.constant 0 : index
    %c0_5 = arith.constant 0 : index
    %5 = vector.load %arg4[%c0_4, %c0_5] : memref<640x128xbf16, #tpu.memory_space<vmem>>, vector<640x128xbf16>
    %cst = arith.constant dense<0.000000e+00> : vector<32x128xf32>
    %6 = tpu.matmul %4, %5, %cst {dimension_numbers = #tpu.dot_dimension_numbers<[1], [0], [0], [1], [0, 0, 1, 1], [], []>} : vector<32x640xbf16>, vector<640x128xbf16>, vector<32x128xf32> -> vector<32x128xf32>
    %7 = arith.addf %3, %6 : vector<32x128xf32>
    %c0_6 = arith.constant 0 : index
    %c0_7 = arith.constant 0 : index
    %8 = vector.load %arg6[%c0_6, %c0_7] : memref<32x128xf32, #tpu.memory_space<vmem>>, vector<32x128xf32>
    tpu.vector_store %arg6[%c0_6, %c0_7], %7 {strides = array<i32>} : memref<32x128xf32, #tpu.memory_space<vmem>>, vector<32x128xf32>,
    %c0_i32_8 = arith.constant 0 : i32
    %9 = arith.cmpi eq, %arg2, %c0_i32_8 : i32
    %10 = arith.extui %9 : i1 to i32
    %c0_i32_9 = arith.constant 0 : i32
    %11 = arith.cmpi ne, %10, %c0_i32_9 : i32
    scf.if %11 {
      %c0_10 = arith.constant 0 : index
      %c0_11 = arith.constant 0 : index
      %12 = vector.load %arg6[%c0_10, %c0_11] : memref<32x128xf32, #tpu.memory_space<vmem>>, vector<32x128xf32>
      %c0_12 = arith.constant 0 : index
      %c0_13 = arith.constant 0 : index
      %13 = vector.load %arg5[%c0_12, %c0_13] : memref<32x128xf32, #tpu.memory_space<vmem>>, vector<32x128xf32>
      tpu.vector_store %arg5[%c0_12, %c0_13], %12 {strides = array<i32>} : memref<32x128xf32, #tpu.memory_space<vmem>>, vector<32x128xf32>,
    } else {
    }
    return
  }
  func.func @transform_0(%arg0: i32, %arg1: i32, %arg2: i32) -> (i32, i32) {
    %c0_i32 = arith.constant 0 : i32
    return %arg0, %arg2 : i32, i32
  }
  func.func @transform_1(%arg0: i32, %arg1: i32, %arg2: i32) -> (i32, i32) {
    %c0_i32 = arith.constant 0 : i32
    return %arg2, %arg1 : i32, i32
  }
  func.func @transform_2(%arg0: i32, %arg1: i32, %arg2: i32) -> (i32, i32) {
    %c0_i32 = arith.constant 0 : i32
    return %arg0, %arg1 : i32, i32
  }
}

module attributes {stable_mosaic.version = 11 : i64} {
  func.func @kernel(%arg0: i32, %arg1: memref<32x128xf32, #tpu.memory_space<vmem>>, %arg2: memref<1x128xf32, #tpu.memory_space<vmem>>, %arg3: memref<1x128xf32, #tpu.memory_space<vmem>>, %arg4: memref<32x128xf32, #tpu.memory_space<vmem>>) attributes {dimension_semantics = [#tpu.dimension_semantics<parallel>], iteration_bounds = array<i64: 1>, scalar_prefetch = 0 : i64, scratch_operands = 0 : i64, tpu.core_type = #tpu.core_type<tc>, window_params = [{transform_indices = @transform_0, window_bounds = array<i64: 32, 128>}, {pipeline_mode = #tpu.pipeline_mode<synchronous>, transform_indices = @transform_1, window_bounds = array<i64: 1, 128>}, {pipeline_mode = #tpu.pipeline_mode<synchronous>, transform_indices = @transform_2, window_bounds = array<i64: 1, 128>}, {transform_indices = @transform_3, window_bounds = array<i64: 32, 128>}]} {
    %c0 = arith.constant 0 : index
    %c0_0 = arith.constant 0 : index
    %0 = vector.load %arg1[%c0, %c0_0] : memref<32x128xf32, #tpu.memory_space<vmem>>, vector<32x128xf32>
    %c0_1 = arith.constant 0 : index
    %c0_2 = arith.constant 0 : index
    %1 = vector.load %arg2[%c0_1, %c0_2] : memref<1x128xf32, #tpu.memory_space<vmem>>, vector<1x128xf32>
    %2 = vector.broadcast %1 : vector<1x128xf32> to vector<32x128xf32>
    %3 = arith.mulf %0, %2 : vector<32x128xf32>
    %c0_3 = arith.constant 0 : index
    %c0_4 = arith.constant 0 : index
    %4 = vector.load %arg3[%c0_3, %c0_4] : memref<1x128xf32, #tpu.memory_space<vmem>>, vector<1x128xf32>
    %5 = vector.broadcast %4 : vector<1x128xf32> to vector<32x128xf32>
    %6 = arith.addf %3, %5 : vector<32x128xf32>
    %cst = arith.constant 0.000000e+00 : f32
    %7 = vector.broadcast %cst : f32 to vector<32x128xf32>
    %8 = arith.maximumf %6, %7 : vector<32x128xf32>
    %c0_5 = arith.constant 0 : index
    %c0_6 = arith.constant 0 : index
    %9 = vector.load %arg4[%c0_5, %c0_6] : memref<32x128xf32, #tpu.memory_space<vmem>>, vector<32x128xf32>
    tpu.vector_store %arg4[%c0_5, %c0_6], %8 {strides = array<i32>} : memref<32x128xf32, #tpu.memory_space<vmem>>, vector<32x128xf32>,
    return
  }
  func.func @transform_0(%arg0: i32) -> (i32, i32) {
    %c0_i32 = arith.constant 0 : i32
    %c0_i32_0 = arith.constant 0 : i32
    return %arg0, %c0_i32 : i32, i32
  }
  func.func @transform_1(%arg0: i32) -> (i32, i32) {
    %c0_i32 = arith.constant 0 : i32
    %c0_i32_0 = arith.constant 0 : i32
    %c0_i32_1 = arith.constant 0 : i32
    return %c0_i32, %c0_i32_0 : i32, i32
  }
  func.func @transform_2(%arg0: i32) -> (i32, i32) {
    %c0_i32 = arith.constant 0 : i32
    %c0_i32_0 = arith.constant 0 : i32
    %c0_i32_1 = arith.constant 0 : i32
    return %c0_i32, %c0_i32_0 : i32, i32
  }
  func.func @transform_3(%arg0: i32) -> (i32, i32) {
    %c0_i32 = arith.constant 0 : i32
    %c0_i32_0 = arith.constant 0 : i32
    return %arg0, %c0_i32 : i32, i32
  }
}

module attributes {stable_mosaic.version = 11 : i64} {
  func.func @_matmul_kernel(%arg0: i32, %arg1: i32, %arg2: i32, %arg3: memref<32x512xbf16, #tpu.memory_space<vmem>>, %arg4: memref<512x128xbf16, #tpu.memory_space<vmem>>, %arg5: memref<32x128xf32, #tpu.memory_space<vmem>>, %arg6: memref<32x128xf32, #tpu.memory_space<vmem>>) attributes {dimension_semantics = [#tpu.dimension_semantics<parallel>, #tpu.dimension_semantics<parallel>, #tpu.dimension_semantics<arbitrary>], iteration_bounds = array<i64: 1, 1, 3>, scalar_prefetch = 0 : i64, scratch_operands = 1 : i64, tpu.core_type = #tpu.core_type<tc>, window_params = [{transform_indices = @transform_0, window_bounds = array<i64: 32, 512>}, {transform_indices = @transform_1, window_bounds = array<i64: 512, 128>}, {transform_indices = @transform_2, window_bounds = array<i64: 32, 128>}]} {
    %c0_i32 = arith.constant 0 : i32
    %0 = arith.cmpi eq, %arg2, %c0_i32 : i32
    %1 = arith.extui %0 : i1 to i32
    %c0_i32_0 = arith.constant 0 : i32
    %2 = arith.cmpi ne, %1, %c0_i32_0 : i32
    scf.if %2 {
      %cst_9 = arith.constant 0.000000e+00 : f32
      %12 = vector.broadcast %cst_9 : f32 to vector<32x128xf32>
      %c0_10 = arith.constant 0 : index
      %c0_11 = arith.constant 0 : index
      %13 = vector.load %arg6[%c0_10, %c0_11] : memref<32x128xf32, #tpu.memory_space<vmem>>, vector<32x128xf32>
      tpu.vector_store %arg6[%c0_10, %c0_11], %12 {strides = array<i32>} : memref<32x128xf32, #tpu.memory_space<vmem>>, vector<32x128xf32>,
    } else {
    }
    %c0 = arith.constant 0 : index
    %c0_1 = arith.constant 0 : index
    %3 = vector.load %arg6[%c0, %c0_1] : memref<32x128xf32, #tpu.memory_space<vmem>>, vector<32x128xf32>
    %c0_2 = arith.constant 0 : index
    %c0_3 = arith.constant 0 : index
    %4 = vector.load %arg3[%c0_2, %c0_3] : memref<32x512xbf16, #tpu.memory_space<vmem>>, vector<32x512xbf16>
    %c0_4 = arith.constant 0 : index
    %c0_5 = arith.constant 0 : index
    %5 = vector.load %arg4[%c0_4, %c0_5] : memref<512x128xbf16, #tpu.memory_space<vmem>>, vector<512x128xbf16>
    %cst = arith.constant dense<0.000000e+00> : vector<32x128xf32>
    %6 = tpu.matmul %4, %5, %cst {dimension_numbers = #tpu.dot_dimension_numbers<[1], [0], [0], [1], [0, 0, 1, 1], [], []>} : vector<32x512xbf16>, vector<512x128xbf16>, vector<32x128xf32> -> vector<32x128xf32>
    %7 = arith.addf %3, %6 : vector<32x128xf32>
    %c0_6 = arith.constant 0 : index
    %c0_7 = arith.constant 0 : index
    %8 = vector.load %arg6[%c0_6, %c0_7] : memref<32x128xf32, #tpu.memory_space<vmem>>, vector<32x128xf32>
    tpu.vector_store %arg6[%c0_6, %c0_7], %7 {strides = array<i32>} : memref<32x128xf32, #tpu.memory_space<vmem>>, vector<32x128xf32>,
    %c2_i32 = arith.constant 2 : i32
    %9 = arith.cmpi eq, %arg2, %c2_i32 : i32
    %10 = arith.extui %9 : i1 to i32
    %c0_i32_8 = arith.constant 0 : i32
    %11 = arith.cmpi ne, %10, %c0_i32_8 : i32
    scf.if %11 {
      %c0_9 = arith.constant 0 : index
      %c0_10 = arith.constant 0 : index
      %12 = vector.load %arg6[%c0_9, %c0_10] : memref<32x128xf32, #tpu.memory_space<vmem>>, vector<32x128xf32>
      %c0_11 = arith.constant 0 : index
      %c0_12 = arith.constant 0 : index
      %13 = vector.load %arg5[%c0_11, %c0_12] : memref<32x128xf32, #tpu.memory_space<vmem>>, vector<32x128xf32>
      tpu.vector_store %arg5[%c0_11, %c0_12], %12 {strides = array<i32>} : memref<32x128xf32, #tpu.memory_space<vmem>>, vector<32x128xf32>,
    } else {
    }
    return
  }
  func.func @transform_0(%arg0: i32, %arg1: i32, %arg2: i32) -> (i32, i32) {
    %c0_i32 = arith.constant 0 : i32
    return %arg0, %arg2 : i32, i32
  }
  func.func @transform_1(%arg0: i32, %arg1: i32, %arg2: i32) -> (i32, i32) {
    %c0_i32 = arith.constant 0 : i32
    return %arg2, %arg1 : i32, i32
  }
  func.func @transform_2(%arg0: i32, %arg1: i32, %arg2: i32) -> (i32, i32) {
    %c0_i32 = arith.constant 0 : i32
    return %arg0, %arg1 : i32, i32
  }
}

module attributes {stable_mosaic.version = 11 : i64} {
  func.func @_matmul_kernel(%arg0: i32, %arg1: i32, %arg2: i32, %arg3: memref<8x128xbf16, #tpu.memory_space<vmem>>, %arg4: memref<128x256xbf16, #tpu.memory_space<vmem>>, %arg5: memref<8x256xf32, #tpu.memory_space<vmem>>, %arg6: memref<8x256xf32, #tpu.memory_space<vmem>>) attributes {dimension_semantics = [#tpu.dimension_semantics<parallel>, #tpu.dimension_semantics<parallel>, #tpu.dimension_semantics<arbitrary>], iteration_bounds = array<i64: 1, 1, 1>, scalar_prefetch = 0 : i64, scratch_operands = 1 : i64, tpu.core_type = #tpu.core_type<tc>, window_params = [{transform_indices = @transform_0, window_bounds = array<i64: 8, 128>}, {transform_indices = @transform_1, window_bounds = array<i64: 128, 256>}, {transform_indices = @transform_2, window_bounds = array<i64: 8, 256>}]} {
    %c0_i32 = arith.constant 0 : i32
    %0 = arith.cmpi eq, %arg2, %c0_i32 : i32
    %1 = arith.extui %0 : i1 to i32
    %c0_i32_0 = arith.constant 0 : i32
    %2 = arith.cmpi ne, %1, %c0_i32_0 : i32
    scf.if %2 {
      %cst_10 = arith.constant 0.000000e+00 : f32
      %12 = vector.broadcast %cst_10 : f32 to vector<8x256xf32>
      %c0_11 = arith.constant 0 : index
      %c0_12 = arith.constant 0 : index
      %13 = vector.load %arg6[%c0_11, %c0_12] : memref<8x256xf32, #tpu.memory_space<vmem>>, vector<8x256xf32>
      tpu.vector_store %arg6[%c0_11, %c0_12], %12 {strides = array<i32>} : memref<8x256xf32, #tpu.memory_space<vmem>>, vector<8x256xf32>,
    } else {
    }
    %c0 = arith.constant 0 : index
    %c0_1 = arith.constant 0 : index
    %3 = vector.load %arg6[%c0, %c0_1] : memref<8x256xf32, #tpu.memory_space<vmem>>, vector<8x256xf32>
    %c0_2 = arith.constant 0 : index
    %c0_3 = arith.constant 0 : index
    %4 = vector.load %arg3[%c0_2, %c0_3] : memref<8x128xbf16, #tpu.memory_space<vmem>>, vector<8x128xbf16>
    %c0_4 = arith.constant 0 : index
    %c0_5 = arith.constant 0 : index
    %5 = vector.load %arg4[%c0_4, %c0_5] : memref<128x256xbf16, #tpu.memory_space<vmem>>, vector<128x256xbf16>
    %cst = arith.constant dense<0.000000e+00> : vector<8x256xf32>
    %6 = tpu.matmul %4, %5, %cst {dimension_numbers = #tpu.dot_dimension_numbers<[1], [0], [0], [1], [0, 0, 1, 1], [], []>} : vector<8x128xbf16>, vector<128x256xbf16>, vector<8x256xf32> -> vector<8x256xf32>
    %7 = arith.addf %3, %6 : vector<8x256xf32>
    %c0_6 = arith.constant 0 : index
    %c0_7 = arith.constant 0 : index
    %8 = vector.load %arg6[%c0_6, %c0_7] : memref<8x256xf32, #tpu.memory_space<vmem>>, vector<8x256xf32>
    tpu.vector_store %arg6[%c0_6, %c0_7], %7 {strides = array<i32>} : memref<8x256xf32, #tpu.memory_space<vmem>>, vector<8x256xf32>,
    %c0_i32_8 = arith.constant 0 : i32
    %9 = arith.cmpi eq, %arg2, %c0_i32_8 : i32
    %10 = arith.extui %9 : i1 to i32
    %c0_i32_9 = arith.constant 0 : i32
    %11 = arith.cmpi ne, %10, %c0_i32_9 : i32
    scf.if %11 {
      %c0_10 = arith.constant 0 : index
      %c0_11 = arith.constant 0 : index
      %12 = vector.load %arg6[%c0_10, %c0_11] : memref<8x256xf32, #tpu.memory_space<vmem>>, vector<8x256xf32>
      %c0_12 = arith.constant 0 : index
      %c0_13 = arith.constant 0 : index
      %13 = vector.load %arg5[%c0_12, %c0_13] : memref<8x256xf32, #tpu.memory_space<vmem>>, vector<8x256xf32>
      tpu.vector_store %arg5[%c0_12, %c0_13], %12 {strides = array<i32>} : memref<8x256xf32, #tpu.memory_space<vmem>>, vector<8x256xf32>,
    } else {
    }
    return
  }
  func.func @transform_0(%arg0: i32, %arg1: i32, %arg2: i32) -> (i32, i32) {
    %c0_i32 = arith.constant 0 : i32
    return %arg0, %arg2 : i32, i32
  }
  func.func @transform_1(%arg0: i32, %arg1: i32, %arg2: i32) -> (i32, i32) {
    %c0_i32 = arith.constant 0 : i32
    return %arg2, %arg1 : i32, i32
  }
  func.func @transform_2(%arg0: i32, %arg1: i32, %arg2: i32) -> (i32, i32) {
    %c0_i32 = arith.constant 0 : i32
    return %arg0, %arg1 : i32, i32
  }
}

module attributes {stable_mosaic.version = 11 : i64} {
  func.func @kernel(%arg0: i32, %arg1: memref<32x128xf32, #tpu.memory_space<vmem>>, %arg2: memref<1x128xf32, #tpu.memory_space<vmem>>, %arg3: memref<1x128xf32, #tpu.memory_space<vmem>>, %arg4: memref<32x128xf32, #tpu.memory_space<vmem>>, %arg5: memref<32x128xf32, #tpu.memory_space<vmem>>) attributes {dimension_semantics = [#tpu.dimension_semantics<parallel>], iteration_bounds = array<i64: 1>, scalar_prefetch = 0 : i64, scratch_operands = 0 : i64, tpu.core_type = #tpu.core_type<tc>, window_params = [{transform_indices = @transform_0, window_bounds = array<i64: 32, 128>}, {pipeline_mode = #tpu.pipeline_mode<synchronous>, transform_indices = @transform_1, window_bounds = array<i64: 1, 128>}, {pipeline_mode = #tpu.pipeline_mode<synchronous>, transform_indices = @transform_2, window_bounds = array<i64: 1, 128>}, {transform_indices = @transform_3, window_bounds = array<i64: 32, 128>}, {transform_indices = @transform_4, window_bounds = array<i64: 32, 128>}]} {
    %c0 = arith.constant 0 : index
    %c0_0 = arith.constant 0 : index
    %0 = vector.load %arg1[%c0, %c0_0] : memref<32x128xf32, #tpu.memory_space<vmem>>, vector<32x128xf32>
    %c0_1 = arith.constant 0 : index
    %c0_2 = arith.constant 0 : index
    %1 = vector.load %arg2[%c0_1, %c0_2] : memref<1x128xf32, #tpu.memory_space<vmem>>, vector<1x128xf32>
    %2 = vector.broadcast %1 : vector<1x128xf32> to vector<32x128xf32>
    %3 = arith.mulf %0, %2 : vector<32x128xf32>
    %c0_3 = arith.constant 0 : index
    %c0_4 = arith.constant 0 : index
    %4 = vector.load %arg3[%c0_3, %c0_4] : memref<1x128xf32, #tpu.memory_space<vmem>>, vector<1x128xf32>
    %5 = vector.broadcast %4 : vector<1x128xf32> to vector<32x128xf32>
    %6 = arith.addf %3, %5 : vector<32x128xf32>
    %c0_5 = arith.constant 0 : index
    %c0_6 = arith.constant 0 : index
    %7 = vector.load %arg4[%c0_5, %c0_6] : memref<32x128xf32, #tpu.memory_space<vmem>>, vector<32x128xf32>
    %8 = arith.addf %6, %7 : vector<32x128xf32>
    %cst = arith.constant 0.000000e+00 : f32
    %9 = vector.broadcast %cst : f32 to vector<32x128xf32>
    %10 = arith.maximumf %8, %9 : vector<32x128xf32>
    %c0_7 = arith.constant 0 : index
    %c0_8 = arith.constant 0 : index
    %11 = vector.load %arg5[%c0_7, %c0_8] : memref<32x128xf32, #tpu.memory_space<vmem>>, vector<32x128xf32>
    tpu.vector_store %arg5[%c0_7, %c0_8], %10 {strides = array<i32>} : memref<32x128xf32, #tpu.memory_space<vmem>>, vector<32x128xf32>,
    return
  }
  func.func @transform_0(%arg0: i32) -> (i32, i32) {
    %c0_i32 = arith.constant 0 : i32
    %c0_i32_0 = arith.constant 0 : i32
    return %arg0, %c0_i32 : i32, i32
  }
  func.func @transform_1(%arg0: i32) -> (i32, i32) {
    %c0_i32 = arith.constant 0 : i32
    %c0_i32_0 = arith.constant 0 : i32
    %c0_i32_1 = arith.constant 0 : i32
    return %c0_i32, %c0_i32_0 : i32, i32
  }
  func.func @transform_2(%arg0: i32) -> (i32, i32) {
    %c0_i32 = arith.constant 0 : i32
    %c0_i32_0 = arith.constant 0 : i32
    %c0_i32_1 = arith.constant 0 : i32
    return %c0_i32, %c0_i32_0 : i32, i32
  }
  func.func @transform_3(%arg0: i32) -> (i32, i32) {
    %c0_i32 = arith.constant 0 : i32
    %c0_i32_0 = arith.constant 0 : i32
    return %arg0, %c0_i32 : i32, i32
  }
  func.func @transform_4(%arg0: i32) -> (i32, i32) {
    %c0_i32 = arith.constant 0 : i32
    %c0_i32_0 = arith.constant 0 : i32
    return %arg0, %c0_i32 : i32, i32
  }
}

module attributes {stable_mosaic.version = 11 : i64} {
  func.func @_bn_stats_kernel(%arg0: i32, %arg1: memref<8x256xf32, #tpu.memory_space<vmem>>, %arg2: memref<1x256xf32, #tpu.memory_space<vmem>>, %arg3: memref<1x256xf32, #tpu.memory_space<vmem>>) attributes {dimension_semantics = [#tpu.dimension_semantics<arbitrary>], iteration_bounds = array<i64: 1>, scalar_prefetch = 0 : i64, scratch_operands = 0 : i64, tpu.core_type = #tpu.core_type<tc>, window_params = [{transform_indices = @transform_0, window_bounds = array<i64: 8, 256>}, {pipeline_mode = #tpu.pipeline_mode<synchronous>, transform_indices = @transform_1, window_bounds = array<i64: 1, 256>}, {pipeline_mode = #tpu.pipeline_mode<synchronous>, transform_indices = @transform_2, window_bounds = array<i64: 1, 256>}]} {
    %c0_i32 = arith.constant 0 : i32
    %0 = arith.cmpi eq, %arg0, %c0_i32 : i32
    %1 = arith.extui %0 : i1 to i32
    %c0_i32_0 = arith.constant 0 : i32
    %2 = arith.cmpi ne, %1, %c0_i32_0 : i32
    scf.if %2 {
      %cst_11 = arith.constant 0.000000e+00 : f32
      %15 = vector.broadcast %cst_11 : f32 to vector<1x256xf32>
      %c0_12 = arith.constant 0 : index
      %c0_13 = arith.constant 0 : index
      %16 = vector.load %arg2[%c0_12, %c0_13] : memref<1x256xf32, #tpu.memory_space<vmem>>, vector<1x256xf32>
      tpu.vector_store %arg2[%c0_12, %c0_13], %15 {strides = array<i32>} : memref<1x256xf32, #tpu.memory_space<vmem>>, vector<1x256xf32>,
      %cst_14 = arith.constant 0.000000e+00 : f32
      %17 = vector.broadcast %cst_14 : f32 to vector<1x256xf32>
      %c0_15 = arith.constant 0 : index
      %c0_16 = arith.constant 0 : index
      %18 = vector.load %arg3[%c0_15, %c0_16] : memref<1x256xf32, #tpu.memory_space<vmem>>, vector<1x256xf32>
      tpu.vector_store %arg3[%c0_15, %c0_16], %17 {strides = array<i32>} : memref<1x256xf32, #tpu.memory_space<vmem>>, vector<1x256xf32>,
    } else {
    }
    %c0 = arith.constant 0 : index
    %c0_1 = arith.constant 0 : index
    %3 = vector.load %arg1[%c0, %c0_1] : memref<8x256xf32, #tpu.memory_space<vmem>>, vector<8x256xf32>
    %c0_2 = arith.constant 0 : index
    %c0_3 = arith.constant 0 : index
    %4 = vector.load %arg2[%c0_2, %c0_3] : memref<1x256xf32, #tpu.memory_space<vmem>>, vector<1x256xf32>
    %cst = arith.constant dense<0.000000e+00> : vector<256xf32>
    %5 = vector.multi_reduction <add>, %3, %cst [0] : vector<8x256xf32> to vector<256xf32>
    %6 = vector.shape_cast %5 : vector<256xf32> to vector<1x256xf32>
    %7 = arith.addf %4, %6 : vector<1x256xf32>
    %c0_4 = arith.constant 0 : index
    %c0_5 = arith.constant 0 : index
    %8 = vector.load %arg2[%c0_4, %c0_5] : memref<1x256xf32, #tpu.memory_space<vmem>>, vector<1x256xf32>
    tpu.vector_store %arg2[%c0_4, %c0_5], %7 {strides = array<i32>} : memref<1x256xf32, #tpu.memory_space<vmem>>, vector<1x256xf32>,
    %c0_6 = arith.constant 0 : index
    %c0_7 = arith.constant 0 : index
    %9 = vector.load %arg3[%c0_6, %c0_7] : memref<1x256xf32, #tpu.memory_space<vmem>>, vector<1x256xf32>
    %10 = arith.mulf %3, %3 : vector<8x256xf32>
    %cst_8 = arith.constant dense<0.000000e+00> : vector<256xf32>
    %11 = vector.multi_reduction <add>, %10, %cst_8 [0] : vector<8x256xf32> to vector<256xf32>
    %12 = vector.shape_cast %11 : vector<256xf32> to vector<1x256xf32>
    %13 = arith.addf %9, %12 : vector<1x256xf32>
    %c0_9 = arith.constant 0 : index
    %c0_10 = arith.constant 0 : index
    %14 = vector.load %arg3[%c0_9, %c0_10] : memref<1x256xf32, #tpu.memory_space<vmem>>, vector<1x256xf32>
    tpu.vector_store %arg3[%c0_9, %c0_10], %13 {strides = array<i32>} : memref<1x256xf32, #tpu.memory_space<vmem>>, vector<1x256xf32>,
    return
  }
  func.func @transform_0(%arg0: i32) -> (i32, i32) {
    %c0_i32 = arith.constant 0 : i32
    %c0_i32_0 = arith.constant 0 : i32
    return %arg0, %c0_i32 : i32, i32
  }
  func.func @transform_1(%arg0: i32) -> (i32, i32) {
    %c0_i32 = arith.constant 0 : i32
    %c0_i32_0 = arith.constant 0 : i32
    %c0_i32_1 = arith.constant 0 : i32
    return %c0_i32, %c0_i32_0 : i32, i32
  }
  func.func @transform_2(%arg0: i32) -> (i32, i32) {
    %c0_i32 = arith.constant 0 : i32
    %c0_i32_0 = arith.constant 0 : i32
    %c0_i32_1 = arith.constant 0 : i32
    return %c0_i32, %c0_i32_0 : i32, i32
  }
}

module attributes {stable_mosaic.version = 11 : i64} {
  func.func @kernel(%arg0: i32, %arg1: memref<8x256xf32, #tpu.memory_space<vmem>>, %arg2: memref<1x256xf32, #tpu.memory_space<vmem>>, %arg3: memref<1x256xf32, #tpu.memory_space<vmem>>, %arg4: memref<8x256xf32, #tpu.memory_space<vmem>>) attributes {dimension_semantics = [#tpu.dimension_semantics<parallel>], iteration_bounds = array<i64: 1>, scalar_prefetch = 0 : i64, scratch_operands = 0 : i64, tpu.core_type = #tpu.core_type<tc>, window_params = [{transform_indices = @transform_0, window_bounds = array<i64: 8, 256>}, {pipeline_mode = #tpu.pipeline_mode<synchronous>, transform_indices = @transform_1, window_bounds = array<i64: 1, 256>}, {pipeline_mode = #tpu.pipeline_mode<synchronous>, transform_indices = @transform_2, window_bounds = array<i64: 1, 256>}, {transform_indices = @transform_3, window_bounds = array<i64: 8, 256>}]} {
    %c0 = arith.constant 0 : index
    %c0_0 = arith.constant 0 : index
    %0 = vector.load %arg1[%c0, %c0_0] : memref<8x256xf32, #tpu.memory_space<vmem>>, vector<8x256xf32>
    %c0_1 = arith.constant 0 : index
    %c0_2 = arith.constant 0 : index
    %1 = vector.load %arg2[%c0_1, %c0_2] : memref<1x256xf32, #tpu.memory_space<vmem>>, vector<1x256xf32>
    %2 = vector.broadcast %1 : vector<1x256xf32> to vector<8x256xf32>
    %3 = arith.mulf %0, %2 : vector<8x256xf32>
    %c0_3 = arith.constant 0 : index
    %c0_4 = arith.constant 0 : index
    %4 = vector.load %arg3[%c0_3, %c0_4] : memref<1x256xf32, #tpu.memory_space<vmem>>, vector<1x256xf32>
    %5 = vector.broadcast %4 : vector<1x256xf32> to vector<8x256xf32>
    %6 = arith.addf %3, %5 : vector<8x256xf32>
    %c0_5 = arith.constant 0 : index
    %c0_6 = arith.constant 0 : index
    %7 = vector.load %arg4[%c0_5, %c0_6] : memref<8x256xf32, #tpu.memory_space<vmem>>, vector<8x256xf32>
    tpu.vector_store %arg4[%c0_5, %c0_6], %6 {strides = array<i32>} : memref<8x256xf32, #tpu.memory_space<vmem>>, vector<8x256xf32>,
    return
  }
  func.func @transform_0(%arg0: i32) -> (i32, i32) {
    %c0_i32 = arith.constant 0 : i32
    %c0_i32_0 = arith.constant 0 : i32
    return %arg0, %c0_i32 : i32, i32
  }
  func.func @transform_1(%arg0: i32) -> (i32, i32) {
    %c0_i32 = arith.constant 0 : i32
    %c0_i32_0 = arith.constant 0 : i32
    %c0_i32_1 = arith.constant 0 : i32
    return %c0_i32, %c0_i32_0 : i32, i32
  }
  func.func @transform_2(%arg0: i32) -> (i32, i32) {
    %c0_i32 = arith.constant 0 : i32
    %c0_i32_0 = arith.constant 0 : i32
    %c0_i32_1 = arith.constant 0 : i32
    return %c0_i32, %c0_i32_0 : i32, i32
  }
  func.func @transform_3(%arg0: i32) -> (i32, i32) {
    %c0_i32 = arith.constant 0 : i32
    %c0_i32_0 = arith.constant 0 : i32
    return %arg0, %c0_i32 : i32, i32
  }
}

module attributes {stable_mosaic.version = 11 : i64} {
  func.func @kernel(%arg0: i32, %arg1: memref<8x256xf32, #tpu.memory_space<vmem>>, %arg2: memref<1x256xf32, #tpu.memory_space<vmem>>, %arg3: memref<1x256xf32, #tpu.memory_space<vmem>>, %arg4: memref<8x256xf32, #tpu.memory_space<vmem>>) attributes {dimension_semantics = [#tpu.dimension_semantics<parallel>], iteration_bounds = array<i64: 1>, scalar_prefetch = 0 : i64, scratch_operands = 0 : i64, tpu.core_type = #tpu.core_type<tc>, window_params = [{transform_indices = @transform_0, window_bounds = array<i64: 8, 256>}, {pipeline_mode = #tpu.pipeline_mode<synchronous>, transform_indices = @transform_1, window_bounds = array<i64: 1, 256>}, {pipeline_mode = #tpu.pipeline_mode<synchronous>, transform_indices = @transform_2, window_bounds = array<i64: 1, 256>}, {transform_indices = @transform_3, window_bounds = array<i64: 8, 256>}]} {
    %c0 = arith.constant 0 : index
    %c0_0 = arith.constant 0 : index
    %0 = vector.load %arg1[%c0, %c0_0] : memref<8x256xf32, #tpu.memory_space<vmem>>, vector<8x256xf32>
    %c0_1 = arith.constant 0 : index
    %c0_2 = arith.constant 0 : index
    %1 = vector.load %arg2[%c0_1, %c0_2] : memref<1x256xf32, #tpu.memory_space<vmem>>, vector<1x256xf32>
    %2 = vector.broadcast %1 : vector<1x256xf32> to vector<8x256xf32>
    %3 = arith.mulf %0, %2 : vector<8x256xf32>
    %c0_3 = arith.constant 0 : index
    %c0_4 = arith.constant 0 : index
    %4 = vector.load %arg3[%c0_3, %c0_4] : memref<1x256xf32, #tpu.memory_space<vmem>>, vector<1x256xf32>
    %5 = vector.broadcast %4 : vector<1x256xf32> to vector<8x256xf32>
    %6 = arith.addf %3, %5 : vector<8x256xf32>
    %cst = arith.constant 0.000000e+00 : f32
    %7 = vector.broadcast %cst : f32 to vector<8x256xf32>
    %8 = arith.maximumf %6, %7 : vector<8x256xf32>
    %c0_5 = arith.constant 0 : index
    %c0_6 = arith.constant 0 : index
    %9 = vector.load %arg4[%c0_5, %c0_6] : memref<8x256xf32, #tpu.memory_space<vmem>>, vector<8x256xf32>
    tpu.vector_store %arg4[%c0_5, %c0_6], %8 {strides = array<i32>} : memref<8x256xf32, #tpu.memory_space<vmem>>, vector<8x256xf32>,
    return
  }
  func.func @transform_0(%arg0: i32) -> (i32, i32) {
    %c0_i32 = arith.constant 0 : i32
    %c0_i32_0 = arith.constant 0 : i32
    return %arg0, %c0_i32 : i32, i32
  }
  func.func @transform_1(%arg0: i32) -> (i32, i32) {
    %c0_i32 = arith.constant 0 : i32
    %c0_i32_0 = arith.constant 0 : i32
    %c0_i32_1 = arith.constant 0 : i32
    return %c0_i32, %c0_i32_0 : i32, i32
  }
  func.func @transform_2(%arg0: i32) -> (i32, i32) {
    %c0_i32 = arith.constant 0 : i32
    %c0_i32_0 = arith.constant 0 : i32
    %c0_i32_1 = arith.constant 0 : i32
    return %c0_i32, %c0_i32_0 : i32, i32
  }
  func.func @transform_3(%arg0: i32) -> (i32, i32) {
    %c0_i32 = arith.constant 0 : i32
    %c0_i32_0 = arith.constant 0 : i32
    return %arg0, %c0_i32 : i32, i32
  }
}

module attributes {stable_mosaic.version = 11 : i64} {
  func.func @_matmul_kernel(%arg0: i32, %arg1: i32, %arg2: i32, %arg3: memref<8x512xbf16, #tpu.memory_space<vmem>>, %arg4: memref<512x256xbf16, #tpu.memory_space<vmem>>, %arg5: memref<8x256xf32, #tpu.memory_space<vmem>>, %arg6: memref<8x256xf32, #tpu.memory_space<vmem>>) attributes {dimension_semantics = [#tpu.dimension_semantics<parallel>, #tpu.dimension_semantics<parallel>, #tpu.dimension_semantics<arbitrary>], iteration_bounds = array<i64: 1, 1, 3>, scalar_prefetch = 0 : i64, scratch_operands = 1 : i64, tpu.core_type = #tpu.core_type<tc>, window_params = [{transform_indices = @transform_0, window_bounds = array<i64: 8, 512>}, {transform_indices = @transform_1, window_bounds = array<i64: 512, 256>}, {transform_indices = @transform_2, window_bounds = array<i64: 8, 256>}]} {
    %c0_i32 = arith.constant 0 : i32
    %0 = arith.cmpi eq, %arg2, %c0_i32 : i32
    %1 = arith.extui %0 : i1 to i32
    %c0_i32_0 = arith.constant 0 : i32
    %2 = arith.cmpi ne, %1, %c0_i32_0 : i32
    scf.if %2 {
      %cst_9 = arith.constant 0.000000e+00 : f32
      %12 = vector.broadcast %cst_9 : f32 to vector<8x256xf32>
      %c0_10 = arith.constant 0 : index
      %c0_11 = arith.constant 0 : index
      %13 = vector.load %arg6[%c0_10, %c0_11] : memref<8x256xf32, #tpu.memory_space<vmem>>, vector<8x256xf32>
      tpu.vector_store %arg6[%c0_10, %c0_11], %12 {strides = array<i32>} : memref<8x256xf32, #tpu.memory_space<vmem>>, vector<8x256xf32>,
    } else {
    }
    %c0 = arith.constant 0 : index
    %c0_1 = arith.constant 0 : index
    %3 = vector.load %arg6[%c0, %c0_1] : memref<8x256xf32, #tpu.memory_space<vmem>>, vector<8x256xf32>
    %c0_2 = arith.constant 0 : index
    %c0_3 = arith.constant 0 : index
    %4 = vector.load %arg3[%c0_2, %c0_3] : memref<8x512xbf16, #tpu.memory_space<vmem>>, vector<8x512xbf16>
    %c0_4 = arith.constant 0 : index
    %c0_5 = arith.constant 0 : index
    %5 = vector.load %arg4[%c0_4, %c0_5] : memref<512x256xbf16, #tpu.memory_space<vmem>>, vector<512x256xbf16>
    %cst = arith.constant dense<0.000000e+00> : vector<8x256xf32>
    %6 = tpu.matmul %4, %5, %cst {dimension_numbers = #tpu.dot_dimension_numbers<[1], [0], [0], [1], [0, 0, 1, 1], [], []>} : vector<8x512xbf16>, vector<512x256xbf16>, vector<8x256xf32> -> vector<8x256xf32>
    %7 = arith.addf %3, %6 : vector<8x256xf32>
    %c0_6 = arith.constant 0 : index
    %c0_7 = arith.constant 0 : index
    %8 = vector.load %arg6[%c0_6, %c0_7] : memref<8x256xf32, #tpu.memory_space<vmem>>, vector<8x256xf32>
    tpu.vector_store %arg6[%c0_6, %c0_7], %7 {strides = array<i32>} : memref<8x256xf32, #tpu.memory_space<vmem>>, vector<8x256xf32>,
    %c2_i32 = arith.constant 2 : i32
    %9 = arith.cmpi eq, %arg2, %c2_i32 : i32
    %10 = arith.extui %9 : i1 to i32
    %c0_i32_8 = arith.constant 0 : i32
    %11 = arith.cmpi ne, %10, %c0_i32_8 : i32
    scf.if %11 {
      %c0_9 = arith.constant 0 : index
      %c0_10 = arith.constant 0 : index
      %12 = vector.load %arg6[%c0_9, %c0_10] : memref<8x256xf32, #tpu.memory_space<vmem>>, vector<8x256xf32>
      %c0_11 = arith.constant 0 : index
      %c0_12 = arith.constant 0 : index
      %13 = vector.load %arg5[%c0_11, %c0_12] : memref<8x256xf32, #tpu.memory_space<vmem>>, vector<8x256xf32>
      tpu.vector_store %arg5[%c0_11, %c0_12], %12 {strides = array<i32>} : memref<8x256xf32, #tpu.memory_space<vmem>>, vector<8x256xf32>,
    } else {
    }
    return
  }
  func.func @transform_0(%arg0: i32, %arg1: i32, %arg2: i32) -> (i32, i32) {
    %c0_i32 = arith.constant 0 : i32
    return %arg0, %arg2 : i32, i32
  }
  func.func @transform_1(%arg0: i32, %arg1: i32, %arg2: i32) -> (i32, i32) {
    %c0_i32 = arith.constant 0 : i32
    return %arg2, %arg1 : i32, i32
  }
  func.func @transform_2(%arg0: i32, %arg1: i32, %arg2: i32) -> (i32, i32) {
    %c0_i32 = arith.constant 0 : i32
    return %arg0, %arg1 : i32, i32
  }
}

module attributes {stable_mosaic.version = 11 : i64} {
  func.func @_matmul_kernel(%arg0: i32, %arg1: i32, %arg2: i32, %arg3: memref<8x512xbf16, #tpu.memory_space<vmem>>, %arg4: memref<512x256xbf16, #tpu.memory_space<vmem>>, %arg5: memref<8x256xf32, #tpu.memory_space<vmem>>, %arg6: memref<8x256xf32, #tpu.memory_space<vmem>>) attributes {dimension_semantics = [#tpu.dimension_semantics<parallel>, #tpu.dimension_semantics<parallel>, #tpu.dimension_semantics<arbitrary>], iteration_bounds = array<i64: 1, 1, 5>, scalar_prefetch = 0 : i64, scratch_operands = 1 : i64, tpu.core_type = #tpu.core_type<tc>, window_params = [{transform_indices = @transform_0, window_bounds = array<i64: 8, 512>}, {transform_indices = @transform_1, window_bounds = array<i64: 512, 256>}, {transform_indices = @transform_2, window_bounds = array<i64: 8, 256>}]} {
    %c0_i32 = arith.constant 0 : i32
    %0 = arith.cmpi eq, %arg2, %c0_i32 : i32
    %1 = arith.extui %0 : i1 to i32
    %c0_i32_0 = arith.constant 0 : i32
    %2 = arith.cmpi ne, %1, %c0_i32_0 : i32
    scf.if %2 {
      %cst_9 = arith.constant 0.000000e+00 : f32
      %12 = vector.broadcast %cst_9 : f32 to vector<8x256xf32>
      %c0_10 = arith.constant 0 : index
      %c0_11 = arith.constant 0 : index
      %13 = vector.load %arg6[%c0_10, %c0_11] : memref<8x256xf32, #tpu.memory_space<vmem>>, vector<8x256xf32>
      tpu.vector_store %arg6[%c0_10, %c0_11], %12 {strides = array<i32>} : memref<8x256xf32, #tpu.memory_space<vmem>>, vector<8x256xf32>,
    } else {
    }
    %c0 = arith.constant 0 : index
    %c0_1 = arith.constant 0 : index
    %3 = vector.load %arg6[%c0, %c0_1] : memref<8x256xf32, #tpu.memory_space<vmem>>, vector<8x256xf32>
    %c0_2 = arith.constant 0 : index
    %c0_3 = arith.constant 0 : index
    %4 = vector.load %arg3[%c0_2, %c0_3] : memref<8x512xbf16, #tpu.memory_space<vmem>>, vector<8x512xbf16>
    %c0_4 = arith.constant 0 : index
    %c0_5 = arith.constant 0 : index
    %5 = vector.load %arg4[%c0_4, %c0_5] : memref<512x256xbf16, #tpu.memory_space<vmem>>, vector<512x256xbf16>
    %cst = arith.constant dense<0.000000e+00> : vector<8x256xf32>
    %6 = tpu.matmul %4, %5, %cst {dimension_numbers = #tpu.dot_dimension_numbers<[1], [0], [0], [1], [0, 0, 1, 1], [], []>} : vector<8x512xbf16>, vector<512x256xbf16>, vector<8x256xf32> -> vector<8x256xf32>
    %7 = arith.addf %3, %6 : vector<8x256xf32>
    %c0_6 = arith.constant 0 : index
    %c0_7 = arith.constant 0 : index
    %8 = vector.load %arg6[%c0_6, %c0_7] : memref<8x256xf32, #tpu.memory_space<vmem>>, vector<8x256xf32>
    tpu.vector_store %arg6[%c0_6, %c0_7], %7 {strides = array<i32>} : memref<8x256xf32, #tpu.memory_space<vmem>>, vector<8x256xf32>,
    %c4_i32 = arith.constant 4 : i32
    %9 = arith.cmpi eq, %arg2, %c4_i32 : i32
    %10 = arith.extui %9 : i1 to i32
    %c0_i32_8 = arith.constant 0 : i32
    %11 = arith.cmpi ne, %10, %c0_i32_8 : i32
    scf.if %11 {
      %c0_9 = arith.constant 0 : index
      %c0_10 = arith.constant 0 : index
      %12 = vector.load %arg6[%c0_9, %c0_10] : memref<8x256xf32, #tpu.memory_space<vmem>>, vector<8x256xf32>
      %c0_11 = arith.constant 0 : index
      %c0_12 = arith.constant 0 : index
      %13 = vector.load %arg5[%c0_11, %c0_12] : memref<8x256xf32, #tpu.memory_space<vmem>>, vector<8x256xf32>
      tpu.vector_store %arg5[%c0_11, %c0_12], %12 {strides = array<i32>} : memref<8x256xf32, #tpu.memory_space<vmem>>, vector<8x256xf32>,
    } else {
    }
    return
  }
  func.func @transform_0(%arg0: i32, %arg1: i32, %arg2: i32) -> (i32, i32) {
    %c0_i32 = arith.constant 0 : i32
    return %arg0, %arg2 : i32, i32
  }
  func.func @transform_1(%arg0: i32, %arg1: i32, %arg2: i32) -> (i32, i32) {
    %c0_i32 = arith.constant 0 : i32
    return %arg2, %arg1 : i32, i32
  }
  func.func @transform_2(%arg0: i32, %arg1: i32, %arg2: i32) -> (i32, i32) {
    %c0_i32 = arith.constant 0 : i32
    return %arg0, %arg1 : i32, i32
  }
}

module attributes {stable_mosaic.version = 11 : i64} {
  func.func @kernel(%arg0: i32, %arg1: memref<8x256xf32, #tpu.memory_space<vmem>>, %arg2: memref<1x256xf32, #tpu.memory_space<vmem>>, %arg3: memref<1x256xf32, #tpu.memory_space<vmem>>, %arg4: memref<8x256xf32, #tpu.memory_space<vmem>>, %arg5: memref<8x256xf32, #tpu.memory_space<vmem>>) attributes {dimension_semantics = [#tpu.dimension_semantics<parallel>], iteration_bounds = array<i64: 1>, scalar_prefetch = 0 : i64, scratch_operands = 0 : i64, tpu.core_type = #tpu.core_type<tc>, window_params = [{transform_indices = @transform_0, window_bounds = array<i64: 8, 256>}, {pipeline_mode = #tpu.pipeline_mode<synchronous>, transform_indices = @transform_1, window_bounds = array<i64: 1, 256>}, {pipeline_mode = #tpu.pipeline_mode<synchronous>, transform_indices = @transform_2, window_bounds = array<i64: 1, 256>}, {transform_indices = @transform_3, window_bounds = array<i64: 8, 256>}, {transform_indices = @transform_4, window_bounds = array<i64: 8, 256>}]} {
    %c0 = arith.constant 0 : index
    %c0_0 = arith.constant 0 : index
    %0 = vector.load %arg1[%c0, %c0_0] : memref<8x256xf32, #tpu.memory_space<vmem>>, vector<8x256xf32>
    %c0_1 = arith.constant 0 : index
    %c0_2 = arith.constant 0 : index
    %1 = vector.load %arg2[%c0_1, %c0_2] : memref<1x256xf32, #tpu.memory_space<vmem>>, vector<1x256xf32>
    %2 = vector.broadcast %1 : vector<1x256xf32> to vector<8x256xf32>
    %3 = arith.mulf %0, %2 : vector<8x256xf32>
    %c0_3 = arith.constant 0 : index
    %c0_4 = arith.constant 0 : index
    %4 = vector.load %arg3[%c0_3, %c0_4] : memref<1x256xf32, #tpu.memory_space<vmem>>, vector<1x256xf32>
    %5 = vector.broadcast %4 : vector<1x256xf32> to vector<8x256xf32>
    %6 = arith.addf %3, %5 : vector<8x256xf32>
    %c0_5 = arith.constant 0 : index
    %c0_6 = arith.constant 0 : index
    %7 = vector.load %arg4[%c0_5, %c0_6] : memref<8x256xf32, #tpu.memory_space<vmem>>, vector<8x256xf32>
    %8 = arith.addf %6, %7 : vector<8x256xf32>
    %cst = arith.constant 0.000000e+00 : f32
    %9 = vector.broadcast %cst : f32 to vector<8x256xf32>
    %10 = arith.maximumf %8, %9 : vector<8x256xf32>
    %c0_7 = arith.constant 0 : index
    %c0_8 = arith.constant 0 : index
    %11 = vector.load %arg5[%c0_7, %c0_8] : memref<8x256xf32, #tpu.memory_space<vmem>>, vector<8x256xf32>
    tpu.vector_store %arg5[%c0_7, %c0_8], %10 {strides = array<i32>} : memref<8x256xf32, #tpu.memory_space<vmem>>, vector<8x256xf32>,
    return
  }
  func.func @transform_0(%arg0: i32) -> (i32, i32) {
    %c0_i32 = arith.constant 0 : i32
    %c0_i32_0 = arith.constant 0 : i32
    return %arg0, %c0_i32 : i32, i32
  }
  func.func @transform_1(%arg0: i32) -> (i32, i32) {
    %c0_i32 = arith.constant 0 : i32
    %c0_i32_0 = arith.constant 0 : i32
    %c0_i32_1 = arith.constant 0 : i32
    return %c0_i32, %c0_i32_0 : i32, i32
  }
  func.func @transform_2(%arg0: i32) -> (i32, i32) {
    %c0_i32 = arith.constant 0 : i32
    %c0_i32_0 = arith.constant 0 : i32
    %c0_i32_1 = arith.constant 0 : i32
    return %c0_i32, %c0_i32_0 : i32, i32
  }
  func.func @transform_3(%arg0: i32) -> (i32, i32) {
    %c0_i32 = arith.constant 0 : i32
    %c0_i32_0 = arith.constant 0 : i32
    return %arg0, %c0_i32 : i32, i32
  }
  func.func @transform_4(%arg0: i32) -> (i32, i32) {
    %c0_i32 = arith.constant 0 : i32
    %c0_i32_0 = arith.constant 0 : i32
    return %arg0, %c0_i32 : i32, i32
  }
}

module attributes {stable_mosaic.version = 11 : i64} {
  func.func @_matmul_kernel(%arg0: i32, %arg1: i32, %arg2: i32, %arg3: memref<8x512xbf16, #tpu.memory_space<vmem>>, %arg4: memref<512x256xbf16, #tpu.memory_space<vmem>>, %arg5: memref<8x256xf32, #tpu.memory_space<vmem>>, %arg6: memref<8x256xf32, #tpu.memory_space<vmem>>) attributes {dimension_semantics = [#tpu.dimension_semantics<parallel>, #tpu.dimension_semantics<parallel>, #tpu.dimension_semantics<arbitrary>], iteration_bounds = array<i64: 1, 2, 5>, scalar_prefetch = 0 : i64, scratch_operands = 1 : i64, tpu.core_type = #tpu.core_type<tc>, window_params = [{transform_indices = @transform_0, window_bounds = array<i64: 8, 512>}, {transform_indices = @transform_1, window_bounds = array<i64: 512, 256>}, {transform_indices = @transform_2, window_bounds = array<i64: 8, 256>}]} {
    %c0_i32 = arith.constant 0 : i32
    %0 = arith.cmpi eq, %arg2, %c0_i32 : i32
    %1 = arith.extui %0 : i1 to i32
    %c0_i32_0 = arith.constant 0 : i32
    %2 = arith.cmpi ne, %1, %c0_i32_0 : i32
    scf.if %2 {
      %cst_9 = arith.constant 0.000000e+00 : f32
      %12 = vector.broadcast %cst_9 : f32 to vector<8x256xf32>
      %c0_10 = arith.constant 0 : index
      %c0_11 = arith.constant 0 : index
      %13 = vector.load %arg6[%c0_10, %c0_11] : memref<8x256xf32, #tpu.memory_space<vmem>>, vector<8x256xf32>
      tpu.vector_store %arg6[%c0_10, %c0_11], %12 {strides = array<i32>} : memref<8x256xf32, #tpu.memory_space<vmem>>, vector<8x256xf32>,
    } else {
    }
    %c0 = arith.constant 0 : index
    %c0_1 = arith.constant 0 : index
    %3 = vector.load %arg6[%c0, %c0_1] : memref<8x256xf32, #tpu.memory_space<vmem>>, vector<8x256xf32>
    %c0_2 = arith.constant 0 : index
    %c0_3 = arith.constant 0 : index
    %4 = vector.load %arg3[%c0_2, %c0_3] : memref<8x512xbf16, #tpu.memory_space<vmem>>, vector<8x512xbf16>
    %c0_4 = arith.constant 0 : index
    %c0_5 = arith.constant 0 : index
    %5 = vector.load %arg4[%c0_4, %c0_5] : memref<512x256xbf16, #tpu.memory_space<vmem>>, vector<512x256xbf16>
    %cst = arith.constant dense<0.000000e+00> : vector<8x256xf32>
    %6 = tpu.matmul %4, %5, %cst {dimension_numbers = #tpu.dot_dimension_numbers<[1], [0], [0], [1], [0, 0, 1, 1], [], []>} : vector<8x512xbf16>, vector<512x256xbf16>, vector<8x256xf32> -> vector<8x256xf32>
    %7 = arith.addf %3, %6 : vector<8x256xf32>
    %c0_6 = arith.constant 0 : index
    %c0_7 = arith.constant 0 : index
    %8 = vector.load %arg6[%c0_6, %c0_7] : memref<8x256xf32, #tpu.memory_space<vmem>>, vector<8x256xf32>
    tpu.vector_store %arg6[%c0_6, %c0_7], %7 {strides = array<i32>} : memref<8x256xf32, #tpu.memory_space<vmem>>, vector<8x256xf32>,
    %c4_i32 = arith.constant 4 : i32
    %9 = arith.cmpi eq, %arg2, %c4_i32 : i32
    %10 = arith.extui %9 : i1 to i32
    %c0_i32_8 = arith.constant 0 : i32
    %11 = arith.cmpi ne, %10, %c0_i32_8 : i32
    scf.if %11 {
      %c0_9 = arith.constant 0 : index
      %c0_10 = arith.constant 0 : index
      %12 = vector.load %arg6[%c0_9, %c0_10] : memref<8x256xf32, #tpu.memory_space<vmem>>, vector<8x256xf32>
      %c0_11 = arith.constant 0 : index
      %c0_12 = arith.constant 0 : index
      %13 = vector.load %arg5[%c0_11, %c0_12] : memref<8x256xf32, #tpu.memory_space<vmem>>, vector<8x256xf32>
      tpu.vector_store %arg5[%c0_11, %c0_12], %12 {strides = array<i32>} : memref<8x256xf32, #tpu.memory_space<vmem>>, vector<8x256xf32>,
    } else {
    }
    return
  }
  func.func @transform_0(%arg0: i32, %arg1: i32, %arg2: i32) -> (i32, i32) {
    %c0_i32 = arith.constant 0 : i32
    return %arg0, %arg2 : i32, i32
  }
  func.func @transform_1(%arg0: i32, %arg1: i32, %arg2: i32) -> (i32, i32) {
    %c0_i32 = arith.constant 0 : i32
    return %arg2, %arg1 : i32, i32
  }
  func.func @transform_2(%arg0: i32, %arg1: i32, %arg2: i32) -> (i32, i32) {
    %c0_i32 = arith.constant 0 : i32
    return %arg0, %arg1 : i32, i32
  }
}

module attributes {stable_mosaic.version = 11 : i64} {
  func.func @_matmul_kernel(%arg0: i32, %arg1: i32, %arg2: i32, %arg3: memref<8x256xbf16, #tpu.memory_space<vmem>>, %arg4: memref<256x256xbf16, #tpu.memory_space<vmem>>, %arg5: memref<8x256xf32, #tpu.memory_space<vmem>>, %arg6: memref<8x256xf32, #tpu.memory_space<vmem>>) attributes {dimension_semantics = [#tpu.dimension_semantics<parallel>, #tpu.dimension_semantics<parallel>, #tpu.dimension_semantics<arbitrary>], iteration_bounds = array<i64: 1, 2, 1>, scalar_prefetch = 0 : i64, scratch_operands = 1 : i64, tpu.core_type = #tpu.core_type<tc>, window_params = [{transform_indices = @transform_0, window_bounds = array<i64: 8, 256>}, {transform_indices = @transform_1, window_bounds = array<i64: 256, 256>}, {transform_indices = @transform_2, window_bounds = array<i64: 8, 256>}]} {
    %c0_i32 = arith.constant 0 : i32
    %0 = arith.cmpi eq, %arg2, %c0_i32 : i32
    %1 = arith.extui %0 : i1 to i32
    %c0_i32_0 = arith.constant 0 : i32
    %2 = arith.cmpi ne, %1, %c0_i32_0 : i32
    scf.if %2 {
      %cst_10 = arith.constant 0.000000e+00 : f32
      %12 = vector.broadcast %cst_10 : f32 to vector<8x256xf32>
      %c0_11 = arith.constant 0 : index
      %c0_12 = arith.constant 0 : index
      %13 = vector.load %arg6[%c0_11, %c0_12] : memref<8x256xf32, #tpu.memory_space<vmem>>, vector<8x256xf32>
      tpu.vector_store %arg6[%c0_11, %c0_12], %12 {strides = array<i32>} : memref<8x256xf32, #tpu.memory_space<vmem>>, vector<8x256xf32>,
    } else {
    }
    %c0 = arith.constant 0 : index
    %c0_1 = arith.constant 0 : index
    %3 = vector.load %arg6[%c0, %c0_1] : memref<8x256xf32, #tpu.memory_space<vmem>>, vector<8x256xf32>
    %c0_2 = arith.constant 0 : index
    %c0_3 = arith.constant 0 : index
    %4 = vector.load %arg3[%c0_2, %c0_3] : memref<8x256xbf16, #tpu.memory_space<vmem>>, vector<8x256xbf16>
    %c0_4 = arith.constant 0 : index
    %c0_5 = arith.constant 0 : index
    %5 = vector.load %arg4[%c0_4, %c0_5] : memref<256x256xbf16, #tpu.memory_space<vmem>>, vector<256x256xbf16>
    %cst = arith.constant dense<0.000000e+00> : vector<8x256xf32>
    %6 = tpu.matmul %4, %5, %cst {dimension_numbers = #tpu.dot_dimension_numbers<[1], [0], [0], [1], [0, 0, 1, 1], [], []>} : vector<8x256xbf16>, vector<256x256xbf16>, vector<8x256xf32> -> vector<8x256xf32>
    %7 = arith.addf %3, %6 : vector<8x256xf32>
    %c0_6 = arith.constant 0 : index
    %c0_7 = arith.constant 0 : index
    %8 = vector.load %arg6[%c0_6, %c0_7] : memref<8x256xf32, #tpu.memory_space<vmem>>, vector<8x256xf32>
    tpu.vector_store %arg6[%c0_6, %c0_7], %7 {strides = array<i32>} : memref<8x256xf32, #tpu.memory_space<vmem>>, vector<8x256xf32>,
    %c0_i32_8 = arith.constant 0 : i32
    %9 = arith.cmpi eq, %arg2, %c0_i32_8 : i32
    %10 = arith.extui %9 : i1 to i32
    %c0_i32_9 = arith.constant 0 : i32
    %11 = arith.cmpi ne, %10, %c0_i32_9 : i32
    scf.if %11 {
      %c0_10 = arith.constant 0 : index
      %c0_11 = arith.constant 0 : index
      %12 = vector.load %arg6[%c0_10, %c0_11] : memref<8x256xf32, #tpu.memory_space<vmem>>, vector<8x256xf32>
      %c0_12 = arith.constant 0 : index
      %c0_13 = arith.constant 0 : index
      %13 = vector.load %arg5[%c0_12, %c0_13] : memref<8x256xf32, #tpu.memory_space<vmem>>, vector<8x256xf32>
      tpu.vector_store %arg5[%c0_12, %c0_13], %12 {strides = array<i32>} : memref<8x256xf32, #tpu.memory_space<vmem>>, vector<8x256xf32>,
    } else {
    }
    return
  }
  func.func @transform_0(%arg0: i32, %arg1: i32, %arg2: i32) -> (i32, i32) {
    %c0_i32 = arith.constant 0 : i32
    return %arg0, %arg2 : i32, i32
  }
  func.func @transform_1(%arg0: i32, %arg1: i32, %arg2: i32) -> (i32, i32) {
    %c0_i32 = arith.constant 0 : i32
    return %arg2, %arg1 : i32, i32
  }
  func.func @transform_2(%arg0: i32, %arg1: i32, %arg2: i32) -> (i32, i32) {
    %c0_i32 = arith.constant 0 : i32
    return %arg0, %arg1 : i32, i32
  }
}

module attributes {stable_mosaic.version = 11 : i64} {
  func.func @_bn_stats_kernel(%arg0: i32, %arg1: memref<8x512xf32, #tpu.memory_space<vmem>>, %arg2: memref<1x512xf32, #tpu.memory_space<vmem>>, %arg3: memref<1x512xf32, #tpu.memory_space<vmem>>) attributes {dimension_semantics = [#tpu.dimension_semantics<arbitrary>], iteration_bounds = array<i64: 1>, scalar_prefetch = 0 : i64, scratch_operands = 0 : i64, tpu.core_type = #tpu.core_type<tc>, window_params = [{transform_indices = @transform_0, window_bounds = array<i64: 8, 512>}, {pipeline_mode = #tpu.pipeline_mode<synchronous>, transform_indices = @transform_1, window_bounds = array<i64: 1, 512>}, {pipeline_mode = #tpu.pipeline_mode<synchronous>, transform_indices = @transform_2, window_bounds = array<i64: 1, 512>}]} {
    %c0_i32 = arith.constant 0 : i32
    %0 = arith.cmpi eq, %arg0, %c0_i32 : i32
    %1 = arith.extui %0 : i1 to i32
    %c0_i32_0 = arith.constant 0 : i32
    %2 = arith.cmpi ne, %1, %c0_i32_0 : i32
    scf.if %2 {
      %cst_11 = arith.constant 0.000000e+00 : f32
      %15 = vector.broadcast %cst_11 : f32 to vector<1x512xf32>
      %c0_12 = arith.constant 0 : index
      %c0_13 = arith.constant 0 : index
      %16 = vector.load %arg2[%c0_12, %c0_13] : memref<1x512xf32, #tpu.memory_space<vmem>>, vector<1x512xf32>
      tpu.vector_store %arg2[%c0_12, %c0_13], %15 {strides = array<i32>} : memref<1x512xf32, #tpu.memory_space<vmem>>, vector<1x512xf32>,
      %cst_14 = arith.constant 0.000000e+00 : f32
      %17 = vector.broadcast %cst_14 : f32 to vector<1x512xf32>
      %c0_15 = arith.constant 0 : index
      %c0_16 = arith.constant 0 : index
      %18 = vector.load %arg3[%c0_15, %c0_16] : memref<1x512xf32, #tpu.memory_space<vmem>>, vector<1x512xf32>
      tpu.vector_store %arg3[%c0_15, %c0_16], %17 {strides = array<i32>} : memref<1x512xf32, #tpu.memory_space<vmem>>, vector<1x512xf32>,
    } else {
    }
    %c0 = arith.constant 0 : index
    %c0_1 = arith.constant 0 : index
    %3 = vector.load %arg1[%c0, %c0_1] : memref<8x512xf32, #tpu.memory_space<vmem>>, vector<8x512xf32>
    %c0_2 = arith.constant 0 : index
    %c0_3 = arith.constant 0 : index
    %4 = vector.load %arg2[%c0_2, %c0_3] : memref<1x512xf32, #tpu.memory_space<vmem>>, vector<1x512xf32>
    %cst = arith.constant dense<0.000000e+00> : vector<512xf32>
    %5 = vector.multi_reduction <add>, %3, %cst [0] : vector<8x512xf32> to vector<512xf32>
    %6 = vector.shape_cast %5 : vector<512xf32> to vector<1x512xf32>
    %7 = arith.addf %4, %6 : vector<1x512xf32>
    %c0_4 = arith.constant 0 : index
    %c0_5 = arith.constant 0 : index
    %8 = vector.load %arg2[%c0_4, %c0_5] : memref<1x512xf32, #tpu.memory_space<vmem>>, vector<1x512xf32>
    tpu.vector_store %arg2[%c0_4, %c0_5], %7 {strides = array<i32>} : memref<1x512xf32, #tpu.memory_space<vmem>>, vector<1x512xf32>,
    %c0_6 = arith.constant 0 : index
    %c0_7 = arith.constant 0 : index
    %9 = vector.load %arg3[%c0_6, %c0_7] : memref<1x512xf32, #tpu.memory_space<vmem>>, vector<1x512xf32>
    %10 = arith.mulf %3, %3 : vector<8x512xf32>
    %cst_8 = arith.constant dense<0.000000e+00> : vector<512xf32>
    %11 = vector.multi_reduction <add>, %10, %cst_8 [0] : vector<8x512xf32> to vector<512xf32>
    %12 = vector.shape_cast %11 : vector<512xf32> to vector<1x512xf32>
    %13 = arith.addf %9, %12 : vector<1x512xf32>
    %c0_9 = arith.constant 0 : index
    %c0_10 = arith.constant 0 : index
    %14 = vector.load %arg3[%c0_9, %c0_10] : memref<1x512xf32, #tpu.memory_space<vmem>>, vector<1x512xf32>
    tpu.vector_store %arg3[%c0_9, %c0_10], %13 {strides = array<i32>} : memref<1x512xf32, #tpu.memory_space<vmem>>, vector<1x512xf32>,
    return
  }
  func.func @transform_0(%arg0: i32) -> (i32, i32) {
    %c0_i32 = arith.constant 0 : i32
    %c0_i32_0 = arith.constant 0 : i32
    return %arg0, %c0_i32 : i32, i32
  }
  func.func @transform_1(%arg0: i32) -> (i32, i32) {
    %c0_i32 = arith.constant 0 : i32
    %c0_i32_0 = arith.constant 0 : i32
    %c0_i32_1 = arith.constant 0 : i32
    return %c0_i32, %c0_i32_0 : i32, i32
  }
  func.func @transform_2(%arg0: i32) -> (i32, i32) {
    %c0_i32 = arith.constant 0 : i32
    %c0_i32_0 = arith.constant 0 : i32
    %c0_i32_1 = arith.constant 0 : i32
    return %c0_i32, %c0_i32_0 : i32, i32
  }
}

module attributes {stable_mosaic.version = 11 : i64} {
  func.func @kernel(%arg0: i32, %arg1: memref<8x512xf32, #tpu.memory_space<vmem>>, %arg2: memref<1x512xf32, #tpu.memory_space<vmem>>, %arg3: memref<1x512xf32, #tpu.memory_space<vmem>>, %arg4: memref<8x512xf32, #tpu.memory_space<vmem>>) attributes {dimension_semantics = [#tpu.dimension_semantics<parallel>], iteration_bounds = array<i64: 1>, scalar_prefetch = 0 : i64, scratch_operands = 0 : i64, tpu.core_type = #tpu.core_type<tc>, window_params = [{transform_indices = @transform_0, window_bounds = array<i64: 8, 512>}, {pipeline_mode = #tpu.pipeline_mode<synchronous>, transform_indices = @transform_1, window_bounds = array<i64: 1, 512>}, {pipeline_mode = #tpu.pipeline_mode<synchronous>, transform_indices = @transform_2, window_bounds = array<i64: 1, 512>}, {transform_indices = @transform_3, window_bounds = array<i64: 8, 512>}]} {
    %c0 = arith.constant 0 : index
    %c0_0 = arith.constant 0 : index
    %0 = vector.load %arg1[%c0, %c0_0] : memref<8x512xf32, #tpu.memory_space<vmem>>, vector<8x512xf32>
    %c0_1 = arith.constant 0 : index
    %c0_2 = arith.constant 0 : index
    %1 = vector.load %arg2[%c0_1, %c0_2] : memref<1x512xf32, #tpu.memory_space<vmem>>, vector<1x512xf32>
    %2 = vector.broadcast %1 : vector<1x512xf32> to vector<8x512xf32>
    %3 = arith.mulf %0, %2 : vector<8x512xf32>
    %c0_3 = arith.constant 0 : index
    %c0_4 = arith.constant 0 : index
    %4 = vector.load %arg3[%c0_3, %c0_4] : memref<1x512xf32, #tpu.memory_space<vmem>>, vector<1x512xf32>
    %5 = vector.broadcast %4 : vector<1x512xf32> to vector<8x512xf32>
    %6 = arith.addf %3, %5 : vector<8x512xf32>
    %cst = arith.constant 0.000000e+00 : f32
    %7 = vector.broadcast %cst : f32 to vector<8x512xf32>
    %8 = arith.maximumf %6, %7 : vector<8x512xf32>
    %c0_5 = arith.constant 0 : index
    %c0_6 = arith.constant 0 : index
    %9 = vector.load %arg4[%c0_5, %c0_6] : memref<8x512xf32, #tpu.memory_space<vmem>>, vector<8x512xf32>
    tpu.vector_store %arg4[%c0_5, %c0_6], %8 {strides = array<i32>} : memref<8x512xf32, #tpu.memory_space<vmem>>, vector<8x512xf32>,
    return
  }
  func.func @transform_0(%arg0: i32) -> (i32, i32) {
    %c0_i32 = arith.constant 0 : i32
    %c0_i32_0 = arith.constant 0 : i32
    return %arg0, %c0_i32 : i32, i32
  }
  func.func @transform_1(%arg0: i32) -> (i32, i32) {
    %c0_i32 = arith.constant 0 : i32
    %c0_i32_0 = arith.constant 0 : i32
    %c0_i32_1 = arith.constant 0 : i32
    return %c0_i32, %c0_i32_0 : i32, i32
  }
  func.func @transform_2(%arg0: i32) -> (i32, i32) {
    %c0_i32 = arith.constant 0 : i32
    %c0_i32_0 = arith.constant 0 : i32
    %c0_i32_1 = arith.constant 0 : i32
    return %c0_i32, %c0_i32_0 : i32, i32
  }
  func.func @transform_3(%arg0: i32) -> (i32, i32) {
    %c0_i32 = arith.constant 0 : i32
    %c0_i32_0 = arith.constant 0 : i32
    return %arg0, %c0_i32 : i32, i32
  }
}

module attributes {stable_mosaic.version = 11 : i64} {
  func.func @kernel(%arg0: i32, %arg1: memref<8x512xf32, #tpu.memory_space<vmem>>, %arg2: memref<1x512xf32, #tpu.memory_space<vmem>>, %arg3: memref<1x512xf32, #tpu.memory_space<vmem>>, %arg4: memref<8x512xf32, #tpu.memory_space<vmem>>) attributes {dimension_semantics = [#tpu.dimension_semantics<parallel>], iteration_bounds = array<i64: 1>, scalar_prefetch = 0 : i64, scratch_operands = 0 : i64, tpu.core_type = #tpu.core_type<tc>, window_params = [{transform_indices = @transform_0, window_bounds = array<i64: 8, 512>}, {pipeline_mode = #tpu.pipeline_mode<synchronous>, transform_indices = @transform_1, window_bounds = array<i64: 1, 512>}, {pipeline_mode = #tpu.pipeline_mode<synchronous>, transform_indices = @transform_2, window_bounds = array<i64: 1, 512>}, {transform_indices = @transform_3, window_bounds = array<i64: 8, 512>}]} {
    %c0 = arith.constant 0 : index
    %c0_0 = arith.constant 0 : index
    %0 = vector.load %arg1[%c0, %c0_0] : memref<8x512xf32, #tpu.memory_space<vmem>>, vector<8x512xf32>
    %c0_1 = arith.constant 0 : index
    %c0_2 = arith.constant 0 : index
    %1 = vector.load %arg2[%c0_1, %c0_2] : memref<1x512xf32, #tpu.memory_space<vmem>>, vector<1x512xf32>
    %2 = vector.broadcast %1 : vector<1x512xf32> to vector<8x512xf32>
    %3 = arith.mulf %0, %2 : vector<8x512xf32>
    %c0_3 = arith.constant 0 : index
    %c0_4 = arith.constant 0 : index
    %4 = vector.load %arg3[%c0_3, %c0_4] : memref<1x512xf32, #tpu.memory_space<vmem>>, vector<1x512xf32>
    %5 = vector.broadcast %4 : vector<1x512xf32> to vector<8x512xf32>
    %6 = arith.addf %3, %5 : vector<8x512xf32>
    %c0_5 = arith.constant 0 : index
    %c0_6 = arith.constant 0 : index
    %7 = vector.load %arg4[%c0_5, %c0_6] : memref<8x512xf32, #tpu.memory_space<vmem>>, vector<8x512xf32>
    tpu.vector_store %arg4[%c0_5, %c0_6], %6 {strides = array<i32>} : memref<8x512xf32, #tpu.memory_space<vmem>>, vector<8x512xf32>,
    return
  }
  func.func @transform_0(%arg0: i32) -> (i32, i32) {
    %c0_i32 = arith.constant 0 : i32
    %c0_i32_0 = arith.constant 0 : i32
    return %arg0, %c0_i32 : i32, i32
  }
  func.func @transform_1(%arg0: i32) -> (i32, i32) {
    %c0_i32 = arith.constant 0 : i32
    %c0_i32_0 = arith.constant 0 : i32
    %c0_i32_1 = arith.constant 0 : i32
    return %c0_i32, %c0_i32_0 : i32, i32
  }
  func.func @transform_2(%arg0: i32) -> (i32, i32) {
    %c0_i32 = arith.constant 0 : i32
    %c0_i32_0 = arith.constant 0 : i32
    %c0_i32_1 = arith.constant 0 : i32
    return %c0_i32, %c0_i32_0 : i32, i32
  }
  func.func @transform_3(%arg0: i32) -> (i32, i32) {
    %c0_i32 = arith.constant 0 : i32
    %c0_i32_0 = arith.constant 0 : i32
    return %arg0, %c0_i32 : i32, i32
  }
}

module attributes {stable_mosaic.version = 11 : i64} {
  func.func @_avgpool_kernel(%arg0: memref<2x1x512xf32, #tpu.memory_space<vmem>>, %arg1: memref<2x512xf32, #tpu.memory_space<vmem>>) attributes {dimension_semantics = [], scalar_prefetch = 0 : i64, scratch_operands = 0 : i64, tpu.core_type = #tpu.core_type<tc>} {
    %c0 = arith.constant 0 : index
    %c0_0 = arith.constant 0 : index
    %c0_1 = arith.constant 0 : index
    %0 = vector.load %arg0[%c0, %c0_0, %c0_1] : memref<2x1x512xf32, #tpu.memory_space<vmem>>, vector<2x1x512xf32>
    %cst = arith.constant dense<0.000000e+00> : vector<2x512xf32>
    %1 = vector.multi_reduction <add>, %0, %cst [1] : vector<2x1x512xf32> to vector<2x512xf32>
    %cst_2 = arith.constant 1.000000e+00 : f32
    %2 = vector.broadcast %cst_2 : f32 to vector<2x512xf32>
    %3 = arith.divf %1, %2 : vector<2x512xf32>
    %c0_3 = arith.constant 0 : index
    %c0_4 = arith.constant 0 : index
    %4 = vector.load %arg1[%c0_3, %c0_4] : memref<2x512xf32, #tpu.memory_space<vmem>>, vector<2x512xf32>
    tpu.vector_store %arg1[%c0_3, %c0_4], %3 {strides = array<i32>} : memref<2x512xf32, #tpu.memory_space<vmem>>, vector<2x512xf32>,
    return
  }
}

module attributes {stable_mosaic.version = 11 : i64} {
  func.func @_matmul_kernel(%arg0: i32, %arg1: i32, %arg2: i32, %arg3: memref<8x512xbf16, #tpu.memory_space<vmem>>, %arg4: memref<512x256xbf16, #tpu.memory_space<vmem>>, %arg5: memref<8x256xf32, #tpu.memory_space<vmem>>, %arg6: memref<8x256xf32, #tpu.memory_space<vmem>>) attributes {dimension_semantics = [#tpu.dimension_semantics<parallel>, #tpu.dimension_semantics<parallel>, #tpu.dimension_semantics<arbitrary>], iteration_bounds = array<i64: 1, 2, 9>, scalar_prefetch = 0 : i64, scratch_operands = 1 : i64, tpu.core_type = #tpu.core_type<tc>, window_params = [{transform_indices = @transform_0, window_bounds = array<i64: 8, 512>}, {transform_indices = @transform_1, window_bounds = array<i64: 512, 256>}, {transform_indices = @transform_2, window_bounds = array<i64: 8, 256>}]} {
    %c0_i32 = arith.constant 0 : i32
    %0 = arith.cmpi eq, %arg2, %c0_i32 : i32
    %1 = arith.extui %0 : i1 to i32
    %c0_i32_0 = arith.constant 0 : i32
    %2 = arith.cmpi ne, %1, %c0_i32_0 : i32
    scf.if %2 {
      %cst_9 = arith.constant 0.000000e+00 : f32
      %12 = vector.broadcast %cst_9 : f32 to vector<8x256xf32>
      %c0_10 = arith.constant 0 : index
      %c0_11 = arith.constant 0 : index
      %13 = vector.load %arg6[%c0_10, %c0_11] : memref<8x256xf32, #tpu.memory_space<vmem>>, vector<8x256xf32>
      tpu.vector_store %arg6[%c0_10, %c0_11], %12 {strides = array<i32>} : memref<8x256xf32, #tpu.memory_space<vmem>>, vector<8x256xf32>,
    } else {
    }
    %c0 = arith.constant 0 : index
    %c0_1 = arith.constant 0 : index
    %3 = vector.load %arg6[%c0, %c0_1] : memref<8x256xf32, #tpu.memory_space<vmem>>, vector<8x256xf32>
    %c0_2 = arith.constant 0 : index
    %c0_3 = arith.constant 0 : index
    %4 = vector.load %arg3[%c0_2, %c0_3] : memref<8x512xbf16, #tpu.memory_space<vmem>>, vector<8x512xbf16>
    %c0_4 = arith.constant 0 : index
    %c0_5 = arith.constant 0 : index
    %5 = vector.load %arg4[%c0_4, %c0_5] : memref<512x256xbf16, #tpu.memory_space<vmem>>, vector<512x256xbf16>
    %cst = arith.constant dense<0.000000e+00> : vector<8x256xf32>
    %6 = tpu.matmul %4, %5, %cst {dimension_numbers = #tpu.dot_dimension_numbers<[1], [0], [0], [1], [0, 0, 1, 1], [], []>} : vector<8x512xbf16>, vector<512x256xbf16>, vector<8x256xf32> -> vector<8x256xf32>
    %7 = arith.addf %3, %6 : vector<8x256xf32>
    %c0_6 = arith.constant 0 : index
    %c0_7 = arith.constant 0 : index
    %8 = vector.load %arg6[%c0_6, %c0_7] : memref<8x256xf32, #tpu.memory_space<vmem>>, vector<8x256xf32>
    tpu.vector_store %arg6[%c0_6, %c0_7], %7 {strides = array<i32>} : memref<8x256xf32, #tpu.memory_space<vmem>>, vector<8x256xf32>,
    %c8_i32 = arith.constant 8 : i32
    %9 = arith.cmpi eq, %arg2, %c8_i32 : i32
    %10 = arith.extui %9 : i1 to i32
    %c0_i32_8 = arith.constant 0 : i32
    %11 = arith.cmpi ne, %10, %c0_i32_8 : i32
    scf.if %11 {
      %c0_9 = arith.constant 0 : index
      %c0_10 = arith.constant 0 : index
      %12 = vector.load %arg6[%c0_9, %c0_10] : memref<8x256xf32, #tpu.memory_space<vmem>>, vector<8x256xf32>
      %c0_11 = arith.constant 0 : index
      %c0_12 = arith.constant 0 : index
      %13 = vector.load %arg5[%c0_11, %c0_12] : memref<8x256xf32, #tpu.memory_space<vmem>>, vector<8x256xf32>
      tpu.vector_store %arg5[%c0_11, %c0_12], %12 {strides = array<i32>} : memref<8x256xf32, #tpu.memory_space<vmem>>, vector<8x256xf32>,
    } else {
    }
    return
  }
  func.func @transform_0(%arg0: i32, %arg1: i32, %arg2: i32) -> (i32, i32) {
    %c0_i32 = arith.constant 0 : i32
    return %arg0, %arg2 : i32, i32
  }
  func.func @transform_1(%arg0: i32, %arg1: i32, %arg2: i32) -> (i32, i32) {
    %c0_i32 = arith.constant 0 : i32
    return %arg2, %arg1 : i32, i32
  }
  func.func @transform_2(%arg0: i32, %arg1: i32, %arg2: i32) -> (i32, i32) {
    %c0_i32 = arith.constant 0 : i32
    return %arg0, %arg1 : i32, i32
  }
}

module attributes {stable_mosaic.version = 11 : i64} {
  func.func @kernel(%arg0: i32, %arg1: memref<8x512xf32, #tpu.memory_space<vmem>>, %arg2: memref<1x512xf32, #tpu.memory_space<vmem>>, %arg3: memref<1x512xf32, #tpu.memory_space<vmem>>, %arg4: memref<8x512xf32, #tpu.memory_space<vmem>>, %arg5: memref<8x512xf32, #tpu.memory_space<vmem>>) attributes {dimension_semantics = [#tpu.dimension_semantics<parallel>], iteration_bounds = array<i64: 1>, scalar_prefetch = 0 : i64, scratch_operands = 0 : i64, tpu.core_type = #tpu.core_type<tc>, window_params = [{transform_indices = @transform_0, window_bounds = array<i64: 8, 512>}, {pipeline_mode = #tpu.pipeline_mode<synchronous>, transform_indices = @transform_1, window_bounds = array<i64: 1, 512>}, {pipeline_mode = #tpu.pipeline_mode<synchronous>, transform_indices = @transform_2, window_bounds = array<i64: 1, 512>}, {transform_indices = @transform_3, window_bounds = array<i64: 8, 512>}, {transform_indices = @transform_4, window_bounds = array<i64: 8, 512>}]} {
    %c0 = arith.constant 0 : index
    %c0_0 = arith.constant 0 : index
    %0 = vector.load %arg1[%c0, %c0_0] : memref<8x512xf32, #tpu.memory_space<vmem>>, vector<8x512xf32>
    %c0_1 = arith.constant 0 : index
    %c0_2 = arith.constant 0 : index
    %1 = vector.load %arg2[%c0_1, %c0_2] : memref<1x512xf32, #tpu.memory_space<vmem>>, vector<1x512xf32>
    %2 = vector.broadcast %1 : vector<1x512xf32> to vector<8x512xf32>
    %3 = arith.mulf %0, %2 : vector<8x512xf32>
    %c0_3 = arith.constant 0 : index
    %c0_4 = arith.constant 0 : index
    %4 = vector.load %arg3[%c0_3, %c0_4] : memref<1x512xf32, #tpu.memory_space<vmem>>, vector<1x512xf32>
    %5 = vector.broadcast %4 : vector<1x512xf32> to vector<8x512xf32>
    %6 = arith.addf %3, %5 : vector<8x512xf32>
    %c0_5 = arith.constant 0 : index
    %c0_6 = arith.constant 0 : index
    %7 = vector.load %arg4[%c0_5, %c0_6] : memref<8x512xf32, #tpu.memory_space<vmem>>, vector<8x512xf32>
    %8 = arith.addf %6, %7 : vector<8x512xf32>
    %cst = arith.constant 0.000000e+00 : f32
    %9 = vector.broadcast %cst : f32 to vector<8x512xf32>
    %10 = arith.maximumf %8, %9 : vector<8x512xf32>
    %c0_7 = arith.constant 0 : index
    %c0_8 = arith.constant 0 : index
    %11 = vector.load %arg5[%c0_7, %c0_8] : memref<8x512xf32, #tpu.memory_space<vmem>>, vector<8x512xf32>
    tpu.vector_store %arg5[%c0_7, %c0_8], %10 {strides = array<i32>} : memref<8x512xf32, #tpu.memory_space<vmem>>, vector<8x512xf32>,
    return
  }
  func.func @transform_0(%arg0: i32) -> (i32, i32) {
    %c0_i32 = arith.constant 0 : i32
    %c0_i32_0 = arith.constant 0 : i32
    return %arg0, %c0_i32 : i32, i32
  }
  func.func @transform_1(%arg0: i32) -> (i32, i32) {
    %c0_i32 = arith.constant 0 : i32
    %c0_i32_0 = arith.constant 0 : i32
    %c0_i32_1 = arith.constant 0 : i32
    return %c0_i32, %c0_i32_0 : i32, i32
  }
  func.func @transform_2(%arg0: i32) -> (i32, i32) {
    %c0_i32 = arith.constant 0 : i32
    %c0_i32_0 = arith.constant 0 : i32
    %c0_i32_1 = arith.constant 0 : i32
    return %c0_i32, %c0_i32_0 : i32, i32
  }
  func.func @transform_3(%arg0: i32) -> (i32, i32) {
    %c0_i32 = arith.constant 0 : i32
    %c0_i32_0 = arith.constant 0 : i32
    return %arg0, %c0_i32 : i32, i32
  }
  func.func @transform_4(%arg0: i32) -> (i32, i32) {
    %c0_i32 = arith.constant 0 : i32
    %c0_i32_0 = arith.constant 0 : i32
    return %arg0, %c0_i32 : i32, i32
  }
}

module attributes {stable_mosaic.version = 11 : i64} {
  func.func @_matmul_bias_kernel(%arg0: i32, %arg1: i32, %arg2: i32, %arg3: memref<8x512xbf16, #tpu.memory_space<vmem>>, %arg4: memref<512x128xbf16, #tpu.memory_space<vmem>>, %arg5: memref<1x128xf32, #tpu.memory_space<vmem>>, %arg6: memref<8x128xf32, #tpu.memory_space<vmem>>, %arg7: memref<8x128xf32, #tpu.memory_space<vmem>>) attributes {dimension_semantics = [#tpu.dimension_semantics<parallel>, #tpu.dimension_semantics<parallel>, #tpu.dimension_semantics<arbitrary>], iteration_bounds = array<i64: 1, 1, 1>, scalar_prefetch = 0 : i64, scratch_operands = 1 : i64, tpu.core_type = #tpu.core_type<tc>, window_params = [{transform_indices = @transform_0, window_bounds = array<i64: 8, 512>}, {transform_indices = @transform_1, window_bounds = array<i64: 512, 128>}, {transform_indices = @transform_2, window_bounds = array<i64: 1, 128>}, {transform_indices = @transform_3, window_bounds = array<i64: 8, 128>}]} {
    %c0_i32 = arith.constant 0 : i32
    %0 = arith.cmpi eq, %arg2, %c0_i32 : i32
    %1 = arith.extui %0 : i1 to i32
    %c0_i32_0 = arith.constant 0 : i32
    %2 = arith.cmpi ne, %1, %c0_i32_0 : i32
    scf.if %2 {
      %cst_10 = arith.constant 0.000000e+00 : f32
      %12 = vector.broadcast %cst_10 : f32 to vector<8x128xf32>
      %c0_11 = arith.constant 0 : index
      %c0_12 = arith.constant 0 : index
      %13 = vector.load %arg7[%c0_11, %c0_12] : memref<8x128xf32, #tpu.memory_space<vmem>>, vector<8x128xf32>
      tpu.vector_store %arg7[%c0_11, %c0_12], %12 {strides = array<i32>} : memref<8x128xf32, #tpu.memory_space<vmem>>, vector<8x128xf32>,
    } else {
    }
    %c0 = arith.constant 0 : index
    %c0_1 = arith.constant 0 : index
    %3 = vector.load %arg7[%c0, %c0_1] : memref<8x128xf32, #tpu.memory_space<vmem>>, vector<8x128xf32>
    %c0_2 = arith.constant 0 : index
    %c0_3 = arith.constant 0 : index
    %4 = vector.load %arg3[%c0_2, %c0_3] : memref<8x512xbf16, #tpu.memory_space<vmem>>, vector<8x512xbf16>
    %c0_4 = arith.constant 0 : index
    %c0_5 = arith.constant 0 : index
    %5 = vector.load %arg4[%c0_4, %c0_5] : memref<512x128xbf16, #tpu.memory_space<vmem>>, vector<512x128xbf16>
    %cst = arith.constant dense<0.000000e+00> : vector<8x128xf32>
    %6 = tpu.matmul %4, %5, %cst {dimension_numbers = #tpu.dot_dimension_numbers<[1], [0], [0], [1], [0, 0, 1, 1], [], []>} : vector<8x512xbf16>, vector<512x128xbf16>, vector<8x128xf32> -> vector<8x128xf32>
    %7 = arith.addf %3, %6 : vector<8x128xf32>
    %c0_6 = arith.constant 0 : index
    %c0_7 = arith.constant 0 : index
    %8 = vector.load %arg7[%c0_6, %c0_7] : memref<8x128xf32, #tpu.memory_space<vmem>>, vector<8x128xf32>
    tpu.vector_store %arg7[%c0_6, %c0_7], %7 {strides = array<i32>} : memref<8x128xf32, #tpu.memory_space<vmem>>, vector<8x128xf32>,
    %c0_i32_8 = arith.constant 0 : i32
    %9 = arith.cmpi eq, %arg2, %c0_i32_8 : i32
    %10 = arith.extui %9 : i1 to i32
    %c0_i32_9 = arith.constant 0 : i32
    %11 = arith.cmpi ne, %10, %c0_i32_9 : i32
    scf.if %11 {
      %c0_10 = arith.constant 0 : index
      %c0_11 = arith.constant 0 : index
      %12 = vector.load %arg7[%c0_10, %c0_11] : memref<8x128xf32, #tpu.memory_space<vmem>>, vector<8x128xf32>
      %c0_12 = arith.constant 0 : index
      %c0_13 = arith.constant 0 : index
      %13 = vector.load %arg5[%c0_12, %c0_13] : memref<1x128xf32, #tpu.memory_space<vmem>>, vector<1x128xf32>
      %14 = vector.broadcast %13 : vector<1x128xf32> to vector<8x128xf32>
      %15 = arith.addf %12, %14 : vector<8x128xf32>
      %c0_14 = arith.constant 0 : index
      %c0_15 = arith.constant 0 : index
      %16 = vector.load %arg6[%c0_14, %c0_15] : memref<8x128xf32, #tpu.memory_space<vmem>>, vector<8x128xf32>
      tpu.vector_store %arg6[%c0_14, %c0_15], %15 {strides = array<i32>} : memref<8x128xf32, #tpu.memory_space<vmem>>, vector<8x128xf32>,
    } else {
    }
    return
  }
  func.func @transform_0(%arg0: i32, %arg1: i32, %arg2: i32) -> (i32, i32) {
    %c0_i32 = arith.constant 0 : i32
    return %arg0, %arg2 : i32, i32
  }
  func.func @transform_1(%arg0: i32, %arg1: i32, %arg2: i32) -> (i32, i32) {
    %c0_i32 = arith.constant 0 : i32
    return %arg2, %arg1 : i32, i32
  }
  func.func @transform_2(%arg0: i32, %arg1: i32, %arg2: i32) -> (i32, i32) {
    %c0_i32 = arith.constant 0 : i32
    %c0_i32_0 = arith.constant 0 : i32
    return %c0_i32, %arg1 : i32, i32
  }
  func.func @transform_3(%arg0: i32, %arg1: i32, %arg2: i32) -> (i32, i32) {
    %c0_i32 = arith.constant 0 : i32
    return %arg0, %arg1 : i32, i32
  }
}

</mosaic_0001>

<bundles_post_ra>
// kernel: tpu_custom_call.1
= control target key start
LH: loop header
LB: loop body
LE: loop exit
PB: predicated region body
PF: predicated region fallthrough
CT: control target
= control target key end

     0   :  { %7 = vsyncpa [#allocation3], 0  ;;  %s1820_s9 = smov [#allocation2]   ;;  %s2370_s0 = inlined_call_operand.vmem [shape: f32[1,110,64], index: 0, kind: input, shape index: {}]   ;;  %s2371_s1 = inlined_call_operand.hbm [shape: bf16[9,64,64], index: 1, kind: input, shape index: {}]   ;;  %s2372_s2 = inlined_call_operand.vmem [shape: f32[1,80,64], index: 2, kind: output, shape index: {}]  }
   0x1   :  { %s15_s10 = sshll.u32 %s1820_s9, 4  ;;  %s16_s10 = int_to_ptr.vmem [resolvable:$true] %s15_s10 }
   0x2   :  { %s1806_s11 = scalar_lea.vmem %s16_s10, 4608  ;;  %p1811_p1 = scmp.lt.s32.totalorder %s16_s10, %s16_s10 }
   0x3   :  { %p1807_p0 = scmp.ne.s32.totalorder %s16_s10, %s1806_s11  ;;  %p1812_p2 = scmp.lt.s32.totalorder %s1806_s11, %s1806_s11 }
   0x5   :  { %p1813_p3 = por %p1812_p2, %p1811_p1 }
   0x7   :  { %p1814_p4 = pnand %p1813_p3, %p1807_p0 }
   0x9   :  { %1817 = shalt.err (!%p1814_p4)
}
   0xa   :  { %s1821_s12 = smov 64   ;;  %s1822_s13 = smov 4  }
   0xb   :  { %21 = dma.hbm_to_vmem [thread:$0]  %s2371_s1, 4608, %s16_s10, [#allocation3], %s1821_s12, %s1821_s12, %s1822_s13  }
   0xc   :  { %1818 = dma.done.wait [#allocation3], 4608  }
   0xd   :  { %1819 = vsyncadd [#allocation3], 4294962688  ;;  %v1823_v0 = vmov 0.0   ;;  %vm1824_vm0 = vmmov 0   ;;  %v1762_v1 = vld [vmem:[#allocation2 + $0x38] sm:$0xff]   ;;  %v1763_v2 = vld [vmem:[#allocation2 + $0x30] sm:$0xff]  }
   0xe   :  { %1749 = vmatprep.subr.bf16.mxu1 %v1823_v0  ;;  %1497 = vmatprep.subr.bf16.mxu0 %v1823_v0  ;;  %v1764_v3 = vld [vmem:[#allocation2 + $0x28] sm:$0xff]   ;;  %v1765_v4 = vld [vmem:[#allocation2 + $0x20] sm:$0xff]   ;;  %v1766_v10 = vld [vmem:[#allocation2 + $0x18] sm:$0xff]   ;;  %vm97_vm1 = vcmask 523264  }
   0xf   :  { %1513 = vmatprep.mubr.msk.bf16.mxu1 %vm1824_vm0, %v1823_v0  ;;  %1505 = vmatprep.mubr.msk.bf16.mxu0 %vm1824_vm0, %v1823_v0  ;;  %v53_v5 = vld [vmem:[%s2370_s0 + $0x21] sm:$0xff]  ;;  %v54_v6 = vld [vmem:[%s2370_s0 + $0x29] sm:$0xff]  ;;  %v1767_v12 = vld [vmem:[#allocation2 + $0x58] sm:$0xff]  }
  0x10   :  { %1753 = vmatpush3.bf16.msra.mxu1 %v1762_v1  ;;  %1498 = vmatpush3.bf16.msra.mxu0 %v1762_v1  ;;  %v49_v7 = vld [vmem:[%s2370_s0 + $0x1] sm:$0xff]  ;;  %v50_v8 = vld [vmem:[%s2370_s0 + $0x9] sm:$0xff]  ;;  %v61_v9 = vpack.c.bf16 %v54_v6, %v53_v5  ;;  %v55_v14 = vld [vmem:[%s2370_s0 + $0x31] sm:$0xff] }
  0x11   :  { %1750 = vmatprep.subr.bf16.mxu1 %v1823_v0  ;;  %1499 = vmatprep.subr.bf16.mxu0 %v1823_v0  ;;  %v59_v11 = vpack.c.bf16 %v50_v8, %v49_v7  ;;  %v1768_v13 = vld [vmem:[#allocation2 + $0x10] sm:$0xff]   ;;  %v56_v15 = vld [vmem:[%s2370_s0 + $0x39] sm:$0xff]  ;;  %v1770_v21 = vld [vmem:[#allocation2 + $0x8] sm:$0xff]  }
  0x12   :  { %v1769_v16 = vld [vmem:[#allocation2 + $0x50] sm:$0xff]   ;;  %v52_v18 = vld [vmem:[%s2370_s0 + $0x19] sm:$0xff]  ;;  %v62_v19 = vpack.c.bf16 %v56_v15, %v55_v14  ;;  %v1771_v22 = vld [vmem:[#allocation2 + $0x48] sm:$0xff]  }
  0x13   :  { %v51_v17 = vld [vmem:[%s2370_s0 + $0x11] sm:$0xff]  ;;  %v57_v23 = vld [vmem:[%s2370_s0 + $0x41] sm:$0xff]  ;;  %v58_v24 = vld [vmem:[%s2370_s0 + $0x49] sm:$0xff] }
  0x14   :  { %1754 = vmatpush3.bf16.msra.mxu1 %v1763_v2  ;;  %1500 = vmatpush3.bf16.msra.mxu0 %v1763_v2  ;;  %v60_v20 = vpack.c.bf16 %v52_v18, %v51_v17  ;;  %v1772_v25 = vld [vmem:[#allocation2 + $0x40] sm:$0xff]   ;;  %v1905_v28 = vld [vmem:[%s2370_s0 + $0xa] sm:$0xff]  ;;  %v63_v29 = vpack.c.bf16 %v58_v24, %v57_v23  ;;  %v1775_v31 = vld [vmem:[#allocation2 + $0x98] sm:$0xff]  }
  0x15   :  { %1751 = vmatprep.subr.bf16.mxu1 %v1823_v0  ;;  %1501 = vmatprep.subr.bf16.mxu0 %v1823_v0  ;;  %v1773_v26 = vld [vmem:[#allocation2] sm:$0xff]   ;;  %v27_v33 = vld [vmem:[%s2370_s0 + $0x8] sm:$0xff]  ;;  %v1929_v34 = vld [vmem:[%s2370_s0 + $0x12] sm:$0xff] }
  0x16   :  { %v298_v27 = vld [vmem:[%s2370_s0 + $0x2] sm:$0xff]  ;;  %v1934_v35 = vld [vmem:[%s2370_s0 + $0x1a] sm:$0xff]  ;;  %v1777_v36 = vld [vmem:[#allocation2 + $0x90] sm:$0xff]  }
  0x17   :  { %v308_v30 = vpack.c.bf16 %v1905_v28, %v298_v27  ;;  %v26_v32 = vld [vmem:[%s2370_s0] sm:$0xff]  ;;  %v309_v38 = vpack.c.bf16 %v1934_v35, %v1929_v34  ;;  %v1774_v39 = vld [vmem:[#allocation2 + $0x78] sm:$0xff]   ;;  %v28_v40 = vld [vmem:[%s2370_s0 + $0x10] sm:$0xff] }
  0x18   :  { %1755 = vmatpush3.bf16.msra.mxu1 %v1764_v3  ;;  %1502 = vmatpush3.bf16.msra.mxu0 %v1764_v3  ;;  %v36_v37 = vpack.c.bf16 %v27_v33, %v26_v32  ;;  %v1779_v41 = vld [vmem:[#allocation2 + $0x88] sm:$0xff]   ;;  %v29_v42 = vld [vmem:[%s2370_s0 + $0x18] sm:$0xff]  ;;  %v1776_v43 = vld [vmem:[#allocation2 + $0x70] sm:$0xff]  }
  0x19   :  { %1752 = vmatprep.subr.bf16.mxu1 %v1823_v0  ;;  %1503 = vmatprep.subr.bf16.mxu0 %v1823_v0  ;;  %v1955_v44 = vld [vmem:[%s2370_s0 + $0x22] sm:$0xff]  ;;  %v1960_v45 = vld [vmem:[%s2370_s0 + $0x2a] sm:$0xff]  ;;  %v37_v47 = vpack.c.bf16 %v29_v42, %v28_v40  ;;  %v1984_v52 = vld [vmem:[%s2370_s0 + $0x32] sm:$0xff] }
  0x1a   :  { %v1781_v46 = vld [vmem:[#allocation2 + $0x80] sm:$0xff]   ;;  %v310_v48 = vpack.c.bf16 %v1960_v45, %v1955_v44  ;;  %v1778_v49 = vld [vmem:[#allocation2 + $0x68] sm:$0xff]   ;;  %v32_v57 = vld [vmem:[%s2370_s0 + $0x30] sm:$0xff]  ;;  %v455_v18 = vpack.c.bf16 %v1955_v44, %v1934_v35  ;;  %v456_v24 = vpack.c.bf16 %v1984_v52, %v1960_v45 }
  0x1b   :  { %v30_v50 = vld [vmem:[%s2370_s0 + $0x20] sm:$0xff]  ;;  %v31_v51 = vld [vmem:[%s2370_s0 + $0x28] sm:$0xff]  ;;  %v33_v58 = vld [vmem:[%s2370_s0 + $0x38] sm:$0xff] }
  0x1c   :  { %1756 = vmatpush3.bf16.msra.mxu1 %v1765_v4  ;;  %1504 = vmatpush3.bf16.msra.mxu0 %v1765_v4  ;;  %v1989_v53 = vld [vmem:[%s2370_s0 + $0x3a] sm:$0xff]  ;;  %v38_v55 = vpack.c.bf16 %v31_v51, %v30_v50  ;;  %v2011_v59 = vld [vmem:[%s2370_s0 + $0x42] sm:$0xff]  ;;  %v2016_v60 = vld [vmem:[%s2370_s0 + $0x4a] sm:$0xff]  ;;  %v39_v61 = vpack.c.bf16 %v33_v58, %v32_v57 }
  0x1d   :  { %1525 = vmatprep.subr.bf16.mxu1 %v1823_v0  ;;  %1553 = vmatprep.subr.bf16.mxu0 %v1823_v0  ;;  %v1780_v54 = vld [vmem:[#allocation2 + $0x60] sm:$0xff]   ;;  %v311_v56 = vpack.c.bf16 %v1989_v53, %v1984_v52  ;;  %v312_v62 = vpack.c.bf16 %v2016_v60, %v2011_v59  ;;  %v35_v1 = vld [vmem:[%s2370_s0 + $0x48] sm:$0xff]  ;;  %v591_v3 = vld [vmem:[%s2370_s0 + $0x13] sm:$0xff] }
  0x1e   :  { %v34_v63 = vld [vmem:[%s2370_s0 + $0x40] sm:$0xff]  ;;  %v590_v2 = vld [vmem:[%s2370_s0 + $0xb] sm:$0xff]  ;;  %v1783_v6 = vld [vmem:[#allocation2 + $0xd8] sm:$0xff]  }
  0x1f   :  { %1514 = vmatmul.mubr.msk.bf16.vlgmr.msra.gmra.mxu1 %vm97_vm1, %v61_v9  ;;  %1506 = vmatmul.mubr.msk.bf16.vlgmr.msra.gmra.mxu0 %vm97_vm1, %v59_v11  ;;  %v40_v4 = vpack.c.bf16 %v35_v1, %v34_v63  ;;  %v600_v5 = vpack.c.bf16 %v591_v3, %v590_v2  ;;  %v592_v7 = vld [vmem:[%s2370_s0 + $0x1b] sm:$0xff]  ;;  %v593_v8 = vld [vmem:[%s2370_s0 + $0x23] sm:$0xff]  ;;  %v1785_v9 = vld [vmem:[#allocation2 + $0xd0] sm:$0xff]  }
  0x20   :  { %1526 = vmatpush3.bf16.msra.mxu1 %v1766_v10  ;;  %1554 = vmatpush3.bf16.msra.mxu0 %v1767_v12  ;;  %v454_v10 = vpack.c.bf16 %v1929_v34, %v1905_v28  ;;  %v601_v11 = vpack.c.bf16 %v593_v8, %v592_v7  ;;  %v1782_v12 = vld [vmem:[#allocation2 + $0xb8] sm:$0xff]   ;;  %v1784_v14 = vld [vmem:[#allocation2 + $0xb0] sm:$0xff]   ;;  %v1789_v17 = vld [vmem:[#allocation2 + $0xc0] sm:$0xff]   ;;  %v457_v28 = vpack.c.bf16 %v2011_v59, %v1989_v53 }
  0x21   :  { %1527 = vmatprep.subr.bf16.mxu1 %v1823_v0  ;;  %1517 = vmatprep.mubr.msk.bf16.mxu1 %vm1824_vm0, %v1823_v0  ;;  %v594_v15 = vld [vmem:[%s2370_s0 + $0x2b] sm:$0xff]  ;;  %v1788_v23 = vld [vmem:[#allocation2 + $0xa0] sm:$0xff]   ;;  %v599_v27 = vld [vmem:[%s2370_s0 + $0x53] sm:$0xff] }
  0x22   :  { %1555 = vmatprep.subr.bf16.mxu0 %v1823_v0  ;;  %1509 = vmatprep.mubr.msk.bf16.mxu0 %vm1824_vm0, %v1823_v0  ;;  %v883_v32 = vld [vmem:[%s2370_s0 + $0x1c] sm:$0xff]  ;;  %v1792_v44 = vld [vmem:[#allocation2 + $0xf0] sm:$0xff]   ;;  %v1794_v50 = vld [vmem:[#allocation2 + $0xe8] sm:$0xff]  }
  0x23   :  { %v1791_v35 = vld [vmem:[#allocation2 + $0x118] sm:$0xff]   ;;  %v888_v51 = vld [vmem:[%s2370_s0 + $0x44] sm:$0xff]  ;;  %v889_v52 = vld [vmem:[%s2370_s0 + $0x4c] sm:$0xff] }
  0x24   :  { %1528 = vmatpush3.bf16.msra.mxu1 %v1768_v13  ;;  %1556 = vmatpush3.bf16.msra.mxu0 %v1769_v16  ;;  %v1787_v13 = vld [vmem:[#allocation2 + $0xc8] sm:$0xff]   ;;  %v595_v16 = vld [vmem:[%s2370_s0 + $0x33] sm:$0xff]  ;;  %v1796_v53 = vld [vmem:[#allocation2 + $0xe0] sm:$0xff]  }
  0x25   :  { %1529 = vmatprep.subr.bf16.mxu1 %v1823_v0  ;;  %1557 = vmatprep.subr.bf16.mxu0 %v1823_v0  ;;  %v1790_v42 = vld [vmem:[#allocation2 + $0xf8] sm:$0xff]   ;;  %v1176_v3 = vld [vmem:[%s2370_s0 + $0x26] sm:$0xff] }
  0x26   :  { %v886_v45 = vld [vmem:[%s2370_s0 + $0x34] sm:$0xff]  ;;  %v891_v57 = vld [vmem:[%s2370_s0 + $0x5c] sm:$0xff]  ;;  %v1030_v7 = vld [vmem:[%s2370_s0 + $0x25] sm:$0xff] }
  0x27   :  { %1518 = vmatmul.mubr.msk.bf16.gmra.mxu1 %vm97_vm1, %v62_v19  ;;  %1510 = vmatmul.mubr.msk.bf16.gmra.mxu0 %vm97_vm1, %v60_v20  ;;  %v602_v19 = vpack.c.bf16 %v595_v16, %v594_v15  ;;  %v1786_v20 = vld [vmem:[#allocation2 + $0xa8] sm:$0xff]   ;;  %v1028_v1 = vld [vmem:[%s2370_s0 + $0x15] sm:$0xff]  ;;  %v1029_v2 = vld [vmem:[%s2370_s0 + $0x1d] sm:$0xff] }
  0x28   :  { %1530 = vmatpush3.bf16.msra.mxu1 %v1770_v21  ;;  %1558 = vmatpush3.bf16.msra.mxu0 %v1771_v22  ;;  %v596_v21 = vld [vmem:[%s2370_s0 + $0x3b] sm:$0xff]  ;;  %v597_v22 = vld [vmem:[%s2370_s0 + $0x43] sm:$0xff]  ;;  %v1031_v8 = vld [vmem:[%s2370_s0 + $0x2d] sm:$0xff] }
  0x29   :  { %1521 = vmatprep.mubr.msk.bf16.mxu1 %vm1824_vm0, %v1823_v0  ;;  %1559 = vmatprep.subr.bf16.mxu0 %v1823_v0  ;;  %v1180_v15 = vld [vmem:[%s2370_s0 + $0x46] sm:$0xff]  ;;  %v1181_v16 = vld [vmem:[%s2370_s0 + $0x4e] sm:$0xff] }
  0x2a   :  { %1531 = vmatprep.subr.bf16.mxu1 %v1823_v0  ;;  %1561 = vmatprep.mubr.msk.bf16.mxu0 %vm1824_vm0, %v1823_v0 }
  0x2c   :  { %1560 = vmatpush3.bf16.msra.mxu0 %v1772_v25  ;;  %1532 = vmatpush3.bf16.msra.mxu1 %v1773_v26  ;;  %v603_v25 = vpack.c.bf16 %v597_v22, %v596_v21  ;;  %v598_v26 = vld [vmem:[%s2370_s0 + $0x4b] sm:$0xff]  ;;  %v1182_v21 = vld [vmem:[%s2370_s0 + $0x56] sm:$0xff]  ;;  %v1183_v22 = vld [vmem:[%s2370_s0 + $0x5e] sm:$0xff] }
  0x2d   :  { %1581 = vmatprep.subr.bf16.mxu1 %v1823_v0  ;;  %1609 = vmatprep.subr.bf16.mxu0 %v1823_v0 }
  0x2f   :  { %1522 = vmatmul.mubr.msk.bf16.gmra.mxu1 %vm97_vm1, %v63_v29  ;;  %1562 = vmatmul.mubr.msk.bf16.vlgmr.msra.gmra.mxu0 %vm97_vm1, %v308_v30  ;;  %v604_v29 = vpack.c.bf16 %v599_v27, %v598_v26  ;;  %v453_v30 = vld [vmem:[%s2370_s0 + $0x52] sm:$0xff]  ;;  %v1037_v26 = vld [vmem:[%s2370_s0 + $0x5d] sm:$0xff] }
  0x30   :  { %1533 = vmatprep.mubr.msk.bf16.mxu1 %vm1824_vm0, %v1823_v0  ;;  %1610 = vmatpush3.bf16.msra.mxu0 %v1775_v31  ;;  %v882_v31 = vld [vmem:[%s2370_s0 + $0x14] sm:$0xff]  ;;  %v458_v33 = vpack.c.bf16 %v453_v30, %v2016_v60 }
  0x31   :  { %1565 = vmatprep.mubr.msk.bf16.mxu0 %vm1824_vm0, %v1823_v0  ;;  %1611 = vmatprep.subr.bf16.mxu0 %v1823_v0  ;;  %v892_v34 = vpack.c.bf16 %v883_v32, %v882_v31  ;;  %v1174_v60 = vld [vmem:[%s2370_s0 + $0x16] sm:$0xff] }
  0x34   :  { %1612 = vmatpush3.bf16.msra.mxu0 %v1777_v36  ;;  %v736_v36 = vld [vmem:[%s2370_s0 + $0xc] sm:$0xff] }
  0x35   :  { %1613 = vmatprep.subr.bf16.mxu0 %v1823_v0  ;;  %v746_v40 = vpack.c.bf16 %v882_v31, %v736_v36 }
  0x37   :  { %1534 = vmatmul.mubr.msk.bf16.vlgmr.msra.gmra.mxu1 %vm97_vm1, %v36_v37  ;;  %1566 = vmatmul.mubr.msk.bf16.gmra.mxu0 %vm97_vm1, %v309_v38  ;;  %v884_v37 = vld [vmem:[%s2370_s0 + $0x24] sm:$0xff]  ;;  %v885_v38 = vld [vmem:[%s2370_s0 + $0x2c] sm:$0xff] }
  0x38   :  { %1582 = vmatpush3.bf16.msra.mxu1 %v1774_v39  ;;  %1537 = vmatprep.mubr.msk.bf16.mxu1 %vm1824_vm0, %v1823_v0  ;;  %v1793_v39 = vld [vmem:[#allocation2 + $0x110] sm:$0xff]  }
  0x39   :  { %1583 = vmatprep.subr.bf16.mxu1 %v1823_v0  ;;  %1569 = vmatprep.mubr.msk.bf16.mxu0 %vm1824_vm0, %v1823_v0 }
  0x3a   :  { %1614 = vmatpush3.bf16.msra.mxu0 %v1779_v41  ;;  %v893_v41 = vpack.c.bf16 %v885_v38, %v884_v37 }
  0x3b   :  { %1615 = vmatprep.subr.bf16.mxu0 %v1823_v0 }
  0x3c   :  { %1584 = vmatpush3.bf16.msra.mxu1 %v1776_v43  ;;  %v1795_v43 = vld [vmem:[#allocation2 + $0x108] sm:$0xff]  }
  0x3d   :  { %1585 = vmatprep.subr.bf16.mxu1 %v1823_v0 }
  0x3e   :  { %1616 = vmatpush3.bf16.msra.mxu0 %v1781_v46  ;;  %v887_v46 = vld [vmem:[%s2370_s0 + $0x3c] sm:$0xff] }
  0x3f   :  { %1538 = vmatmul.mubr.msk.bf16.gmra.mxu1 %vm97_vm1, %v37_v47  ;;  %1570 = vmatmul.mubr.msk.bf16.gmra.mxu0 %vm97_vm1, %v310_v48  ;;  %v1797_v47 = vld [vmem:[#allocation2 + $0x100] sm:$0xff]   ;;  %v747_v48 = vpack.c.bf16 %v884_v37, %v883_v32  ;;  %v749_v58 = vpack.c.bf16 %v888_v51, %v887_v46 }
  0x40   :  { %1541 = vmatprep.mubr.msk.bf16.mxu1 %vm1824_vm0, %v1823_v0  ;;  %1573 = vmatprep.mubr.msk.bf16.mxu0 %vm1824_vm0, %v1823_v0 }
  0x41   :  { %1586 = vmatpush3.bf16.msra.mxu1 %v1778_v49  ;;  %1665 = vmatprep.subr.bf16.mxu0 %v1823_v0  ;;  %v894_v49 = vpack.c.bf16 %v887_v46, %v886_v45 }
  0x42   :  { %1587 = vmatprep.subr.bf16.mxu1 %v1823_v0 }
  0x45   :  { %1588 = vmatpush3.bf16.msra.mxu1 %v1780_v54  ;;  %v748_v54 = vpack.c.bf16 %v886_v45, %v885_v38 }
  0x46   :  { %1637 = vmatprep.subr.bf16.mxu1 %v1823_v0 }
  0x47   :  { %1542 = vmatmul.mubr.msk.bf16.gmra.mxu1 %vm97_vm1, %v38_v55  ;;  %1574 = vmatmul.mubr.msk.bf16.gmra.mxu0 %vm97_vm1, %v311_v56  ;;  %v895_v55 = vpack.c.bf16 %v889_v52, %v888_v51  ;;  %v890_v56 = vld [vmem:[%s2370_s0 + $0x54] sm:$0xff] }
  0x48   :  { %1545 = vmatprep.mubr.msk.bf16.mxu1 %vm1824_vm0, %v1823_v0  ;;  %1577 = vmatprep.mubr.msk.bf16.mxu0 %vm1824_vm0, %v1823_v0  ;;  %v896_v59 = vpack.c.bf16 %v891_v57, %v890_v56 }
  0x4f   :  { %1546 = vmatmul.mubr.msk.bf16.gmra.mxu1 %vm97_vm1, %v39_v61  ;;  %1578 = vmatmul.mubr.msk.bf16.gmra.mxu0 %vm97_vm1, %v312_v62  ;;  %v1175_v61 = vld [vmem:[%s2370_s0 + $0x1e] sm:$0xff]  ;;  %v750_v62 = vpack.c.bf16 %v890_v56, %v889_v52 }
  0x50   :  { %1549 = vmatprep.mubr.msk.bf16.mxu1 %vm1824_vm0, %v1823_v0  ;;  %1617 = vmatprep.mubr.msk.bf16.mxu0 %vm1824_vm0, %v1823_v0  ;;  %v1184_v63 = vpack.c.bf16 %v1175_v61, %v1174_v60 }
  0x57   :  { %1550 = vmatmul.mubr.msk.bf16.gmra.mxu1 %vm97_vm1, %v40_v4  ;;  %1618 = vmatmul.mubr.msk.bf16.vlgmr.msra.gmra.mxu0 %vm97_vm1, %v600_v5  ;;  %v1177_v4 = vld [vmem:[%s2370_s0 + $0x2e] sm:$0xff]  ;;  %v1038_v5 = vpack.c.bf16 %v1029_v2, %v1028_v1 }
  0x58   :  { %1589 = vmatprep.mubr.msk.bf16.mxu1 %vm1824_vm0, %v1823_v0  ;;  %1666 = vmatpush3.bf16.msra.mxu0 %v1783_v6  ;;  %v1185_v6 = vpack.c.bf16 %v1177_v4, %v1176_v3 }
  0x59   :  { %1621 = vmatprep.mubr.msk.bf16.mxu0 %vm1824_vm0, %v1823_v0  ;;  %1667 = vmatprep.subr.bf16.mxu0 %v1823_v0 }
  0x5c   :  { %1668 = vmatpush3.bf16.msra.mxu0 %v1785_v9  ;;  %v1178_v9 = vld [vmem:[%s2370_s0 + $0x36] sm:$0xff] }
  0x5d   :  { %1669 = vmatprep.subr.bf16.mxu0 %v1823_v0 }
  0x5f   :  { %1590 = vmatmul.mubr.msk.bf16.vlgmr.msra.gmra.mxu1 %vm97_vm1, %v454_v10  ;;  %1622 = vmatmul.mubr.msk.bf16.gmra.mxu0 %vm97_vm1, %v601_v11  ;;  %v1179_v10 = vld [vmem:[%s2370_s0 + $0x3e] sm:$0xff]  ;;  %v1039_v11 = vpack.c.bf16 %v1031_v8, %v1030_v7 }
  0x60   :  { %1638 = vmatpush3.bf16.msra.mxu1 %v1782_v12  ;;  %1593 = vmatprep.mubr.msk.bf16.mxu1 %vm1824_vm0, %v1823_v0  ;;  %v1186_v12 = vpack.c.bf16 %v1179_v10, %v1178_v9 }
  0x61   :  { %1639 = vmatprep.subr.bf16.mxu1 %v1823_v0  ;;  %1625 = vmatprep.mubr.msk.bf16.mxu0 %vm1824_vm0, %v1823_v0 }
  0x62   :  { %1670 = vmatpush3.bf16.msra.mxu0 %v1787_v13  ;;  %v1032_v13 = vld [vmem:[%s2370_s0 + $0x35] sm:$0xff] }
  0x63   :  { %1671 = vmatprep.subr.bf16.mxu0 %v1823_v0 }
  0x64   :  { %1640 = vmatpush3.bf16.msra.mxu1 %v1784_v14  ;;  %v1033_v14 = vld [vmem:[%s2370_s0 + $0x3d] sm:$0xff] }
  0x65   :  { %1641 = vmatprep.subr.bf16.mxu1 %v1823_v0 }
  0x66   :  { %1672 = vmatpush3.bf16.msra.mxu0 %v1789_v17  ;;  %v1040_v17 = vpack.c.bf16 %v1033_v14, %v1032_v13 }
  0x67   :  { %1594 = vmatmul.mubr.msk.bf16.gmra.mxu1 %vm97_vm1, %v455_v18  ;;  %1626 = vmatmul.mubr.msk.bf16.gmra.mxu0 %vm97_vm1, %v602_v19  ;;  %v1187_v18 = vpack.c.bf16 %v1181_v16, %v1180_v15  ;;  %v1034_v19 = vld [vmem:[%s2370_s0 + $0x45] sm:$0xff] }
  0x68   :  { %1597 = vmatprep.mubr.msk.bf16.mxu1 %vm1824_vm0, %v1823_v0  ;;  %1629 = vmatprep.mubr.msk.bf16.mxu0 %vm1824_vm0, %v1823_v0 }
  0x69   :  { %1642 = vmatpush3.bf16.msra.mxu1 %v1786_v20  ;;  %1721 = vmatprep.subr.bf16.mxu0 %v1823_v0  ;;  %v1035_v20 = vld [vmem:[%s2370_s0 + $0x4d] sm:$0xff] }
  0x6a   :  { %1643 = vmatprep.subr.bf16.mxu1 %v1823_v0 }
  0x6d   :  { %1644 = vmatpush3.bf16.msra.mxu1 %v1788_v23  ;;  %v1041_v23 = vpack.c.bf16 %v1035_v20, %v1034_v19 }
  0x6e   :  { %1693 = vmatprep.subr.bf16.mxu1 %v1823_v0 }
  0x6f   :  { %1598 = vmatmul.mubr.msk.bf16.gmra.mxu1 %vm97_vm1, %v456_v24  ;;  %1630 = vmatmul.mubr.msk.bf16.gmra.mxu0 %vm97_vm1, %v603_v25  ;;  %v1188_v24 = vpack.c.bf16 %v1183_v22, %v1182_v21  ;;  %v1036_v25 = vld [vmem:[%s2370_s0 + $0x55] sm:$0xff] }
  0x70   :  { %1601 = vmatprep.mubr.msk.bf16.mxu1 %vm1824_vm0, %v1823_v0  ;;  %1633 = vmatprep.mubr.msk.bf16.mxu0 %vm1824_vm0, %v1823_v0  ;;  %v1042_v27 = vpack.c.bf16 %v1037_v26, %v1036_v25 }
  0x77   :  { %1602 = vmatmul.mubr.msk.bf16.gmra.mxu1 %vm97_vm1, %v457_v28  ;;  %1634 = vmatmul.mubr.msk.bf16.gmra.mxu0 %vm97_vm1, %v604_v29 }
  0x78   :  { %1605 = vmatprep.mubr.msk.bf16.mxu1 %vm1824_vm0, %v1823_v0  ;;  %1673 = vmatprep.mubr.msk.bf16.mxu0 %vm1824_vm0, %v1823_v0 }
  0x7f   :  { %1606 = vmatmul.mubr.msk.bf16.gmra.mxu1 %vm97_vm1, %v458_v33  ;;  %1674 = vmatmul.mubr.msk.bf16.vlgmr.msra.gmra.mxu0 %vm97_vm1, %v892_v34 }
  0x80   :  { %1645 = vmatprep.mubr.msk.bf16.mxu1 %vm1824_vm0, %v1823_v0  ;;  %1722 = vmatpush3.bf16.msra.mxu0 %v1791_v35 }
  0x81   :  { %1677 = vmatprep.mubr.msk.bf16.mxu0 %vm1824_vm0, %v1823_v0  ;;  %1723 = vmatprep.subr.bf16.mxu0 %v1823_v0 }
  0x84   :  { %1724 = vmatpush3.bf16.msra.mxu0 %v1793_v39 }
  0x85   :  { %1725 = vmatprep.subr.bf16.mxu0 %v1823_v0 }
  0x87   :  { %1646 = vmatmul.mubr.msk.bf16.vlgmr.msra.gmra.mxu1 %vm97_vm1, %v746_v40  ;;  %1678 = vmatmul.mubr.msk.bf16.gmra.mxu0 %vm97_vm1, %v893_v41 }
  0x88   :  { %1694 = vmatpush3.bf16.msra.mxu1 %v1790_v42  ;;  %1649 = vmatprep.mubr.msk.bf16.mxu1 %vm1824_vm0, %v1823_v0 }
  0x89   :  { %1695 = vmatprep.subr.bf16.mxu1 %v1823_v0  ;;  %1681 = vmatprep.mubr.msk.bf16.mxu0 %vm1824_vm0, %v1823_v0 }
  0x8a   :  { %1726 = vmatpush3.bf16.msra.mxu0 %v1795_v43 }
  0x8b   :  { %1727 = vmatprep.subr.bf16.mxu0 %v1823_v0 }
  0x8c   :  { %1696 = vmatpush3.bf16.msra.mxu1 %v1792_v44 }
  0x8d   :  { %1697 = vmatprep.subr.bf16.mxu1 %v1823_v0 }
  0x8e   :  { %1728 = vmatpush3.bf16.msra.mxu0 %v1797_v47 }
  0x8f   :  { %1650 = vmatmul.mubr.msk.bf16.gmra.mxu1 %vm97_vm1, %v747_v48  ;;  %1682 = vmatmul.mubr.msk.bf16.gmra.mxu0 %vm97_vm1, %v894_v49 }
  0x90   :  { %1653 = vmatprep.mubr.msk.bf16.mxu1 %vm1824_vm0, %v1823_v0  ;;  %1685 = vmatprep.mubr.msk.bf16.mxu0 %vm1824_vm0, %v1823_v0 }
  0x91   :  { %1698 = vmatpush3.bf16.msra.mxu1 %v1794_v50 }
  0x92   :  { %1699 = vmatprep.subr.bf16.mxu1 %v1823_v0 }
  0x95   :  { %1700 = vmatpush3.bf16.msra.mxu1 %v1796_v53 }
  0x97   :  { %1654 = vmatmul.mubr.msk.bf16.gmra.mxu1 %vm97_vm1, %v748_v54  ;;  %1686 = vmatmul.mubr.msk.bf16.gmra.mxu0 %vm97_vm1, %v895_v55 }
  0x98   :  { %1657 = vmatprep.mubr.msk.bf16.mxu1 %vm1824_vm0, %v1823_v0  ;;  %1689 = vmatprep.mubr.msk.bf16.mxu0 %vm1824_vm0, %v1823_v0 }
  0x9f   :  { %1658 = vmatmul.mubr.msk.bf16.gmra.mxu1 %vm97_vm1, %v749_v58  ;;  %1690 = vmatmul.mubr.msk.bf16.gmra.mxu0 %vm97_vm1, %v896_v59 }
  0xa0   :  { %1661 = vmatprep.mubr.msk.bf16.mxu1 %vm1824_vm0, %v1823_v0  ;;  %1729 = vmatprep.mubr.msk.bf16.mxu0 %vm1824_vm0, %v1823_v0 }
  0xa7   :  { %1662 = vmatmul.mubr.msk.bf16.gmra.mxu1 %vm97_vm1, %v750_v62  ;;  %1730 = vmatmul.mubr.msk.bf16.vlgmr.msra.gmra.mxu0 %vm97_vm1, %v1184_v63 }
  0xa8   :  { %1701 = vmatprep.mubr.msk.bf16.mxu1 %vm1824_vm0, %v1823_v0  ;;  %1733 = vmatprep.mubr.msk.bf16.mxu0 %vm1824_vm0, %v1823_v0 }
  0xaf   :  { %1702 = vmatmul.mubr.msk.bf16.vlgmr.msra.gmra.mxu1 %vm97_vm1, %v1038_v5  ;;  %1734 = vmatmul.mubr.msk.bf16.gmra.mxu0 %vm97_vm1, %v1185_v6 }
  0xb0   :  { %1705 = vmatprep.mubr.msk.bf16.mxu1 %vm1824_vm0, %v1823_v0  ;;  %1737 = vmatprep.mubr.msk.bf16.mxu0 %vm1824_vm0, %v1823_v0 }
  0xb7   :  { %1706 = vmatmul.mubr.msk.bf16.gmra.mxu1 %vm97_vm1, %v1039_v11  ;;  %1738 = vmatmul.mubr.msk.bf16.gmra.mxu0 %vm97_vm1, %v1186_v12 }
  0xb8   :  { %1709 = vmatprep.mubr.msk.bf16.mxu1 %vm1824_vm0, %v1823_v0  ;;  %1741 = vmatprep.mubr.msk.bf16.mxu0 %vm1824_vm0, %v1823_v0 }
  0xbf   :  { %1710 = vmatmul.mubr.msk.bf16.gmra.mxu1 %vm97_vm1, %v1040_v17  ;;  %1742 = vmatmul.mubr.msk.bf16.gmra.mxu0 %vm97_vm1, %v1187_v18 }
  0xc0   :  { %1713 = vmatprep.mubr.msk.bf16.mxu1 %vm1824_vm0, %v1823_v0  ;;  %1745 = vmatprep.mubr.msk.bf16.mxu0 %vm1824_vm0, %v1823_v0 }
  0xc7   :  { %1714 = vmatmul.mubr.msk.bf16.gmra.mxu1 %vm97_vm1, %v1041_v23  ;;  %1746 = vmatmul.mubr.msk.bf16.gmra.mxu0 %vm97_vm1, %v1188_v24 }
  0xc8   :  { %1717 = vmatprep.mubr.msk.bf16.mxu1 %vm1824_vm0, %v1823_v0 }
  0xcf   :  { %1718 = vmatmul.mubr.msk.bf16.gmra.mxu1 %vm97_vm1, %v1042_v27 }
  0xdf   :  { %v163_v28 = vpop.f32.mrf.mxu1  ;;  %v147_v29 = vpop.f32.mrf.mxu0 }
  0xe1   :  { %v1515_v30 = vpop.f32.mrf.mxu1  ;;  %v1507_v31 = vpop.f32.mrf.mxu0 }
  0xe3   :  { %v166_v32 = vpop.f32.mrf.mxu1  ;;  %v150_v33 = vpop.f32.mrf.mxu0 }
  0xe5   :  { %v1516_v34 = vpop.f32.mrf.mxu1  ;;  %v1508_v35 = vpop.f32.mrf.mxu0 }
  0xe7   :  { %v171_v0 = vpop.f32.mrf.mxu1  ;;  %v155_v36 = vpop.f32.mrf.mxu0 }
  0xe9   :  { %v1519_v37 = vpop.f32.mrf.mxu1  ;;  %v1511_v38 = vpop.f32.mrf.mxu0 }
  0xeb   :  { %v174_v39 = vpop.f32.mrf.mxu1  ;;  %v158_v40 = vpop.f32.mrf.mxu0 }
  0xed   :  { %v1520_v41 = vpop.f32.mrf.mxu1  ;;  %v1512_v42 = vpop.f32.mrf.mxu0 }
  0xef   :  { %v179_v43 = vpop.f32.mrf.mxu1  ;;  %v395_v44 = vpop.f32.mrf.mxu0 }
  0xf1   :  { %v1523_v45 = vpop.f32.mrf.mxu1  ;;  %v1563_v46 = vpop.f32.mrf.mxu0 }
  0xf3   :  { %v182_v47 = vpop.f32.mrf.mxu1  ;;  %v398_v48 = vpop.f32.mrf.mxu0 }
  0xf5   :  { %v1524_v49 = vpop.f32.mrf.mxu1  ;;  %v1564_v50 = vpop.f32.mrf.mxu0 }
  0xf7   :  { %v259_v51 = vpop.f32.mrf.mxu1  ;;  %v403_v52 = vpop.f32.mrf.mxu0 }
  0xf8   :  { %v260_v53 = vadd.f32 %v259_v51, %v147_v29 }
  0xf9   :  { %v1535_v54 = vpop.f32.mrf.mxu1  ;;  %v1567_v55 = vpop.f32.mrf.mxu0 }
  0xfa   :  { %v434_v56 = vadd.f32 %v395_v44, %v260_v53 }
  0xfb   :  { %v262_v57 = vpop.f32.mrf.mxu1  ;;  %v406_v58 = vpop.f32.mrf.mxu0 }
  0xfc   :  { %v263_v59 = vadd.f32 %v262_v57, %v150_v33 }
  0xfd   :  { %v1536_v60 = vpop.f32.mrf.mxu1  ;;  %v1568_v61 = vpop.f32.mrf.mxu0 }
  0xfe   :  { %v435_v62 = vadd.f32 %v398_v48, %v263_v59 }
  0xff   :  { %v267_v63 = vpop.f32.mrf.mxu1  ;;  %v411_v1 = vpop.f32.mrf.mxu0 }
 0x100   :  { %v268_v2 = vadd.f32 %v267_v63, %v155_v36 }
 0x101   :  { %v1539_v3 = vpop.f32.mrf.mxu1  ;;  %v1571_v4 = vpop.f32.mrf.mxu0 }
 0x102   :  { %v436_v5 = vadd.f32 %v403_v52, %v268_v2 }
 0x103   :  { %v270_v6 = vpop.f32.mrf.mxu1  ;;  %v414_v7 = vpop.f32.mrf.mxu0 }
 0x104   :  { %v271_v8 = vadd.f32 %v270_v6, %v158_v40 }
 0x105   :  { %v1540_v9 = vpop.f32.mrf.mxu1  ;;  %v1572_v10 = vpop.f32.mrf.mxu0 }
 0x106   :  { %v437_v11 = vadd.f32 %v406_v58, %v271_v8 }
 0x107   :  { %v275_v12 = vpop.f32.mrf.mxu1  ;;  %v419_v13 = vpop.f32.mrf.mxu0 }
 0x108   :  { %v276_v14 = vadd.f32 %v275_v12, %v163_v28 }
 0x109   :  { %v1543_v15 = vpop.f32.mrf.mxu1  ;;  %v1575_v16 = vpop.f32.mrf.mxu0 }
 0x10a   :  { %v438_v17 = vadd.f32 %v411_v1, %v276_v14 }
 0x10b   :  { %v278_v18 = vpop.f32.mrf.mxu1  ;;  %v422_v19 = vpop.f32.mrf.mxu0 }
 0x10c   :  { %v279_v20 = vadd.f32 %v278_v18, %v166_v32 }
 0x10d   :  { %v1544_v21 = vpop.f32.mrf.mxu1  ;;  %v1576_v22 = vpop.f32.mrf.mxu0 }
 0x10e   :  { %v439_v23 = vadd.f32 %v414_v7, %v279_v20 }
 0x10f   :  { %v283_v24 = vpop.f32.mrf.mxu1  ;;  %v427_v25 = vpop.f32.mrf.mxu0 }
 0x110   :  { %v284_v26 = vadd.f32 %v283_v24, %v171_v0 }
 0x111   :  { %v1547_v27 = vpop.f32.mrf.mxu1  ;;  %v1579_v29 = vpop.f32.mrf.mxu0 }
 0x112   :  { %v440_v30 = vadd.f32 %v419_v13, %v284_v26 }
 0x113   :  { %v286_v31 = vpop.f32.mrf.mxu1  ;;  %v430_v33 = vpop.f32.mrf.mxu0 }
 0x114   :  { %v287_v34 = vadd.f32 %v286_v31, %v174_v39 }
 0x115   :  { %v1548_v35 = vpop.f32.mrf.mxu1  ;;  %v1580_v28 = vpop.f32.mrf.mxu0 }
 0x116   :  { %v441_v36 = vadd.f32 %v422_v19, %v287_v34 }
 0x117   :  { %v291_v37 = vpop.f32.mrf.mxu1  ;;  %v687_v38 = vpop.f32.mrf.mxu0 }
 0x118   :  { %v292_v40 = vadd.f32 %v291_v37, %v179_v43 }
 0x119   :  { %v1551_v41 = vpop.f32.mrf.mxu1  ;;  %v1619_v32 = vpop.f32.mrf.mxu0 }
 0x11a   :  { %v442_v42 = vadd.f32 %v427_v25, %v292_v40 }
 0x11b   :  { %v294_v44 = vpop.f32.mrf.mxu1  ;;  %v690_v45 = vpop.f32.mrf.mxu0 }
 0x11c   :  { %v295_v46 = vadd.f32 %v294_v44, %v182_v47 }
 0x11d   :  { %v1552_v48 = vpop.f32.mrf.mxu1  ;;  %v1620_v0 = vpop.f32.mrf.mxu0 }
 0x11e   :  { %v443_v49 = vadd.f32 %v430_v33, %v295_v46 }
 0x11f   :  { %v541_v50 = vpop.f32.mrf.mxu1  ;;  %v695_v51 = vpop.f32.mrf.mxu0 }
 0x120   :  { %v580_v52 = vadd.f32 %v541_v50, %v434_v56 }
 0x121   :  { %v1591_v53 = vpop.f32.mrf.mxu1  ;;  %v1623_v39 = vpop.f32.mrf.mxu0 }
 0x122   :  { %v2270_v54 = vadd.f32 %v687_v38, %v580_v52 }
 0x123   :  { %v544_v55 = vpop.f32.mrf.mxu1  ;;  %v698_v57 = vpop.f32.mrf.mxu0 }
 0x124   :  { %v581_v58 = vadd.f32 %v544_v55, %v435_v62 }
 0x125   :  { %v1592_v43 = vpop.f32.mrf.mxu1  ;;  %v1624_v59 = vpop.f32.mrf.mxu0 }
 0x126   :  { %v2272_v60 = vadd.f32 %v690_v45, %v581_v58 }
 0x127   :  { %v549_v61 = vpop.f32.mrf.mxu1  ;;  %v703_v63 = vpop.f32.mrf.mxu0 }
 0x128   :  { %v582_v47 = vadd.f32 %v549_v61, %v436_v5 }
 0x129   :  { %v1595_v1 = vpop.f32.mrf.mxu1  ;;  %v1627_v2 = vpop.f32.mrf.mxu0 }
 0x12a   :  { %v2274_v3 = vadd.f32 %v695_v51, %v582_v47 }
 0x12b   :  { %v552_v4 = vpop.f32.mrf.mxu1  ;;  %v706_v56 = vpop.f32.mrf.mxu0 }
 0x12c   :  { %v583_v6 = vadd.f32 %v552_v4, %v437_v11 }
 0x12d   :  { %v1596_v7 = vpop.f32.mrf.mxu1  ;;  %v1628_v8 = vpop.f32.mrf.mxu0 }
 0x12e   :  { %v2276_v9 = vadd.f32 %v698_v57, %v583_v6 }
 0x12f   :  { %v557_v10 = vpop.f32.mrf.mxu1  ;;  %v711_v62 = vpop.f32.mrf.mxu0 }
 0x130   :  { %v584_v12 = vadd.f32 %v557_v10, %v438_v17 }
 0x131   :  { %v1599_v13 = vpop.f32.mrf.mxu1  ;;  %v1631_v14 = vpop.f32.mrf.mxu0 }
 0x132   :  { %v2278_v15 = vadd.f32 %v703_v63, %v584_v12 }
 0x133   :  { %v560_v16 = vpop.f32.mrf.mxu1  ;;  %v714_v5 = vpop.f32.mrf.mxu0 }
 0x134   :  { %v585_v18 = vadd.f32 %v560_v16, %v439_v23 }
 0x135   :  { %v1600_v19 = vpop.f32.mrf.mxu1  ;;  %v1632_v20 = vpop.f32.mrf.mxu0 }
 0x136   :  { %v2280_v21 = vadd.f32 %v706_v56, %v585_v18 }
 0x137   :  { %v565_v22 = vpop.f32.mrf.mxu1  ;;  %v719_v11 = vpop.f32.mrf.mxu0 }
 0x138   :  { %v586_v24 = vadd.f32 %v565_v22, %v440_v30 }
 0x139   :  { %v1603_v25 = vpop.f32.mrf.mxu1  ;;  %v1635_v26 = vpop.f32.mrf.mxu0 }
 0x13a   :  { %v2282_v27 = vadd.f32 %v711_v62, %v586_v24 }
 0x13b   :  { %v568_v29 = vpop.f32.mrf.mxu1  ;;  %v722_v17 = vpop.f32.mrf.mxu0 }
 0x13c   :  { %v587_v31 = vadd.f32 %v568_v29, %v441_v36 }
 0x13d   :  { %v1604_v33 = vpop.f32.mrf.mxu1  ;;  %v1636_v34 = vpop.f32.mrf.mxu0 }
 0x13e   :  { %v2284_v35 = vadd.f32 %v714_v5, %v587_v31 }
 0x13f   :  { %v573_v28 = vpop.f32.mrf.mxu1  ;;  %v979_v23 = vpop.f32.mrf.mxu0 }
 0x140   :  { %v588_v37 = vadd.f32 %v573_v28, %v442_v42 }
 0x141   :  { %v1607_v38 = vpop.f32.mrf.mxu1  ;;  %v1675_v40 = vpop.f32.mrf.mxu0 }
 0x142   :  { %v2286_v41 = vadd.f32 %v719_v11, %v588_v37 }
 0x143   :  { %v576_v32 = vpop.f32.mrf.mxu1  ;;  %v982_v30 = vpop.f32.mrf.mxu0 }
 0x144   :  { %v589_v44 = vadd.f32 %v576_v32, %v443_v49 }
 0x145   :  { %v1608_v45 = vpop.f32.mrf.mxu1  ;;  %v1676_v46 = vpop.f32.mrf.mxu0 }
 0x146   :  { %v2288_v48 = vadd.f32 %v722_v17, %v589_v44 }
 0x147   :  { %v833_v0 = vpop.f32.mrf.mxu1  ;;  %v987_v36 = vpop.f32.mrf.mxu0 }
 0x148   :  { %v872_v24 = vadd.f32 %v833_v0, %v2270_v54 }
 0x149   :  { %v1647_v50 = vpop.f32.mrf.mxu1  ;;  %v1679_v51 = vpop.f32.mrf.mxu0 }
 0x14a   :  { %v1018_v33 = vadd.f32 %v979_v23, %v872_v24 }
 0x14b   :  { %v836_v52 = vpop.f32.mrf.mxu1  ;;  %v2290_v53 = vpop.f32.mrf.mxu0 }
 0x14c   :  { %v873_v31 = vadd.f32 %v836_v52, %v2272_v60 }
 0x14d   :  { %v1648_v39 = vpop.f32.mrf.mxu1  ;;  %v1680_v42 = vpop.f32.mrf.mxu0 }
 0x14e   :  { %v1019_v45 = vadd.f32 %v982_v30, %v873_v31 }
 0x14f   :  { %v841_v55 = vpop.f32.mrf.mxu1  ;;  %v2292_v57 = vpop.f32.mrf.mxu0 }
 0x150   :  { %v874_v32 = vadd.f32 %v841_v55, %v2274_v3 }
 0x151   :  { %v1651_v58 = vpop.f32.mrf.mxu1  ;;  %v1683_v43 = vpop.f32.mrf.mxu0 }
 0x152   :  { %v1020_v52 = vadd.f32 %v987_v36, %v874_v32 }
 0x153   :  { %v844_v59 = vpop.f32.mrf.mxu1  ;;  %v2294_v49 = vpop.f32.mrf.mxu0 }
 0x154   :  { %v875_v23 = vadd.f32 %v844_v59, %v2276_v9 }
 0x155   :  { %v1652_v61 = vpop.f32.mrf.mxu1  ;;  %v1684_v63 = vpop.f32.mrf.mxu0 }
 0x156   :  { %v1021_v61 = vadd.f32 %v2290_v53, %v875_v23 }
 0x157   :  { %v849_v47 = vpop.f32.mrf.mxu1  ;;  %v2296_v1 = vpop.f32.mrf.mxu0 }
 0x158   :  { %v876_v58 = vadd.f32 %v849_v47, %v2278_v15 }
 0x159   :  { %v1655_v2 = vpop.f32.mrf.mxu1  ;;  %v1687_v4 = vpop.f32.mrf.mxu0 }
 0x15b   :  { %v852_v56 = vpop.f32.mrf.mxu1  ;;  %v2298_v6 = vpop.f32.mrf.mxu0 }
 0x15c   :  { %v877_v4 = vadd.f32 %v852_v56, %v2280_v21 }
 0x15d   :  { %v1656_v7 = vpop.f32.mrf.mxu1  ;;  %v1688_v8 = vpop.f32.mrf.mxu0 }
 0x15e   :  { %v1022_v8 = vadd.f32 %v2292_v57, %v876_v58 }
 0x15f   :  { %v857_v10 = vpop.f32.mrf.mxu1  ;;  %v2300_v62 = vpop.f32.mrf.mxu0 }
 0x161   :  { %v1659_v12 = vpop.f32.mrf.mxu1  ;;  %v1691_v13 = vpop.f32.mrf.mxu0 }
 0x163   :  { %v2302_v14 = vpop.f32.mrf.mxu1  ;;  %v2304_v16 = vpop.f32.mrf.mxu0 }
 0x164   :  { %v879_v24 = vadd.f32 %v2302_v14, %v2284_v35 }
 0x165   :  { %v1660_v5 = vpop.f32.mrf.mxu1  ;;  %v1692_v18 = vpop.f32.mrf.mxu0 }
 0x166   :  { %v878_v5 = vadd.f32 %v857_v10, %v2282_v27 }
 0x167   :  { %v2306_v19 = vpop.f32.mrf.mxu1  ;;  %v1271_v20 = vpop.f32.mrf.mxu0 }
 0x169   :  { %v1663_v22 = vpop.f32.mrf.mxu1  ;;  %v1731_v11 = vpop.f32.mrf.mxu0 }
 0x16b   :  { %v2309_v25 = vpop.f32.mrf.mxu1  ;;  %v1274_v26 = vpop.f32.mrf.mxu0 }
 0x16d   :  { %v1664_v29 = vpop.f32.mrf.mxu1  ;;  %v1732_v17 = vpop.f32.mrf.mxu0 }
 0x16e   :  { %v1024_v29 = vadd.f32 %v2296_v1, %v878_v5 }
 0x16f   :  { %v1125_v34 = vpop.f32.mrf.mxu1  ;;  %v1279_v28 = vpop.f32.mrf.mxu0 }
 0x170   :  { %v1164_v37 = vadd.f32 %v1125_v34, %v1018_v33  ;;  %v880_v33 = vadd.f32 %v2306_v19, %v2286_v41 }
 0x171   :  { %v1703_v38 = vpop.f32.mrf.mxu1  ;;  %v1735_v40 = vpop.f32.mrf.mxu0 }
 0x172   :  { %v1310_v44 = vadd.f32 %v1271_v20, %v1164_v37  ;;  %v1023_v20 = vadd.f32 %v2294_v49, %v877_v4  ;;  %v881_v40 = vadd.f32 %v2309_v25, %v2288_v48 }
 0x173   :  { %v1128_v46 = vpop.f32.mrf.mxu1  ;;  %v1282_v50 = vpop.f32.mrf.mxu0 }
 0x174   :  { %1320 = vst.msk [vmem:[%s2372_s2] sm:$0xff] %vm97_vm1, %v1310_v44  ;;  %v1165_v54 = vadd.f32 %v1128_v46, %v1019_v45  ;;  %v1026_v44 = vadd.f32 %v2300_v62, %v880_v33  ;;  %v1027_v46 = vadd.f32 %v2304_v16, %v881_v40 }
 0x175   :  { %v1704_v0 = vpop.f32.mrf.mxu1  ;;  %v1736_v60 = vpop.f32.mrf.mxu0 }
 0x176   :  { %v1311_v51 = vadd.f32 %v1274_v26, %v1165_v54 }
 0x177   :  { %v1133_v39 = vpop.f32.mrf.mxu1  ;;  %v1287_v42 = vpop.f32.mrf.mxu0 }
 0x178   :  { %1321 = vst.msk [vmem:[%s2372_s2 + $0x8] sm:$0xff] %vm97_vm1, %v1311_v51  ;;  %v1166_v3 = vadd.f32 %v1133_v39, %v1020_v52 }
 0x179   :  { %v1707_v30 = vpop.f32.mrf.mxu1  ;;  %v1739_v55 = vpop.f32.mrf.mxu0 }
 0x17a   :  { %v1312_v43 = vadd.f32 %v1279_v28, %v1166_v3  ;;  %v1025_v28 = vadd.f32 %v2298_v6, %v879_v24 }
 0x17b   :  { %v1136_v63 = vpop.f32.mrf.mxu1  ;;  %v1290_v2 = vpop.f32.mrf.mxu0 }
 0x17c   :  { %1322 = vst.msk [vmem:[%s2372_s2 + $0x10] sm:$0xff] %vm97_vm1, %v1312_v43  ;;  %v1167_v9 = vadd.f32 %v1136_v63, %v1021_v61 }
 0x17d   :  { %v1708_v36 = vpop.f32.mrf.mxu1  ;;  %v1740_v59 = vpop.f32.mrf.mxu0 }
 0x17e   :  { %v1313_v7 = vadd.f32 %v1282_v50, %v1167_v9 }
 0x17f   :  { %v1141_v12 = vpop.f32.mrf.mxu1  ;;  %v1295_v15 = vpop.f32.mrf.mxu0 }
 0x180   :  { %1323 = vst.msk [vmem:[%s2372_s2 + $0x18] sm:$0xff] %vm97_vm1, %v1313_v7  ;;  %v1168_v53 = vadd.f32 %v1141_v12, %v1022_v8 }
 0x181   :  { %v1711_v47 = vpop.f32.mrf.mxu1  ;;  %v1743_v13 = vpop.f32.mrf.mxu0 }
 0x182   :  { %v1314_v18 = vadd.f32 %v1287_v42, %v1168_v53 }
 0x183   :  { %v1144_v22 = vpop.f32.mrf.mxu1  ;;  %v1298_v21 = vpop.f32.mrf.mxu0 }
 0x184   :  { %1324 = vst.msk [vmem:[%s2372_s2 + $0x20] sm:$0xff] %vm97_vm1, %v1314_v18  ;;  %v1169_v57 = vadd.f32 %v1144_v22, %v1023_v20 }
 0x185   :  { %v1712_v56 = vpop.f32.mrf.mxu1  ;;  %v1744_v11 = vpop.f32.mrf.mxu0 }
 0x186   :  { %v1315_v26 = vadd.f32 %v1290_v2, %v1169_v57 }
 0x187   :  { %v1149_v27 = vpop.f32.mrf.mxu1  ;;  %v1303_v10 = vpop.f32.mrf.mxu0 }
 0x188   :  { %1325 = vst.msk [vmem:[%s2372_s2 + $0x28] sm:$0xff] %vm97_vm1, %v1315_v26  ;;  %v1170_v49 = vadd.f32 %v1149_v27, %v1024_v29 }
 0x189   :  { %v1715_v17 = vpop.f32.mrf.mxu1  ;;  %v1747_v31 = vpop.f32.mrf.mxu0 }
 0x18a   :  { %v1316_v34 = vadd.f32 %v1295_v15, %v1170_v49 }
 0x18b   :  { %v1152_v35 = vpop.f32.mrf.mxu1  ;;  %v1306_v14 = vpop.f32.mrf.mxu0 }
 0x18c   :  { %1326 = vst.msk [vmem:[%s2372_s2 + $0x30] sm:$0xff] %vm97_vm1, %v1316_v34  ;;  %v1171_v1 = vadd.f32 %v1152_v35, %v1025_v28 }
 0x18d   :  { %v1716_v37 = vpop.f32.mrf.mxu1  ;;  %v1748_v38 = vpop.f32.mrf.mxu0 }
 0x18e   :  { %v1317_v32 = vadd.f32 %v1298_v21, %v1171_v1 }
 0x18f   :  { %v1157_v41 = vpop.f32.mrf.mxu1 }
 0x190   :  { %1327 = vst.msk [vmem:[%s2372_s2 + $0x38] sm:$0xff] %vm97_vm1, %v1317_v32  ;;  %v1172_v6 = vadd.f32 %v1157_v41, %v1026_v44 }
 0x191   :  { %v1719_v19 = vpop.f32.mrf.mxu1 }
 0x192   :  { %v1318_v45 = vadd.f32 %v1303_v10, %v1172_v6 }
 0x193   :  { %v1160_v50 = vpop.f32.mrf.mxu1 }
 0x194   :  { %1328 = vst.msk [vmem:[%s2372_s2 + $0x40] sm:$0xff] %vm97_vm1, %v1318_v45  ;;  %v1173_v48 = vadd.f32 %v1160_v50, %v1027_v46 }
 0x195   :  { %v1720_v25 = vpop.f32.mrf.mxu1 }
 0x196   :  { %v1319_v62 = vadd.f32 %v1306_v14, %v1173_v48 }
 0x198   :  { %1329 = vst.msk [vmem:[%s2372_s2 + $0x48] sm:$0xff] %vm97_vm1, %v1319_v62 }
 0x199   :  { %1334 = vsyncpa [#allocation3], 1 }

// kernel: resnet34_forward.111
= control target key start
LH: loop header
LB: loop body
LE: loop exit
PB: predicated region body
PF: predicated region fallthrough
CT: control target
= control target key end

     0   :  { %vm14_vm0 = vcmask 516096   ;;  %vm82_vm1 = vcmask 523264   ;;  %v428_v0 = vmov 0.0   ;;  %s1318_s0 = inlined_call_operand.vmem [shape: f32[512,64], index: 0, kind: input, shape index: {}]   ;;  %s1319_s1 = inlined_call_operand.vmem [shape: f32[1,64], index: 1, kind: output, shape index: {0}]   ;;  %s1320_s2 = inlined_call_operand.vmem [shape: f32[1,64], index: 2, kind: output, shape index: {1}]  }
   0x1   :  { %15 = vst.msk [vmem:[%s1319_s1] sm:$0x1] %vm14_vm0, %v428_v0  ;;  %16 = vst.msk [vmem:[%s1320_s2] sm:$0x1] %vm14_vm0, %v428_v0  ;;  %v455_v1 = vld [vmem:[%s1318_s0] sm:$0xff]  ;;  %v460_v2 = vld [vmem:[%s1318_s0 + $0x8] sm:$0xff] }
   0x2   :  { %v465_v3 = vld [vmem:[%s1318_s0 + $0x10] sm:$0xff]  ;;  %v83_v4 = vsel %vm82_vm1, %v455_v1, 0.0  ;;  %v84_v5 = vsel %vm82_vm1, %v460_v2, 0.0  ;;  %v476_v7 = vld [vmem:[%s1318_s0 + $0x18] sm:$0xff]  ;;  %v483_v10 = vld [vmem:[%s1318_s0 + $0x20] sm:$0xff] }
   0x3   :  { %v86_v6 = vsel %vm82_vm1, %v465_v3, 0.0  ;;  %v85_v8 = vadd.f32 %v84_v5, %v83_v4  ;;  %v88_v9 = vsel %vm82_vm1, %v476_v7, 0.0  ;;  %v90_v12 = vsel %vm82_vm1, %v483_v10, 0.0  ;;  %v490_v13 = vld [vmem:[%s1318_s0 + $0x28] sm:$0xff]  ;;  %v497_v16 = vld [vmem:[%s1318_s0 + $0x30] sm:$0xff]  ;;  %v502_v18 = vld [vmem:[%s1318_s0 + $0x38] sm:$0xff] }
   0x4   :  { %v92_v15 = vsel %vm82_vm1, %v490_v13, 0.0  ;;  %v507_v19 = vld [vmem:[%s1318_s0 + $0x40] sm:$0xff]  ;;  %v94_v20 = vsel %vm82_vm1, %v497_v16, 0.0  ;;  %v514_v21 = vld [vmem:[%s1318_s0 + $0x48] sm:$0xff]  ;;  %v519_v22 = vld [vmem:[%s1318_s0 + $0x50] sm:$0xff]  ;;  %v96_v25 = vsel %vm82_vm1, %v502_v18, 0.0 }
   0x5   :  { %v87_v11 = vadd.f32 %v86_v6, %v85_v8  ;;  %v524_v23 = vld [vmem:[%s1318_s0 + $0x58] sm:$0xff]  ;;  %v98_v26 = vsel %vm82_vm1, %v507_v19, 0.0  ;;  %v533_v27 = vld [vmem:[%s1318_s0 + $0x108] sm:$0xff]  ;;  %v538_v28 = vld [vmem:[%s1318_s0 + $0x110] sm:$0xff]  ;;  %v100_v30 = vsel %vm82_vm1, %v514_v21, 0.0  ;;  %v102_v31 = vsel %vm82_vm1, %v519_v22, 0.0 }
   0x6   :  { %v543_v29 = vld [vmem:[%s1318_s0 + $0x118] sm:$0xff]  ;;  %v551_v32 = vsel %vm82_vm1, %v524_v23, 0.0  ;;  %v556_v33 = vld [vmem:[%s1318_s0 + $0x120] sm:$0xff]  ;;  %v561_v34 = vld [vmem:[%s1318_s0 + $0x128] sm:$0xff]  ;;  %v570_v37 = vsel %vm82_vm1, %v533_v27, 0.0  ;;  %v574_v38 = vsel %vm82_vm1, %v538_v28, 0.0 }
   0x7   :  { %v89_v14 = vadd.f32 %v88_v9, %v87_v11  ;;  %v566_v35 = vld [vmem:[%s1318_s0 + $0x130] sm:$0xff]  ;;  %1339 = vst [vmem:[#allocation2_spill] sm:$0xff] %v570_v37  ;;  %1340 = vst [vmem:[#allocation3_spill] sm:$0xff] %v574_v38  ;;  %v578_v39 = vsel %vm82_vm1, %v543_v29, 0.0  ;;  %v583_v40 = vld [vmem:[%s1318_s0 + $0x138] sm:$0xff]  ;;  %v597_v43 = vsel %vm82_vm1, %v556_v33, 0.0  ;;  %v222_v37 = vmul.f32 %v465_v3, %v465_v3 }
   0x8   :  { %1341 = vst [vmem:[#allocation4_spill] sm:$0xff] %v578_v39  ;;  %v588_v41 = vld [vmem:[%s1318_s0 + $0x140] sm:$0xff]  ;;  %v593_v42 = vld [vmem:[%s1318_s0 + $0x148] sm:$0xff]  ;;  %1342 = vst [vmem:[#allocation5_spill] sm:$0xff] %v597_v43  ;;  %v601_v44 = vsel %vm82_vm1, %v561_v34, 0.0  ;;  %v605_v45 = vsel %vm82_vm1, %v566_v35, 0.0 }
   0x9   :  { %v91_v17 = vadd.f32 %v90_v12, %v89_v14  ;;  %1343 = vst [vmem:[#allocation6_spill] sm:$0xff] %v601_v44  ;;  %1344 = vst [vmem:[#allocation7_spill] sm:$0xff] %v605_v45  ;;  %v610_v46 = vld [vmem:[%s1318_s0 + $0x150] sm:$0xff]  ;;  %v615_v47 = vld [vmem:[%s1318_s0 + $0x158] sm:$0xff]  ;;  %v624_v50 = vsel %vm82_vm1, %v583_v40, 0.0  ;;  %v628_v51 = vsel %vm82_vm1, %v588_v41, 0.0 }
   0xa   :  { %v620_v48 = vld [vmem:[%s1318_s0 + $0x160] sm:$0xff]  ;;  %1345 = vst [vmem:[#allocation8_spill] sm:$0xff] %v624_v50  ;;  %1346 = vst [vmem:[#allocation9_spill] sm:$0xff] %v628_v51  ;;  %v632_v52 = vsel %vm82_vm1, %v593_v42, 0.0  ;;  %v637_v53 = vld [vmem:[%s1318_s0 + $0x168] sm:$0xff]  ;;  %v651_v56 = vsel %vm82_vm1, %v610_v46, 0.0 }
   0xb   :  { %v93_v24 = vadd.f32 %v92_v15, %v91_v17  ;;  %1347 = vst [vmem:[#allocation10_spill] sm:$0xff] %v632_v52  ;;  %v642_v54 = vld [vmem:[%s1318_s0 + $0x170] sm:$0xff]  ;;  %v647_v55 = vld [vmem:[%s1318_s0 + $0x178] sm:$0xff]  ;;  %1348 = vst [vmem:[#allocation11_spill] sm:$0xff] %v651_v56  ;;  %v655_v57 = vsel %vm82_vm1, %v615_v47, 0.0  ;;  %v659_v58 = vsel %vm82_vm1, %v620_v48, 0.0 }
   0xc   :  { %1349 = vst [vmem:[#allocation12_spill] sm:$0xff] %v655_v57  ;;  %1350 = vst [vmem:[#allocation13_spill] sm:$0xff] %v659_v58  ;;  %v664_v59 = vld [vmem:[%s1318_s0 + $0x180] sm:$0xff]  ;;  %v669_v60 = vld [vmem:[%s1318_s0 + $0x188] sm:$0xff]  ;;  %v678_v63 = vsel %vm82_vm1, %v637_v53, 0.0  ;;  %v682_v0 = vsel %vm82_vm1, %v642_v54, 0.0 }
   0xd   :  { %v95_v36 = vadd.f32 %v94_v20, %v93_v24  ;;  %v674_v61 = vld [vmem:[%s1318_s0 + $0x190] sm:$0xff]  ;;  %1351 = vst [vmem:[#allocation14_spill] sm:$0xff] %v678_v63  ;;  %1352 = vst [vmem:[#allocation15_spill] sm:$0xff] %v682_v0  ;;  %v686_v4 = vsel %vm82_vm1, %v647_v55, 0.0  ;;  %v691_v5 = vld [vmem:[%s1318_s0 + $0x198] sm:$0xff]  ;;  %v705_v9 = vsel %vm82_vm1, %v664_v59, 0.0 }
   0xe   :  { %1353 = vst [vmem:[#allocation16_spill] sm:$0xff] %v686_v4  ;;  %v696_v6 = vld [vmem:[%s1318_s0 + $0x1a0] sm:$0xff]  ;;  %v701_v8 = vld [vmem:[%s1318_s0 + $0x1a8] sm:$0xff]  ;;  %1354 = vst [vmem:[#allocation17_spill] sm:$0xff] %v705_v9  ;;  %v709_v11 = vsel %vm82_vm1, %v669_v60, 0.0  ;;  %v713_v12 = vsel %vm82_vm1, %v674_v61, 0.0 }
   0xf   :  { %v97_v49 = vadd.f32 %v96_v25, %v95_v36  ;;  %1355 = vst [vmem:[#allocation18_spill] sm:$0xff] %v709_v11  ;;  %1356 = vst [vmem:[#allocation19_spill] sm:$0xff] %v713_v12  ;;  %v718_v14 = vld [vmem:[%s1318_s0 + $0x60] sm:$0xff]  ;;  %v723_v15 = vld [vmem:[%s1318_s0 + $0x1b0] sm:$0xff]  ;;  %v737_v25 = vsel %vm82_vm1, %v691_v5, 0.0  ;;  %v745_v36 = vsel %vm82_vm1, %v701_v8, 0.0 }
  0x10   :  { %v728_v17 = vld [vmem:[%s1318_s0 + $0x1b8] sm:$0xff]  ;;  %v733_v20 = vld [vmem:[%s1318_s0 + $0x1c0] sm:$0xff]  ;;  %1357 = vst [vmem:[#allocation20_spill] sm:$0xff] %v737_v25  ;;  %1359 = vst [vmem:[#allocation22_spill] sm:$0xff] %v745_v36 }
  0x11   :  { %v99_v62 = vadd.f32 %v98_v26, %v97_v49  ;;  %v741_v26 = vsel %vm82_vm1, %v696_v6, 0.0  ;;  %v750_v49 = vld [vmem:[%s1318_s0 + $0x1c8] sm:$0xff]  ;;  %v768_v36 = vsel %vm82_vm1, %v728_v17, 0.0  ;;  %v772_v25 = vsel %vm82_vm1, %v733_v20, 0.0  ;;  %v777_v12 = vld [vmem:[%s1318_s0 + $0x1e0] sm:$0xff]  ;;  %v804_v0 = vld [vmem:[%s1318_s0 + $0x1f8] sm:$0xff] }
  0x12   :  { %1358 = vst [vmem:[#allocation21_spill] sm:$0xff] %v741_v26  ;;  %v764_v26 = vsel %vm82_vm1, %v723_v15, 0.0  ;;  %1361 = vst [vmem:[#allocation24_spill] sm:$0xff] %v768_v36  ;;  %v782_v11 = vld [vmem:[%s1318_s0 + $0x1e8] sm:$0xff]  ;;  %v791_v9 = vsel %vm82_vm1, %v750_v49, 0.0  ;;  %v826_v58 = vsel %vm82_vm1, %v804_v0, 0.0 }
  0x13   :  { %v101_v24 = vadd.f32 %v100_v30, %v99_v62  ;;  %v755_v30 = vld [vmem:[%s1318_s0 + $0x1d0] sm:$0xff]  ;;  %v760_v62 = vld [vmem:[%s1318_s0 + $0x1d8] sm:$0xff]  ;;  %1360 = vst [vmem:[#allocation23_spill] sm:$0xff] %v764_v26  ;;  %1362 = vst [vmem:[#allocation25_spill] sm:$0xff] %v772_v25 }
  0x14   :  { %v787_v26 = vld [vmem:[%s1318_s0 + $0x1f0] sm:$0xff]  ;;  %1364 = vst [vmem:[#allocation27_spill] sm:$0xff] %v791_v9  ;;  %v795_v25 = vsel %vm82_vm1, %v755_v30, 0.0  ;;  %v799_v4 = vsel %vm82_vm1, %v760_v62, 0.0  ;;  %1367 = vst [vmem:[#allocation30_spill] sm:$0xff] %v804_v0  ;;  %v814_v9 = vsel %vm82_vm1, %v782_v11, 0.0 }
  0x15   :  { %1363 = vst [vmem:[#allocation26_spill] sm:$0xff] %v787_v26  ;;  %v103_v36 = vadd.f32 %v102_v31, %v101_v24  ;;  %1365 = vst [vmem:[#allocation28_spill] sm:$0xff] %v795_v25  ;;  %v106_v31 = vsel %vm82_vm1, %v718_v14, 0.0  ;;  %v810_v24 = vsel %vm82_vm1, %v777_v12, 0.0  ;;  %v818_v25 = vsel %vm82_vm1, %v787_v26, 0.0  ;;  %v855_v56 = vld [vmem:[%s1318_s0 + $0x90] sm:$0xff] }
  0x16   :  { %1366 = vst [vmem:[#allocation29_spill] sm:$0xff] %v799_v4  ;;  %1368 = vst [vmem:[#allocation31_spill] sm:$0xff] %v810_v24  ;;  %v30_v4 = vld [vmem:[%s1318_s0 + $0x68] sm:$0xff]  ;;  %v860_v52 = vld [vmem:[%s1318_s0 + $0x98] sm:$0xff] }
  0x17   :  { %1369 = vst [vmem:[#allocation32_spill] sm:$0xff] %v814_v9  ;;  %1370 = vst [vmem:[#allocation33_spill] sm:$0xff] %v818_v25  ;;  %v105_v63 = vadd.f32 %v551_v32, %v103_v36  ;;  %v108_v24 = vsel %vm82_vm1, %v30_v4, 0.0  ;;  %v31_v9 = vld [vmem:[%s1318_s0 + $0x70] sm:$0xff]  ;;  %v835_v25 = vld [vmem:[%s1318_s0 + $0x78] sm:$0xff]  ;;  %v120_v39 = vsel %vm82_vm1, %v860_v52, 0.0 }
  0x18   :  { %1371 = vst [vmem:[#allocation34_spill] sm:$0xff] %v826_v58  ;;  %1372 = vst [vmem:[#allocation35_spill] sm:$0xff] %v835_v25  ;;  %v840_v32 = vld [vmem:[%s1318_s0 + $0x80] sm:$0xff]  ;;  %v845_v36 = vld [vmem:[%s1318_s0 + $0x88] sm:$0xff]  ;;  %v110_v58 = vsel %vm82_vm1, %v31_v9, 0.0 }
  0x19   :  { %v107_v57 = vadd.f32 %v106_v31, %v105_v63  ;;  %1373 = vst [vmem:[#allocation36_spill] sm:$0xff] %v840_v32  ;;  %1374 = vst [vmem:[#allocation37_spill] sm:$0xff] %v845_v36  ;;  %v220_v63 = vmul.f32 %v455_v1, %v455_v1  ;;  %v221_v31 = vmul.f32 %v460_v2, %v460_v2  ;;  %v865_v51 = vld [vmem:[%s1318_s0 + $0xa0] sm:$0xff]  ;;  %v112_v1 = vsel %vm82_vm1, %v835_v25, 0.0  ;;  %v876_v44 = vld [vmem:[%s1318_s0 + $0xa8] sm:$0xff] }
  0x1a   :  { %1375 = vst [vmem:[#allocation38_spill] sm:$0xff] %v855_v56  ;;  %1376 = vst [vmem:[#allocation39_spill] sm:$0xff] %v860_v52  ;;  %v114_v2 = vsel %vm82_vm1, %v840_v32, 0.0  ;;  %v116_v45 = vsel %vm82_vm1, %v845_v36, 0.0  ;;  %v881_v43 = vld [vmem:[%s1318_s0 + $0xb0] sm:$0xff]  ;;  %v122_v38 = vsel %vm82_vm1, %v865_v51, 0.0  ;;  %v223_v25 = vmul.f32 %v476_v7, %v476_v7 }
  0x1b   :  { %1377 = vst [vmem:[#allocation40_spill] sm:$0xff] %v865_v51  ;;  %v109_v50 = vadd.f32 %v108_v24, %v107_v57  ;;  %1378 = vst [vmem:[#allocation41_spill] sm:$0xff] %v876_v44  ;;  %v886_v57 = vld [vmem:[%s1318_s0 + $0xb8] sm:$0xff]  ;;  %v118_v24 = vsel %vm82_vm1, %v855_v56, 0.0  ;;  %v899_v36 = vld [vmem:[%s1318_s0 + $0xc0] sm:$0xff]  ;;  %v124_v51 = vsel %vm82_vm1, %v876_v44, 0.0 }
  0x1c   :  { %1379 = vst [vmem:[#allocation42_spill] sm:$0xff] %v881_v43  ;;  %1380 = vst [vmem:[#allocation43_spill] sm:$0xff] %v886_v57  ;;  %v904_v32 = vld [vmem:[%s1318_s0 + $0xc8] sm:$0xff]  ;;  %v909_v52 = vld [vmem:[%s1318_s0 + $0xd0] sm:$0xff]  ;;  %v915_v3 = vsel %vm82_vm1, %v881_v43, 0.0 }
  0x1d   :  { %1381 = vst [vmem:[#allocation44_spill] sm:$0xff] %v899_v36  ;;  %1382 = vst [vmem:[#allocation45_spill] sm:$0xff] %v904_v32  ;;  %v111_v56 = vadd.f32 %v110_v58, %v109_v50  ;;  %v922_v0 = vld [vmem:[%s1318_s0 + $0xd8] sm:$0xff]  ;;  %v927_v26 = vld [vmem:[%s1318_s0 + $0xe0] sm:$0xff]  ;;  %v931_v50 = vsel %vm82_vm1, %v886_v57, 0.0  ;;  %v935_v58 = vsel %vm82_vm1, %v899_v36, 0.0 }
  0x1e   :  { %1383 = vst [vmem:[#allocation46_spill] sm:$0xff] %v909_v52  ;;  %1384 = vst [vmem:[#allocation47_spill] sm:$0xff] %v922_v0  ;;  %v939_v7 = vsel %vm82_vm1, %v904_v32, 0.0  ;;  %v943_v43 = vsel %vm82_vm1, %v909_v52, 0.0  ;;  %v948_v44 = vld [vmem:[%s1318_s0 + $0xe8] sm:$0xff]  ;;  %v953_v57 = vld [vmem:[%s1318_s0 + $0xf0] sm:$0xff]  ;;  %v224_v52 = vmul.f32 %v483_v10, %v483_v10  ;;  %v228_v10 = vmul.f32 %v507_v19, %v507_v19 }
  0x1f   :  { %1385 = vst [vmem:[#allocation48_spill] sm:$0xff] %v927_v26  ;;  %1386 = vst [vmem:[#allocation49_spill] sm:$0xff] %v935_v58  ;;  %v113_v36 = vadd.f32 %v112_v1, %v111_v56  ;;  %v957_v58 = vsel %vm82_vm1, %v922_v0, 0.0  ;;  %v961_v32 = vsel %vm82_vm1, %v927_v26, 0.0  ;;  %v225_v56 = vmul.f32 %v490_v13, %v490_v13 }
  0x20   :  { %1387 = vst [vmem:[#allocation50_spill] sm:$0xff] %v939_v7  ;;  %1388 = vst [vmem:[#allocation51_spill] sm:$0xff] %v943_v43  ;;  %v967_v43 = vsel %vm82_vm1, %v948_v44, 0.0  ;;  %v971_v7 = vsel %vm82_vm1, %v953_v57, 0.0  ;;  %v226_v1 = vmul.f32 %v497_v16, %v497_v16  ;;  %v227_v26 = vmul.f32 %v502_v18, %v502_v18 }
  0x21   :  { %1389 = vst [vmem:[#allocation52_spill] sm:$0xff] %v948_v44  ;;  %1390 = vst [vmem:[#allocation53_spill] sm:$0xff] %v953_v57  ;;  %v115_v0 = vadd.f32 %v114_v2, %v113_v36  ;;  %v229_v44 = vmul.f32 %v514_v21, %v514_v21  ;;  %v230_v57 = vmul.f32 %v519_v22, %v519_v22 }
  0x22   :  { %1391 = vst [vmem:[#allocation54_spill] sm:$0xff] %v971_v7  ;;  %v231_v7 = vmul.f32 %v524_v23, %v524_v23  ;;  %v232_v13 = vmul.f32 %v718_v14, %v718_v14  ;;  %v989_v16 = vmul.f32 %v30_v4, %v30_v4  ;;  %v991_v2 = vmul.f32 %v31_v9, %v31_v9 }
  0x23   :  { %v117_v36 = vadd.f32 %v116_v45, %v115_v0  ;;  %v253_v18 = vmul.f32 %v533_v27, %v533_v27  ;;  %v254_v19 = vmul.f32 %v538_v28, %v538_v28  ;;  %v255_v21 = vmul.f32 %v543_v29, %v543_v29 }
  0x24   :  { %v256_v22 = vmul.f32 %v556_v33, %v556_v33  ;;  %v257_v23 = vmul.f32 %v561_v34, %v561_v34  ;;  %v258_v45 = vmul.f32 %v566_v35, %v566_v35  ;;  %v259_v4 = vmul.f32 %v583_v40, %v583_v40 }
  0x25   :  { %v119_v0 = vadd.f32 %v118_v24, %v117_v36  ;;  %v260_v27 = vmul.f32 %v588_v41, %v588_v41  ;;  %v261_v28 = vmul.f32 %v593_v42, %v593_v42  ;;  %v262_v29 = vmul.f32 %v610_v46, %v610_v46 }
  0x26   :  { %v263_v33 = vmul.f32 %v615_v47, %v615_v47  ;;  %v284_v34 = vsel %vm82_vm1, %v220_v63, 0.0  ;;  %v285_v35 = vsel %vm82_vm1, %v221_v31, 0.0  ;;  %v264_v40 = vmul.f32 %v620_v48, %v620_v48 }
  0x27   :  { %v121_v9 = vadd.f32 %v120_v39, %v119_v0  ;;  %v286_v14 = vadd.f32 %v285_v35, %v284_v34  ;;  %v287_v41 = vsel %vm82_vm1, %v222_v37, 0.0  ;;  %v265_v42 = vmul.f32 %v637_v53, %v637_v53  ;;  %v1392_v0 = vld [vmem:[#allocation26_spill] sm:$0xff] }
  0x28   :  { %v266_v46 = vmul.f32 %v642_v54, %v642_v54  ;;  %v267_v47 = vmul.f32 %v647_v55, %v647_v55  ;;  %v289_v63 = vsel %vm82_vm1, %v223_v25, 0.0  ;;  %v268_v39 = vmul.f32 %v664_v59, %v664_v59  ;;  %v1393_v34 = vld [vmem:[#allocation30_spill] sm:$0xff] }
  0x29   :  { %v123_v24 = vadd.f32 %v122_v38, %v121_v9  ;;  %v269_v48 = vmul.f32 %v669_v60, %v669_v60  ;;  %v288_v31 = vadd.f32 %v287_v41, %v286_v14  ;;  %v270_v37 = vmul.f32 %v674_v61, %v674_v61  ;;  %v1394_v41 = vld [vmem:[#allocation49_spill] sm:$0xff] }
  0x2a   :  { %v271_v53 = vmul.f32 %v691_v5, %v691_v5  ;;  %v272_v54 = vmul.f32 %v696_v6, %v696_v6  ;;  %v291_v55 = vsel %vm82_vm1, %v224_v52, 0.0  ;;  %v273_v38 = vmul.f32 %v701_v8, %v701_v8 }
  0x2b   :  { %v125_v25 = vadd.f32 %v124_v51, %v123_v24  ;;  %v274_v59 = vmul.f32 %v723_v15, %v723_v15  ;;  %v290_v60 = vadd.f32 %v289_v63, %v288_v31  ;;  %v275_v36 = vmul.f32 %v728_v17, %v728_v17 }
  0x2c   :  { %v276_v61 = vmul.f32 %v733_v20, %v733_v20  ;;  %v277_v5 = vmul.f32 %v750_v49, %v750_v49  ;;  %v293_v6 = vsel %vm82_vm1, %v225_v56, 0.0  ;;  %v278_v52 = vmul.f32 %v755_v30, %v755_v30 }
  0x2d   :  { %v127_v51 = vadd.f32 %v915_v3, %v125_v25  ;;  %v279_v8 = vmul.f32 %v760_v62, %v760_v62  ;;  %v292_v15 = vadd.f32 %v291_v55, %v290_v60  ;;  %v280_v17 = vmul.f32 %v777_v12, %v777_v12  ;;  %v1396_v25 = vld [vmem:[#allocation51_spill] sm:$0xff] }
  0x2e   :  { %v281_v20 = vmul.f32 %v782_v11, %v782_v11  ;;  %v282_v49 = vmul.f32 %v1392_v0, %v1392_v0  ;;  %v295_v56 = vsel %vm82_vm1, %v226_v1, 0.0  ;;  %v283_v30 = vmul.f32 %v1393_v34, %v1393_v34  ;;  %v1398_v34 = vld [vmem:[#allocation54_spill] sm:$0xff] }
  0x2f   :  { %v129_v3 = vadd.f32 %v931_v50, %v127_v51  ;;  %v294_v35 = vadd.f32 %v293_v6, %v292_v15  ;;  %v297_v62 = vsel %vm82_vm1, %v227_v26, 0.0  ;;  %v299_v9 = vsel %vm82_vm1, %v228_v10, 0.0 }
  0x30   :  { %v301_v12 = vsel %vm82_vm1, %v229_v44, 0.0  ;;  %v303_v14 = vsel %vm82_vm1, %v230_v57, 0.0  ;;  %v305_v11 = vsel %vm82_vm1, %v231_v7, 0.0  ;;  %v307_v1 = vsel %vm82_vm1, %v232_v13, 0.0  ;;  %v1395_v7 = vld [vmem:[#allocation50_spill] sm:$0xff] }
  0x31   :  { %v131_v63 = vadd.f32 %v1394_v41, %v129_v3  ;;  %v296_v24 = vadd.f32 %v295_v56, %v294_v35  ;;  %v1072_v50 = vsel %vm82_vm1, %v253_v18, 0.0  ;;  %v1075_v31 = vsel %vm82_vm1, %v254_v19, 0.0  ;;  %v1397_v56 = vld [vmem:[#allocation35_spill] sm:$0xff] }
  0x32   :  { %v1078_v26 = vsel %vm82_vm1, %v255_v21, 0.0  ;;  %v1081_v44 = vsel %vm82_vm1, %v256_v22, 0.0  ;;  %v1084_v57 = vsel %vm82_vm1, %v257_v23, 0.0  ;;  %v1088_v13 = vsel %vm82_vm1, %v258_v45, 0.0 }
  0x33   :  { %v133_v10 = vadd.f32 %v1395_v7, %v131_v63  ;;  %v298_v55 = vadd.f32 %v297_v62, %v296_v24  ;;  %v1091_v18 = vsel %vm82_vm1, %v259_v4, 0.0  ;;  %v1094_v19 = vsel %vm82_vm1, %v260_v27, 0.0  ;;  %v1399_v62 = vld [vmem:[#allocation36_spill] sm:$0xff] }
  0x34   :  { %v1097_v21 = vsel %vm82_vm1, %v261_v28, 0.0  ;;  %v1100_v22 = vsel %vm82_vm1, %v262_v29, 0.0  ;;  %v1103_v23 = vsel %vm82_vm1, %v263_v33, 0.0  ;;  %v1107_v45 = vsel %vm82_vm1, %v264_v40, 0.0 }
  0x35   :  { %v135_v60 = vadd.f32 %v1396_v25, %v133_v10  ;;  %v300_v6 = vadd.f32 %v299_v9, %v298_v55  ;;  %v1110_v4 = vsel %vm82_vm1, %v265_v42, 0.0  ;;  %v1113_v27 = vsel %vm82_vm1, %v266_v46, 0.0  ;;  %v1401_v10 = vld [vmem:[#allocation38_spill] sm:$0xff] }
  0x36   :  { %v1116_v28 = vsel %vm82_vm1, %v267_v47, 0.0  ;;  %v1119_v29 = vsel %vm82_vm1, %v268_v39, 0.0  ;;  %v1122_v33 = vsel %vm82_vm1, %v269_v48, 0.0  ;;  %v1126_v40 = vsel %vm82_vm1, %v270_v37, 0.0  ;;  %v1402_v25 = vld [vmem:[#allocation2_spill] sm:$0xff] }
  0x37   :  { %v137_v51 = vadd.f32 %v957_v58, %v135_v60  ;;  %v302_v15 = vadd.f32 %v301_v12, %v300_v6  ;;  %v1129_v42 = vsel %vm82_vm1, %v271_v53, 0.0  ;;  %v1132_v46 = vsel %vm82_vm1, %v272_v54, 0.0 }
  0x38   :  { %v1135_v47 = vsel %vm82_vm1, %v273_v38, 0.0  ;;  %v1138_v39 = vsel %vm82_vm1, %v274_v59, 0.0  ;;  %v1141_v48 = vsel %vm82_vm1, %v275_v36, 0.0  ;;  %v1145_v37 = vsel %vm82_vm1, %v276_v61, 0.0 }
  0x39   :  { %v139_v58 = vadd.f32 %v961_v32, %v137_v51  ;;  %v304_v0 = vadd.f32 %v303_v14, %v302_v15  ;;  %v1148_v53 = vsel %vm82_vm1, %v277_v5, 0.0  ;;  %v1151_v54 = vsel %vm82_vm1, %v278_v52, 0.0  ;;  %v1165_v32 = vld [vmem:[%s1318_s0 + $0xf8] sm:$0xff]  ;;  %v1403_v51 = vld [vmem:[#allocation39_spill] sm:$0xff] }
  0x3a   :  { %v1154_v38 = vsel %vm82_vm1, %v279_v8, 0.0  ;;  %v1157_v59 = vsel %vm82_vm1, %v280_v17, 0.0  ;;  %v1160_v36 = vsel %vm82_vm1, %v281_v20, 0.0  ;;  %v1169_v52 = vsel %vm82_vm1, %v282_v49, 0.0 }
  0x3b   :  { %v141_v61 = vadd.f32 %v967_v43, %v139_v58  ;;  %v306_v5 = vadd.f32 %v305_v11, %v304_v0  ;;  %v1172_v8 = vsel %vm82_vm1, %v283_v30, 0.0  ;;  %v144_v17 = vsel %vm82_vm1, %v1165_v32, 0.0  ;;  %v1183_v43 = vld [vmem:[%s1318_s0 + $0x100] sm:$0xff]  ;;  %v1404_v58 = vld [vmem:[#allocation3_spill] sm:$0xff] }
  0x3c   :  { %v235_v20 = vmul.f32 %v1397_v56, %v1397_v56  ;;  %v309_v3 = vsel %vm82_vm1, %v989_v16, 0.0  ;;  %v146_v30 = vsel %vm82_vm1, %v1183_v43, 0.0  ;;  %v236_v9 = vmul.f32 %v1399_v62, %v1399_v62  ;;  %v1400_v16 = vld [vmem:[#allocation37_spill] sm:$0xff] }
  0x3d   :  { %v143_v49 = vadd.f32 %v1398_v34, %v141_v61  ;;  %v308_v35 = vadd.f32 %v307_v1, %v306_v5  ;;  %v311_v12 = vsel %vm82_vm1, %v991_v2, 0.0  ;;  %v237_v41 = vmul.f32 %v1400_v16, %v1400_v16  ;;  %v1405_v5 = vld [vmem:[#allocation40_spill] sm:$0xff]  ;;  %v1408_v62 = vld [vmem:[#allocation5_spill] sm:$0xff] }
  0x3e   :  { %v313_v63 = vsel %vm82_vm1, %v235_v20, 0.0  ;;  %v238_v1 = vmul.f32 %v1401_v10, %v1401_v10  ;;  %v315_v55 = vsel %vm82_vm1, %v236_v9, 0.0  ;;  %v239_v2 = vmul.f32 %v1403_v51, %v1403_v51  ;;  %v1406_v20 = vld [vmem:[#allocation4_spill] sm:$0xff] }
  0x3f   :  { %v145_v14 = vadd.f32 %v144_v17, %v143_v49  ;;  %v310_v11 = vadd.f32 %v309_v3, %v308_v35  ;;  %v317_v15 = vsel %vm82_vm1, %v237_v41, 0.0  ;;  %v240_v17 = vmul.f32 %v1405_v5, %v1405_v5  ;;  %v1407_v49 = vld [vmem:[#allocation41_spill] sm:$0xff]  ;;  %v1410_v41 = vld [vmem:[#allocation6_spill] sm:$0xff] }
  0x40   :  { %v319_v56 = vsel %vm82_vm1, %v238_v1, 0.0  ;;  %v241_v35 = vmul.f32 %v1407_v49, %v1407_v49 }
  0x41   :  { %v147_v24 = vadd.f32 %v146_v30, %v145_v14  ;;  %v312_v7 = vadd.f32 %v311_v12, %v310_v11  ;;  %v321_v30 = vsel %vm82_vm1, %v239_v2, 0.0  ;;  %v1409_v14 = vld [vmem:[#allocation42_spill] sm:$0xff]  ;;  %v323_v16 = vsel %vm82_vm1, %v240_v17, 0.0 }
  0x42   :  { %v242_v11 = vmul.f32 %v1409_v14, %v1409_v14  ;;  %v325_v1 = vsel %vm82_vm1, %v241_v35, 0.0 }
  0x43   :  { %v149_v60 = vadd.f32 %v1402_v25, %v147_v24  ;;  %v314_v6 = vadd.f32 %v313_v63, %v312_v7  ;;  %v1411_v7 = vld [vmem:[#allocation43_spill] sm:$0xff] }
  0x44   :  { %v243_v10 = vmul.f32 %v1411_v7, %v1411_v7  ;;  %v327_v2 = vsel %vm82_vm1, %v242_v11, 0.0 }
  0x45   :  { %v151_v0 = vadd.f32 %v1404_v58, %v149_v60  ;;  %v316_v61 = vadd.f32 %v315_v55, %v314_v6  ;;  %v1412_v55 = vld [vmem:[#allocation7_spill] sm:$0xff]  ;;  %v1413_v6 = vld [vmem:[#allocation44_spill] sm:$0xff] }
  0x46   :  { %v244_v51 = vmul.f32 %v1413_v6, %v1413_v6  ;;  %v329_v17 = vsel %vm82_vm1, %v243_v10, 0.0 }
  0x47   :  { %v153_v3 = vadd.f32 %v1406_v20, %v151_v0  ;;  %v318_v34 = vadd.f32 %v317_v15, %v316_v61  ;;  %v1414_v15 = vld [vmem:[#allocation8_spill] sm:$0xff]  ;;  %v1415_v61 = vld [vmem:[#allocation45_spill] sm:$0xff] }
  0x48   :  { %v245_v5 = vmul.f32 %v1415_v61, %v1415_v61  ;;  %v331_v35 = vsel %vm82_vm1, %v244_v51, 0.0 }
  0x49   :  { %v155_v9 = vadd.f32 %v1408_v62, %v153_v3  ;;  %v320_v12 = vadd.f32 %v319_v56, %v318_v34  ;;  %v1416_v56 = vld [vmem:[#allocation9_spill] sm:$0xff]  ;;  %v1417_v34 = vld [vmem:[#allocation46_spill] sm:$0xff] }
  0x4a   :  { %v246_v49 = vmul.f32 %v1417_v34, %v1417_v34  ;;  %v333_v11 = vsel %vm82_vm1, %v245_v5, 0.0 }
  0x4b   :  { %v157_v63 = vadd.f32 %v1410_v41, %v155_v9  ;;  %v322_v24 = vadd.f32 %v321_v30, %v320_v12  ;;  %v1418_v30 = vld [vmem:[#allocation10_spill] sm:$0xff]  ;;  %v1419_v12 = vld [vmem:[#allocation47_spill] sm:$0xff] }
  0x4c   :  { %v247_v14 = vmul.f32 %v1419_v12, %v1419_v12  ;;  %v335_v10 = vsel %vm82_vm1, %v246_v49, 0.0  ;;  %v1427_v49 = vld [vmem:[#allocation15_spill] sm:$0xff]  ;;  %v1428_v12 = vld [vmem:[#allocation16_spill] sm:$0xff] }
  0x4d   :  { %v159_v25 = vadd.f32 %v1412_v55, %v157_v63  ;;  %v324_v60 = vadd.f32 %v323_v16, %v322_v24  ;;  %v1420_v16 = vld [vmem:[#allocation11_spill] sm:$0xff]  ;;  %v1421_v24 = vld [vmem:[#allocation48_spill] sm:$0xff] }
  0x4e   :  { %v248_v7 = vmul.f32 %v1421_v24, %v1421_v24  ;;  %v337_v51 = vsel %vm82_vm1, %v247_v14, 0.0 }
  0x4f   :  { %v161_v58 = vadd.f32 %v1414_v15, %v159_v25  ;;  %v326_v0 = vadd.f32 %v325_v1, %v324_v60  ;;  %v1422_v1 = vld [vmem:[#allocation12_spill] sm:$0xff] }
  0x50   :  { %v1423_v60 = vld [vmem:[#allocation52_spill] sm:$0xff]  ;;  %v339_v5 = vsel %vm82_vm1, %v248_v7, 0.0  ;;  %v1430_v7 = vld [vmem:[#allocation18_spill] sm:$0xff] }
  0x51   :  { %v163_v20 = vadd.f32 %v1416_v56, %v161_v58  ;;  %v328_v3 = vadd.f32 %v327_v2, %v326_v0  ;;  %v249_v6 = vmul.f32 %v1423_v60, %v1423_v60  ;;  %v1424_v2 = vld [vmem:[#allocation13_spill] sm:$0xff] }
  0x52   :  { %v1425_v0 = vld [vmem:[#allocation53_spill] sm:$0xff] }
  0x53   :  { %v165_v62 = vadd.f32 %v1418_v30, %v163_v20  ;;  %v330_v9 = vadd.f32 %v329_v17, %v328_v3  ;;  %v250_v61 = vmul.f32 %v1425_v0, %v1425_v0  ;;  %v1426_v17 = vld [vmem:[#allocation14_spill] sm:$0xff]  ;;  %v251_v3 = vmul.f32 %v1165_v32, %v1165_v32 }
  0x54   :  { %v341_v34 = vsel %vm82_vm1, %v249_v6, 0.0  ;;  %v1432_v6 = vld [vmem:[#allocation20_spill] sm:$0xff]  ;;  %v1434_v0 = vld [vmem:[#allocation22_spill] sm:$0xff] }
  0x55   :  { %v167_v41 = vadd.f32 %v1420_v16, %v165_v62  ;;  %v332_v63 = vadd.f32 %v331_v35, %v330_v9  ;;  %v252_v62 = vmul.f32 %v1183_v43, %v1183_v43  ;;  %v343_v9 = vsel %vm82_vm1, %v250_v61, 0.0 }
  0x56   :  { %v345_v16 = vsel %vm82_vm1, %v251_v3, 0.0  ;;  %v1436_v3 = vld [vmem:[#allocation24_spill] sm:$0xff] }
  0x57   :  { %v169_v55 = vadd.f32 %v1422_v1, %v167_v41  ;;  %v334_v25 = vadd.f32 %v333_v11, %v332_v63  ;;  %v1429_v41 = vld [vmem:[#allocation17_spill] sm:$0xff]  ;;  %v347_v32 = vsel %vm82_vm1, %v252_v62, 0.0  ;;  %v1438_v62 = vld [vmem:[#allocation27_spill] sm:$0xff] }
  0x59   :  { %v171_v15 = vadd.f32 %v1424_v2, %v169_v55  ;;  %v336_v58 = vadd.f32 %v335_v10, %v334_v25  ;;  %v1431_v55 = vld [vmem:[#allocation19_spill] sm:$0xff]  ;;  %v1433_v2 = vld [vmem:[#allocation21_spill] sm:$0xff] }
  0x5b   :  { %v173_v56 = vadd.f32 %v1426_v17, %v171_v15  ;;  %v338_v20 = vadd.f32 %v337_v51, %v336_v58  ;;  %v1435_v17 = vld [vmem:[#allocation23_spill] sm:$0xff] }
  0x5d   :  { %v175_v35 = vadd.f32 %v1427_v49, %v173_v56  ;;  %v340_v30 = vadd.f32 %v339_v5, %v338_v20 }
  0x5f   :  { %v177_v14 = vadd.f32 %v1428_v12, %v175_v35  ;;  %v342_v11 = vadd.f32 %v341_v34, %v340_v30  ;;  %v1437_v35 = vld [vmem:[#allocation25_spill] sm:$0xff]  ;;  %v1439_v12 = vld [vmem:[#allocation28_spill] sm:$0xff] }
  0x61   :  { %v179_v63 = vadd.f32 %v1429_v41, %v177_v14  ;;  %v344_v24 = vadd.f32 %v343_v9, %v342_v11  ;;  %v1440_v11 = vld [vmem:[#allocation29_spill] sm:$0xff]  ;;  %v1441_v41 = vld [vmem:[#allocation31_spill] sm:$0xff] }
  0x63   :  { %v181_v10 = vadd.f32 %v1430_v7, %v179_v63  ;;  %v346_v1 = vadd.f32 %v345_v16, %v344_v24  ;;  %v1442_v24 = vld [vmem:[#allocation32_spill] sm:$0xff]  ;;  %v1443_v7 = vld [vmem:[#allocation33_spill] sm:$0xff] }
  0x65   :  { %v183_v25 = vadd.f32 %v1431_v55, %v181_v10  ;;  %v348_v60 = vadd.f32 %v347_v32, %v346_v1  ;;  %v1444_v1 = vld [vmem:[#allocation34_spill] sm:$0xff] }
  0x67   :  { %v185_v43 = vadd.f32 %v1432_v6, %v183_v25  ;;  %v350_v51 = vadd.f32 %v1072_v50, %v348_v60 }
  0x69   :  { %v187_v15 = vadd.f32 %v1433_v2, %v185_v43  ;;  %v352_v58 = vadd.f32 %v1075_v31, %v350_v51 }
  0x6b   :  { %v189_v61 = vadd.f32 %v1434_v0, %v187_v15  ;;  %v354_v5 = vadd.f32 %v1078_v26, %v352_v58 }
  0x6d   :  { %v191_v56 = vadd.f32 %v1435_v17, %v189_v61  ;;  %v356_v20 = vadd.f32 %v1081_v44, %v354_v5 }
  0x6f   :  { %v193_v34 = vadd.f32 %v1436_v3, %v191_v56  ;;  %v358_v49 = vadd.f32 %v1084_v57, %v356_v20 }
  0x71   :  { %v195_v30 = vadd.f32 %v1437_v35, %v193_v34  ;;  %v360_v50 = vadd.f32 %v1088_v13, %v358_v49 }
  0x73   :  { %v197_v9 = vadd.f32 %v1438_v62, %v195_v30  ;;  %v362_v31 = vadd.f32 %v1091_v18, %v360_v50 }
  0x75   :  { %v199_v14 = vadd.f32 %v1439_v12, %v197_v9  ;;  %v364_v26 = vadd.f32 %v1094_v19, %v362_v31 }
  0x77   :  { %v201_v16 = vadd.f32 %v1440_v11, %v199_v14  ;;  %v366_v44 = vadd.f32 %v1097_v21, %v364_v26 }
  0x79   :  { %v203_v63 = vadd.f32 %v1441_v41, %v201_v16  ;;  %v368_v57 = vadd.f32 %v1100_v22, %v366_v44 }
  0x7b   :  { %v205_v32 = vadd.f32 %v1442_v24, %v203_v63  ;;  %v370_v13 = vadd.f32 %v1103_v23, %v368_v57 }
  0x7d   :  { %v207_v10 = vadd.f32 %v1443_v7, %v205_v32  ;;  %v372_v18 = vadd.f32 %v1107_v45, %v370_v13  ;;  %v81_v45 = vld [vmem:[%s1319_s1] sm:$0x1] }
  0x7f   :  { %v209_v55 = vadd.f32 %v1444_v1, %v207_v10  ;;  %v374_v19 = vadd.f32 %v1110_v4, %v372_v18 }
  0x81   :  { %v210_v25 = vrot.slane %v209_v55, 4  ;;  %v376_v60 = vadd.f32 %v1113_v27, %v374_v19 }
  0x83   :  { %v211_v21 = vadd.f32 %v210_v25, %v209_v55  ;;  %v378_v6 = vadd.f32 %v1116_v28, %v376_v60 }
  0x85   :  { %v212_v43 = vrot.slane %v211_v21, 2  ;;  %v380_v22 = vadd.f32 %v1119_v29, %v378_v6 }
  0x87   :  { %v213_v51 = vadd.f32 %v212_v43, %v211_v21  ;;  %v382_v23 = vadd.f32 %v1122_v33, %v380_v22 }
  0x89   :  { %v214_v2 = vrot.slane %v213_v51, 1  ;;  %v384_v15 = vadd.f32 %v1126_v40, %v382_v23 }
  0x8b   :  { %v215_v4 = vadd.f32 %v214_v2, %v213_v51  ;;  %v386_v58 = vadd.f32 %v1129_v42, %v384_v15 }
  0x8d   :  { %v216_v27 = vadd.f32 %v215_v4, %v81_v45  ;;  %v388_v0 = vadd.f32 %v1132_v46, %v386_v58 }
  0x8f   :  { %218 = vst.msk [vmem:[%s1319_s1] sm:$0x1] %vm14_vm0, %v216_v27  ;;  %v390_v28 = vadd.f32 %v1135_v47, %v388_v0 }
  0x91   :  { %v392_v29 = vadd.f32 %v1138_v39, %v390_v28 }
  0x93   :  { %v394_v33 = vadd.f32 %v1141_v48, %v392_v29 }
  0x95   :  { %v396_v40 = vadd.f32 %v1145_v37, %v394_v33  ;;  %v219_v37 = vld [vmem:[%s1320_s2] sm:$0x1] }
  0x97   :  { %v398_v61 = vadd.f32 %v1148_v53, %v396_v40 }
  0x99   :  { %v400_v42 = vadd.f32 %v1151_v54, %v398_v61 }
  0x9b   :  { %v402_v5 = vadd.f32 %v1154_v38, %v400_v42 }
  0x9d   :  { %v404_v46 = vadd.f32 %v1157_v59, %v402_v5 }
  0x9f   :  { %v406_v17 = vadd.f32 %v1160_v36, %v404_v46 }
  0xa1   :  { %v408_v56 = vadd.f32 %v1169_v52, %v406_v17 }
  0xa3   :  { %v410_v47 = vadd.f32 %v1172_v8, %v408_v56 }
  0xa5   :  { %v411_v20 = vrot.slane %v410_v47, 4 }
  0xa7   :  { %v412_v39 = vadd.f32 %v411_v20, %v410_v47 }
  0xa9   :  { %v413_v3 = vrot.slane %v412_v39, 2 }
  0xab   :  { %v414_v48 = vadd.f32 %v413_v3, %v412_v39 }
  0xad   :  { %v415_v34 = vrot.slane %v414_v48, 1 }
  0xaf   :  { %v416_v53 = vadd.f32 %v415_v34, %v414_v48 }
  0xb1   :  { %v417_v54 = vadd.f32 %v416_v53, %v219_v37 }
  0xb3   :  { %418 = vst.msk [vmem:[%s1320_s2] sm:$0x1] %vm14_vm0, %v417_v54 }

// kernel: resnet34_forward.110
= control target key start
LH: loop header
LB: loop body
LE: loop exit
PB: predicated region body
PF: predicated region fallthrough
CT: control target
= control target key end

     0   :  { %v1433_v0 = vmov 0   ;;  %s1913_s1 = inlined_call_operand.vmem [shape: bf16[256,128], index: 1, kind: input, shape index: {}]   ;;  %s1914_s0 = inlined_call_operand.vmem [shape: bf16[512,256], index: 0, kind: input, shape index: {}]   ;;  %s1915_s2 = inlined_call_operand.vmem [shape: f32[512,128], index: 2, kind: output, shape index: {}]  }
   0x1   :  { %656 = vmatprep.subr.bf16.mxu0 %v1433_v0  ;;  %1288 = vmatprep.subr.bf16.mxu1 %v1433_v0  ;;  %v1321_v1 = vld [vmem:[%s1913_s1 + $0x38] sm:$0xff]   ;;  %v1322_v2 = vld [vmem:[%s1913_s1 + $0x30] sm:$0xff]   ;;  %v1323_v3 = vld [vmem:[%s1913_s1 + $0x28] sm:$0xff]  }
   0x2   :  { %657 = vmatpush1.bf16.msra.mxu0 %v1321_v1  ;;  %1304 = vmatpush1.bf16.msra.mxu1 %v1321_v1  ;;  %v1324_v4 = vld [vmem:[%s1913_s1 + $0x20] sm:$0xff]   ;;  %v1325_v5 = vld [vmem:[%s1913_s1 + $0x18] sm:$0xff]   ;;  %v1326_v7 = vld [vmem:[%s1913_s1 + $0x10] sm:$0xff]  }
   0x3   :  { %658 = vmatprep.subr.bf16.mxu0 %v1433_v0  ;;  %1289 = vmatprep.subr.bf16.mxu1 %v1433_v0  ;;  %v1339_v6 = vld [vmem:[%s1914_s0 + $0x4] ss:$8 sps:$4 sm:$0xff]   ;;  %v1329_v11 = vld [vmem:[%s1913_s1 + $0x78] sm:$0xff]   ;;  %v1330_v12 = vld [vmem:[%s1913_s1 + $0x70] sm:$0xff]  }
   0x4   :  { %v1342_v8 = vld [vmem:[%s1914_s0 + $0x104] ss:$8 sps:$4 sm:$0xff]   ;;  %688 = vmatprep.mubr.bf16.mxu0 %v1339_v6  ;;  %v1333_v15 = vld [vmem:[%s1913_s1 + $0x58] sm:$0xff]   ;;  %v1334_v16 = vld [vmem:[%s1913_s1 + $0x50] sm:$0xff]  }
   0x5   :  { %816 = vmatprep.mubr.bf16.mxu1 %v1342_v8  ;;  %v1327_v9 = vld [vmem:[%s1913_s1 + $0x8] sm:$0xff]   ;;  %v1328_v10 = vld [vmem:[%s1913_s1] sm:$0xff]   ;;  %v1343_v21 = vld [vmem:[%s1914_s0 + $0x14] ss:$8 sps:$4 sm:$0xff]  }
   0x6   :  { %659 = vmatpush1.bf16.msra.mxu0 %v1322_v2  ;;  %1305 = vmatpush1.bf16.msra.mxu1 %v1322_v2  ;;  %v1331_v13 = vld [vmem:[%s1913_s1 + $0x68] sm:$0xff]   ;;  %v1332_v14 = vld [vmem:[%s1913_s1 + $0x60] sm:$0xff]   ;;  %v1345_v22 = vld [vmem:[%s1914_s0 + $0x114] ss:$8 sps:$4 sm:$0xff]  }
   0x7   :  { %660 = vmatprep.subr.bf16.mxu0 %v1433_v0  ;;  %1290 = vmatprep.subr.bf16.mxu1 %v1433_v0  ;;  %v1335_v17 = vld [vmem:[%s1913_s1 + $0x48] sm:$0xff]   ;;  %v1336_v18 = vld [vmem:[%s1913_s1 + $0x40] sm:$0xff]   ;;  %v1347_v23 = vld [vmem:[%s1914_s0 + $0x10] ss:$8 sps:$4 sm:$0xff]  }
   0x8   :  { %v1337_v19 = vld [vmem:[%s1914_s0] ss:$8 sps:$4 sm:$0xff]   ;;  %v1348_v24 = vld [vmem:[%s1914_s0 + $0x110] ss:$8 sps:$4 sm:$0xff]   ;;  %v1349_v25 = vld [vmem:[%s1914_s0 + $0x24] ss:$8 sps:$4 sm:$0xff]  }
   0x9   :  { %v1340_v20 = vld [vmem:[%s1914_s0 + $0x100] ss:$8 sps:$4 sm:$0xff]   ;;  %v1351_v26 = vld [vmem:[%s1914_s0 + $0x124] ss:$8 sps:$4 sm:$0xff]   ;;  %v1355_v29 = vld [vmem:[%s1914_s0 + $0x34] ss:$8 sps:$4 sm:$0xff]  }
   0xa   :  { %661 = vmatpush1.bf16.msra.mxu0 %v1323_v3  ;;  %1306 = vmatpush1.bf16.msra.mxu1 %v1323_v3  ;;  %v1353_v27 = vld [vmem:[%s1914_s0 + $0x20] ss:$8 sps:$4 sm:$0xff]   ;;  %v1357_v30 = vld [vmem:[%s1914_s0 + $0x134] ss:$8 sps:$4 sm:$0xff]   ;;  %v1359_v31 = vld [vmem:[%s1914_s0 + $0x30] ss:$8 sps:$4 sm:$0xff]  }
   0xb   :  { %662 = vmatprep.subr.bf16.mxu0 %v1433_v0  ;;  %1291 = vmatprep.subr.bf16.mxu1 %v1433_v0  ;;  %v1354_v28 = vld [vmem:[%s1914_s0 + $0x120] ss:$8 sps:$4 sm:$0xff]   ;;  %v1360_v32 = vld [vmem:[%s1914_s0 + $0x130] ss:$8 sps:$4 sm:$0xff]   ;;  %v1361_v33 = vld [vmem:[%s1914_s0 + $0x44] ss:$8 sps:$4 sm:$0xff]  }
   0xc   :  { %v1363_v34 = vld [vmem:[%s1914_s0 + $0x144] ss:$8 sps:$4 sm:$0xff]   ;;  %v1365_v35 = vld [vmem:[%s1914_s0 + $0x40] ss:$8 sps:$4 sm:$0xff]   ;;  %v1367_v37 = vld [vmem:[%s1914_s0 + $0x54] ss:$8 sps:$4 sm:$0xff]  }
   0xd   :  { %v1366_v36 = vld [vmem:[%s1914_s0 + $0x140] ss:$8 sps:$4 sm:$0xff]   ;;  %v1369_v38 = vld [vmem:[%s1914_s0 + $0x154] ss:$8 sps:$4 sm:$0xff]   ;;  %v1371_v39 = vld [vmem:[%s1914_s0 + $0x50] ss:$8 sps:$4 sm:$0xff]  }
   0xe   :  { %663 = vmatpush1.bf16.msra.mxu0 %v1324_v4  ;;  %1307 = vmatpush1.bf16.msra.mxu1 %v1324_v4  ;;  %v1372_v40 = vld [vmem:[%s1914_s0 + $0x150] ss:$8 sps:$4 sm:$0xff]   ;;  %v1373_v41 = vld [vmem:[%s1914_s0 + $0x64] ss:$8 sps:$4 sm:$0xff]   ;;  %v1377_v43 = vld [vmem:[%s1914_s0 + $0x60] ss:$8 sps:$4 sm:$0xff]  }
   0xf   :  { %664 = vmatprep.subr.bf16.mxu0 %v1433_v0  ;;  %1292 = vmatprep.subr.bf16.mxu1 %v1433_v0  ;;  %v1375_v42 = vld [vmem:[%s1914_s0 + $0x164] ss:$8 sps:$4 sm:$0xff]   ;;  %v1378_v44 = vld [vmem:[%s1914_s0 + $0x160] ss:$8 sps:$4 sm:$0xff]   ;;  %v1379_v45 = vld [vmem:[%s1914_s0 + $0x74] ss:$8 sps:$4 sm:$0xff]  }
  0x10   :  { %v1381_v46 = vld [vmem:[%s1914_s0 + $0x174] ss:$8 sps:$4 sm:$0xff]   ;;  %v1383_v47 = vld [vmem:[%s1914_s0 + $0x70] ss:$8 sps:$4 sm:$0xff]   ;;  %v1385_v49 = vld [vmem:[%s1914_s0 + $0x84] ss:$8 sps:$4 sm:$0xff]  }
  0x11   :  { %v1384_v48 = vld [vmem:[%s1914_s0 + $0x170] ss:$8 sps:$4 sm:$0xff]   ;;  %v1387_v50 = vld [vmem:[%s1914_s0 + $0x184] ss:$8 sps:$4 sm:$0xff]   ;;  %v1389_v51 = vld [vmem:[%s1914_s0 + $0x80] ss:$8 sps:$4 sm:$0xff]  }
  0x12   :  { %665 = vmatpush1.bf16.msra.mxu0 %v1325_v5  ;;  %1308 = vmatpush1.bf16.msra.mxu1 %v1325_v5  ;;  %v1390_v52 = vld [vmem:[%s1914_s0 + $0x180] ss:$8 sps:$4 sm:$0xff]   ;;  %v1391_v53 = vld [vmem:[%s1914_s0 + $0x94] ss:$8 sps:$4 sm:$0xff]   ;;  %v1395_v55 = vld [vmem:[%s1914_s0 + $0x90] ss:$8 sps:$4 sm:$0xff]  }
  0x13   :  { %666 = vmatprep.subr.bf16.mxu0 %v1433_v0  ;;  %1293 = vmatprep.subr.bf16.mxu1 %v1433_v0  ;;  %v1393_v54 = vld [vmem:[%s1914_s0 + $0x194] ss:$8 sps:$4 sm:$0xff]   ;;  %v1396_v56 = vld [vmem:[%s1914_s0 + $0x190] ss:$8 sps:$4 sm:$0xff]   ;;  %v1397_v57 = vld [vmem:[%s1914_s0 + $0xa4] ss:$8 sps:$4 sm:$0xff]  }
  0x14   :  { %v1399_v58 = vld [vmem:[%s1914_s0 + $0x1a4] ss:$8 sps:$4 sm:$0xff]   ;;  %v1401_v59 = vld [vmem:[%s1914_s0 + $0xa0] ss:$8 sps:$4 sm:$0xff]   ;;  %v1403_v61 = vld [vmem:[%s1914_s0 + $0xb4] ss:$8 sps:$4 sm:$0xff]  }
  0x15   :  { %v1402_v60 = vld [vmem:[%s1914_s0 + $0x1a0] ss:$8 sps:$4 sm:$0xff]   ;;  %v1405_v62 = vld [vmem:[%s1914_s0 + $0x1b4] ss:$8 sps:$4 sm:$0xff]   ;;  %v1407_v63 = vld [vmem:[%s1914_s0 + $0xb0] ss:$8 sps:$4 sm:$0xff]  }
  0x16   :  { %667 = vmatpush1.bf16.msra.mxu0 %v1326_v7  ;;  %1309 = vmatpush1.bf16.msra.mxu1 %v1326_v7  ;;  %v1409_v1 = vld [vmem:[%s1914_s0 + $0xc4] ss:$8 sps:$4 sm:$0xff]   ;;  %v1413_v3 = vld [vmem:[%s1914_s0 + $0xc0] ss:$8 sps:$4 sm:$0xff]   ;;  %v1415_v5 = vld [vmem:[%s1914_s0 + $0xd4] ss:$8 sps:$4 sm:$0xff]  }
  0x17   :  { %668 = vmatprep.subr.bf16.mxu0 %v1433_v0  ;;  %1294 = vmatprep.subr.bf16.mxu1 %v1433_v0  ;;  %v1411_v2 = vld [vmem:[%s1914_s0 + $0x1c4] ss:$8 sps:$4 sm:$0xff]   ;;  %v1414_v4 = vld [vmem:[%s1914_s0 + $0x1c0] ss:$8 sps:$4 sm:$0xff]   ;;  %v1417_v6 = vld [vmem:[%s1914_s0 + $0x1d4] ss:$8 sps:$4 sm:$0xff]  }
  0x18   :  { %v1419_v7 = vld [vmem:[%s1914_s0 + $0xd0] ss:$8 sps:$4 sm:$0xff]  }
  0x19   :  { %v1420_v8 = vld [vmem:[%s1914_s0 + $0x1d0] ss:$8 sps:$4 sm:$0xff]  }
  0x1a   :  { %669 = vmatpush1.bf16.msra.mxu0 %v1327_v9  ;;  %1310 = vmatpush1.bf16.msra.mxu1 %v1327_v9  ;;  %v1421_v9 = vld [vmem:[%s1914_s0 + $0xe4] ss:$8 sps:$4 sm:$0xff]  }
  0x1b   :  { %670 = vmatprep.subr.bf16.mxu0 %v1433_v0  ;;  %1295 = vmatprep.subr.bf16.mxu1 %v1433_v0 }
  0x1e   :  { %671 = vmatpush1.bf16.msra.mxu0 %v1328_v10  ;;  %1311 = vmatpush1.bf16.msra.mxu1 %v1328_v10  ;;  %v1423_v10 = vld [vmem:[%s1914_s0 + $0x1e4] ss:$8 sps:$4 sm:$0xff]  }
  0x1f   :  { %672 = vmatprep.subr.bf16.mxu0 %v1433_v0  ;;  %1296 = vmatprep.subr.bf16.mxu1 %v1433_v0 }
  0x22   :  { %673 = vmatpush2.bf16.msra.mxu0 %v1329_v11  ;;  %1312 = vmatpush2.bf16.msra.mxu1 %v1329_v11  ;;  %v1425_v11 = vld [vmem:[%s1914_s0 + $0xe0] ss:$8 sps:$4 sm:$0xff]  }
  0x23   :  { %674 = vmatprep.subr.bf16.mxu0 %v1433_v0  ;;  %1297 = vmatprep.subr.bf16.mxu1 %v1433_v0 }
  0x26   :  { %675 = vmatpush2.bf16.msra.mxu0 %v1330_v12  ;;  %1313 = vmatpush2.bf16.msra.mxu1 %v1330_v12  ;;  %v1426_v12 = vld [vmem:[%s1914_s0 + $0x1e0] ss:$8 sps:$4 sm:$0xff]  }
  0x27   :  { %676 = vmatprep.subr.bf16.mxu0 %v1433_v0  ;;  %1298 = vmatprep.subr.bf16.mxu1 %v1433_v0 }
  0x2a   :  { %677 = vmatpush2.bf16.msra.mxu0 %v1331_v13  ;;  %1314 = vmatpush2.bf16.msra.mxu1 %v1331_v13  ;;  %v1427_v13 = vld [vmem:[%s1914_s0 + $0xf4] ss:$8 sps:$4 sm:$0xff]  }
  0x2b   :  { %678 = vmatprep.subr.bf16.mxu0 %v1433_v0  ;;  %1299 = vmatprep.subr.bf16.mxu1 %v1433_v0 }
  0x2e   :  { %679 = vmatpush2.bf16.msra.mxu0 %v1332_v14  ;;  %1315 = vmatpush2.bf16.msra.mxu1 %v1332_v14  ;;  %v1429_v14 = vld [vmem:[%s1914_s0 + $0x1f4] ss:$8 sps:$4 sm:$0xff]  }
  0x2f   :  { %680 = vmatprep.subr.bf16.mxu0 %v1433_v0  ;;  %1300 = vmatprep.subr.bf16.mxu1 %v1433_v0 }
  0x32   :  { %681 = vmatpush2.bf16.msra.mxu0 %v1333_v15  ;;  %1316 = vmatpush2.bf16.msra.mxu1 %v1333_v15  ;;  %v1431_v15 = vld [vmem:[%s1914_s0 + $0xf0] ss:$8 sps:$4 sm:$0xff]  }
  0x33   :  { %682 = vmatprep.subr.bf16.mxu0 %v1433_v0  ;;  %1301 = vmatprep.subr.bf16.mxu1 %v1433_v0 }
  0x36   :  { %683 = vmatpush2.bf16.msra.mxu0 %v1334_v16  ;;  %1317 = vmatpush2.bf16.msra.mxu1 %v1334_v16  ;;  %v1432_v16 = vld [vmem:[%s1914_s0 + $0x1f0] ss:$8 sps:$4 sm:$0xff]  }
  0x37   :  { %684 = vmatprep.subr.bf16.mxu0 %v1433_v0  ;;  %1302 = vmatprep.subr.bf16.mxu1 %v1433_v0 }
  0x3a   :  { %685 = vmatpush2.bf16.msra.mxu0 %v1335_v17  ;;  %1318 = vmatpush2.bf16.msra.mxu1 %v1335_v17 }
  0x3b   :  { %686 = vmatprep.subr.bf16.mxu0 %v1433_v0  ;;  %1303 = vmatprep.subr.bf16.mxu1 %v1433_v0  ;;  %v1408_v0 = vld [vmem:[%s1914_s0 + $0x1b0] ss:$8 sps:$4 sm:$0xff]  }
  0x3e   :  { %687 = vmatpush2.bf16.msra.mxu0 %v1336_v18  ;;  %1319 = vmatpush2.bf16.msra.mxu1 %v1336_v18 }
  0x41   :  { %689 = vmatmul.mubr.bf16.vlgmr.msra.gmra.mxu0 %v1337_v19  ;;  %817 = vmatmul.mubr.bf16.vlgmr.msra.gmra.mxu1 %v1340_v20 }
  0x42   :  { %696 = vmatprep.mubr.bf16.mxu0 %v1343_v21  ;;  %824 = vmatprep.mubr.bf16.mxu1 %v1345_v22 }
  0x49   :  { %697 = vmatmul.mubr.bf16.gmra.mxu0 %v1347_v23  ;;  %825 = vmatmul.mubr.bf16.gmra.mxu1 %v1348_v24 }
  0x4a   :  { %704 = vmatprep.mubr.bf16.mxu0 %v1349_v25  ;;  %832 = vmatprep.mubr.bf16.mxu1 %v1351_v26 }
  0x51   :  { %705 = vmatmul.mubr.bf16.gmra.mxu0 %v1353_v27  ;;  %833 = vmatmul.mubr.bf16.gmra.mxu1 %v1354_v28 }
  0x52   :  { %712 = vmatprep.mubr.bf16.mxu0 %v1355_v29  ;;  %840 = vmatprep.mubr.bf16.mxu1 %v1357_v30 }
  0x59   :  { %713 = vmatmul.mubr.bf16.gmra.mxu0 %v1359_v31  ;;  %841 = vmatmul.mubr.bf16.gmra.mxu1 %v1360_v32 }
  0x5a   :  { %720 = vmatprep.mubr.bf16.mxu0 %v1361_v33  ;;  %848 = vmatprep.mubr.bf16.mxu1 %v1363_v34 }
  0x61   :  { %721 = vmatmul.mubr.bf16.gmra.mxu0 %v1365_v35  ;;  %849 = vmatmul.mubr.bf16.gmra.mxu1 %v1366_v36 }
  0x62   :  { %728 = vmatprep.mubr.bf16.mxu0 %v1367_v37  ;;  %856 = vmatprep.mubr.bf16.mxu1 %v1369_v38 }
  0x69   :  { %729 = vmatmul.mubr.bf16.gmra.mxu0 %v1371_v39  ;;  %857 = vmatmul.mubr.bf16.gmra.mxu1 %v1372_v40 }
  0x6a   :  { %736 = vmatprep.mubr.bf16.mxu0 %v1373_v41  ;;  %864 = vmatprep.mubr.bf16.mxu1 %v1375_v42 }
  0x71   :  { %737 = vmatmul.mubr.bf16.gmra.mxu0 %v1377_v43  ;;  %865 = vmatmul.mubr.bf16.gmra.mxu1 %v1378_v44 }
  0x72   :  { %744 = vmatprep.mubr.bf16.mxu0 %v1379_v45  ;;  %872 = vmatprep.mubr.bf16.mxu1 %v1381_v46 }
  0x79   :  { %745 = vmatmul.mubr.bf16.gmra.mxu0 %v1383_v47  ;;  %873 = vmatmul.mubr.bf16.gmra.mxu1 %v1384_v48 }
  0x7a   :  { %752 = vmatprep.mubr.bf16.mxu0 %v1385_v49  ;;  %880 = vmatprep.mubr.bf16.mxu1 %v1387_v50 }
  0x81   :  { %753 = vmatmul.mubr.bf16.gmra.mxu0 %v1389_v51  ;;  %881 = vmatmul.mubr.bf16.gmra.mxu1 %v1390_v52 }
  0x82   :  { %760 = vmatprep.mubr.bf16.mxu0 %v1391_v53  ;;  %888 = vmatprep.mubr.bf16.mxu1 %v1393_v54 }
  0x89   :  { %761 = vmatmul.mubr.bf16.gmra.mxu0 %v1395_v55  ;;  %889 = vmatmul.mubr.bf16.gmra.mxu1 %v1396_v56 }
  0x8a   :  { %768 = vmatprep.mubr.bf16.mxu0 %v1397_v57  ;;  %896 = vmatprep.mubr.bf16.mxu1 %v1399_v58 }
  0x91   :  { %769 = vmatmul.mubr.bf16.gmra.mxu0 %v1401_v59  ;;  %897 = vmatmul.mubr.bf16.gmra.mxu1 %v1402_v60 }
  0x92   :  { %776 = vmatprep.mubr.bf16.mxu0 %v1403_v61  ;;  %904 = vmatprep.mubr.bf16.mxu1 %v1405_v62 }
  0x99   :  { %777 = vmatmul.mubr.bf16.gmra.mxu0 %v1407_v63  ;;  %905 = vmatmul.mubr.bf16.gmra.mxu1 %v1408_v0 }
  0x9a   :  { %784 = vmatprep.mubr.bf16.mxu0 %v1409_v1  ;;  %912 = vmatprep.mubr.bf16.mxu1 %v1411_v2 }
  0xa1   :  { %785 = vmatmul.mubr.bf16.gmra.mxu0 %v1413_v3  ;;  %913 = vmatmul.mubr.bf16.gmra.mxu1 %v1414_v4 }
  0xa2   :  { %792 = vmatprep.mubr.bf16.mxu0 %v1415_v5  ;;  %920 = vmatprep.mubr.bf16.mxu1 %v1417_v6 }
  0xa9   :  { %793 = vmatmul.mubr.bf16.gmra.mxu0 %v1419_v7  ;;  %921 = vmatmul.mubr.bf16.gmra.mxu1 %v1420_v8 }
  0xaa   :  { %800 = vmatprep.mubr.bf16.mxu0 %v1421_v9  ;;  %928 = vmatprep.mubr.bf16.mxu1 %v1423_v10 }
  0xb1   :  { %801 = vmatmul.mubr.bf16.gmra.mxu0 %v1425_v11  ;;  %929 = vmatmul.mubr.bf16.gmra.mxu1 %v1426_v12 }
  0xb2   :  { %808 = vmatprep.mubr.bf16.mxu0 %v1427_v13  ;;  %936 = vmatprep.mubr.bf16.mxu1 %v1429_v14 }
  0xb9   :  { %809 = vmatmul.mubr.bf16.gmra.mxu0 %v1431_v15  ;;  %937 = vmatmul.mubr.bf16.gmra.mxu1 %v1432_v16 }
 0x101   :  { %v690_v17 = vpop.f32.mrf.mxu0  ;;  %v818_v18 = vpop.f32.mrf.mxu1 }
 0x102   :  { %1140 = vst [vmem:[%s1915_s2] sm:$0xff] %v690_v17  ;;  %1172 = vst [vmem:[%s1915_s2 + $0x100] sm:$0xff] %v818_v18 }
 0x103   :  { %v692_v19 = vpop.f32.mrf.mxu0  ;;  %v820_v20 = vpop.f32.mrf.mxu1 }
 0x105   :  { %v693_v21 = vpop.f32.mrf.mxu0  ;;  %v821_v22 = vpop.f32.mrf.mxu1 }
 0x106   :  { %1141 = vst [vmem:[%s1915_s2 + $0x8] sm:$0xff] %v693_v21  ;;  %1173 = vst [vmem:[%s1915_s2 + $0x108] sm:$0xff] %v821_v22 }
 0x107   :  { %v695_v23 = vpop.f32.mrf.mxu0  ;;  %v823_v24 = vpop.f32.mrf.mxu1 }
 0x109   :  { %v698_v25 = vpop.f32.mrf.mxu0  ;;  %v826_v26 = vpop.f32.mrf.mxu1 }
 0x10a   :  { %1142 = vst [vmem:[%s1915_s2 + $0x10] sm:$0xff] %v698_v25  ;;  %1174 = vst [vmem:[%s1915_s2 + $0x110] sm:$0xff] %v826_v26 }
 0x10b   :  { %v700_v27 = vpop.f32.mrf.mxu0  ;;  %v828_v28 = vpop.f32.mrf.mxu1 }
 0x10d   :  { %v701_v29 = vpop.f32.mrf.mxu0  ;;  %v829_v30 = vpop.f32.mrf.mxu1 }
 0x10e   :  { %1143 = vst [vmem:[%s1915_s2 + $0x18] sm:$0xff] %v701_v29  ;;  %1175 = vst [vmem:[%s1915_s2 + $0x118] sm:$0xff] %v829_v30 }
 0x10f   :  { %v703_v31 = vpop.f32.mrf.mxu0  ;;  %v831_v32 = vpop.f32.mrf.mxu1 }
 0x111   :  { %v706_v33 = vpop.f32.mrf.mxu0  ;;  %v834_v34 = vpop.f32.mrf.mxu1 }
 0x112   :  { %1144 = vst [vmem:[%s1915_s2 + $0x20] sm:$0xff] %v706_v33  ;;  %1176 = vst [vmem:[%s1915_s2 + $0x120] sm:$0xff] %v834_v34 }
 0x113   :  { %v708_v35 = vpop.f32.mrf.mxu0  ;;  %v836_v36 = vpop.f32.mrf.mxu1 }
 0x115   :  { %v709_v37 = vpop.f32.mrf.mxu0  ;;  %v837_v38 = vpop.f32.mrf.mxu1 }
 0x116   :  { %1145 = vst [vmem:[%s1915_s2 + $0x28] sm:$0xff] %v709_v37  ;;  %1177 = vst [vmem:[%s1915_s2 + $0x128] sm:$0xff] %v837_v38 }
 0x117   :  { %v711_v39 = vpop.f32.mrf.mxu0  ;;  %v839_v40 = vpop.f32.mrf.mxu1 }
 0x119   :  { %v714_v41 = vpop.f32.mrf.mxu0  ;;  %v842_v42 = vpop.f32.mrf.mxu1 }
 0x11a   :  { %1146 = vst [vmem:[%s1915_s2 + $0x30] sm:$0xff] %v714_v41  ;;  %1178 = vst [vmem:[%s1915_s2 + $0x130] sm:$0xff] %v842_v42 }
 0x11b   :  { %v716_v43 = vpop.f32.mrf.mxu0  ;;  %v844_v44 = vpop.f32.mrf.mxu1 }
 0x11d   :  { %v717_v45 = vpop.f32.mrf.mxu0  ;;  %v845_v46 = vpop.f32.mrf.mxu1 }
 0x11e   :  { %1147 = vst [vmem:[%s1915_s2 + $0x38] sm:$0xff] %v717_v45  ;;  %1179 = vst [vmem:[%s1915_s2 + $0x138] sm:$0xff] %v845_v46 }
 0x11f   :  { %v719_v47 = vpop.f32.mrf.mxu0  ;;  %v847_v48 = vpop.f32.mrf.mxu1 }
 0x121   :  { %v722_v49 = vpop.f32.mrf.mxu0  ;;  %v850_v50 = vpop.f32.mrf.mxu1 }
 0x122   :  { %1148 = vst [vmem:[%s1915_s2 + $0x40] sm:$0xff] %v722_v49  ;;  %1180 = vst [vmem:[%s1915_s2 + $0x140] sm:$0xff] %v850_v50 }
 0x123   :  { %v724_v51 = vpop.f32.mrf.mxu0  ;;  %v852_v52 = vpop.f32.mrf.mxu1 }
 0x125   :  { %v725_v53 = vpop.f32.mrf.mxu0  ;;  %v853_v54 = vpop.f32.mrf.mxu1 }
 0x126   :  { %1149 = vst [vmem:[%s1915_s2 + $0x48] sm:$0xff] %v725_v53  ;;  %1181 = vst [vmem:[%s1915_s2 + $0x148] sm:$0xff] %v853_v54 }
 0x127   :  { %v727_v55 = vpop.f32.mrf.mxu0  ;;  %v855_v56 = vpop.f32.mrf.mxu1 }
 0x129   :  { %v730_v57 = vpop.f32.mrf.mxu0  ;;  %v858_v58 = vpop.f32.mrf.mxu1 }
 0x12a   :  { %1150 = vst [vmem:[%s1915_s2 + $0x50] sm:$0xff] %v730_v57  ;;  %1182 = vst [vmem:[%s1915_s2 + $0x150] sm:$0xff] %v858_v58 }
 0x12b   :  { %v732_v59 = vpop.f32.mrf.mxu0  ;;  %v860_v60 = vpop.f32.mrf.mxu1 }
 0x12d   :  { %v733_v61 = vpop.f32.mrf.mxu0  ;;  %v861_v62 = vpop.f32.mrf.mxu1 }
 0x12e   :  { %1151 = vst [vmem:[%s1915_s2 + $0x58] sm:$0xff] %v733_v61  ;;  %1183 = vst [vmem:[%s1915_s2 + $0x158] sm:$0xff] %v861_v62 }
 0x12f   :  { %v735_v63 = vpop.f32.mrf.mxu0  ;;  %v863_v0 = vpop.f32.mrf.mxu1 }
 0x131   :  { %v738_v1 = vpop.f32.mrf.mxu0  ;;  %v866_v2 = vpop.f32.mrf.mxu1 }
 0x132   :  { %1152 = vst [vmem:[%s1915_s2 + $0x60] sm:$0xff] %v738_v1  ;;  %1184 = vst [vmem:[%s1915_s2 + $0x160] sm:$0xff] %v866_v2 }
 0x133   :  { %v740_v3 = vpop.f32.mrf.mxu0  ;;  %v868_v4 = vpop.f32.mrf.mxu1 }
 0x135   :  { %v741_v5 = vpop.f32.mrf.mxu0  ;;  %v869_v6 = vpop.f32.mrf.mxu1 }
 0x136   :  { %1153 = vst [vmem:[%s1915_s2 + $0x68] sm:$0xff] %v741_v5  ;;  %1185 = vst [vmem:[%s1915_s2 + $0x168] sm:$0xff] %v869_v6 }
 0x137   :  { %v743_v7 = vpop.f32.mrf.mxu0  ;;  %v871_v8 = vpop.f32.mrf.mxu1 }
 0x139   :  { %v746_v9 = vpop.f32.mrf.mxu0  ;;  %v874_v10 = vpop.f32.mrf.mxu1 }
 0x13a   :  { %1154 = vst [vmem:[%s1915_s2 + $0x70] sm:$0xff] %v746_v9  ;;  %1186 = vst [vmem:[%s1915_s2 + $0x170] sm:$0xff] %v874_v10 }
 0x13b   :  { %v748_v11 = vpop.f32.mrf.mxu0  ;;  %v876_v12 = vpop.f32.mrf.mxu1 }
 0x13d   :  { %v749_v13 = vpop.f32.mrf.mxu0  ;;  %v877_v14 = vpop.f32.mrf.mxu1 }
 0x13e   :  { %1155 = vst [vmem:[%s1915_s2 + $0x78] sm:$0xff] %v749_v13  ;;  %1187 = vst [vmem:[%s1915_s2 + $0x178] sm:$0xff] %v877_v14 }
 0x13f   :  { %v751_v15 = vpop.f32.mrf.mxu0  ;;  %v879_v16 = vpop.f32.mrf.mxu1 }
 0x141   :  { %v754_v17 = vpop.f32.mrf.mxu0  ;;  %v882_v18 = vpop.f32.mrf.mxu1 }
 0x142   :  { %1156 = vst [vmem:[%s1915_s2 + $0x80] sm:$0xff] %v754_v17  ;;  %1188 = vst [vmem:[%s1915_s2 + $0x180] sm:$0xff] %v882_v18 }
 0x143   :  { %v756_v19 = vpop.f32.mrf.mxu0  ;;  %v884_v20 = vpop.f32.mrf.mxu1 }
 0x145   :  { %v757_v21 = vpop.f32.mrf.mxu0  ;;  %v885_v22 = vpop.f32.mrf.mxu1 }
 0x146   :  { %1157 = vst [vmem:[%s1915_s2 + $0x88] sm:$0xff] %v757_v21  ;;  %1189 = vst [vmem:[%s1915_s2 + $0x188] sm:$0xff] %v885_v22 }
 0x147   :  { %v759_v23 = vpop.f32.mrf.mxu0  ;;  %v887_v24 = vpop.f32.mrf.mxu1 }
 0x149   :  { %v762_v25 = vpop.f32.mrf.mxu0  ;;  %v890_v26 = vpop.f32.mrf.mxu1 }
 0x14a   :  { %1158 = vst [vmem:[%s1915_s2 + $0x90] sm:$0xff] %v762_v25  ;;  %1190 = vst [vmem:[%s1915_s2 + $0x190] sm:$0xff] %v890_v26 }
 0x14b   :  { %v764_v27 = vpop.f32.mrf.mxu0  ;;  %v892_v28 = vpop.f32.mrf.mxu1 }
 0x14d   :  { %v765_v29 = vpop.f32.mrf.mxu0  ;;  %v893_v30 = vpop.f32.mrf.mxu1 }
 0x14e   :  { %1159 = vst [vmem:[%s1915_s2 + $0x98] sm:$0xff] %v765_v29  ;;  %1191 = vst [vmem:[%s1915_s2 + $0x198] sm:$0xff] %v893_v30 }
 0x14f   :  { %v767_v31 = vpop.f32.mrf.mxu0  ;;  %v895_v32 = vpop.f32.mrf.mxu1 }
 0x151   :  { %v770_v33 = vpop.f32.mrf.mxu0  ;;  %v898_v34 = vpop.f32.mrf.mxu1 }
 0x152   :  { %1160 = vst [vmem:[%s1915_s2 + $0xa0] sm:$0xff] %v770_v33  ;;  %1192 = vst [vmem:[%s1915_s2 + $0x1a0] sm:$0xff] %v898_v34 }
 0x153   :  { %v772_v35 = vpop.f32.mrf.mxu0  ;;  %v900_v36 = vpop.f32.mrf.mxu1 }
 0x155   :  { %v773_v37 = vpop.f32.mrf.mxu0  ;;  %v901_v38 = vpop.f32.mrf.mxu1 }
 0x156   :  { %1161 = vst [vmem:[%s1915_s2 + $0xa8] sm:$0xff] %v773_v37  ;;  %1193 = vst [vmem:[%s1915_s2 + $0x1a8] sm:$0xff] %v901_v38 }
 0x157   :  { %v775_v39 = vpop.f32.mrf.mxu0  ;;  %v903_v40 = vpop.f32.mrf.mxu1 }
 0x159   :  { %v778_v41 = vpop.f32.mrf.mxu0  ;;  %v906_v42 = vpop.f32.mrf.mxu1 }
 0x15a   :  { %1162 = vst [vmem:[%s1915_s2 + $0xb0] sm:$0xff] %v778_v41  ;;  %1194 = vst [vmem:[%s1915_s2 + $0x1b0] sm:$0xff] %v906_v42 }
 0x15b   :  { %v780_v43 = vpop.f32.mrf.mxu0  ;;  %v908_v44 = vpop.f32.mrf.mxu1 }
 0x15d   :  { %v781_v45 = vpop.f32.mrf.mxu0  ;;  %v909_v46 = vpop.f32.mrf.mxu1 }
 0x15e   :  { %1163 = vst [vmem:[%s1915_s2 + $0xb8] sm:$0xff] %v781_v45  ;;  %1195 = vst [vmem:[%s1915_s2 + $0x1b8] sm:$0xff] %v909_v46 }
 0x15f   :  { %v783_v47 = vpop.f32.mrf.mxu0  ;;  %v911_v48 = vpop.f32.mrf.mxu1 }
 0x161   :  { %v786_v49 = vpop.f32.mrf.mxu0  ;;  %v914_v50 = vpop.f32.mrf.mxu1 }
 0x162   :  { %1164 = vst [vmem:[%s1915_s2 + $0xc0] sm:$0xff] %v786_v49  ;;  %1196 = vst [vmem:[%s1915_s2 + $0x1c0] sm:$0xff] %v914_v50 }
 0x163   :  { %v788_v51 = vpop.f32.mrf.mxu0  ;;  %v916_v52 = vpop.f32.mrf.mxu1 }
 0x165   :  { %v789_v53 = vpop.f32.mrf.mxu0  ;;  %v917_v54 = vpop.f32.mrf.mxu1 }
 0x166   :  { %1165 = vst [vmem:[%s1915_s2 + $0xc8] sm:$0xff] %v789_v53  ;;  %1197 = vst [vmem:[%s1915_s2 + $0x1c8] sm:$0xff] %v917_v54 }
 0x167   :  { %v791_v55 = vpop.f32.mrf.mxu0  ;;  %v919_v56 = vpop.f32.mrf.mxu1 }
 0x169   :  { %v794_v57 = vpop.f32.mrf.mxu0  ;;  %v922_v58 = vpop.f32.mrf.mxu1 }
 0x16a   :  { %1166 = vst [vmem:[%s1915_s2 + $0xd0] sm:$0xff] %v794_v57  ;;  %1198 = vst [vmem:[%s1915_s2 + $0x1d0] sm:$0xff] %v922_v58 }
 0x16b   :  { %v796_v59 = vpop.f32.mrf.mxu0  ;;  %v924_v60 = vpop.f32.mrf.mxu1 }
 0x16d   :  { %v797_v61 = vpop.f32.mrf.mxu0  ;;  %v925_v62 = vpop.f32.mrf.mxu1 }
 0x16e   :  { %1167 = vst [vmem:[%s1915_s2 + $0xd8] sm:$0xff] %v797_v61  ;;  %1199 = vst [vmem:[%s1915_s2 + $0x1d8] sm:$0xff] %v925_v62 }
 0x16f   :  { %v799_v63 = vpop.f32.mrf.mxu0  ;;  %v927_v0 = vpop.f32.mrf.mxu1 }
 0x171   :  { %v802_v1 = vpop.f32.mrf.mxu0  ;;  %v930_v2 = vpop.f32.mrf.mxu1 }
 0x172   :  { %1168 = vst [vmem:[%s1915_s2 + $0xe0] sm:$0xff] %v802_v1  ;;  %1200 = vst [vmem:[%s1915_s2 + $0x1e0] sm:$0xff] %v930_v2 }
 0x173   :  { %v804_v3 = vpop.f32.mrf.mxu0  ;;  %v932_v4 = vpop.f32.mrf.mxu1 }
 0x175   :  { %v805_v5 = vpop.f32.mrf.mxu0  ;;  %v933_v6 = vpop.f32.mrf.mxu1 }
 0x176   :  { %1169 = vst [vmem:[%s1915_s2 + $0xe8] sm:$0xff] %v805_v5  ;;  %1201 = vst [vmem:[%s1915_s2 + $0x1e8] sm:$0xff] %v933_v6 }
 0x177   :  { %v807_v7 = vpop.f32.mrf.mxu0  ;;  %v935_v8 = vpop.f32.mrf.mxu1 }
 0x179   :  { %v810_v9 = vpop.f32.mrf.mxu0  ;;  %v938_v10 = vpop.f32.mrf.mxu1 }
 0x17a   :  { %1170 = vst [vmem:[%s1915_s2 + $0xf0] sm:$0xff] %v810_v9  ;;  %1202 = vst [vmem:[%s1915_s2 + $0x1f0] sm:$0xff] %v938_v10 }
 0x17b   :  { %v812_v11 = vpop.f32.mrf.mxu0  ;;  %v940_v12 = vpop.f32.mrf.mxu1 }
 0x17d   :  { %v813_v13 = vpop.f32.mrf.mxu0  ;;  %v941_v14 = vpop.f32.mrf.mxu1 }
 0x17e   :  { %1171 = vst [vmem:[%s1915_s2 + $0xf8] sm:$0xff] %v813_v13  ;;  %1203 = vst [vmem:[%s1915_s2 + $0x1f8] sm:$0xff] %v941_v14 }
 0x17f   :  { %v815_v15 = vpop.f32.mrf.mxu0  ;;  %v943_v16 = vpop.f32.mrf.mxu1 }

// kernel: resnet34_forward.112
= control target key start
LH: loop header
LB: loop body
LE: loop exit
PB: predicated region body
PF: predicated region fallthrough
CT: control target
= control target key end

     0   :  { %vm284_vm0 = vcmask 523264   ;;  %s961_s0 = inlined_call_operand.vmem [shape: f32[512,64], index: 0, kind: input, shape index: {}]   ;;  %s962_s1 = inlined_call_operand.vmem [shape: f32[1,64], index: 1, kind: input, shape index: {}]   ;;  %s963_s2 = inlined_call_operand.vmem [shape: f32[1,64], index: 2, kind: input, shape index: {}]   ;;  %s964_s3 = inlined_call_operand.vmem [shape: f32[512,64], index: 3, kind: output, shape index: {}]  }
   0x1   :  { %v14_v0 = vld [vmem:[%s961_s0] sm:$0xff]  ;;  %v15_v4 = vld [vmem:[%s961_s0 + $0x8] sm:$0xff]  ;;  %v16_v5 = vld [vmem:[%s961_s0 + $0x10] sm:$0xff] }
   0x2   :  { %v381_v1 = vld [vmem:[%s962_s1] ss:$0 sm:$0xff]  ;;  %v17_v6 = vld [vmem:[%s961_s0 + $0x18] sm:$0xff]  ;;  %v19_v11 = vld [vmem:[%s961_s0 + $0x28] sm:$0xff] }
   0x3   :  { %v386_v2 = vld [vmem:[%s963_s2] ss:$0 sm:$0xff]  ;;  %v85_v3 = vmul.f32 %v381_v1, %v14_v0  ;;  %v86_v7 = vmul.f32 %v381_v1, %v15_v4  ;;  %v87_v8 = vmul.f32 %v381_v1, %v16_v5  ;;  %v88_v9 = vmul.f32 %v381_v1, %v17_v6  ;;  %v20_v12 = vld [vmem:[%s961_s0 + $0x30] sm:$0xff]  ;;  %v21_v17 = vld [vmem:[%s961_s0 + $0x38] sm:$0xff] }
   0x4   :  { %v18_v10 = vld [vmem:[%s961_s0 + $0x20] sm:$0xff]  ;;  %v90_v15 = vmul.f32 %v381_v1, %v19_v11  ;;  %v91_v16 = vmul.f32 %v381_v1, %v20_v12  ;;  %v92_v21 = vmul.f32 %v381_v1, %v21_v17  ;;  %v23_v27 = vld [vmem:[%s961_s0 + $0x48] sm:$0xff]  ;;  %v24_v28 = vld [vmem:[%s961_s0 + $0x50] sm:$0xff] }
   0x5   :  { %v156_v13 = vadd.f32 %v386_v2, %v85_v3  ;;  %v89_v14 = vmul.f32 %v381_v1, %v18_v10  ;;  %v157_v18 = vadd.f32 %v386_v2, %v86_v7  ;;  %v158_v19 = vadd.f32 %v386_v2, %v87_v8  ;;  %v22_v22 = vld [vmem:[%s961_s0 + $0x40] sm:$0xff]  ;;  %v25_v29 = vld [vmem:[%s961_s0 + $0x58] sm:$0xff]  ;;  %v27_v35 = vld [vmem:[%s961_s0 + $0x68] sm:$0xff] }
   0x6   :  { %v159_v20 = vadd.f32 %v386_v2, %v88_v9  ;;  %v161_v25 = vadd.f32 %v386_v2, %v90_v15  ;;  %v162_v26 = vadd.f32 %v386_v2, %v91_v16  ;;  %v163_v33 = vadd.f32 %v386_v2, %v92_v21  ;;  %v26_v34 = vld [vmem:[%s961_s0 + $0x60] sm:$0xff]  ;;  %v28_v36 = vld [vmem:[%s961_s0 + $0x70] sm:$0xff]  ;;  %v29_v41 = vld [vmem:[%s961_s0 + $0x78] sm:$0xff] }
   0x7   :  { %v220_v23 = vmax.f32 %v156_v13, 0.0  ;;  %v160_v24 = vadd.f32 %v386_v2, %v89_v14  ;;  %v221_v30 = vmax.f32 %v157_v18, 0.0  ;;  %v222_v31 = vmax.f32 %v158_v19, 0.0  ;;  %v30_v54 = vld [vmem:[%s961_s0 + $0x80] sm:$0xff]  ;;  %v31_v59 = vld [vmem:[%s961_s0 + $0x88] sm:$0xff]  ;;  %v32_v60 = vld [vmem:[%s961_s0 + $0x90] sm:$0xff] }
   0x8   :  { %v223_v32 = vmax.f32 %v159_v20, 0.0  ;;  %v225_v38 = vmax.f32 %v161_v25, 0.0  ;;  %v226_v39 = vmax.f32 %v162_v26, 0.0  ;;  %v93_v40 = vmul.f32 %v381_v1, %v22_v22  ;;  %v33_v61 = vld [vmem:[%s961_s0 + $0x98] sm:$0xff]  ;;  %v34_v4 = vld [vmem:[%s961_s0 + $0xa0] sm:$0xff]  ;;  %v35_v5 = vld [vmem:[%s961_s0 + $0xa8] sm:$0xff] }
   0x9   :  { %285 = vst.msk [vmem:[%s964_s3] sm:$0xff] %vm284_vm0, %v220_v23  ;;  %v224_v37 = vmax.f32 %v160_v24, 0.0  ;;  %286 = vst.msk [vmem:[%s964_s3 + $0x8] sm:$0xff] %vm284_vm0, %v221_v30  ;;  %v227_v42 = vmax.f32 %v163_v33, 0.0  ;;  %v94_v43 = vmul.f32 %v381_v1, %v23_v27  ;;  %v95_v44 = vmul.f32 %v381_v1, %v24_v28  ;;  %v36_v6 = vld [vmem:[%s961_s0 + $0xb0] sm:$0xff]  ;;  %v37_v11 = vld [vmem:[%s961_s0 + $0xb8] sm:$0xff] }
   0xa   :  { %287 = vst.msk [vmem:[%s964_s3 + $0x10] sm:$0xff] %vm284_vm0, %v222_v31  ;;  %288 = vst.msk [vmem:[%s964_s3 + $0x18] sm:$0xff] %vm284_vm0, %v223_v32  ;;  %v96_v45 = vmul.f32 %v381_v1, %v25_v29  ;;  %v164_v46 = vadd.f32 %v386_v2, %v93_v40  ;;  %v97_v47 = vmul.f32 %v381_v1, %v26_v34  ;;  %v38_v24 = vld [vmem:[%s961_s0 + $0xc0] sm:$0xff]  ;;  %v39_v29 = vld [vmem:[%s961_s0 + $0xc8] sm:$0xff] }
   0xb   :  { %289 = vst.msk [vmem:[%s964_s3 + $0x20] sm:$0xff] %vm284_vm0, %v224_v37  ;;  %290 = vst.msk [vmem:[%s964_s3 + $0x28] sm:$0xff] %vm284_vm0, %v225_v38  ;;  %v98_v48 = vmul.f32 %v381_v1, %v27_v35  ;;  %v99_v49 = vmul.f32 %v381_v1, %v28_v36  ;;  %v165_v50 = vadd.f32 %v386_v2, %v94_v43  ;;  %v40_v30 = vld [vmem:[%s961_s0 + $0xd0] sm:$0xff]  ;;  %v41_v31 = vld [vmem:[%s961_s0 + $0xd8] sm:$0xff] }
   0xc   :  { %291 = vst.msk [vmem:[%s964_s3 + $0x30] sm:$0xff] %vm284_vm0, %v226_v39  ;;  %292 = vst.msk [vmem:[%s964_s3 + $0x38] sm:$0xff] %vm284_vm0, %v227_v42  ;;  %v166_v51 = vadd.f32 %v386_v2, %v95_v44  ;;  %v167_v52 = vadd.f32 %v386_v2, %v96_v45  ;;  %v100_v53 = vmul.f32 %v381_v1, %v29_v41  ;;  %v228_v55 = vmax.f32 %v164_v46, 0.0  ;;  %v42_v36 = vld [vmem:[%s961_s0 + $0xe0] sm:$0xff]  ;;  %v43_v37 = vld [vmem:[%s961_s0 + $0xe8] sm:$0xff] }
   0xd   :  { %v168_v56 = vadd.f32 %v386_v2, %v97_v47  ;;  %v169_v57 = vadd.f32 %v386_v2, %v98_v48  ;;  %v170_v58 = vadd.f32 %v386_v2, %v99_v49  ;;  %v229_v62 = vmax.f32 %v165_v50, 0.0  ;;  %v44_v38 = vld [vmem:[%s961_s0 + $0xf0] sm:$0xff]  ;;  %v45_v43 = vld [vmem:[%s961_s0 + $0xf8] sm:$0xff] }
   0xe   :  { %v230_v63 = vmax.f32 %v166_v51, 0.0  ;;  %v231_v0 = vmax.f32 %v167_v52, 0.0  ;;  %v171_v3 = vadd.f32 %v386_v2, %v100_v53  ;;  %293 = vst.msk [vmem:[%s964_s3 + $0x40] sm:$0xff] %vm284_vm0, %v228_v55  ;;  %v101_v10 = vmul.f32 %v381_v1, %v30_v54 }
   0xf   :  { %v232_v7 = vmax.f32 %v168_v56, 0.0  ;;  %v233_v8 = vmax.f32 %v169_v57, 0.0  ;;  %v234_v9 = vmax.f32 %v170_v58, 0.0  ;;  %294 = vst.msk [vmem:[%s964_s3 + $0x48] sm:$0xff] %vm284_vm0, %v229_v62  ;;  %v102_v13 = vmul.f32 %v381_v1, %v31_v59  ;;  %v46_v56 = vld [vmem:[%s961_s0 + $0x100] sm:$0xff]  ;;  %v48_v62 = vld [vmem:[%s961_s0 + $0x110] sm:$0xff] }
  0x10   :  { %295 = vst.msk [vmem:[%s964_s3 + $0x50] sm:$0xff] %vm284_vm0, %v230_v63  ;;  %296 = vst.msk [vmem:[%s964_s3 + $0x58] sm:$0xff] %vm284_vm0, %v231_v0  ;;  %v235_v12 = vmax.f32 %v171_v3, 0.0  ;;  %v103_v14 = vmul.f32 %v381_v1, %v32_v60  ;;  %v104_v15 = vmul.f32 %v381_v1, %v33_v61  ;;  %v172_v16 = vadd.f32 %v386_v2, %v101_v10  ;;  %v47_v61 = vld [vmem:[%s961_s0 + $0x108] sm:$0xff]  ;;  %v49_v63 = vld [vmem:[%s961_s0 + $0x118] sm:$0xff] }
  0x11   :  { %297 = vst.msk [vmem:[%s964_s3 + $0x60] sm:$0xff] %vm284_vm0, %v232_v7  ;;  %298 = vst.msk [vmem:[%s964_s3 + $0x68] sm:$0xff] %vm284_vm0, %v233_v8  ;;  %v105_v17 = vmul.f32 %v381_v1, %v34_v4  ;;  %v106_v18 = vmul.f32 %v381_v1, %v35_v5  ;;  %v107_v19 = vmul.f32 %v381_v1, %v36_v6  ;;  %v50_v6 = vld [vmem:[%s961_s0 + $0x120] sm:$0xff]  ;;  %v51_v7 = vld [vmem:[%s961_s0 + $0x128] sm:$0xff] }
  0x12   :  { %299 = vst.msk [vmem:[%s964_s3 + $0x70] sm:$0xff] %vm284_vm0, %v234_v9  ;;  %300 = vst.msk [vmem:[%s964_s3 + $0x78] sm:$0xff] %vm284_vm0, %v235_v12  ;;  %v173_v20 = vadd.f32 %v386_v2, %v102_v13  ;;  %v174_v21 = vadd.f32 %v386_v2, %v103_v14  ;;  %v175_v22 = vadd.f32 %v386_v2, %v104_v15  ;;  %v236_v25 = vmax.f32 %v172_v16, 0.0  ;;  %v52_v8 = vld [vmem:[%s961_s0 + $0x130] sm:$0xff]  ;;  %v53_v13 = vld [vmem:[%s961_s0 + $0x138] sm:$0xff] }
  0x13   :  { %v108_v23 = vmul.f32 %v381_v1, %v37_v11  ;;  %v176_v26 = vadd.f32 %v386_v2, %v105_v17  ;;  %v177_v27 = vadd.f32 %v386_v2, %v106_v18  ;;  %v178_v28 = vadd.f32 %v386_v2, %v107_v19 }
  0x14   :  { %v237_v32 = vmax.f32 %v173_v20, 0.0  ;;  %v238_v33 = vmax.f32 %v174_v21, 0.0  ;;  %v239_v34 = vmax.f32 %v175_v22, 0.0  ;;  %301 = vst.msk [vmem:[%s964_s3 + $0x80] sm:$0xff] %vm284_vm0, %v236_v25  ;;  %v109_v42 = vmul.f32 %v381_v1, %v38_v24 }
  0x15   :  { %v179_v35 = vadd.f32 %v386_v2, %v108_v23  ;;  %v240_v39 = vmax.f32 %v176_v26, 0.0  ;;  %v241_v40 = vmax.f32 %v177_v27, 0.0  ;;  %v242_v41 = vmax.f32 %v178_v28, 0.0  ;;  %v54_v26 = vld [vmem:[%s961_s0 + $0x140] sm:$0xff] }
  0x16   :  { %302 = vst.msk [vmem:[%s964_s3 + $0x88] sm:$0xff] %vm284_vm0, %v237_v32  ;;  %303 = vst.msk [vmem:[%s964_s3 + $0x90] sm:$0xff] %vm284_vm0, %v238_v33  ;;  %v110_v45 = vmul.f32 %v381_v1, %v39_v29  ;;  %v111_v46 = vmul.f32 %v381_v1, %v40_v30  ;;  %v112_v47 = vmul.f32 %v381_v1, %v41_v31  ;;  %v55_v31 = vld [vmem:[%s961_s0 + $0x148] sm:$0xff]  ;;  %v56_v32 = vld [vmem:[%s961_s0 + $0x150] sm:$0xff] }
  0x17   :  { %304 = vst.msk [vmem:[%s964_s3 + $0x98] sm:$0xff] %vm284_vm0, %v239_v34  ;;  %v243_v44 = vmax.f32 %v179_v35, 0.0  ;;  %305 = vst.msk [vmem:[%s964_s3 + $0xa0] sm:$0xff] %vm284_vm0, %v240_v39  ;;  %v180_v48 = vadd.f32 %v386_v2, %v109_v42  ;;  %v113_v49 = vmul.f32 %v381_v1, %v42_v36  ;;  %v114_v50 = vmul.f32 %v381_v1, %v43_v37  ;;  %v57_v33 = vld [vmem:[%s961_s0 + $0x158] sm:$0xff]  ;;  %v59_v39 = vld [vmem:[%s961_s0 + $0x168] sm:$0xff] }
  0x18   :  { %306 = vst.msk [vmem:[%s964_s3 + $0xa8] sm:$0xff] %vm284_vm0, %v241_v40  ;;  %307 = vst.msk [vmem:[%s964_s3 + $0xb0] sm:$0xff] %vm284_vm0, %v242_v41  ;;  %v115_v51 = vmul.f32 %v381_v1, %v44_v38  ;;  %v181_v52 = vadd.f32 %v386_v2, %v110_v45  ;;  %v182_v53 = vadd.f32 %v386_v2, %v111_v46  ;;  %v58_v38 = vld [vmem:[%s961_s0 + $0x160] sm:$0xff]  ;;  %v60_v40 = vld [vmem:[%s961_s0 + $0x170] sm:$0xff] }
  0x19   :  { %308 = vst.msk [vmem:[%s964_s3 + $0xb8] sm:$0xff] %vm284_vm0, %v243_v44  ;;  %v183_v54 = vadd.f32 %v386_v2, %v112_v47  ;;  %v116_v55 = vmul.f32 %v381_v1, %v45_v43  ;;  %v244_v57 = vmax.f32 %v180_v48, 0.0  ;;  %v184_v58 = vadd.f32 %v386_v2, %v113_v49  ;;  %v61_v45 = vld [vmem:[%s961_s0 + $0x178] sm:$0xff] }
  0x1a   :  { %v185_v59 = vadd.f32 %v386_v2, %v114_v50  ;;  %v186_v60 = vadd.f32 %v386_v2, %v115_v51  ;;  %v245_v0 = vmax.f32 %v181_v52, 0.0  ;;  %v246_v3 = vmax.f32 %v182_v53, 0.0 }
  0x1b   :  { %v247_v4 = vmax.f32 %v183_v54, 0.0  ;;  %v187_v5 = vadd.f32 %v386_v2, %v116_v55  ;;  %309 = vst.msk [vmem:[%s964_s3 + $0xc0] sm:$0xff] %vm284_vm0, %v244_v57  ;;  %v248_v9 = vmax.f32 %v184_v58, 0.0  ;;  %v117_v12 = vmul.f32 %v381_v1, %v46_v56  ;;  %v62_v58 = vld [vmem:[%s961_s0 + $0x180] sm:$0xff] }
  0x1c   :  { %v249_v10 = vmax.f32 %v185_v59, 0.0  ;;  %v250_v11 = vmax.f32 %v186_v60, 0.0  ;;  %310 = vst.msk [vmem:[%s964_s3 + $0xc8] sm:$0xff] %vm284_vm0, %v245_v0  ;;  %311 = vst.msk [vmem:[%s964_s3 + $0xd0] sm:$0xff] %vm284_vm0, %v246_v3  ;;  %v118_v15 = vmul.f32 %v381_v1, %v47_v61  ;;  %v119_v16 = vmul.f32 %v381_v1, %v48_v62  ;;  %v64_v0 = vld [vmem:[%s961_s0 + $0x190] sm:$0xff]  ;;  %v65_v3 = vld [vmem:[%s961_s0 + $0x198] sm:$0xff] }
  0x1d   :  { %312 = vst.msk [vmem:[%s964_s3 + $0xd8] sm:$0xff] %vm284_vm0, %v247_v4  ;;  %v251_v14 = vmax.f32 %v187_v5, 0.0  ;;  %v120_v17 = vmul.f32 %v381_v1, %v49_v63  ;;  %313 = vst.msk [vmem:[%s964_s3 + $0xe0] sm:$0xff] %vm284_vm0, %v248_v9  ;;  %v188_v18 = vadd.f32 %v386_v2, %v117_v12  ;;  %v121_v19 = vmul.f32 %v381_v1, %v50_v6  ;;  %v63_v63 = vld [vmem:[%s961_s0 + $0x188] sm:$0xff] }
  0x1e   :  { %314 = vst.msk [vmem:[%s964_s3 + $0xe8] sm:$0xff] %vm284_vm0, %v249_v10  ;;  %315 = vst.msk [vmem:[%s964_s3 + $0xf0] sm:$0xff] %vm284_vm0, %v250_v11  ;;  %v122_v20 = vmul.f32 %v381_v1, %v51_v7  ;;  %v123_v21 = vmul.f32 %v381_v1, %v52_v8  ;;  %v189_v22 = vadd.f32 %v386_v2, %v118_v15  ;;  %v66_v8 = vld [vmem:[%s961_s0 + $0x1a0] sm:$0xff]  ;;  %v67_v9 = vld [vmem:[%s961_s0 + $0x1a8] sm:$0xff] }
  0x1f   :  { %316 = vst.msk [vmem:[%s964_s3 + $0xf8] sm:$0xff] %vm284_vm0, %v251_v14  ;;  %v190_v23 = vadd.f32 %v386_v2, %v119_v16  ;;  %v191_v24 = vadd.f32 %v386_v2, %v120_v17  ;;  %v124_v25 = vmul.f32 %v381_v1, %v53_v13  ;;  %v252_v27 = vmax.f32 %v188_v18, 0.0  ;;  %v68_v10 = vld [vmem:[%s961_s0 + $0x1b0] sm:$0xff]  ;;  %v69_v15 = vld [vmem:[%s961_s0 + $0x1b8] sm:$0xff] }
  0x20   :  { %v192_v28 = vadd.f32 %v386_v2, %v121_v19  ;;  %v193_v29 = vadd.f32 %v386_v2, %v122_v20  ;;  %v194_v30 = vadd.f32 %v386_v2, %v123_v21  ;;  %v253_v34 = vmax.f32 %v189_v22, 0.0 }
  0x21   :  { %v254_v35 = vmax.f32 %v190_v23, 0.0  ;;  %v255_v36 = vmax.f32 %v191_v24, 0.0  ;;  %v195_v37 = vadd.f32 %v386_v2, %v124_v25  ;;  %317 = vst.msk [vmem:[%s964_s3 + $0x100] sm:$0xff] %vm284_vm0, %v252_v27  ;;  %v125_v44 = vmul.f32 %v381_v1, %v54_v26 }
  0x22   :  { %v256_v41 = vmax.f32 %v192_v28, 0.0  ;;  %v257_v42 = vmax.f32 %v193_v29, 0.0  ;;  %v258_v43 = vmax.f32 %v194_v30, 0.0  ;;  %318 = vst.msk [vmem:[%s964_s3 + $0x108] sm:$0xff] %vm284_vm0, %v253_v34  ;;  %v126_v47 = vmul.f32 %v381_v1, %v55_v31  ;;  %v70_v28 = vld [vmem:[%s961_s0 + $0x1c0] sm:$0xff]  ;;  %v72_v34 = vld [vmem:[%s961_s0 + $0x1d0] sm:$0xff] }
  0x23   :  { %319 = vst.msk [vmem:[%s964_s3 + $0x110] sm:$0xff] %vm284_vm0, %v254_v35  ;;  %320 = vst.msk [vmem:[%s964_s3 + $0x118] sm:$0xff] %vm284_vm0, %v255_v36  ;;  %v259_v46 = vmax.f32 %v195_v37, 0.0  ;;  %v127_v48 = vmul.f32 %v381_v1, %v56_v32  ;;  %v128_v49 = vmul.f32 %v381_v1, %v57_v33  ;;  %v196_v50 = vadd.f32 %v386_v2, %v125_v44  ;;  %v71_v33 = vld [vmem:[%s961_s0 + $0x1c8] sm:$0xff]  ;;  %v73_v35 = vld [vmem:[%s961_s0 + $0x1d8] sm:$0xff] }
  0x24   :  { %321 = vst.msk [vmem:[%s964_s3 + $0x120] sm:$0xff] %vm284_vm0, %v256_v41  ;;  %322 = vst.msk [vmem:[%s964_s3 + $0x128] sm:$0xff] %vm284_vm0, %v257_v42  ;;  %v129_v51 = vmul.f32 %v381_v1, %v58_v38  ;;  %v130_v52 = vmul.f32 %v381_v1, %v59_v39  ;;  %v131_v53 = vmul.f32 %v381_v1, %v60_v40  ;;  %v74_v40 = vld [vmem:[%s961_s0 + $0x1e0] sm:$0xff]  ;;  %v75_v41 = vld [vmem:[%s961_s0 + $0x1e8] sm:$0xff] }
  0x25   :  { %323 = vst.msk [vmem:[%s964_s3 + $0x130] sm:$0xff] %vm284_vm0, %v258_v43  ;;  %324 = vst.msk [vmem:[%s964_s3 + $0x138] sm:$0xff] %vm284_vm0, %v259_v46  ;;  %v197_v54 = vadd.f32 %v386_v2, %v126_v47  ;;  %v198_v55 = vadd.f32 %v386_v2, %v127_v48  ;;  %v199_v56 = vadd.f32 %v386_v2, %v128_v49  ;;  %v260_v59 = vmax.f32 %v196_v50, 0.0  ;;  %v76_v42 = vld [vmem:[%s961_s0 + $0x1f0] sm:$0xff]  ;;  %v77_v47 = vld [vmem:[%s961_s0 + $0x1f8] sm:$0xff] }
  0x26   :  { %v132_v57 = vmul.f32 %v381_v1, %v61_v45  ;;  %v200_v60 = vadd.f32 %v386_v2, %v129_v51  ;;  %v201_v61 = vadd.f32 %v386_v2, %v130_v52  ;;  %v202_v62 = vadd.f32 %v386_v2, %v131_v53 }
  0x27   :  { %v261_v4 = vmax.f32 %v197_v54, 0.0  ;;  %v262_v5 = vmax.f32 %v198_v55, 0.0  ;;  %v263_v6 = vmax.f32 %v199_v56, 0.0  ;;  %325 = vst.msk [vmem:[%s964_s3 + $0x140] sm:$0xff] %vm284_vm0, %v260_v59  ;;  %v133_v14 = vmul.f32 %v381_v1, %v62_v58 }
  0x28   :  { %v203_v7 = vadd.f32 %v386_v2, %v132_v57  ;;  %v264_v11 = vmax.f32 %v200_v60, 0.0  ;;  %v265_v12 = vmax.f32 %v201_v61, 0.0  ;;  %v266_v13 = vmax.f32 %v202_v62, 0.0 }
  0x29   :  { %326 = vst.msk [vmem:[%s964_s3 + $0x148] sm:$0xff] %vm284_vm0, %v261_v4  ;;  %327 = vst.msk [vmem:[%s964_s3 + $0x150] sm:$0xff] %vm284_vm0, %v262_v5  ;;  %v134_v17 = vmul.f32 %v381_v1, %v63_v63  ;;  %v135_v18 = vmul.f32 %v381_v1, %v64_v0  ;;  %v136_v19 = vmul.f32 %v381_v1, %v65_v3 }
  0x2a   :  { %328 = vst.msk [vmem:[%s964_s3 + $0x158] sm:$0xff] %vm284_vm0, %v263_v6  ;;  %v267_v16 = vmax.f32 %v203_v7, 0.0  ;;  %329 = vst.msk [vmem:[%s964_s3 + $0x160] sm:$0xff] %vm284_vm0, %v264_v11  ;;  %v204_v20 = vadd.f32 %v386_v2, %v133_v14  ;;  %v137_v21 = vmul.f32 %v381_v1, %v66_v8  ;;  %v138_v22 = vmul.f32 %v381_v1, %v67_v9 }
  0x2b   :  { %330 = vst.msk [vmem:[%s964_s3 + $0x168] sm:$0xff] %vm284_vm0, %v265_v12  ;;  %331 = vst.msk [vmem:[%s964_s3 + $0x170] sm:$0xff] %vm284_vm0, %v266_v13  ;;  %v139_v23 = vmul.f32 %v381_v1, %v68_v10  ;;  %v205_v24 = vadd.f32 %v386_v2, %v134_v17  ;;  %v206_v25 = vadd.f32 %v386_v2, %v135_v18 }
  0x2c   :  { %332 = vst.msk [vmem:[%s964_s3 + $0x178] sm:$0xff] %vm284_vm0, %v267_v16  ;;  %v207_v26 = vadd.f32 %v386_v2, %v136_v19  ;;  %v140_v27 = vmul.f32 %v381_v1, %v69_v15  ;;  %v268_v29 = vmax.f32 %v204_v20, 0.0  ;;  %v208_v30 = vadd.f32 %v386_v2, %v137_v21 }
  0x2d   :  { %v209_v31 = vadd.f32 %v386_v2, %v138_v22  ;;  %v210_v32 = vadd.f32 %v386_v2, %v139_v23  ;;  %v269_v36 = vmax.f32 %v205_v24, 0.0  ;;  %v270_v37 = vmax.f32 %v206_v25, 0.0 }
  0x2e   :  { %v271_v38 = vmax.f32 %v207_v26, 0.0  ;;  %v211_v39 = vadd.f32 %v386_v2, %v140_v27  ;;  %333 = vst.msk [vmem:[%s964_s3 + $0x180] sm:$0xff] %vm284_vm0, %v268_v29  ;;  %v272_v43 = vmax.f32 %v208_v30, 0.0  ;;  %v141_v46 = vmul.f32 %v381_v1, %v70_v28 }
  0x2f   :  { %v273_v44 = vmax.f32 %v209_v31, 0.0  ;;  %v274_v45 = vmax.f32 %v210_v32, 0.0  ;;  %334 = vst.msk [vmem:[%s964_s3 + $0x188] sm:$0xff] %vm284_vm0, %v269_v36  ;;  %335 = vst.msk [vmem:[%s964_s3 + $0x190] sm:$0xff] %vm284_vm0, %v270_v37  ;;  %v142_v49 = vmul.f32 %v381_v1, %v71_v33  ;;  %v143_v50 = vmul.f32 %v381_v1, %v72_v34 }
  0x30   :  { %336 = vst.msk [vmem:[%s964_s3 + $0x198] sm:$0xff] %vm284_vm0, %v271_v38  ;;  %v275_v48 = vmax.f32 %v211_v39, 0.0  ;;  %v144_v51 = vmul.f32 %v381_v1, %v73_v35  ;;  %337 = vst.msk [vmem:[%s964_s3 + $0x1a0] sm:$0xff] %vm284_vm0, %v272_v43  ;;  %v212_v52 = vadd.f32 %v386_v2, %v141_v46  ;;  %v145_v53 = vmul.f32 %v381_v1, %v74_v40 }
  0x31   :  { %338 = vst.msk [vmem:[%s964_s3 + $0x1a8] sm:$0xff] %vm284_vm0, %v273_v44  ;;  %339 = vst.msk [vmem:[%s964_s3 + $0x1b0] sm:$0xff] %vm284_vm0, %v274_v45  ;;  %v146_v54 = vmul.f32 %v381_v1, %v75_v41  ;;  %v147_v55 = vmul.f32 %v381_v1, %v76_v42  ;;  %v213_v56 = vadd.f32 %v386_v2, %v142_v49 }
  0x32   :  { %340 = vst.msk [vmem:[%s964_s3 + $0x1b8] sm:$0xff] %vm284_vm0, %v275_v48  ;;  %v214_v57 = vadd.f32 %v386_v2, %v143_v50  ;;  %v215_v58 = vadd.f32 %v386_v2, %v144_v51  ;;  %v148_v59 = vmul.f32 %v381_v1, %v77_v47  ;;  %v276_v60 = vmax.f32 %v212_v52, 0.0 }
  0x33   :  { %v216_v61 = vadd.f32 %v386_v2, %v145_v53  ;;  %v217_v62 = vadd.f32 %v386_v2, %v146_v54  ;;  %v218_v63 = vadd.f32 %v386_v2, %v147_v55  ;;  %v277_v0 = vmax.f32 %v213_v56, 0.0 }
  0x34   :  { %v278_v3 = vmax.f32 %v214_v57, 0.0  ;;  %v279_v4 = vmax.f32 %v215_v58, 0.0  ;;  %v219_v5 = vadd.f32 %v386_v2, %v148_v59  ;;  %341 = vst.msk [vmem:[%s964_s3 + $0x1c0] sm:$0xff] %vm284_vm0, %v276_v60 }
  0x35   :  { %v280_v6 = vmax.f32 %v216_v61, 0.0  ;;  %v281_v7 = vmax.f32 %v217_v62, 0.0  ;;  %v282_v1 = vmax.f32 %v218_v63, 0.0  ;;  %342 = vst.msk [vmem:[%s964_s3 + $0x1c8] sm:$0xff] %vm284_vm0, %v277_v0 }
  0x36   :  { %343 = vst.msk [vmem:[%s964_s3 + $0x1d0] sm:$0xff] %vm284_vm0, %v278_v3  ;;  %344 = vst.msk [vmem:[%s964_s3 + $0x1d8] sm:$0xff] %vm284_vm0, %v279_v4  ;;  %v283_v2 = vmax.f32 %v219_v5, 0.0 }
  0x37   :  { %345 = vst.msk [vmem:[%s964_s3 + $0x1e0] sm:$0xff] %vm284_vm0, %v280_v6  ;;  %346 = vst.msk [vmem:[%s964_s3 + $0x1e8] sm:$0xff] %vm284_vm0, %v281_v7 }
  0x38   :  { %347 = vst.msk [vmem:[%s964_s3 + $0x1f0] sm:$0xff] %vm284_vm0, %v282_v1  ;;  %348 = vst.msk [vmem:[%s964_s3 + $0x1f8] sm:$0xff] %vm284_vm0, %v283_v2 }

// kernel: resnet34_forward.114
= control target key start
LH: loop header
LB: loop body
LE: loop exit
PB: predicated region body
PF: predicated region fallthrough
CT: control target
= control target key end

     0   :  { %vm14_vm0 = vcmask 516096   ;;  %vm34_vm1 = vcmask 523264   ;;  %v140_v0 = vmov 0.0   ;;  %s258_s0 = inlined_call_operand.vmem [shape: f32[128,64], index: 0, kind: input, shape index: {}]   ;;  %s259_s1 = inlined_call_operand.vmem [shape: f32[1,64], index: 1, kind: output, shape index: {0}]   ;;  %s260_s2 = inlined_call_operand.vmem [shape: f32[1,64], index: 2, kind: output, shape index: {1}]  }
   0x1   :  { %15 = vst.msk [vmem:[%s259_s1] sm:$0x1] %vm14_vm0, %v140_v0  ;;  %v17_v1 = vld [vmem:[%s258_s0] sm:$0xff]  ;;  %v18_v2 = vld [vmem:[%s258_s0 + $0x8] sm:$0xff]  ;;  %v19_v3 = vld [vmem:[%s258_s0 + $0x10] sm:$0xff] }
   0x2   :  { %16 = vst.msk [vmem:[%s260_s2] sm:$0x1] %vm14_vm0, %v140_v0  ;;  %v35_v4 = vsel %vm34_vm1, %v17_v1, 0.0  ;;  %v36_v5 = vsel %vm34_vm1, %v18_v2, 0.0  ;;  %v38_v6 = vsel %vm34_vm1, %v19_v3, 0.0  ;;  %v20_v7 = vld [vmem:[%s258_s0 + $0x18] sm:$0xff]  ;;  %v76_v15 = vmul.f32 %v17_v1, %v17_v1 }
   0x3   :  { %v37_v8 = vadd.f32 %v36_v5, %v35_v4  ;;  %v40_v9 = vsel %vm34_vm1, %v20_v7, 0.0  ;;  %v21_v10 = vld [vmem:[%s258_s0 + $0x20] sm:$0xff]  ;;  %v22_v13 = vld [vmem:[%s258_s0 + $0x28] sm:$0xff]  ;;  %v77_v16 = vmul.f32 %v18_v2, %v18_v2  ;;  %v78_v17 = vmul.f32 %v19_v3, %v19_v3  ;;  %v23_v19 = vld [vmem:[%s258_s0 + $0x30] sm:$0xff] }
   0x4   :  { %v42_v12 = vsel %vm34_vm1, %v21_v10, 0.0  ;;  %v44_v18 = vsel %vm34_vm1, %v22_v13, 0.0  ;;  %v79_v21 = vmul.f32 %v20_v7, %v20_v7  ;;  %v46_v22 = vsel %vm34_vm1, %v23_v19, 0.0  ;;  %v24_v24 = vld [vmem:[%s258_s0 + $0x38] sm:$0xff]  ;;  %v25_v31 = vld [vmem:[%s258_s0 + $0x40] sm:$0xff]  ;;  %v26_v37 = vld [vmem:[%s258_s0 + $0x48] sm:$0xff] }
   0x5   :  { %v39_v11 = vadd.f32 %v38_v6, %v37_v8  ;;  %v80_v23 = vmul.f32 %v21_v10, %v21_v10  ;;  %v92_v26 = vsel %vm34_vm1, %v76_v15, 0.0  ;;  %v93_v27 = vsel %vm34_vm1, %v77_v16, 0.0  ;;  %v27_v43 = vld [vmem:[%s258_s0 + $0x50] sm:$0xff]  ;;  %v28_v49 = vld [vmem:[%s258_s0 + $0x58] sm:$0xff]  ;;  %v29_v55 = vld [vmem:[%s258_s0 + $0x60] sm:$0xff] }
   0x6   :  { %v95_v28 = vsel %vm34_vm1, %v78_v17, 0.0  ;;  %v48_v29 = vsel %vm34_vm1, %v24_v24, 0.0  ;;  %v94_v30 = vadd.f32 %v93_v27, %v92_v26  ;;  %v81_v33 = vmul.f32 %v22_v13, %v22_v13  ;;  %v30_v61 = vld [vmem:[%s258_s0 + $0x68] sm:$0xff]  ;;  %v31_v3 = vld [vmem:[%s258_s0 + $0x70] sm:$0xff] }
   0x7   :  { %v41_v14 = vadd.f32 %v40_v9, %v39_v11  ;;  %v97_v34 = vsel %vm34_vm1, %v79_v21, 0.0  ;;  %v50_v35 = vsel %vm34_vm1, %v25_v31, 0.0  ;;  %v82_v39 = vmul.f32 %v23_v19, %v23_v19  ;;  %v32_v9 = vld [vmem:[%s258_s0 + $0x78] sm:$0xff] }
   0x8   :  { %v96_v36 = vadd.f32 %v95_v28, %v94_v30  ;;  %v99_v40 = vsel %vm34_vm1, %v80_v23, 0.0  ;;  %v52_v41 = vsel %vm34_vm1, %v26_v37, 0.0  ;;  %v83_v45 = vmul.f32 %v24_v24, %v24_v24 }
   0x9   :  { %v43_v20 = vadd.f32 %v42_v12, %v41_v14  ;;  %v101_v46 = vsel %vm34_vm1, %v81_v33, 0.0  ;;  %v54_v47 = vsel %vm34_vm1, %v27_v43, 0.0  ;;  %v84_v51 = vmul.f32 %v25_v31, %v25_v31 }
   0xa   :  { %v98_v42 = vadd.f32 %v97_v34, %v96_v36  ;;  %v103_v52 = vsel %vm34_vm1, %v82_v39, 0.0  ;;  %v56_v53 = vsel %vm34_vm1, %v28_v49, 0.0  ;;  %v85_v57 = vmul.f32 %v26_v37, %v26_v37  ;;  %v33_v36 = vld [vmem:[%s259_s1] sm:$0x1] }
   0xb   :  { %v45_v25 = vadd.f32 %v44_v18, %v43_v20  ;;  %v105_v58 = vsel %vm34_vm1, %v83_v45, 0.0  ;;  %v58_v59 = vsel %vm34_vm1, %v29_v55, 0.0  ;;  %v86_v63 = vmul.f32 %v27_v43, %v27_v43 }
   0xc   :  { %v100_v48 = vadd.f32 %v99_v40, %v98_v42  ;;  %v107_v0 = vsel %vm34_vm1, %v84_v51, 0.0  ;;  %v60_v1 = vsel %vm34_vm1, %v30_v61, 0.0  ;;  %v87_v5 = vmul.f32 %v28_v49, %v28_v49 }
   0xd   :  { %v47_v32 = vadd.f32 %v46_v22, %v45_v25  ;;  %v109_v6 = vsel %vm34_vm1, %v85_v57, 0.0  ;;  %v62_v7 = vsel %vm34_vm1, %v31_v3, 0.0  ;;  %v88_v11 = vmul.f32 %v29_v55, %v29_v55 }
   0xe   :  { %v102_v54 = vadd.f32 %v101_v46, %v100_v48  ;;  %v111_v12 = vsel %vm34_vm1, %v86_v63, 0.0  ;;  %v64_v13 = vsel %vm34_vm1, %v32_v9, 0.0  ;;  %v89_v16 = vmul.f32 %v30_v61, %v30_v61 }
   0xf   :  { %v49_v38 = vadd.f32 %v48_v29, %v47_v32  ;;  %v113_v17 = vsel %vm34_vm1, %v87_v5, 0.0  ;;  %v90_v20 = vmul.f32 %v31_v3, %v31_v3  ;;  %v115_v21 = vsel %vm34_vm1, %v88_v11, 0.0 }
  0x10   :  { %v104_v60 = vadd.f32 %v103_v52, %v102_v54  ;;  %v91_v24 = vmul.f32 %v32_v9, %v32_v9  ;;  %v117_v25 = vsel %vm34_vm1, %v89_v16, 0.0 }
  0x11   :  { %v51_v44 = vadd.f32 %v50_v35, %v49_v38  ;;  %v119_v28 = vsel %vm34_vm1, %v90_v20, 0.0 }
  0x12   :  { %v106_v2 = vadd.f32 %v105_v58, %v104_v60  ;;  %v121_v31 = vsel %vm34_vm1, %v91_v24, 0.0 }
  0x13   :  { %v53_v50 = vadd.f32 %v52_v41, %v51_v44  ;;  %v75_v44 = vld [vmem:[%s260_s2] sm:$0x1] }
  0x14   :  { %v108_v8 = vadd.f32 %v107_v0, %v106_v2 }
  0x15   :  { %v55_v56 = vadd.f32 %v54_v47, %v53_v50 }
  0x16   :  { %v110_v14 = vadd.f32 %v109_v6, %v108_v8 }
  0x17   :  { %v57_v62 = vadd.f32 %v56_v53, %v55_v56 }
  0x18   :  { %v112_v18 = vadd.f32 %v111_v12, %v110_v14 }
  0x19   :  { %v59_v4 = vadd.f32 %v58_v59, %v57_v62 }
  0x1a   :  { %v114_v22 = vadd.f32 %v113_v17, %v112_v18 }
  0x1b   :  { %v61_v10 = vadd.f32 %v60_v1, %v59_v4 }
  0x1c   :  { %v116_v26 = vadd.f32 %v115_v21, %v114_v22 }
  0x1d   :  { %v63_v15 = vadd.f32 %v62_v7, %v61_v10 }
  0x1e   :  { %v118_v29 = vadd.f32 %v117_v25, %v116_v26 }
  0x1f   :  { %v65_v19 = vadd.f32 %v64_v13, %v63_v15 }
  0x20   :  { %v120_v32 = vadd.f32 %v119_v28, %v118_v29 }
  0x21   :  { %v66_v23 = vrot.slane %v65_v19, 4 }
  0x22   :  { %v122_v34 = vadd.f32 %v121_v31, %v120_v32 }
  0x23   :  { %v67_v27 = vadd.f32 %v66_v23, %v65_v19 }
  0x24   :  { %v123_v37 = vrot.slane %v122_v34, 4 }
  0x25   :  { %v68_v30 = vrot.slane %v67_v27, 2 }
  0x26   :  { %v124_v39 = vadd.f32 %v123_v37, %v122_v34 }
  0x27   :  { %v69_v33 = vadd.f32 %v68_v30, %v67_v27 }
  0x28   :  { %v125_v41 = vrot.slane %v124_v39, 2 }
  0x29   :  { %v70_v35 = vrot.slane %v69_v33, 1 }
  0x2a   :  { %v126_v42 = vadd.f32 %v125_v41, %v124_v39 }
  0x2b   :  { %v71_v38 = vadd.f32 %v70_v35, %v69_v33 }
  0x2c   :  { %v127_v43 = vrot.slane %v126_v42, 1 }
  0x2d   :  { %v72_v40 = vadd.f32 %v71_v38, %v33_v36 }
  0x2e   :  { %v128_v45 = vadd.f32 %v127_v43, %v126_v42 }
  0x2f   :  { %74 = vst.msk [vmem:[%s259_s1] sm:$0x1] %vm14_vm0, %v72_v40 }
  0x30   :  { %v129_v46 = vadd.f32 %v128_v45, %v75_v44 }
  0x32   :  { %130 = vst.msk [vmem:[%s260_s2] sm:$0x1] %vm14_vm0, %v129_v46 }

// kernel: resnet34_forward.115
= control target key start
LH: loop header
LB: loop body
LE: loop exit
PB: predicated region body
PF: predicated region fallthrough
CT: control target
= control target key end

     0   :  { %vm92_vm0 = vcmask 523264   ;;  %s271_s0 = inlined_call_operand.vmem [shape: f32[128,64], index: 0, kind: input, shape index: {}]   ;;  %s272_s1 = inlined_call_operand.vmem [shape: f32[1,64], index: 1, kind: input, shape index: {}]   ;;  %s273_s2 = inlined_call_operand.vmem [shape: f32[1,64], index: 2, kind: input, shape index: {}]   ;;  %s274_s3 = inlined_call_operand.vmem [shape: f32[128,64], index: 3, kind: output, shape index: {}]  }
   0x1   :  { %v14_v0 = vld [vmem:[%s271_s0] sm:$0xff]  ;;  %v15_v4 = vld [vmem:[%s271_s0 + $0x8] sm:$0xff]  ;;  %v16_v5 = vld [vmem:[%s271_s0 + $0x10] sm:$0xff] }
   0x2   :  { %v113_v1 = vld [vmem:[%s272_s1] ss:$0 sm:$0xff]  ;;  %v17_v6 = vld [vmem:[%s271_s0 + $0x18] sm:$0xff]  ;;  %v19_v11 = vld [vmem:[%s271_s0 + $0x28] sm:$0xff] }
   0x3   :  { %v144_v2 = vld [vmem:[%s273_s2] ss:$0 sm:$0xff]  ;;  %v37_v3 = vmul.f32 %v113_v1, %v14_v0  ;;  %v38_v7 = vmul.f32 %v113_v1, %v15_v4  ;;  %v39_v8 = vmul.f32 %v113_v1, %v16_v5  ;;  %v40_v9 = vmul.f32 %v113_v1, %v17_v6  ;;  %v20_v12 = vld [vmem:[%s271_s0 + $0x30] sm:$0xff]  ;;  %v21_v17 = vld [vmem:[%s271_s0 + $0x38] sm:$0xff] }
   0x4   :  { %v18_v10 = vld [vmem:[%s271_s0 + $0x20] sm:$0xff]  ;;  %v42_v15 = vmul.f32 %v113_v1, %v19_v11  ;;  %v43_v16 = vmul.f32 %v113_v1, %v20_v12  ;;  %v44_v21 = vmul.f32 %v113_v1, %v21_v17  ;;  %v23_v27 = vld [vmem:[%s271_s0 + $0x48] sm:$0xff]  ;;  %v24_v28 = vld [vmem:[%s271_s0 + $0x50] sm:$0xff] }
   0x5   :  { %v60_v13 = vadd.f32 %v144_v2, %v37_v3  ;;  %v41_v14 = vmul.f32 %v113_v1, %v18_v10  ;;  %v61_v18 = vadd.f32 %v144_v2, %v38_v7  ;;  %v62_v19 = vadd.f32 %v144_v2, %v39_v8  ;;  %v22_v22 = vld [vmem:[%s271_s0 + $0x40] sm:$0xff]  ;;  %v25_v29 = vld [vmem:[%s271_s0 + $0x58] sm:$0xff]  ;;  %v27_v35 = vld [vmem:[%s271_s0 + $0x68] sm:$0xff] }
   0x6   :  { %v63_v20 = vadd.f32 %v144_v2, %v40_v9  ;;  %v65_v25 = vadd.f32 %v144_v2, %v42_v15  ;;  %v66_v26 = vadd.f32 %v144_v2, %v43_v16  ;;  %v67_v33 = vadd.f32 %v144_v2, %v44_v21  ;;  %v26_v34 = vld [vmem:[%s271_s0 + $0x60] sm:$0xff]  ;;  %v28_v36 = vld [vmem:[%s271_s0 + $0x70] sm:$0xff]  ;;  %v29_v41 = vld [vmem:[%s271_s0 + $0x78] sm:$0xff] }
   0x7   :  { %v76_v23 = vmax.f32 %v60_v13, 0.0  ;;  %v64_v24 = vadd.f32 %v144_v2, %v41_v14  ;;  %v77_v30 = vmax.f32 %v61_v18, 0.0  ;;  %v78_v31 = vmax.f32 %v62_v19, 0.0 }
   0x8   :  { %v79_v32 = vmax.f32 %v63_v20, 0.0  ;;  %v81_v38 = vmax.f32 %v65_v25, 0.0  ;;  %v82_v39 = vmax.f32 %v66_v26, 0.0  ;;  %v45_v40 = vmul.f32 %v113_v1, %v22_v22 }
   0x9   :  { %93 = vst.msk [vmem:[%s274_s3] sm:$0xff] %vm92_vm0, %v76_v23  ;;  %v80_v37 = vmax.f32 %v64_v24, 0.0  ;;  %94 = vst.msk [vmem:[%s274_s3 + $0x8] sm:$0xff] %vm92_vm0, %v77_v30  ;;  %v83_v42 = vmax.f32 %v67_v33, 0.0  ;;  %v46_v43 = vmul.f32 %v113_v1, %v23_v27  ;;  %v47_v44 = vmul.f32 %v113_v1, %v24_v28 }
   0xa   :  { %95 = vst.msk [vmem:[%s274_s3 + $0x10] sm:$0xff] %vm92_vm0, %v78_v31  ;;  %96 = vst.msk [vmem:[%s274_s3 + $0x18] sm:$0xff] %vm92_vm0, %v79_v32  ;;  %v48_v45 = vmul.f32 %v113_v1, %v25_v29  ;;  %v68_v46 = vadd.f32 %v144_v2, %v45_v40  ;;  %v49_v47 = vmul.f32 %v113_v1, %v26_v34 }
   0xb   :  { %97 = vst.msk [vmem:[%s274_s3 + $0x20] sm:$0xff] %vm92_vm0, %v80_v37  ;;  %98 = vst.msk [vmem:[%s274_s3 + $0x28] sm:$0xff] %vm92_vm0, %v81_v38  ;;  %v50_v48 = vmul.f32 %v113_v1, %v27_v35  ;;  %v51_v49 = vmul.f32 %v113_v1, %v28_v36  ;;  %v69_v50 = vadd.f32 %v144_v2, %v46_v43 }
   0xc   :  { %99 = vst.msk [vmem:[%s274_s3 + $0x30] sm:$0xff] %vm92_vm0, %v82_v39  ;;  %100 = vst.msk [vmem:[%s274_s3 + $0x38] sm:$0xff] %vm92_vm0, %v83_v42  ;;  %v70_v51 = vadd.f32 %v144_v2, %v47_v44  ;;  %v71_v52 = vadd.f32 %v144_v2, %v48_v45  ;;  %v52_v53 = vmul.f32 %v113_v1, %v29_v41  ;;  %v84_v54 = vmax.f32 %v68_v46, 0.0 }
   0xd   :  { %v72_v55 = vadd.f32 %v144_v2, %v49_v47  ;;  %v73_v56 = vadd.f32 %v144_v2, %v50_v48  ;;  %v74_v57 = vadd.f32 %v144_v2, %v51_v49  ;;  %v85_v58 = vmax.f32 %v69_v50, 0.0 }
   0xe   :  { %v86_v59 = vmax.f32 %v70_v51, 0.0  ;;  %v87_v60 = vmax.f32 %v71_v52, 0.0  ;;  %v75_v61 = vadd.f32 %v144_v2, %v52_v53  ;;  %101 = vst.msk [vmem:[%s274_s3 + $0x40] sm:$0xff] %vm92_vm0, %v84_v54 }
   0xf   :  { %v88_v62 = vmax.f32 %v72_v55, 0.0  ;;  %v89_v63 = vmax.f32 %v73_v56, 0.0  ;;  %v90_v0 = vmax.f32 %v74_v57, 0.0  ;;  %102 = vst.msk [vmem:[%s274_s3 + $0x48] sm:$0xff] %vm92_vm0, %v85_v58 }
  0x10   :  { %103 = vst.msk [vmem:[%s274_s3 + $0x50] sm:$0xff] %vm92_vm0, %v86_v59  ;;  %104 = vst.msk [vmem:[%s274_s3 + $0x58] sm:$0xff] %vm92_vm0, %v87_v60  ;;  %v91_v1 = vmax.f32 %v75_v61, 0.0 }
  0x11   :  { %105 = vst.msk [vmem:[%s274_s3 + $0x60] sm:$0xff] %vm92_vm0, %v88_v62  ;;  %106 = vst.msk [vmem:[%s274_s3 + $0x68] sm:$0xff] %vm92_vm0, %v89_v63 }
  0x12   :  { %107 = vst.msk [vmem:[%s274_s3 + $0x70] sm:$0xff] %vm92_vm0, %v90_v0  ;;  %108 = vst.msk [vmem:[%s274_s3 + $0x78] sm:$0xff] %vm92_vm0, %v91_v1 }

// kernel: resnet34_forward.113
= control target key start
LH: loop header
LB: loop body
LE: loop exit
PB: predicated region body
PF: predicated region fallthrough
CT: control target
= control target key end

     0   :  { %s1741_s1 = inlined_call_operand.vmem [shape: bf16[640,128], index: 1, kind: input, shape index: {}]   ;;  %s1742_s0 = inlined_call_operand.vmem [shape: bf16[128,640], index: 0, kind: input, shape index: {}]   ;;  %s1743_s2 = inlined_call_operand.vmem [shape: f32[128,128], index: 2, kind: output, shape index: {}]  }
   0x1   :  { %v1258_v0 = vld [vmem:[%s1741_s1 + $0x78] sm:$0xff]   ;;  %v1262_v4 = vld [vmem:[%s1741_s1 + $0x70] sm:$0xff]   ;;  %v1266_v8 = vld [vmem:[%s1741_s1 + $0x68] sm:$0xff]  }
   0x2   :  { %v1259_v1 = vld [vmem:[%s1741_s1 + $0xf8] sm:$0xff]   ;;  %1066 = vmatprep.subr.bf16.mxu0 %v1258_v0  ;;  %v1263_v5 = vld [vmem:[%s1741_s1 + $0xf0] sm:$0xff]   ;;  %v1267_v9 = vld [vmem:[%s1741_s1 + $0xe8] sm:$0xff]  }
   0x3   :  { %v1260_v2 = vld [vmem:[%s1741_s1 + $0x38] sm:$0xff]   ;;  %1130 = vmatprep.subr.bf16.mxu1 %v1259_v1  ;;  %v1264_v6 = vld [vmem:[%s1741_s1 + $0x30] sm:$0xff]   ;;  %v1268_v10 = vld [vmem:[%s1741_s1 + $0x28] sm:$0xff]  }
   0x4   :  { %v1261_v3 = vld [vmem:[%s1741_s1 + $0xb8] sm:$0xff]   ;;  %1067 = vmatpush3.bf16.msra.mxu0 %v1260_v2  ;;  %v1265_v7 = vld [vmem:[%s1741_s1 + $0xb0] sm:$0xff]   ;;  %v1269_v11 = vld [vmem:[%s1741_s1 + $0xa8] sm:$0xff]  }
   0x5   :  { %1131 = vmatpush3.bf16.msra.mxu1 %v1261_v3  ;;  %1068 = vmatprep.subr.bf16.mxu0 %v1262_v4  ;;  %v1270_v12 = vld [vmem:[%s1741_s1 + $0x60] sm:$0xff]   ;;  %v1274_v16 = vld [vmem:[%s1741_s1 + $0x58] sm:$0xff]   ;;  %v1278_v20 = vld [vmem:[%s1741_s1 + $0x50] sm:$0xff]  }
   0x6   :  { %1132 = vmatprep.subr.bf16.mxu1 %v1263_v5  ;;  %v1271_v13 = vld [vmem:[%s1741_s1 + $0xe0] sm:$0xff]   ;;  %v1275_v17 = vld [vmem:[%s1741_s1 + $0xd8] sm:$0xff]   ;;  %v1279_v21 = vld [vmem:[%s1741_s1 + $0xd0] sm:$0xff]  }
   0x7   :  { %v1272_v14 = vld [vmem:[%s1741_s1 + $0x20] sm:$0xff]   ;;  %v1276_v18 = vld [vmem:[%s1741_s1 + $0x18] sm:$0xff]   ;;  %v1280_v22 = vld [vmem:[%s1741_s1 + $0x10] sm:$0xff]  }
   0x8   :  { %1069 = vmatpush3.bf16.msra.mxu0 %v1264_v6  ;;  %v1273_v15 = vld [vmem:[%s1741_s1 + $0xa0] sm:$0xff]   ;;  %v1277_v19 = vld [vmem:[%s1741_s1 + $0x98] sm:$0xff]   ;;  %v1281_v23 = vld [vmem:[%s1741_s1 + $0x90] sm:$0xff]  }
   0x9   :  { %1133 = vmatpush3.bf16.msra.mxu1 %v1265_v7  ;;  %1070 = vmatprep.subr.bf16.mxu0 %v1266_v8  ;;  %v1282_v24 = vld [vmem:[%s1741_s1 + $0x48] sm:$0xff]   ;;  %v1286_v28 = vld [vmem:[%s1741_s1 + $0x40] sm:$0xff]   ;;  %v1296_v36 = vld [vmem:[%s1741_s1 + $0x138] sm:$0xff]  }
   0xa   :  { %1134 = vmatprep.subr.bf16.mxu1 %v1267_v9  ;;  %v1283_v25 = vld [vmem:[%s1741_s1 + $0xc8] sm:$0xff]   ;;  %v1287_v29 = vld [vmem:[%s1741_s1 + $0xc0] sm:$0xff]   ;;  %v1303_v39 = vld [vmem:[%s1741_s1 + $0x130] sm:$0xff]  }
   0xb   :  { %v1284_v26 = vld [vmem:[%s1741_s1 + $0x8] sm:$0xff]   ;;  %v1288_v30 = vld [vmem:[%s1741_s1] sm:$0xff]   ;;  %v1306_v43 = vld [vmem:[%s1742_s0 + $0x5c] ss:$20 sps:$4 sm:$0xff]  }
   0xc   :  { %1071 = vmatpush3.bf16.msra.mxu0 %v1268_v10  ;;  %v1285_v27 = vld [vmem:[%s1741_s1 + $0x88] sm:$0xff]   ;;  %v1289_v31 = vld [vmem:[%s1741_s1 + $0x80] sm:$0xff]   ;;  %v1311_v48 = vld [vmem:[%s1742_s0 + $0x7c] ss:$20 sps:$4 sm:$0xff]  }
   0xd   :  { %1135 = vmatpush3.bf16.msra.mxu1 %v1269_v11  ;;  %1072 = vmatprep.subr.bf16.mxu0 %v1270_v12  ;;  %v1290_v32 = vld [vmem:[%s1742_s0] ss:$20 sps:$4 sm:$0xff]   ;;  %v1292_v33 = vld [vmem:[%s1742_s0 + $0x4] ss:$20 sps:$4 sm:$0xff]   ;;  %v1293_v34 = vld [vmem:[%s1742_s0 + $0x8] ss:$20 sps:$4 sm:$0xff]  }
   0xe   :  { %1136 = vmatprep.subr.bf16.mxu1 %v1271_v13  ;;  %v1295_v35 = vld [vmem:[%s1742_s0 + $0xc] ss:$20 sps:$4 sm:$0xff]   ;;  %656 = vmatprep.mubr.bf16.mxu0 %v1292_v33  ;;  %v1299_v38 = vld [vmem:[%s1742_s0 + $0x34] ss:$20 sps:$4 sm:$0xff]   ;;  %v1302_v41 = vld [vmem:[%s1742_s0 + $0x30] ss:$20 sps:$4 sm:$0xff]  }
   0xf   :  { %753 = vmatprep.mubr.bf16.mxu1 %v1295_v35  ;;  %v1297_v37 = vld [vmem:[%s1742_s0 + $0x2c] ss:$20 sps:$4 sm:$0xff]   ;;  %v1301_v40 = vld [vmem:[%s1742_s0 + $0x28] ss:$20 sps:$4 sm:$0xff]   ;;  %v1308_v46 = vld [vmem:[%s1742_s0 + $0x50] ss:$20 sps:$4 sm:$0xff]  }
  0x10   :  { %1073 = vmatpush3.bf16.msra.mxu0 %v1272_v14  ;;  %v1304_v42 = vld [vmem:[%s1742_s0 + $0x54] ss:$20 sps:$4 sm:$0xff]   ;;  %v1317_v45 = vld [vmem:[%s1741_s1 + $0x120] sm:$0xff]   ;;  %v1309_v47 = vld [vmem:[%s1742_s0 + $0x58] ss:$20 sps:$4 sm:$0xff]  }
  0x11   :  { %1137 = vmatpush3.bf16.msra.mxu1 %v1273_v15  ;;  %1074 = vmatprep.subr.bf16.mxu0 %v1274_v16  ;;  %v1310_v44 = vld [vmem:[%s1741_s1 + $0x128] sm:$0xff]   ;;  %v1313_v49 = vld [vmem:[%s1742_s0 + $0x84] ss:$20 sps:$4 sm:$0xff]   ;;  %v1331_v51 = vld [vmem:[%s1741_s1 + $0x110] sm:$0xff]  }
  0x12   :  { %1138 = vmatprep.subr.bf16.mxu1 %v1275_v17  ;;  %v1324_v50 = vld [vmem:[%s1741_s1 + $0x118] sm:$0xff]   ;;  %v1316_v53 = vld [vmem:[%s1742_s0 + $0x80] ss:$20 sps:$4 sm:$0xff]   ;;  %v1338_v55 = vld [vmem:[%s1741_s1 + $0x108] sm:$0xff]  }
  0x13   :  { %v1315_v52 = vld [vmem:[%s1742_s0 + $0x78] ss:$20 sps:$4 sm:$0xff]   ;;  %v1345_v57 = vld [vmem:[%s1741_s1 + $0x100] sm:$0xff]   ;;  %v1323_v59 = vld [vmem:[%s1742_s0 + $0xa8] ss:$20 sps:$4 sm:$0xff]  }
  0x14   :  { %1075 = vmatpush3.bf16.msra.mxu0 %v1276_v18  ;;  %v1318_v54 = vld [vmem:[%s1742_s0 + $0xa4] ss:$20 sps:$4 sm:$0xff]   ;;  %v1320_v56 = vld [vmem:[%s1742_s0 + $0xac] ss:$20 sps:$4 sm:$0xff]   ;;  %v1327_v61 = vld [vmem:[%s1742_s0 + $0xd4] ss:$20 sps:$4 sm:$0xff]  }
  0x15   :  { %1139 = vmatpush3.bf16.msra.mxu1 %v1277_v19  ;;  %1076 = vmatprep.subr.bf16.mxu0 %v1278_v20  ;;  %v1322_v58 = vld [vmem:[%s1742_s0 + $0xa0] ss:$20 sps:$4 sm:$0xff]   ;;  %v1329_v62 = vld [vmem:[%s1742_s0 + $0xc8] ss:$20 sps:$4 sm:$0xff]   ;;  %v1330_v63 = vld [vmem:[%s1742_s0 + $0xd0] ss:$20 sps:$4 sm:$0xff]  }
  0x16   :  { %1140 = vmatprep.subr.bf16.mxu1 %v1279_v21  ;;  %v1325_v60 = vld [vmem:[%s1742_s0 + $0xcc] ss:$20 sps:$4 sm:$0xff]   ;;  %v1332_v0 = vld [vmem:[%s1742_s0 + $0xf4] ss:$20 sps:$4 sm:$0xff]   ;;  %v1334_v1 = vld [vmem:[%s1742_s0 + $0xfc] ss:$20 sps:$4 sm:$0xff]  }
  0x17   :  { %v1336_v2 = vld [vmem:[%s1742_s0 + $0xf0] ss:$20 sps:$4 sm:$0xff]   ;;  %v1337_v3 = vld [vmem:[%s1742_s0 + $0xf8] ss:$20 sps:$4 sm:$0xff]   ;;  %v1344_v7 = vld [vmem:[%s1742_s0 + $0x120] ss:$20 sps:$4 sm:$0xff]  }
  0x18   :  { %1077 = vmatpush3.bf16.msra.mxu0 %v1280_v22  ;;  %v1339_v4 = vld [vmem:[%s1742_s0 + $0x11c] ss:$20 sps:$4 sm:$0xff]   ;;  %v1341_v5 = vld [vmem:[%s1742_s0 + $0x124] ss:$20 sps:$4 sm:$0xff]   ;;  %v1350_v12 = vld [vmem:[%s1742_s0 + $0x60] ss:$20 sps:$4 sm:$0xff]  }
  0x19   :  { %1141 = vmatpush3.bf16.msra.mxu1 %v1281_v23  ;;  %1078 = vmatprep.subr.bf16.mxu0 %v1282_v24  ;;  %v1343_v6 = vld [vmem:[%s1742_s0 + $0x118] ss:$20 sps:$4 sm:$0xff]   ;;  %v1346_v8 = vld [vmem:[%s1742_s0 + $0x10] ss:$20 sps:$4 sm:$0xff]   ;;  %v1351_v13 = vld [vmem:[%s1742_s0 + $0x100] ss:$20 sps:$4 sm:$0xff]  }
  0x1a   :  { %1142 = vmatprep.subr.bf16.mxu1 %v1283_v25  ;;  %v1347_v9 = vld [vmem:[%s1742_s0 + $0xb0] ss:$20 sps:$4 sm:$0xff]   ;;  %v1348_v10 = vld [vmem:[%s1742_s0 + $0x38] ss:$20 sps:$4 sm:$0xff]   ;;  %v1352_v14 = vld [vmem:[%s1742_s0 + $0x88] ss:$20 sps:$4 sm:$0xff]  }
  0x1b   :  { %v1349_v11 = vld [vmem:[%s1742_s0 + $0xd8] ss:$20 sps:$4 sm:$0xff]   ;;  %v1353_v15 = vld [vmem:[%s1742_s0 + $0x128] ss:$20 sps:$4 sm:$0xff]  }
  0x1c   :  { %1079 = vmatpush3.bf16.msra.mxu0 %v1284_v26 }
  0x1d   :  { %1143 = vmatpush3.bf16.msra.mxu1 %v1285_v27  ;;  %1080 = vmatprep.subr.bf16.mxu0 %v1286_v28 }
  0x1e   :  { %1144 = vmatprep.subr.bf16.mxu1 %v1287_v29 }
  0x20   :  { %1081 = vmatpush3.bf16.msra.mxu0 %v1288_v30 }
  0x21   :  { %1145 = vmatpush3.bf16.msra.mxu1 %v1289_v31  ;;  %1210 = vmatprep.subr.bf16.mxu0 %v1296_v36 }
  0x22   :  { %1242 = vmatprep.subr.bf16.mxu1 %v1296_v36 }
  0x23   :  { %657 = vmatmul.mubr.bf16.vlgmr.msra.gmra.mxu0 %v1290_v32 }
  0x24   :  { %754 = vmatmul.mubr.bf16.vlgmr.msra.gmra.mxu1 %v1293_v34  ;;  %1211 = vmatpush3.bf16.msra.mxu0 %v1296_v36 }
  0x25   :  { %1250 = vmatpush3.bf16.msra.mxu1 %v1296_v36  ;;  %664 = vmatprep.mubr.bf16.mxu0 %v1297_v37 }
  0x26   :  { %761 = vmatprep.mubr.bf16.mxu1 %v1299_v38  ;;  %1212 = vmatprep.subr.bf16.mxu0 %v1303_v39 }
  0x27   :  { %1243 = vmatprep.subr.bf16.mxu1 %v1303_v39 }
  0x28   :  { %1213 = vmatpush3.bf16.msra.mxu0 %v1303_v39 }
  0x29   :  { %1251 = vmatpush3.bf16.msra.mxu1 %v1303_v39  ;;  %1214 = vmatprep.subr.bf16.mxu0 %v1310_v44 }
  0x2a   :  { %1244 = vmatprep.subr.bf16.mxu1 %v1310_v44 }
  0x2b   :  { %665 = vmatmul.mubr.bf16.gmra.mxu0 %v1301_v40 }
  0x2c   :  { %762 = vmatmul.mubr.bf16.gmra.mxu1 %v1302_v41  ;;  %672 = vmatprep.mubr.bf16.mxu0 %v1304_v42 }
  0x2d   :  { %769 = vmatprep.mubr.bf16.mxu1 %v1306_v43  ;;  %1215 = vmatpush3.bf16.msra.mxu0 %v1310_v44 }
  0x2e   :  { %1252 = vmatpush3.bf16.msra.mxu1 %v1310_v44  ;;  %1216 = vmatprep.subr.bf16.mxu0 %v1317_v45 }
  0x2f   :  { %1245 = vmatprep.subr.bf16.mxu1 %v1317_v45 }
  0x31   :  { %1217 = vmatpush3.bf16.msra.mxu0 %v1317_v45 }
  0x32   :  { %1253 = vmatpush3.bf16.msra.mxu1 %v1317_v45  ;;  %1218 = vmatprep.subr.bf16.mxu0 %v1324_v50 }
  0x33   :  { %673 = vmatmul.mubr.bf16.gmra.mxu0 %v1308_v46  ;;  %1246 = vmatprep.subr.bf16.mxu1 %v1324_v50 }
  0x34   :  { %770 = vmatmul.mubr.bf16.gmra.mxu1 %v1309_v47  ;;  %680 = vmatprep.mubr.bf16.mxu0 %v1311_v48 }
  0x35   :  { %777 = vmatprep.mubr.bf16.mxu1 %v1313_v49  ;;  %1219 = vmatpush3.bf16.msra.mxu0 %v1324_v50 }
  0x36   :  { %1254 = vmatpush3.bf16.msra.mxu1 %v1324_v50  ;;  %1220 = vmatprep.subr.bf16.mxu0 %v1331_v51 }
  0x37   :  { %1247 = vmatprep.subr.bf16.mxu1 %v1331_v51 }
  0x39   :  { %1221 = vmatpush3.bf16.msra.mxu0 %v1331_v51 }
  0x3a   :  { %1255 = vmatpush3.bf16.msra.mxu1 %v1331_v51  ;;  %1222 = vmatprep.subr.bf16.mxu0 %v1338_v55 }
  0x3b   :  { %681 = vmatmul.mubr.bf16.gmra.mxu0 %v1315_v52  ;;  %1248 = vmatprep.subr.bf16.mxu1 %v1338_v55 }
  0x3c   :  { %778 = vmatmul.mubr.bf16.gmra.mxu1 %v1316_v53  ;;  %688 = vmatprep.mubr.bf16.mxu0 %v1318_v54 }
  0x3d   :  { %785 = vmatprep.mubr.bf16.mxu1 %v1320_v56  ;;  %1223 = vmatpush3.bf16.msra.mxu0 %v1338_v55 }
  0x3e   :  { %1256 = vmatpush3.bf16.msra.mxu1 %v1338_v55  ;;  %1224 = vmatprep.subr.bf16.mxu0 %v1345_v57 }
  0x3f   :  { %1249 = vmatprep.subr.bf16.mxu1 %v1345_v57 }
  0x41   :  { %1225 = vmatpush3.bf16.msra.mxu0 %v1345_v57 }
  0x42   :  { %1257 = vmatpush3.bf16.msra.mxu1 %v1345_v57 }
  0x43   :  { %689 = vmatmul.mubr.bf16.gmra.mxu0 %v1322_v58 }
  0x44   :  { %786 = vmatmul.mubr.bf16.gmra.mxu1 %v1323_v59  ;;  %696 = vmatprep.mubr.bf16.mxu0 %v1325_v60 }
  0x45   :  { %793 = vmatprep.mubr.bf16.mxu1 %v1327_v61 }
  0x4b   :  { %697 = vmatmul.mubr.bf16.gmra.mxu0 %v1329_v62 }
  0x4c   :  { %794 = vmatmul.mubr.bf16.gmra.mxu1 %v1330_v63  ;;  %704 = vmatprep.mubr.bf16.mxu0 %v1332_v0 }
  0x4d   :  { %801 = vmatprep.mubr.bf16.mxu1 %v1334_v1 }
  0x53   :  { %705 = vmatmul.mubr.bf16.gmra.mxu0 %v1336_v2 }
  0x54   :  { %802 = vmatmul.mubr.bf16.gmra.mxu1 %v1337_v3  ;;  %712 = vmatprep.mubr.bf16.mxu0 %v1339_v4 }
  0x55   :  { %809 = vmatprep.mubr.bf16.mxu1 %v1341_v5 }
  0x5b   :  { %713 = vmatmul.mubr.bf16.gmra.mxu0 %v1343_v6 }
  0x5c   :  { %810 = vmatmul.mubr.bf16.gmra.mxu1 %v1344_v7  ;;  %1226 = vmatprep.mubr.bf16.mxu0 %v1346_v8 }
  0x5d   :  { %1234 = vmatprep.mubr.bf16.mxu1 %v1347_v9 }
  0x63   :  { %1227 = vmatmul.mubr.bf16.vlgmr.msra.gmra.mxu0 %v1348_v10 }
  0x64   :  { %1235 = vmatmul.mubr.bf16.vlgmr.msra.gmra.mxu1 %v1349_v11  ;;  %1230 = vmatprep.mubr.bf16.mxu0 %v1350_v12 }
  0x65   :  { %1238 = vmatprep.mubr.bf16.mxu1 %v1351_v13 }
  0x6b   :  { %1231 = vmatmul.mubr.bf16.gmra.mxu0 %v1352_v14 }
  0x6c   :  { %1239 = vmatmul.mubr.bf16.gmra.mxu1 %v1353_v15 }
  0xe3   :  { %v1609_v16 = vpop.f32.mrf.mxu0 }
  0xe4   :  { %v1611_v17 = vpop.f32.mrf.mxu1 }
  0xe5   :  { %v1613_v18 = vpop.f32.mrf.mxu0 }
  0xe6   :  { %v1615_v19 = vpop.f32.mrf.mxu1 }
  0xe7   :  { %v1617_v20 = vpop.f32.mrf.mxu0 }
  0xe8   :  { %v1619_v21 = vpop.f32.mrf.mxu1 }
  0xe9   :  { %v1621_v22 = vpop.f32.mrf.mxu0 }
  0xea   :  { %v1623_v23 = vpop.f32.mrf.mxu1 }
  0xeb   :  { %v1088_v24 = vpop.f32.mrf.mxu0 }
  0xec   :  { %v1152_v25 = vpop.f32.mrf.mxu1 }
  0xed   :  { %v1089_v26 = vpop.f32.mrf.mxu0 }
  0xee   :  { %v1153_v27 = vpop.f32.mrf.mxu1  ;;  %v1090_v11 = vadd.f32 %v1089_v26, %v1088_v24 }
  0xef   :  { %v1091_v28 = vpop.f32.mrf.mxu0  ;;  %v1154_v12 = vadd.f32 %v1153_v27, %v1152_v25 }
  0xf0   :  { %v1155_v29 = vpop.f32.mrf.mxu1 }
  0xf1   :  { %v1092_v30 = vpop.f32.mrf.mxu0 }
  0xf2   :  { %v1156_v31 = vpop.f32.mrf.mxu1 }
  0xf3   :  { %v1625_v32 = vpop.f32.mrf.mxu0 }
  0xf4   :  { %v1627_v33 = vpop.f32.mrf.mxu1 }
  0xf5   :  { %v1629_v34 = vpop.f32.mrf.mxu0 }
  0xf6   :  { %v1631_v35 = vpop.f32.mrf.mxu1 }
  0xf7   :  { %v1633_v36 = vpop.f32.mrf.mxu0 }
  0xf8   :  { %1744 = vst [vmem:[#allocation3_spill] sm:$0xff] %v1633_v36  ;;  %v1635_v37 = vpop.f32.mrf.mxu1 }
  0xf9   :  { %1745 = vst [vmem:[#allocation4_spill] sm:$0xff] %v1635_v37  ;;  %v1637_v38 = vpop.f32.mrf.mxu0  ;;  %v1084_v37 = vadd.f32 %v1613_v18, %v1609_v16  ;;  %v1151_v16 = vadd.f32 %v1623_v23, %v1619_v21 }
  0xfa   :  { %1746 = vst [vmem:[#allocation5_spill] sm:$0xff] %v1637_v38  ;;  %v1639_v39 = vpop.f32.mrf.mxu1 }
  0xfb   :  { %1747 = vst [vmem:[#allocation6_spill] sm:$0xff] %v1639_v39  ;;  %v1641_v40 = vpop.f32.mrf.mxu0 }
  0xfc   :  { %v1643_v41 = vpop.f32.mrf.mxu1 }
  0xfd   :  { %v1645_v42 = vpop.f32.mrf.mxu0 }
  0xfe   :  { %v1647_v43 = vpop.f32.mrf.mxu1 }
  0xff   :  { %v1649_v44 = vpop.f32.mrf.mxu0 }
 0x100   :  { %v1651_v45 = vpop.f32.mrf.mxu1 }
 0x101   :  { %1748 = vst [vmem:[#allocation7_spill] sm:$0xff] %v1651_v45  ;;  %v1653_v46 = vpop.f32.mrf.mxu0 }
 0x102   :  { %1749 = vst [vmem:[#allocation8_spill] sm:$0xff] %v1653_v46  ;;  %v1655_v47 = vpop.f32.mrf.mxu1  ;;  %v764_v46 = vadd.f32 %v1154_v12, %v1090_v11 }
 0x103   :  { %1750 = vst [vmem:[#allocation9_spill] sm:$0xff] %v1655_v47  ;;  %v1106_v48 = vpop.f32.mrf.mxu0  ;;  %v1157_v47 = vadd.f32 %v1156_v31, %v1155_v29  ;;  %v1166_v31 = vadd.f32 %v1647_v43, %v1643_v41  ;;  %v1160_v41 = vadd.f32 %v1631_v35, %v1627_v33 }
 0x104   :  { %v1170_v49 = vpop.f32.mrf.mxu1 }
 0x105   :  { %v1107_v50 = vpop.f32.mrf.mxu0 }
 0x106   :  { %v1171_v51 = vpop.f32.mrf.mxu1  ;;  %v1108_v38 = vadd.f32 %v1107_v50, %v1106_v48 }
 0x107   :  { %v1109_v52 = vpop.f32.mrf.mxu0 }
 0x108   :  { %v1173_v53 = vpop.f32.mrf.mxu1  ;;  %v1756_v33 = vld [vmem:[#allocation7_spill] sm:$0xff] }
 0x109   :  { %v1110_v54 = vpop.f32.mrf.mxu0 }
 0x10a   :  { %v1174_v55 = vpop.f32.mrf.mxu1  ;;  %v1111_v48 = vadd.f32 %v1110_v54, %v1109_v52  ;;  %v1757_v35 = vld [vmem:[#allocation9_spill] sm:$0xff] }
 0x10b   :  { %v1112_v56 = vpop.f32.mrf.mxu0 }
 0x10c   :  { %v1176_v57 = vpop.f32.mrf.mxu1 }
 0x10d   :  { %v1113_v58 = vpop.f32.mrf.mxu0 }
 0x10e   :  { %v1177_v59 = vpop.f32.mrf.mxu1  ;;  %v1114_v14 = vadd.f32 %v1113_v58, %v1112_v56  ;;  %v1087_v56 = vadd.f32 %v1621_v22, %v1617_v20  ;;  %v1169_v58 = vadd.f32 %v1757_v35, %v1756_v33 }
 0x10f   :  { %v1115_v60 = vpop.f32.mrf.mxu0  ;;  %v1178_v15 = vadd.f32 %v1177_v59, %v1176_v57 }
 0x110   :  { %v1179_v61 = vpop.f32.mrf.mxu1 }
 0x111   :  { %v1116_v62 = vpop.f32.mrf.mxu0  ;;  %v796_v27 = vadd.f32 %v1178_v15, %v1114_v14 }
 0x112   :  { %v1180_v63 = vpop.f32.mrf.mxu1  ;;  %v1117_v24 = vadd.f32 %v1116_v62, %v1115_v60 }
 0x113   :  { %v1118_v0 = vpop.f32.mrf.mxu0  ;;  %v1181_v25 = vadd.f32 %v1180_v63, %v1179_v61 }
 0x114   :  { %v1182_v1 = vpop.f32.mrf.mxu1 }
 0x115   :  { %v1119_v2 = vpop.f32.mrf.mxu0 }
 0x116   :  { %v1183_v3 = vpop.f32.mrf.mxu1  ;;  %v1120_v52 = vadd.f32 %v1119_v2, %v1118_v0 }
 0x117   :  { %v1657_v4 = vpop.f32.mrf.mxu0 }
 0x118   :  { %1751 = vst [vmem:[#allocation10_spill] sm:$0xff] %v1657_v4  ;;  %v1659_v5 = vpop.f32.mrf.mxu1  ;;  %v1148_v4 = vadd.f32 %v1615_v19, %v1611_v17 }
 0x119   :  { %1752 = vst [vmem:[#allocation11_spill] sm:$0xff] %v1659_v5  ;;  %v1661_v6 = vpop.f32.mrf.mxu0 }
 0x11a   :  { %1753 = vst [vmem:[#allocation12_spill] sm:$0xff] %v1661_v6  ;;  %v1663_v7 = vpop.f32.mrf.mxu1  ;;  %v1172_v6 = vadd.f32 %v1171_v51, %v1170_v49  ;;  %v756_v19 = vadd.f32 %v1148_v4, %v1084_v37  ;;  %v1175_v49 = vadd.f32 %v1174_v55, %v1173_v53  ;;  %v799_v51 = vadd.f32 %v1181_v25, %v1117_v24 }
 0x11b   :  { %1754 = vst [vmem:[#allocation13_spill] sm:$0xff] %v1663_v7  ;;  %v1124_v8 = vpop.f32.mrf.mxu0  ;;  %v1093_v7 = vadd.f32 %v1092_v30, %v1091_v28  ;;  %v1102_v30 = vadd.f32 %v1645_v42, %v1641_v40  ;;  %v1096_v40 = vadd.f32 %v1629_v34, %v1625_v32  ;;  %v1184_v53 = vadd.f32 %v1183_v3, %v1182_v1  ;;  %v1755_v32 = vld [vmem:[#allocation8_spill] sm:$0xff]  ;;  %v1759_v3 = vld [vmem:[#allocation5_spill] sm:$0xff] }
 0x11c   :  { %v1188_v9 = vpop.f32.mrf.mxu1  ;;  %v788_v29 = vadd.f32 %v1172_v6, %v1108_v38  ;;  %v791_v57 = vadd.f32 %v1175_v49, %v1111_v48  ;;  %v1105_v34 = vadd.f32 %v1755_v32, %v1649_v44  ;;  %v1758_v44 = vld [vmem:[#allocation3_spill] sm:$0xff]  ;;  %v1760_v6 = vld [vmem:[#allocation4_spill] sm:$0xff] }
 0x11d   :  { %v1125_v10 = vpop.f32.mrf.mxu0  ;;  %v767_v22 = vadd.f32 %v1157_v47, %v1093_v7  ;;  %v759_v47 = vadd.f32 %v1151_v16, %v1087_v56  ;;  %v780_v61 = vadd.f32 %v1166_v31, %v1102_v30  ;;  %v1099_v4 = vadd.f32 %v1759_v3, %v1758_v44  ;;  %v1761_v7 = vld [vmem:[#allocation6_spill] sm:$0xff] }
 0x11e   :  { %v1189_v13 = vpop.f32.mrf.mxu1  ;;  %v1126_v23 = vadd.f32 %v1125_v10, %v1124_v8  ;;  %v1163_v8 = vadd.f32 %v1761_v7, %v1760_v6  ;;  %v804_v24 = vadd.f32 %v1184_v53, %v1120_v52 }
 0x11f   :  { %v1127_v39 = vpop.f32.mrf.mxu0  ;;  %v1190_v37 = vadd.f32 %v1189_v13, %v1188_v9 }
 0x120   :  { %v1191_v5 = vpop.f32.mrf.mxu1  ;;  %v1764_v11 = vld [vmem:[#allocation11_spill] sm:$0xff]  ;;  %v775_v48 = vadd.f32 %v1163_v8, %v1099_v4 }
 0x121   :  { %v1128_v36 = vpop.f32.mrf.mxu0  ;;  %v812_v2 = vadd.f32 %v1190_v37, %v1126_v23 }
 0x122   :  { %v1192_v45 = vpop.f32.mrf.mxu1  ;;  %v1129_v62 = vadd.f32 %v1128_v36, %v1127_v39  ;;  %v772_v39 = vadd.f32 %v1160_v41, %v1096_v40  ;;  %v1765_v12 = vld [vmem:[#allocation13_spill] sm:$0xff] }
 0x123   :  { %v1228_v26 = vpop.f32.mrf.mxu0  ;;  %v1193_v63 = vadd.f32 %v1192_v45, %v1191_v5  ;;  %v1762_v45 = vld [vmem:[#allocation10_spill] sm:$0xff]  ;;  %v1763_v5 = vld [vmem:[#allocation12_spill] sm:$0xff]  ;;  %v1187_v13 = vadd.f32 %v1765_v12, %v1764_v11 }
 0x124   :  { %v861_v18 = vadd.f32 %v1228_v26, %v764_v46  ;;  %v1236_v17 = vpop.f32.mrf.mxu1  ;;  %v1123_v10 = vadd.f32 %v1763_v5, %v1762_v45 }
 0x125   :  { %v893_v50 = vadd.f32 %v1236_v17, %v796_v27  ;;  %v852_v28 = vpop.f32.mrf.mxu0  ;;  %v783_v27 = vadd.f32 %v1169_v58, %v1105_v34 }
 0x126   :  { %968 = vst [vmem:[%s1743_s2 + $0x10] sm:$0xff] %v861_v18  ;;  %v853_v20 = vadd.f32 %v852_v28, %v756_v19  ;;  %v884_v21 = vpop.f32.mrf.mxu1  ;;  %v815_v18 = vadd.f32 %v1193_v63, %v1129_v62  ;;  %v807_v28 = vadd.f32 %v1187_v13, %v1123_v10 }
 0x127   :  { %976 = vst [vmem:[%s1743_s2 + $0x50] sm:$0xff] %v893_v50  ;;  %v885_v38 = vadd.f32 %v884_v21, %v788_v29  ;;  %v1229_v46 = vpop.f32.mrf.mxu0 }
 0x128   :  { %966 = vst [vmem:[%s1743_s2] sm:$0xff] %v853_v20  ;;  %v864_v42 = vadd.f32 %v1229_v46, %v767_v22  ;;  %v1237_v43 = vpop.f32.mrf.mxu1 }
 0x129   :  { %974 = vst [vmem:[%s1743_s2 + $0x40] sm:$0xff] %v885_v38  ;;  %v896_v54 = vadd.f32 %v1237_v43, %v799_v51  ;;  %v855_v55 = vpop.f32.mrf.mxu0 }
 0x12a   :  { %969 = vst [vmem:[%s1743_s2 + $0x18] sm:$0xff] %v864_v42  ;;  %v856_v59 = vadd.f32 %v855_v55, %v759_v47  ;;  %v887_v60 = vpop.f32.mrf.mxu1 }
 0x12b   :  { %977 = vst [vmem:[%s1743_s2 + $0x58] sm:$0xff] %v896_v54  ;;  %v888_v0 = vadd.f32 %v887_v60, %v791_v57  ;;  %v1232_v1 = vpop.f32.mrf.mxu0 }
 0x12c   :  { %967 = vst [vmem:[%s1743_s2 + $0x8] sm:$0xff] %v856_v59  ;;  %v877_v9 = vadd.f32 %v1232_v1, %v780_v61  ;;  %v1240_v36 = vpop.f32.mrf.mxu1 }
 0x12d   :  { %975 = vst [vmem:[%s1743_s2 + $0x48] sm:$0xff] %v888_v0  ;;  %v909_v14 = vadd.f32 %v1240_v36, %v812_v2  ;;  %v868_v15 = vpop.f32.mrf.mxu0 }
 0x12e   :  { %972 = vst [vmem:[%s1743_s2 + $0x30] sm:$0xff] %v877_v9  ;;  %v869_v25 = vadd.f32 %v868_v15, %v772_v39  ;;  %v900_v26 = vpop.f32.mrf.mxu1 }
 0x12f   :  { %980 = vst [vmem:[%s1743_s2 + $0x70] sm:$0xff] %v909_v14  ;;  %v901_v56 = vadd.f32 %v900_v26, %v804_v24  ;;  %v1233_v16 = vpop.f32.mrf.mxu0 }
 0x130   :  { %970 = vst [vmem:[%s1743_s2 + $0x20] sm:$0xff] %v869_v25  ;;  %v880_v17 = vadd.f32 %v1233_v16, %v783_v27  ;;  %v1241_v19 = vpop.f32.mrf.mxu1 }
 0x131   :  { %978 = vst [vmem:[%s1743_s2 + $0x60] sm:$0xff] %v901_v56  ;;  %v912_v49 = vadd.f32 %v1241_v19, %v815_v18  ;;  %v871_v50 = vpop.f32.mrf.mxu0 }
 0x132   :  { %973 = vst [vmem:[%s1743_s2 + $0x38] sm:$0xff] %v880_v17  ;;  %v872_v29 = vadd.f32 %v871_v50, %v775_v48  ;;  %v903_v30 = vpop.f32.mrf.mxu1 }
 0x133   :  { %981 = vst [vmem:[%s1743_s2 + $0x78] sm:$0xff] %v912_v49  ;;  %v904_v31 = vadd.f32 %v903_v30, %v807_v28 }
 0x134   :  { %971 = vst [vmem:[%s1743_s2 + $0x28] sm:$0xff] %v872_v29 }
 0x135   :  { %979 = vst [vmem:[%s1743_s2 + $0x68] sm:$0xff] %v904_v31 }

// kernel: resnet34_forward.118
= control target key start
LH: loop header
LB: loop body
LE: loop exit
PB: predicated region body
PF: predicated region fallthrough
CT: control target
= control target key end

     0   :  { %vm127_vm0 = vcmask 523264   ;;  %s377_s0 = inlined_call_operand.vmem [shape: f32[128,64], index: 0, kind: input, shape index: {}]   ;;  %s378_s1 = inlined_call_operand.vmem [shape: f32[1,64], index: 1, kind: input, shape index: {}]   ;;  %s379_s2 = inlined_call_operand.vmem [shape: f32[1,64], index: 2, kind: input, shape index: {}]   ;;  %s380_s3 = inlined_call_operand.vmem [shape: f32[128,64], index: 3, kind: input, shape index: {}]   ;;  %s381_s4 = inlined_call_operand.vmem [shape: f32[128,64], index: 4, kind: output, shape index: {}]  }
   0x1   :  { %v17_v0 = vld [vmem:[%s377_s0] sm:$0xff]  ;;  %v18_v4 = vld [vmem:[%s377_s0 + $0x8] sm:$0xff]  ;;  %v19_v7 = vld [vmem:[%s377_s0 + $0x10] sm:$0xff] }
   0x2   :  { %v181_v1 = vld [vmem:[%s378_s1] ss:$0 sm:$0xff]  ;;  %v20_v8 = vld [vmem:[%s377_s0 + $0x18] sm:$0xff]  ;;  %v80_v10 = vld [vmem:[%s380_s3 + $0x8] sm:$0xff] }
   0x3   :  { %v186_v2 = vld [vmem:[%s379_s2] ss:$0 sm:$0xff]  ;;  %v40_v3 = vmul.f32 %v181_v1, %v17_v0  ;;  %v41_v6 = vmul.f32 %v181_v1, %v18_v4  ;;  %v42_v11 = vmul.f32 %v181_v1, %v19_v7  ;;  %v81_v12 = vld [vmem:[%s380_s3 + $0x10] sm:$0xff]  ;;  %v43_v13 = vmul.f32 %v181_v1, %v20_v8  ;;  %v82_v16 = vld [vmem:[%s380_s3 + $0x18] sm:$0xff] }
   0x4   :  { %v79_v5 = vld [vmem:[%s380_s3] sm:$0xff]  ;;  %v22_v18 = vld [vmem:[%s377_s0 + $0x28] sm:$0xff]  ;;  %v23_v19 = vld [vmem:[%s377_s0 + $0x30] sm:$0xff] }
   0x5   :  { %v63_v9 = vadd.f32 %v186_v2, %v40_v3  ;;  %v21_v14 = vld [vmem:[%s377_s0 + $0x20] sm:$0xff]  ;;  %v64_v15 = vadd.f32 %v186_v2, %v41_v6  ;;  %v65_v21 = vadd.f32 %v186_v2, %v42_v11  ;;  %v66_v22 = vadd.f32 %v186_v2, %v43_v13  ;;  %v24_v25 = vld [vmem:[%s377_s0 + $0x38] sm:$0xff]  ;;  %v84_v28 = vld [vmem:[%s380_s3 + $0x28] sm:$0xff] }
   0x6   :  { %v44_v17 = vmul.f32 %v181_v1, %v21_v14  ;;  %v83_v23 = vld [vmem:[%s380_s3 + $0x20] sm:$0xff]  ;;  %v45_v24 = vmul.f32 %v181_v1, %v22_v18  ;;  %v46_v29 = vmul.f32 %v181_v1, %v23_v19  ;;  %v47_v30 = vmul.f32 %v181_v1, %v24_v25  ;;  %v85_v36 = vld [vmem:[%s380_s3 + $0x30] sm:$0xff]  ;;  %v86_v37 = vld [vmem:[%s380_s3 + $0x38] sm:$0xff] }
   0x7   :  { %v95_v20 = vadd.f32 %v79_v5, %v63_v9  ;;  %v96_v26 = vadd.f32 %v80_v10, %v64_v15  ;;  %v25_v31 = vld [vmem:[%s377_s0 + $0x40] sm:$0xff]  ;;  %v97_v33 = vadd.f32 %v81_v12, %v65_v21  ;;  %v98_v34 = vadd.f32 %v82_v16, %v66_v22  ;;  %v26_v38 = vld [vmem:[%s377_s0 + $0x48] sm:$0xff]  ;;  %v27_v43 = vld [vmem:[%s377_s0 + $0x50] sm:$0xff] }
   0x8   :  { %v67_v27 = vadd.f32 %v186_v2, %v44_v17  ;;  %v68_v35 = vadd.f32 %v186_v2, %v45_v24  ;;  %v69_v41 = vadd.f32 %v186_v2, %v46_v29  ;;  %v70_v42 = vadd.f32 %v186_v2, %v47_v30  ;;  %v28_v44 = vld [vmem:[%s377_s0 + $0x58] sm:$0xff]  ;;  %v29_v49 = vld [vmem:[%s377_s0 + $0x60] sm:$0xff]  ;;  %v30_v55 = vld [vmem:[%s377_s0 + $0x68] sm:$0xff] }
   0x9   :  { %v111_v32 = vmax.f32 %v95_v20, 0.0  ;;  %v112_v39 = vmax.f32 %v96_v26, 0.0  ;;  %v113_v45 = vmax.f32 %v97_v33, 0.0  ;;  %v114_v46 = vmax.f32 %v98_v34, 0.0  ;;  %v87_v53 = vld [vmem:[%s380_s3 + $0x40] sm:$0xff]  ;;  %v88_v58 = vld [vmem:[%s380_s3 + $0x48] sm:$0xff] }
   0xa   :  { %v99_v40 = vadd.f32 %v83_v23, %v67_v27  ;;  %v100_v47 = vadd.f32 %v84_v28, %v68_v35  ;;  %v48_v48 = vmul.f32 %v181_v1, %v25_v31  ;;  %v101_v51 = vadd.f32 %v85_v36, %v69_v41  ;;  %v31_v61 = vld [vmem:[%s377_s0 + $0x70] sm:$0xff]  ;;  %v32_v62 = vld [vmem:[%s377_s0 + $0x78] sm:$0xff]  ;;  %v91_v10 = vld [vmem:[%s380_s3 + $0x60] sm:$0xff] }
   0xb   :  { %128 = vst.msk [vmem:[%s381_s4] sm:$0xff] %vm127_vm0, %v111_v32  ;;  %129 = vst.msk [vmem:[%s381_s4 + $0x8] sm:$0xff] %vm127_vm0, %v112_v39  ;;  %v102_v52 = vadd.f32 %v86_v37, %v70_v42  ;;  %v49_v54 = vmul.f32 %v181_v1, %v26_v38  ;;  %v50_v59 = vmul.f32 %v181_v1, %v27_v43  ;;  %v89_v4 = vld [vmem:[%s380_s3 + $0x50] sm:$0xff]  ;;  %v90_v5 = vld [vmem:[%s380_s3 + $0x58] sm:$0xff] }
   0xc   :  { %v115_v50 = vmax.f32 %v99_v40, 0.0  ;;  %130 = vst.msk [vmem:[%s381_s4 + $0x10] sm:$0xff] %vm127_vm0, %v113_v45  ;;  %131 = vst.msk [vmem:[%s381_s4 + $0x18] sm:$0xff] %vm127_vm0, %v114_v46  ;;  %v116_v56 = vmax.f32 %v100_v47, 0.0  ;;  %v71_v57 = vadd.f32 %v186_v2, %v48_v48  ;;  %v51_v60 = vmul.f32 %v181_v1, %v28_v44  ;;  %v92_v14 = vld [vmem:[%s380_s3 + $0x68] sm:$0xff]  ;;  %v93_v21 = vld [vmem:[%s380_s3 + $0x70] sm:$0xff] }
   0xd   :  { %v117_v63 = vmax.f32 %v101_v51, 0.0  ;;  %v118_v0 = vmax.f32 %v102_v52, 0.0  ;;  %v72_v3 = vadd.f32 %v186_v2, %v49_v54  ;;  %v52_v6 = vmul.f32 %v181_v1, %v29_v49  ;;  %v94_v22 = vld [vmem:[%s380_s3 + $0x78] sm:$0xff] }
   0xe   :  { %132 = vst.msk [vmem:[%s381_s4 + $0x20] sm:$0xff] %vm127_vm0, %v115_v50  ;;  %133 = vst.msk [vmem:[%s381_s4 + $0x28] sm:$0xff] %vm127_vm0, %v116_v56  ;;  %v103_v7 = vadd.f32 %v87_v53, %v71_v57  ;;  %v73_v8 = vadd.f32 %v186_v2, %v50_v59  ;;  %v74_v9 = vadd.f32 %v186_v2, %v51_v60 }
   0xf   :  { %v53_v11 = vmul.f32 %v181_v1, %v30_v55  ;;  %134 = vst.msk [vmem:[%s381_s4 + $0x30] sm:$0xff] %vm127_vm0, %v117_v63  ;;  %135 = vst.msk [vmem:[%s381_s4 + $0x38] sm:$0xff] %vm127_vm0, %v118_v0  ;;  %v104_v12 = vadd.f32 %v88_v58, %v72_v3  ;;  %v75_v13 = vadd.f32 %v186_v2, %v52_v6 }
  0x10   :  { %v54_v15 = vmul.f32 %v181_v1, %v31_v61  ;;  %v55_v16 = vmul.f32 %v181_v1, %v32_v62  ;;  %v119_v17 = vmax.f32 %v103_v7, 0.0  ;;  %v105_v18 = vadd.f32 %v89_v4, %v73_v8 }
  0x11   :  { %v106_v19 = vadd.f32 %v90_v5, %v74_v9  ;;  %v76_v20 = vadd.f32 %v186_v2, %v53_v11  ;;  %v120_v23 = vmax.f32 %v104_v12, 0.0  ;;  %v107_v24 = vadd.f32 %v91_v10, %v75_v13 }
  0x12   :  { %v77_v25 = vadd.f32 %v186_v2, %v54_v15  ;;  %v78_v26 = vadd.f32 %v186_v2, %v55_v16  ;;  %136 = vst.msk [vmem:[%s381_s4 + $0x40] sm:$0xff] %vm127_vm0, %v119_v17  ;;  %v121_v1 = vmax.f32 %v105_v18, 0.0 }
  0x13   :  { %v122_v27 = vmax.f32 %v106_v19, 0.0  ;;  %v108_v28 = vadd.f32 %v92_v14, %v76_v20  ;;  %137 = vst.msk [vmem:[%s381_s4 + $0x48] sm:$0xff] %vm127_vm0, %v120_v23  ;;  %v123_v29 = vmax.f32 %v107_v24, 0.0 }
  0x14   :  { %v109_v30 = vadd.f32 %v93_v21, %v77_v25  ;;  %v110_v31 = vadd.f32 %v94_v22, %v78_v26  ;;  %138 = vst.msk [vmem:[%s381_s4 + $0x50] sm:$0xff] %vm127_vm0, %v121_v1 }
  0x15   :  { %139 = vst.msk [vmem:[%s381_s4 + $0x58] sm:$0xff] %vm127_vm0, %v122_v27  ;;  %v124_v2 = vmax.f32 %v108_v28, 0.0  ;;  %140 = vst.msk [vmem:[%s381_s4 + $0x60] sm:$0xff] %vm127_vm0, %v123_v29 }
  0x16   :  { %v125_v32 = vmax.f32 %v109_v30, 0.0  ;;  %v126_v33 = vmax.f32 %v110_v31, 0.0 }
  0x17   :  { %141 = vst.msk [vmem:[%s381_s4 + $0x68] sm:$0xff] %vm127_vm0, %v124_v2 }
  0x18   :  { %142 = vst.msk [vmem:[%s381_s4 + $0x70] sm:$0xff] %vm127_vm0, %v125_v32  ;;  %143 = vst.msk [vmem:[%s381_s4 + $0x78] sm:$0xff] %vm127_vm0, %v126_v33 }

// kernel: resnet34_forward.137
= control target key start
LH: loop header
LB: loop body
LE: loop exit
PB: predicated region body
PF: predicated region fallthrough
CT: control target
= control target key end

     0   :  { %s100_s0 = inlined_call_operand.vmem [shape: f32[32,128], index: 0, kind: input, shape index: {}]   ;;  %s101_s1 = inlined_call_operand.vmem [shape: f32[1,128], index: 1, kind: input, shape index: {}]   ;;  %s102_s2 = inlined_call_operand.vmem [shape: f32[1,128], index: 2, kind: input, shape index: {}]   ;;  %s103_s3 = inlined_call_operand.vmem [shape: f32[32,128], index: 3, kind: output, shape index: {}]  }
   0x1   :  { %v14_v0 = vld [vmem:[%s100_s0] sm:$0xff]  ;;  %v15_v4 = vld [vmem:[%s100_s0 + $0x8] sm:$0xff]  ;;  %v16_v5 = vld [vmem:[%s100_s0 + $0x10] sm:$0xff] }
   0x2   :  { %v48_v1 = vld [vmem:[%s101_s1] ss:$0 sm:$0xff]  ;;  %v17_v6 = vld [vmem:[%s100_s0 + $0x18] sm:$0xff] }
   0x3   :  { %v49_v2 = vld [vmem:[%s102_s2] ss:$0 sm:$0xff]  ;;  %v25_v3 = vmul.f32 %v48_v1, %v14_v0  ;;  %v26_v7 = vmul.f32 %v48_v1, %v15_v4  ;;  %v27_v8 = vmul.f32 %v48_v1, %v16_v5  ;;  %v28_v9 = vmul.f32 %v48_v1, %v17_v6 }
   0x5   :  { %v36_v10 = vadd.f32 %v49_v2, %v25_v3  ;;  %v37_v11 = vadd.f32 %v49_v2, %v26_v7  ;;  %v38_v12 = vadd.f32 %v49_v2, %v27_v8  ;;  %v39_v13 = vadd.f32 %v49_v2, %v28_v9 }
   0x7   :  { %40 = vst [vmem:[%s103_s3] sm:$0xff] %v36_v10  ;;  %41 = vst [vmem:[%s103_s3 + $0x8] sm:$0xff] %v37_v11 }
   0x8   :  { %42 = vst [vmem:[%s103_s3 + $0x10] sm:$0xff] %v38_v12  ;;  %43 = vst [vmem:[%s103_s3 + $0x18] sm:$0xff] %v39_v13 }

// kernel: resnet34_forward.136
= control target key start
LH: loop header
LB: loop body
LE: loop exit
PB: predicated region body
PF: predicated region fallthrough
CT: control target
= control target key end

     0   :  { %v57_v0 = vmov 0.0   ;;  %s103_s1 = inlined_call_operand.vmem [shape: f32[1,128], index: 1, kind: output, shape index: {0}]   ;;  %s104_s2 = inlined_call_operand.vmem [shape: f32[1,128], index: 2, kind: output, shape index: {1}]   ;;  %s105_s0 = inlined_call_operand.vmem [shape: f32[32,128], index: 0, kind: input, shape index: {}]  }
   0x1   :  { %14 = vst [vmem:[%s103_s1] sm:$0x1] %v57_v0  ;;  %15 = vst [vmem:[%s104_s2] sm:$0x1] %v57_v0  ;;  %v16_v1 = vld [vmem:[%s105_s0] sm:$0xff]  ;;  %v17_v2 = vld [vmem:[%s105_s0 + $0x8] sm:$0xff] }
   0x2   :  { %v18_v3 = vld [vmem:[%s105_s0 + $0x10] sm:$0xff]  ;;  %v19_v4 = vld [vmem:[%s105_s0 + $0x18] sm:$0xff]  ;;  %v21_v5 = vadd.f32 %v17_v2, %v16_v1  ;;  %v33_v6 = vmul.f32 %v16_v1, %v16_v1  ;;  %v34_v7 = vmul.f32 %v17_v2, %v17_v2 }
   0x3   :  { %v35_v8 = vmul.f32 %v18_v3, %v18_v3  ;;  %v36_v10 = vmul.f32 %v19_v4, %v19_v4 }
   0x4   :  { %v22_v9 = vadd.f32 %v21_v5, %v18_v3  ;;  %v37_v11 = vadd.f32 %v34_v7, %v33_v6 }
   0x6   :  { %v23_v12 = vadd.f32 %v22_v9, %v19_v4  ;;  %v38_v13 = vadd.f32 %v37_v11, %v35_v8 }
   0x8   :  { %v24_v14 = vrot.slane %v23_v12, 4  ;;  %v39_v15 = vadd.f32 %v38_v13, %v36_v10  ;;  %v20_v24 = vld [vmem:[%s103_s1] sm:$0x1] }
   0x9   :  { %v32_v27 = vld [vmem:[%s104_s2] sm:$0x1] }
   0xa   :  { %v25_v16 = vadd.f32 %v24_v14, %v23_v12  ;;  %v40_v17 = vrot.slane %v39_v15, 4 }
   0xc   :  { %v26_v18 = vrot.slane %v25_v16, 2  ;;  %v41_v19 = vadd.f32 %v40_v17, %v39_v15 }
   0xe   :  { %v27_v20 = vadd.f32 %v26_v18, %v25_v16  ;;  %v42_v21 = vrot.slane %v41_v19, 2 }
  0x10   :  { %v28_v22 = vrot.slane %v27_v20, 1  ;;  %v43_v23 = vadd.f32 %v42_v21, %v41_v19 }
  0x12   :  { %v29_v25 = vadd.f32 %v28_v22, %v27_v20  ;;  %v44_v26 = vrot.slane %v43_v23, 1 }
  0x14   :  { %v30_v28 = vadd.f32 %v29_v25, %v20_v24  ;;  %v45_v29 = vadd.f32 %v44_v26, %v43_v23 }
  0x16   :  { %31 = vst [vmem:[%s103_s1] sm:$0x1] %v30_v28  ;;  %v46_v30 = vadd.f32 %v45_v29, %v32_v27 }
  0x18   :  { %47 = vst [vmem:[%s104_s2] sm:$0x1] %v46_v30 }

// kernel: resnet34_forward.135
= control target key start
LH: loop header
LB: loop body
LE: loop exit
PB: predicated region body
PF: predicated region fallthrough
CT: control target
= control target key end

     0   :  { %s283_s1 = inlined_call_operand.vmem [shape: bf16[128,128], index: 1, kind: input, shape index: {}]   ;;  %s284_s0 = inlined_call_operand.vmem [shape: bf16[32,128], index: 0, kind: input, shape index: {}]   ;;  %s285_s2 = inlined_call_operand.vmem [shape: f32[32,128], index: 2, kind: output, shape index: {}]  }
   0x1   :  { %v216_v0 = vld [vmem:[%s283_s1 + $0x38] sm:$0xff]   ;;  %v217_v1 = vld [vmem:[%s283_s1 + $0x30] sm:$0xff]   ;;  %v218_v2 = vld [vmem:[%s283_s1 + $0x28] sm:$0xff]  }
   0x2   :  { %196 = vmatprep.subr.bf16.mxu0 %v216_v0  ;;  %v219_v3 = vld [vmem:[%s283_s1 + $0x20] sm:$0xff]   ;;  %v220_v5 = vld [vmem:[%s283_s1 + $0x18] sm:$0xff]   ;;  %v221_v6 = vld [vmem:[%s283_s1 + $0x10] sm:$0xff]  }
   0x3   :  { %197 = vmatpush3.bf16.msra.mxu0 %v216_v0  ;;  %v224_v4 = vld [vmem:[%s284_s0] sm:$0xff]   ;;  %v222_v7 = vld [vmem:[%s283_s1 + $0x8] sm:$0xff]  }
   0x4   :  { %198 = vmatprep.subr.bf16.mxu0 %v217_v1  ;;  %212 = vmatprep.mubr.bf16.mxu0 %v224_v4  ;;  %v223_v8 = vld [vmem:[%s283_s1] sm:$0xff]   ;;  %v225_v9 = vld [vmem:[%s284_s0 + $0x8] sm:$0xff]  }
   0x7   :  { %199 = vmatpush3.bf16.msra.mxu0 %v217_v1 }
   0x8   :  { %200 = vmatprep.subr.bf16.mxu0 %v218_v2 }
   0xb   :  { %201 = vmatpush3.bf16.msra.mxu0 %v218_v2 }
   0xc   :  { %202 = vmatprep.subr.bf16.mxu0 %v219_v3 }
   0xf   :  { %203 = vmatpush3.bf16.msra.mxu0 %v219_v3 }
  0x10   :  { %204 = vmatprep.subr.bf16.mxu0 %v220_v5 }
  0x13   :  { %205 = vmatpush3.bf16.msra.mxu0 %v220_v5 }
  0x14   :  { %206 = vmatprep.subr.bf16.mxu0 %v221_v6 }
  0x17   :  { %207 = vmatpush3.bf16.msra.mxu0 %v221_v6 }
  0x18   :  { %208 = vmatprep.subr.bf16.mxu0 %v222_v7 }
  0x1b   :  { %209 = vmatpush3.bf16.msra.mxu0 %v222_v7 }
  0x1c   :  { %210 = vmatprep.subr.bf16.mxu0 %v223_v8 }
  0x1f   :  { %211 = vmatpush3.bf16.msra.mxu0 %v223_v8 }
  0x22   :  { %213 = vmatmul.mubr.bf16.vlgmr.msra.gmra.mxu0 %v225_v9 }
  0xe2   :  { %v214_v10 = vpop.f32.mrf.mxu0 }
  0xe3   :  { %170 = vst [vmem:[%s285_s2 + $0x10] sm:$0xff] %v214_v10 }
  0xe4   :  { %v138_v11 = vpop.f32.mrf.mxu0 }
  0xe5   :  { %168 = vst [vmem:[%s285_s2] sm:$0xff] %v138_v11 }
  0xe6   :  { %v215_v12 = vpop.f32.mrf.mxu0 }
  0xe7   :  { %171 = vst [vmem:[%s285_s2 + $0x18] sm:$0xff] %v215_v12 }
  0xe8   :  { %v141_v13 = vpop.f32.mrf.mxu0 }
  0xe9   :  { %169 = vst [vmem:[%s285_s2 + $0x8] sm:$0xff] %v141_v13 }

// kernel: resnet34_forward.133
= control target key start
LH: loop header
LB: loop body
LE: loop exit
PB: predicated region body
PF: predicated region fallthrough
CT: control target
= control target key end

     0   :  { %s104_s0 = inlined_call_operand.vmem [shape: f32[32,128], index: 0, kind: input, shape index: {}]   ;;  %s105_s1 = inlined_call_operand.vmem [shape: f32[1,128], index: 1, kind: input, shape index: {}]   ;;  %s106_s2 = inlined_call_operand.vmem [shape: f32[1,128], index: 2, kind: input, shape index: {}]   ;;  %s107_s3 = inlined_call_operand.vmem [shape: f32[32,128], index: 3, kind: output, shape index: {}]  }
   0x1   :  { %v14_v0 = vld [vmem:[%s104_s0] sm:$0xff]  ;;  %v15_v4 = vld [vmem:[%s104_s0 + $0x8] sm:$0xff]  ;;  %v16_v5 = vld [vmem:[%s104_s0 + $0x10] sm:$0xff] }
   0x2   :  { %v52_v1 = vld [vmem:[%s105_s1] ss:$0 sm:$0xff]  ;;  %v17_v6 = vld [vmem:[%s104_s0 + $0x18] sm:$0xff] }
   0x3   :  { %v53_v2 = vld [vmem:[%s106_s2] ss:$0 sm:$0xff]  ;;  %v25_v3 = vmul.f32 %v52_v1, %v14_v0  ;;  %v26_v7 = vmul.f32 %v52_v1, %v15_v4  ;;  %v27_v8 = vmul.f32 %v52_v1, %v16_v5  ;;  %v28_v9 = vmul.f32 %v52_v1, %v17_v6 }
   0x5   :  { %v36_v10 = vadd.f32 %v53_v2, %v25_v3  ;;  %v37_v11 = vadd.f32 %v53_v2, %v26_v7  ;;  %v38_v12 = vadd.f32 %v53_v2, %v27_v8  ;;  %v39_v13 = vadd.f32 %v53_v2, %v28_v9 }
   0x7   :  { %v40_v14 = vmax.f32 %v36_v10, 0.0  ;;  %v41_v15 = vmax.f32 %v37_v11, 0.0  ;;  %v42_v16 = vmax.f32 %v38_v12, 0.0  ;;  %v43_v17 = vmax.f32 %v39_v13, 0.0 }
   0x9   :  { %44 = vst [vmem:[%s107_s3] sm:$0xff] %v40_v14  ;;  %45 = vst [vmem:[%s107_s3 + $0x8] sm:$0xff] %v41_v15 }
   0xa   :  { %46 = vst [vmem:[%s107_s3 + $0x10] sm:$0xff] %v42_v16  ;;  %47 = vst [vmem:[%s107_s3 + $0x18] sm:$0xff] %v43_v17 }

// kernel: resnet34_forward.131
= control target key start
LH: loop header
LB: loop body
LE: loop exit
PB: predicated region body
PF: predicated region fallthrough
CT: control target
= control target key end

     0   :  { %s945_s1 = inlined_call_operand.vmem [shape: bf16[640,128], index: 1, kind: input, shape index: {}]   ;;  %s946_s0 = inlined_call_operand.vmem [shape: bf16[32,640], index: 0, kind: input, shape index: {}]   ;;  %s947_s2 = inlined_call_operand.vmem [shape: f32[32,128], index: 2, kind: output, shape index: {}]  }
   0x1   :  { %v714_v0 = vld [vmem:[%s945_s1 + $0x78] sm:$0xff]   ;;  %v718_v4 = vld [vmem:[%s945_s1 + $0x70] sm:$0xff]   ;;  %v722_v8 = vld [vmem:[%s945_s1 + $0x68] sm:$0xff]  }
   0x2   :  { %v715_v1 = vld [vmem:[%s945_s1 + $0xf8] sm:$0xff]   ;;  %628 = vmatprep.subr.bf16.mxu0 %v714_v0  ;;  %v719_v5 = vld [vmem:[%s945_s1 + $0xf0] sm:$0xff]   ;;  %v723_v9 = vld [vmem:[%s945_s1 + $0xe8] sm:$0xff]  }
   0x3   :  { %v716_v2 = vld [vmem:[%s945_s1 + $0x38] sm:$0xff]   ;;  %656 = vmatprep.subr.bf16.mxu1 %v715_v1  ;;  %v720_v6 = vld [vmem:[%s945_s1 + $0x30] sm:$0xff]   ;;  %v724_v10 = vld [vmem:[%s945_s1 + $0x28] sm:$0xff]  }
   0x4   :  { %v717_v3 = vld [vmem:[%s945_s1 + $0xb8] sm:$0xff]   ;;  %629 = vmatpush3.bf16.msra.mxu0 %v716_v2  ;;  %v721_v7 = vld [vmem:[%s945_s1 + $0xb0] sm:$0xff]   ;;  %v725_v11 = vld [vmem:[%s945_s1 + $0xa8] sm:$0xff]  }
   0x5   :  { %657 = vmatpush3.bf16.msra.mxu1 %v717_v3  ;;  %630 = vmatprep.subr.bf16.mxu0 %v718_v4  ;;  %v726_v12 = vld [vmem:[%s945_s1 + $0x60] sm:$0xff]   ;;  %v730_v16 = vld [vmem:[%s945_s1 + $0x58] sm:$0xff]   ;;  %v734_v20 = vld [vmem:[%s945_s1 + $0x50] sm:$0xff]  }
   0x6   :  { %658 = vmatprep.subr.bf16.mxu1 %v719_v5  ;;  %v727_v13 = vld [vmem:[%s945_s1 + $0xe0] sm:$0xff]   ;;  %v731_v17 = vld [vmem:[%s945_s1 + $0xd8] sm:$0xff]   ;;  %v735_v21 = vld [vmem:[%s945_s1 + $0xd0] sm:$0xff]  }
   0x7   :  { %v728_v14 = vld [vmem:[%s945_s1 + $0x20] sm:$0xff]   ;;  %v732_v18 = vld [vmem:[%s945_s1 + $0x18] sm:$0xff]   ;;  %v736_v22 = vld [vmem:[%s945_s1 + $0x10] sm:$0xff]  }
   0x8   :  { %631 = vmatpush3.bf16.msra.mxu0 %v720_v6  ;;  %v729_v15 = vld [vmem:[%s945_s1 + $0xa0] sm:$0xff]   ;;  %v733_v19 = vld [vmem:[%s945_s1 + $0x98] sm:$0xff]   ;;  %v737_v23 = vld [vmem:[%s945_s1 + $0x90] sm:$0xff]  }
   0x9   :  { %659 = vmatpush3.bf16.msra.mxu1 %v721_v7  ;;  %632 = vmatprep.subr.bf16.mxu0 %v722_v8  ;;  %v738_v24 = vld [vmem:[%s945_s1 + $0x48] sm:$0xff]   ;;  %v742_v28 = vld [vmem:[%s945_s1 + $0x40] sm:$0xff]   ;;  %v752_v36 = vld [vmem:[%s945_s1 + $0x138] sm:$0xff]  }
   0xa   :  { %660 = vmatprep.subr.bf16.mxu1 %v723_v9  ;;  %v739_v25 = vld [vmem:[%s945_s1 + $0xc8] sm:$0xff]   ;;  %v743_v29 = vld [vmem:[%s945_s1 + $0xc0] sm:$0xff]   ;;  %v753_v37 = vld [vmem:[%s945_s1 + $0x130] sm:$0xff]  }
   0xb   :  { %v740_v26 = vld [vmem:[%s945_s1 + $0x8] sm:$0xff]   ;;  %v744_v30 = vld [vmem:[%s945_s1] sm:$0xff]   ;;  %v756_v45 = vld [vmem:[%s945_s1 + $0x118] sm:$0xff]  }
   0xc   :  { %633 = vmatpush3.bf16.msra.mxu0 %v724_v10  ;;  %v741_v27 = vld [vmem:[%s945_s1 + $0x88] sm:$0xff]   ;;  %v745_v31 = vld [vmem:[%s945_s1 + $0x80] sm:$0xff]   ;;  %v763_v46 = vld [vmem:[%s945_s1 + $0x110] sm:$0xff]  }
   0xd   :  { %661 = vmatpush3.bf16.msra.mxu1 %v725_v11  ;;  %634 = vmatprep.subr.bf16.mxu0 %v726_v12  ;;  %v746_v32 = vld [vmem:[%s946_s0] ss:$20 sps:$4 sm:$0xff]   ;;  %v748_v33 = vld [vmem:[%s946_s0 + $0x4] ss:$20 sps:$4 sm:$0xff]   ;;  %v749_v34 = vld [vmem:[%s946_s0 + $0x8] ss:$20 sps:$4 sm:$0xff]  }
   0xe   :  { %662 = vmatprep.subr.bf16.mxu1 %v727_v13  ;;  %v751_v35 = vld [vmem:[%s946_s0 + $0xc] ss:$20 sps:$4 sm:$0xff]   ;;  %440 = vmatprep.mubr.bf16.mxu0 %v748_v33  ;;  %v759_v40 = vld [vmem:[%s946_s0 + $0x34] ss:$20 sps:$4 sm:$0xff]   ;;  %v762_v42 = vld [vmem:[%s946_s0 + $0x30] ss:$20 sps:$4 sm:$0xff]  }
   0xf   :  { %489 = vmatprep.mubr.bf16.mxu1 %v751_v35  ;;  %v754_v38 = vld [vmem:[%s945_s1 + $0x128] sm:$0xff]   ;;  %v755_v43 = vld [vmem:[%s945_s1 + $0x120] sm:$0xff]  }
  0x10   :  { %635 = vmatpush3.bf16.msra.mxu0 %v728_v14  ;;  %v757_v39 = vld [vmem:[%s946_s0 + $0x2c] ss:$20 sps:$4 sm:$0xff]   ;;  %v761_v41 = vld [vmem:[%s946_s0 + $0x28] ss:$20 sps:$4 sm:$0xff]   ;;  %v766_v44 = vld [vmem:[%s946_s0 + $0x10] ss:$20 sps:$4 sm:$0xff]  }
  0x11   :  { %663 = vmatpush3.bf16.msra.mxu1 %v729_v15  ;;  %636 = vmatprep.subr.bf16.mxu0 %v730_v16  ;;  %v764_v47 = vld [vmem:[%s945_s1 + $0x108] sm:$0xff]   ;;  %v765_v48 = vld [vmem:[%s945_s1 + $0x100] sm:$0xff]  }
  0x12   :  { %664 = vmatprep.subr.bf16.mxu1 %v731_v17  ;;  %v767_v49 = vld [vmem:[%s946_s0 + $0x38] ss:$20 sps:$4 sm:$0xff]  }
  0x14   :  { %637 = vmatpush3.bf16.msra.mxu0 %v732_v18 }
  0x15   :  { %665 = vmatpush3.bf16.msra.mxu1 %v733_v19  ;;  %638 = vmatprep.subr.bf16.mxu0 %v734_v20 }
  0x16   :  { %666 = vmatprep.subr.bf16.mxu1 %v735_v21 }
  0x18   :  { %639 = vmatpush3.bf16.msra.mxu0 %v736_v22 }
  0x19   :  { %667 = vmatpush3.bf16.msra.mxu1 %v737_v23  ;;  %640 = vmatprep.subr.bf16.mxu0 %v738_v24 }
  0x1a   :  { %668 = vmatprep.subr.bf16.mxu1 %v739_v25 }
  0x1c   :  { %641 = vmatpush3.bf16.msra.mxu0 %v740_v26 }
  0x1d   :  { %669 = vmatpush3.bf16.msra.mxu1 %v741_v27  ;;  %642 = vmatprep.subr.bf16.mxu0 %v742_v28 }
  0x1e   :  { %670 = vmatprep.subr.bf16.mxu1 %v743_v29 }
  0x20   :  { %643 = vmatpush3.bf16.msra.mxu0 %v744_v30 }
  0x21   :  { %671 = vmatpush3.bf16.msra.mxu1 %v745_v31  ;;  %694 = vmatprep.subr.bf16.mxu0 %v752_v36 }
  0x23   :  { %441 = vmatmul.mubr.bf16.vlgmr.msra.gmra.mxu0 %v746_v32 }
  0x24   :  { %490 = vmatmul.mubr.bf16.vlgmr.msra.gmra.mxu1 %v749_v34  ;;  %695 = vmatpush3.bf16.msra.mxu0 %v752_v36 }
  0x25   :  { %696 = vmatprep.subr.bf16.mxu0 %v753_v37  ;;  %448 = vmatprep.mubr.bf16.mxu0 %v757_v39 }
  0x26   :  { %497 = vmatprep.mubr.bf16.mxu1 %v759_v40 }
  0x28   :  { %697 = vmatpush3.bf16.msra.mxu0 %v753_v37 }
  0x29   :  { %698 = vmatprep.subr.bf16.mxu0 %v754_v38 }
  0x2b   :  { %449 = vmatmul.mubr.bf16.gmra.mxu0 %v761_v41 }
  0x2c   :  { %498 = vmatmul.mubr.bf16.gmra.mxu1 %v762_v42  ;;  %699 = vmatpush3.bf16.msra.mxu0 %v754_v38 }
  0x2d   :  { %700 = vmatprep.subr.bf16.mxu0 %v755_v43  ;;  %710 = vmatprep.mubr.bf16.mxu0 %v766_v44 }
  0x30   :  { %701 = vmatpush3.bf16.msra.mxu0 %v755_v43 }
  0x31   :  { %702 = vmatprep.subr.bf16.mxu0 %v756_v45 }
  0x34   :  { %703 = vmatpush3.bf16.msra.mxu0 %v756_v45 }
  0x35   :  { %704 = vmatprep.subr.bf16.mxu0 %v763_v46 }
  0x38   :  { %705 = vmatpush3.bf16.msra.mxu0 %v763_v46 }
  0x39   :  { %706 = vmatprep.subr.bf16.mxu0 %v764_v47 }
  0x3c   :  { %707 = vmatpush3.bf16.msra.mxu0 %v764_v47 }
  0x3d   :  { %708 = vmatprep.subr.bf16.mxu0 %v765_v48 }
  0x40   :  { %709 = vmatpush3.bf16.msra.mxu0 %v765_v48 }
  0x43   :  { %711 = vmatmul.mubr.bf16.vlgmr.msra.gmra.mxu0 %v767_v49 }
  0xe3   :  { %v644_v50 = vpop.f32.mrf.mxu0 }
  0xe4   :  { %v672_v51 = vpop.f32.mrf.mxu1 }
  0xe5   :  { %v645_v52 = vpop.f32.mrf.mxu0 }
  0xe6   :  { %v673_v53 = vpop.f32.mrf.mxu1  ;;  %v646_v4 = vadd.f32 %v645_v52, %v644_v50 }
  0xe7   :  { %v647_v54 = vpop.f32.mrf.mxu0  ;;  %v674_v5 = vadd.f32 %v673_v53, %v672_v51 }
  0xe8   :  { %v675_v55 = vpop.f32.mrf.mxu1 }
  0xe9   :  { %v648_v56 = vpop.f32.mrf.mxu0  ;;  %v492_v13 = vadd.f32 %v674_v5, %v646_v4 }
  0xea   :  { %v676_v57 = vpop.f32.mrf.mxu1  ;;  %v649_v10 = vadd.f32 %v648_v56, %v647_v54 }
  0xeb   :  { %v650_v58 = vpop.f32.mrf.mxu0  ;;  %v677_v11 = vadd.f32 %v676_v57, %v675_v55 }
  0xec   :  { %v678_v59 = vpop.f32.mrf.mxu1 }
  0xed   :  { %v651_v60 = vpop.f32.mrf.mxu0  ;;  %v495_v19 = vadd.f32 %v677_v11, %v649_v10 }
  0xee   :  { %v679_v61 = vpop.f32.mrf.mxu1  ;;  %v652_v0 = vadd.f32 %v651_v60, %v650_v58 }
  0xef   :  { %v653_v62 = vpop.f32.mrf.mxu0  ;;  %v680_v1 = vadd.f32 %v679_v61, %v678_v59 }
  0xf0   :  { %v681_v63 = vpop.f32.mrf.mxu1 }
  0xf1   :  { %v654_v2 = vpop.f32.mrf.mxu0  ;;  %v500_v8 = vadd.f32 %v680_v1, %v652_v0 }
  0xf2   :  { %v682_v3 = vpop.f32.mrf.mxu1  ;;  %v655_v6 = vadd.f32 %v654_v2, %v653_v62 }
  0xf3   :  { %v683_v7 = vadd.f32 %v682_v3, %v681_v63 }
  0xf5   :  { %v503_v16 = vadd.f32 %v683_v7, %v655_v6 }
 0x103   :  { %v712_v9 = vpop.f32.mrf.mxu0 }
 0x104   :  { %v549_v12 = vadd.f32 %v712_v9, %v500_v8 }
 0x105   :  { %v540_v14 = vpop.f32.mrf.mxu0 }
 0x106   :  { %572 = vst [vmem:[%s947_s2 + $0x10] sm:$0xff] %v549_v12  ;;  %v541_v15 = vadd.f32 %v540_v14, %v492_v13 }
 0x107   :  { %v713_v17 = vpop.f32.mrf.mxu0 }
 0x108   :  { %570 = vst [vmem:[%s947_s2] sm:$0xff] %v541_v15  ;;  %v552_v18 = vadd.f32 %v713_v17, %v503_v16 }
 0x109   :  { %v543_v20 = vpop.f32.mrf.mxu0 }
 0x10a   :  { %573 = vst [vmem:[%s947_s2 + $0x18] sm:$0xff] %v552_v18  ;;  %v544_v21 = vadd.f32 %v543_v20, %v495_v19 }
 0x10c   :  { %571 = vst [vmem:[%s947_s2 + $0x8] sm:$0xff] %v544_v21 }

// kernel: resnet34_forward.162
= control target key start
LH: loop header
LB: loop body
LE: loop exit
PB: predicated region body
PF: predicated region fallthrough
CT: control target
= control target key end

     0   :  { %v214_v1 = vmov 0   ;;  %s287_s1 = inlined_call_operand.vmem [shape: bf16[128,256], index: 1, kind: input, shape index: {}]   ;;  %s288_s0 = inlined_call_operand.vmem [shape: bf16[8,128], index: 0, kind: input, shape index: {}]   ;;  %s289_s2 = inlined_call_operand.vmem [shape: f32[8,256], index: 2, kind: output, shape index: {}]  }
   0x1   :  { %v190_v0 = vld [vmem:[%s287_s1 + $0x74] ss:$8 sps:$4 sm:$0xff]   ;;  %149 = vmatprep.mubr.bf16.mxu0 %v214_v1  ;;  %v192_v2 = vld [vmem:[%s287_s1 + $0x70] ss:$8 sps:$4 sm:$0xff]   ;;  %v193_v3 = vld [vmem:[%s287_s1 + $0x64] ss:$8 sps:$4 sm:$0xff]  }
   0x2   :  { %117 = vmatprep.subr.bf16.mxu0 %v190_v0  ;;  %v195_v4 = vld [vmem:[%s287_s1 + $0x60] ss:$8 sps:$4 sm:$0xff]   ;;  %v196_v5 = vld [vmem:[%s287_s1 + $0x54] ss:$8 sps:$4 sm:$0xff]   ;;  %v198_v6 = vld [vmem:[%s287_s1 + $0x50] ss:$8 sps:$4 sm:$0xff]  }
   0x3   :  { %118 = vmatpush1.bf16.msra.mxu0 %v192_v2  ;;  %v199_v7 = vld [vmem:[%s287_s1 + $0x44] ss:$8 sps:$4 sm:$0xff]   ;;  %v201_v8 = vld [vmem:[%s287_s1 + $0x40] ss:$8 sps:$4 sm:$0xff]   ;;  %v202_v9 = vld [vmem:[%s287_s1 + $0x34] ss:$8 sps:$4 sm:$0xff]  }
   0x4   :  { %119 = vmatprep.subr.bf16.mxu0 %v193_v3  ;;  %v204_v10 = vld [vmem:[%s287_s1 + $0x30] ss:$8 sps:$4 sm:$0xff]   ;;  %v205_v11 = vld [vmem:[%s287_s1 + $0x24] ss:$8 sps:$4 sm:$0xff]   ;;  %v207_v12 = vld [vmem:[%s287_s1 + $0x20] ss:$8 sps:$4 sm:$0xff]  }
   0x5   :  { %v208_v13 = vld [vmem:[%s287_s1 + $0x14] ss:$8 sps:$4 sm:$0xff]   ;;  %v210_v14 = vld [vmem:[%s287_s1 + $0x10] ss:$8 sps:$4 sm:$0xff]   ;;  %v211_v15 = vld [vmem:[%s287_s1 + $0x4] ss:$8 sps:$4 sm:$0xff]  }
   0x6   :  { %v213_v16 = vld [vmem:[%s287_s1] ss:$8 sps:$4 sm:$0xff]  }
   0x7   :  { %120 = vmatpush1.bf16.msra.mxu0 %v195_v4  ;;  %v20_v17 = vld [vmem:[%s288_s0] sm:$0xf] }
   0x8   :  { %121 = vmatprep.subr.bf16.mxu0 %v196_v5 }
   0xb   :  { %122 = vmatpush1.bf16.msra.mxu0 %v198_v6 }
   0xc   :  { %123 = vmatprep.subr.bf16.mxu0 %v199_v7 }
   0xf   :  { %124 = vmatpush1.bf16.msra.mxu0 %v201_v8 }
  0x10   :  { %125 = vmatprep.subr.bf16.mxu0 %v202_v9 }
  0x13   :  { %126 = vmatpush1.bf16.msra.mxu0 %v204_v10 }
  0x14   :  { %127 = vmatprep.subr.bf16.mxu0 %v205_v11 }
  0x17   :  { %128 = vmatpush1.bf16.msra.mxu0 %v207_v12 }
  0x18   :  { %129 = vmatprep.subr.bf16.mxu0 %v208_v13 }
  0x1b   :  { %130 = vmatpush1.bf16.msra.mxu0 %v210_v14 }
  0x1c   :  { %131 = vmatprep.subr.bf16.mxu0 %v211_v15 }
  0x1f   :  { %132 = vmatpush1.bf16.msra.mxu0 %v213_v16 }
  0x22   :  { %150 = vmatmul.mubr.bf16.vlgmr.msra.gmra.mxu0 %v20_v17 }
  0xe2   :  { %v151_v18 = vpop.f32.mrf.mxu0 }
  0xe3   :  { %167 = vst [vmem:[%s289_s2] sm:$0xff] %v151_v18 }
  0xe4   :  { %v153_v19 = vpop.f32.mrf.mxu0 }
  0xe5   :  { %168 = vst [vmem:[%s289_s2 + $0x8] sm:$0xff] %v153_v19 }
  0xe6   :  { %v155_v20 = vpop.f32.mrf.mxu0 }
  0xe8   :  { %v156_v21 = vpop.f32.mrf.mxu0 }

// kernel: resnet34_forward.134
= control target key start
LH: loop header
LB: loop body
LE: loop exit
PB: predicated region body
PF: predicated region fallthrough
CT: control target
= control target key end

     0   :  { %s1034_s9 = smov 0   ;;  %s1036_s10 = smov 0   ;;  %s1157_s0 = inlined_call_operand.vmem [shape: bf16[32,1536], index: 0, kind: input, shape index: {}]   ;;  %s1158_s1 = inlined_call_operand.vmem [shape: bf16[1536,128], index: 1, kind: input, shape index: {}]   ;;  %s1159_s2 = inlined_call_operand.vmem [shape: f32[32,128], index: 2, kind: output, shape index: {}]  }
   0x1   :  { %s1038_s11 = smov 0   ;;  %s1040_s12 = smov 0  }
   0x2   :  { %s1042_s13 = smov 0  }
   0x3 LB: > { %s24_s14 = sadd.s32 1, %s1012_s12  ;;  %p47_p1 = scmp.ne.s32.totalorder %s1004_s10, %s1000_s9  ;;  %s1016_s13 = sphi %s1042_s13, %s12_s13   ;;  %s1012_s12 = sphi %s1040_s12, %s1163_s12   ;;  %s1008_s11 = sphi %s1038_s11, %s1162_s11   ;;  %s1004_s10 = sphi %s1036_s10, %s1161_s10   ;;  %s1000_s9 = sphi %s1034_s9, %s1160_s9  }
   0x4   : > { %p25_p0 = scmp.ge.s32.totalorder %s24_s14, 3  ;;  %p48_p2 = scmp.eq.s32.totalorder %s1016_s13, 0 }
   0x5   : > { %s40_s16 = sadd.s32 1, %s1004_s10  ;;  %p782_p5 = scmp.ge.s32.totalorder %s1016_s13, 3 }
   0x6   : > { %s1165_s14 = smov (%p25_p0, %s24_s14), 0  ;;  %p49_p3 = por %p48_p2, %p47_p1 }
   0x7   : > { %s36_s15 = ssub.s32 %s1012_s12, %s1165_s14  ;;  %129 = sbr.rel (%p782_p5) target bundleno = 20 (0x14), region = 16 }
   0x8   : > { %p38_p4 = scmp.eq.s32.totalorder %s36_s15, 0 }
   0xa   : > { %s1069_s17 = scalar_select %p38_p4, %s1004_s10, %s40_s16  }
   0xc   : > { %132 = sbr.rel (!%p49_p3) target bundleno = 20 (0x14), region = 20  ;;  %s134_s18 = sand.u32 (%p49_p3), 1, %s1004_s10  }
   0xd   : > { %s836_s19 = sshll.u32 (%p49_p3), %s1012_s12, 4  ;;  %s783_s20 = sshll.u32 (%p49_p3), %s134_s18, 6 }
   0xe   : > { %s142_s23 = scalar_lea.vmem (%p49_p3), %s1157_s0, %s836_s19  ;;  %s136_s24 = scalar_lea.vmem (%p49_p3), [#allocation3], %s783_s20 }
   0xf   : > { %v155_v0 = vld [vmem:[%s142_s23] sm:$0xff] (%p49_p3)  ;;  %v157_v1 = vld [vmem:[%s142_s23 + $0x8] sm:$0xff] (%p49_p3)  ;;  %v159_v2 = vld [vmem:[%s142_s23 + $0x30] sm:$0xff] (%p49_p3) }
  0x10   : > { %156 = vst [vmem:[%s136_s24] sm:$0xff] (%p49_p3), %v155_v0  ;;  %158 = vst [vmem:[%s136_s24 + $0x8] sm:$0xff] (%p49_p3), %v157_v1  ;;  %v161_v3 = vld [vmem:[%s142_s23 + $0x38] sm:$0xff] (%p49_p3)  ;;  %v163_v4 = vld [vmem:[%s142_s23 + $0x60] sm:$0xff] (%p49_p3) }
  0x11   : > { %160 = vst [vmem:[%s136_s24 + $0x10] sm:$0xff] %v159_v2  ;;  %v165_v5 = vld [vmem:[%s142_s23 + $0x68] sm:$0xff]  ;;  %162 = vst [vmem:[%s136_s24 + $0x18] sm:$0xff] %v161_v3  ;;  %v167_v6 = vld [vmem:[%s142_s23 + $0x90] sm:$0xff] }
  0x12   : > { %164 = vst [vmem:[%s136_s24 + $0x20] sm:$0xff] %v163_v4  ;;  %166 = vst [vmem:[%s136_s24 + $0x28] sm:$0xff] %v165_v5  ;;  %v169_v7 = vld [vmem:[%s142_s23 + $0x98] sm:$0xff] }
  0x13   : > { %168 = vst [vmem:[%s136_s24 + $0x30] sm:$0xff] %v167_v6  ;;  %170 = vst [vmem:[%s136_s24 + $0x38] sm:$0xff] %v169_v7 }
  0x14 PF: > { %p786_p6 = scmp.ge.s32.totalorder %s1016_s13, 1  ;;  %p187_p7 = scmp.lt.s32.totalorder %s1016_s13, 4 }
  0x16   : > { %p188_p8 = pnand %p786_p6, %p187_p7 }
  0x17   : > { %s194_s25 = sand.u32 (!%p188_p8), 1, %s1000_s9   ;;  %s788_s26 = sshll.u32 (!%p188_p8), %s1008_s11, 6 }
  0x18   : > { %191 = sbr.rel (%p188_p8) target bundleno = 294 (0x126), region = 47  ;;  %s787_s27 = sshll.u32 (!%p188_p8), %s194_s25, 6 }
  0x19   : > { %p229_p9 = scmp.lt.s32.totalorder (!%p188_p8), %s788_s26, 191  ;;  %s1086_s4 = scalar_lea.vmem (!%p188_p8), [#allocation3], %s787_s27 }
  0x1a   : > { %p790_p10 = scmp.ne.s32.totalorder (!%p188_p8), %s1008_s11, 0 }
  0x1d   : > { %s1167_s26 = smov (!%p229_p9, %s788_s26), 191  ;;  %250 = sbr.rel (%p790_p10) target bundleno = 37 (0x25), region = 55 }
  0x1e   : > { %s789_s28 = sshll.u32 %s1167_s26, 2 }
  0x1f   : > { %s1084_s3 = scalar_lea.vmem %s1158_s1, %s789_s28 }
  0x22   : > { %v1018_v8 = vmov 0.0  }
  0x23   : > { %251 = vst [vmem:[#allocation2 + $0x10] sm:$0xff] %v1018_v8  ;;  %252 = vst [vmem:[#allocation2] sm:$0xff] %v1018_v8 }
  0x24   : > { %253 = vst [vmem:[#allocation2 + $0x18] sm:$0xff] %v1018_v8  ;;  %254 = vst [vmem:[#allocation2 + $0x8] sm:$0xff] %v1018_v8 }
  0x25 PF: > { %v934_v9 = vld [vmem:[%s1084_s3 + $0x78] sm:$0xff]   ;;  %v938_v13 = vld [vmem:[%s1084_s3 + $0x70] sm:$0xff]   ;;  %v942_v17 = vld [vmem:[%s1084_s3 + $0x68] sm:$0xff]   ;;  %p831_p11 = scmp.ne.s32.totalorder %s1008_s11, 2 }
  0x26   : > { %v935_v10 = vld [vmem:[%s1084_s3 + $0xf8] sm:$0xff]   ;;  %837 = vmatprep.subr.bf16.mxu0 %v934_v9  ;;  %v939_v14 = vld [vmem:[%s1084_s3 + $0xf0] sm:$0xff]   ;;  %v943_v18 = vld [vmem:[%s1084_s3 + $0xe8] sm:$0xff]  }
  0x27   : > { %v936_v11 = vld [vmem:[%s1084_s3 + $0x38] sm:$0xff]   ;;  %865 = vmatprep.subr.bf16.mxu1 %v935_v10  ;;  %v940_v15 = vld [vmem:[%s1084_s3 + $0x30] sm:$0xff]   ;;  %v944_v19 = vld [vmem:[%s1084_s3 + $0x28] sm:$0xff]  }
  0x28   : > { %v937_v12 = vld [vmem:[%s1084_s3 + $0xb8] sm:$0xff]   ;;  %838 = vmatpush3.bf16.msra.mxu0 %v936_v11  ;;  %v941_v16 = vld [vmem:[%s1084_s3 + $0xb0] sm:$0xff]   ;;  %v945_v20 = vld [vmem:[%s1084_s3 + $0xa8] sm:$0xff]  }
  0x29   : > { %866 = vmatpush3.bf16.msra.mxu1 %v937_v12  ;;  %839 = vmatprep.subr.bf16.mxu0 %v938_v13  ;;  %v946_v21 = vld [vmem:[%s1084_s3 + $0x60] sm:$0xff]   ;;  %v950_v25 = vld [vmem:[%s1084_s3 + $0x58] sm:$0xff]   ;;  %v954_v29 = vld [vmem:[%s1084_s3 + $0x50] sm:$0xff]  }
  0x2a   : > { %867 = vmatprep.subr.bf16.mxu1 %v939_v14  ;;  %v947_v22 = vld [vmem:[%s1084_s3 + $0xe0] sm:$0xff]   ;;  %v951_v26 = vld [vmem:[%s1084_s3 + $0xd8] sm:$0xff]   ;;  %v955_v30 = vld [vmem:[%s1084_s3 + $0xd0] sm:$0xff]  }
  0x2b   : > { %v948_v23 = vld [vmem:[%s1084_s3 + $0x20] sm:$0xff]   ;;  %v952_v27 = vld [vmem:[%s1084_s3 + $0x18] sm:$0xff]   ;;  %v956_v31 = vld [vmem:[%s1084_s3 + $0x10] sm:$0xff]  }
  0x2c   : > { %840 = vmatpush3.bf16.msra.mxu0 %v940_v15  ;;  %v949_v24 = vld [vmem:[%s1084_s3 + $0xa0] sm:$0xff]   ;;  %v953_v28 = vld [vmem:[%s1084_s3 + $0x98] sm:$0xff]   ;;  %v957_v32 = vld [vmem:[%s1084_s3 + $0x90] sm:$0xff]  }
  0x2d   : > { %868 = vmatpush3.bf16.msra.mxu1 %v941_v16  ;;  %841 = vmatprep.subr.bf16.mxu0 %v942_v17  ;;  %v958_v33 = vld [vmem:[%s1084_s3 + $0x48] sm:$0xff]   ;;  %v962_v37 = vld [vmem:[%s1084_s3 + $0x40] sm:$0xff]   ;;  %v255_v56 = vld [vmem:[#allocation2 + $0x10] sm:$0xff] }
  0x2e   : > { %869 = vmatprep.subr.bf16.mxu1 %v943_v18  ;;  %v959_v34 = vld [vmem:[%s1084_s3 + $0xc8] sm:$0xff]   ;;  %v963_v38 = vld [vmem:[%s1084_s3 + $0xc0] sm:$0xff]   ;;  %v257_v10 = vld [vmem:[#allocation2 + $0x18] sm:$0xff] }
  0x2f   : > { %v960_v35 = vld [vmem:[%s1084_s3 + $0x8] sm:$0xff]   ;;  %v964_v39 = vld [vmem:[%s1084_s3] sm:$0xff]  }
  0x30   : > { %842 = vmatpush3.bf16.msra.mxu0 %v944_v19  ;;  %v961_v36 = vld [vmem:[%s1084_s3 + $0x88] sm:$0xff]   ;;  %v965_v40 = vld [vmem:[%s1084_s3 + $0x80] sm:$0xff]  }
  0x31   : > { %870 = vmatpush3.bf16.msra.mxu1 %v945_v20  ;;  %843 = vmatprep.subr.bf16.mxu0 %v946_v21  ;;  %v966_v41 = vld [vmem:[%s1086_s4] ss:$16 sps:$4 sm:$0xff]   ;;  %v968_v42 = vld [vmem:[%s1086_s4 + $0x4] ss:$16 sps:$4 sm:$0xff]   ;;  %v969_v43 = vld [vmem:[%s1086_s4 + $0x8] ss:$16 sps:$4 sm:$0xff]  }
  0x32   : > { %871 = vmatprep.subr.bf16.mxu1 %v947_v22  ;;  %v971_v44 = vld [vmem:[%s1086_s4 + $0xc] ss:$16 sps:$4 sm:$0xff]   ;;  %595 = vmatprep.mubr.bf16.mxu0 %v968_v42  ;;  %v972_v45 = vld [vmem:[%s1086_s4 + $0x24] ss:$16 sps:$4 sm:$0xff]   ;;  %v976_v47 = vld [vmem:[%s1086_s4 + $0x20] ss:$16 sps:$4 sm:$0xff]  }
  0x33   : > { %644 = vmatprep.mubr.bf16.mxu1 %v971_v44  ;;  %v974_v46 = vld [vmem:[%s1086_s4 + $0x2c] ss:$16 sps:$4 sm:$0xff]   ;;  %v977_v48 = vld [vmem:[%s1086_s4 + $0x28] ss:$16 sps:$4 sm:$0xff]   ;;  %v256_v1 = vld [vmem:[#allocation2] sm:$0xff] }
  0x34   : > { %844 = vmatpush3.bf16.msra.mxu0 %v948_v23  ;;  %v258_v18 = vld [vmem:[#allocation2 + $0x8] sm:$0xff] }
  0x35   : > { %872 = vmatpush3.bf16.msra.mxu1 %v949_v24  ;;  %845 = vmatprep.subr.bf16.mxu0 %v950_v25 }
  0x36   : > { %873 = vmatprep.subr.bf16.mxu1 %v951_v26 }
  0x38   : > { %846 = vmatpush3.bf16.msra.mxu0 %v952_v27 }
  0x39   : > { %874 = vmatpush3.bf16.msra.mxu1 %v953_v28  ;;  %847 = vmatprep.subr.bf16.mxu0 %v954_v29 }
  0x3a   : > { %875 = vmatprep.subr.bf16.mxu1 %v955_v30 }
  0x3c   : > { %848 = vmatpush3.bf16.msra.mxu0 %v956_v31 }
  0x3d   : > { %876 = vmatpush3.bf16.msra.mxu1 %v957_v32  ;;  %849 = vmatprep.subr.bf16.mxu0 %v958_v33 }
  0x3e   : > { %877 = vmatprep.subr.bf16.mxu1 %v959_v34 }
  0x40   : > { %850 = vmatpush3.bf16.msra.mxu0 %v960_v35 }
  0x41   : > { %878 = vmatpush3.bf16.msra.mxu1 %v961_v36  ;;  %851 = vmatprep.subr.bf16.mxu0 %v962_v37 }
  0x42   : > { %879 = vmatprep.subr.bf16.mxu1 %v963_v38 }
  0x44   : > { %852 = vmatpush3.bf16.msra.mxu0 %v964_v39 }
  0x45   : > { %880 = vmatpush3.bf16.msra.mxu1 %v965_v40 }
  0x47   : > { %596 = vmatmul.mubr.bf16.vlgmr.msra.gmra.mxu0 %v966_v41 }
  0x48   : > { %645 = vmatmul.mubr.bf16.vlgmr.msra.gmra.mxu1 %v969_v43  ;;  %603 = vmatprep.mubr.bf16.mxu0 %v972_v45 }
  0x49   : > { %652 = vmatprep.mubr.bf16.mxu1 %v974_v46 }
  0x4f   : > { %604 = vmatmul.mubr.bf16.gmra.mxu0 %v976_v47 }
  0x50   : > { %653 = vmatmul.mubr.bf16.gmra.mxu1 %v977_v48 }
 0x107   : > { %v853_v49 = vpop.f32.mrf.mxu0 }
 0x108   : > { %v881_v50 = vpop.f32.mrf.mxu1 }
 0x109   : > { %v854_v51 = vpop.f32.mrf.mxu0 }
 0x10a   : > { %v855_v52 = vadd.f32 %v854_v51, %v853_v49  ;;  %v882_v53 = vpop.f32.mrf.mxu1 }
 0x10b   : > { %v883_v54 = vadd.f32 %v882_v53, %v881_v50  ;;  %v856_v55 = vpop.f32.mrf.mxu0 }
 0x10c   : > { %v884_v57 = vpop.f32.mrf.mxu1 }
 0x10d   : > { %v647_v58 = vadd.f32 %v883_v54, %v855_v52  ;;  %v857_v59 = vpop.f32.mrf.mxu0 }
 0x10e   : > { %v858_v60 = vadd.f32 %v857_v59, %v856_v55  ;;  %v885_v61 = vpop.f32.mrf.mxu1 }
 0x10f   : > { %v661_v62 = vadd.f32 %v647_v58, %v255_v56  ;;  %v886_v63 = vadd.f32 %v885_v61, %v884_v57  ;;  %v859_v0 = vpop.f32.mrf.mxu0 }
 0x110   : > { %v887_v2 = vpop.f32.mrf.mxu1 }
 0x111   : > { %665 = vst [vmem:[#allocation2 + $0x10] sm:$0xff] %v661_v62  ;;  %v650_v3 = vadd.f32 %v886_v63, %v858_v60  ;;  %v860_v4 = vpop.f32.mrf.mxu0 }
 0x112   : > { %v861_v5 = vadd.f32 %v860_v4, %v859_v0  ;;  %v888_v6 = vpop.f32.mrf.mxu1 }
 0x113   : > { %v662_v7 = vadd.f32 %v650_v3, %v256_v1  ;;  %v889_v8 = vadd.f32 %v888_v6, %v887_v2  ;;  %v862_v9 = vpop.f32.mrf.mxu0 }
 0x114   : > { %v890_v11 = vpop.f32.mrf.mxu1 }
 0x115   : > { %666 = vst [vmem:[#allocation2] sm:$0xff] %v662_v7  ;;  %v655_v12 = vadd.f32 %v889_v8, %v861_v5  ;;  %v863_v13 = vpop.f32.mrf.mxu0 }
 0x116   : > { %v864_v14 = vadd.f32 %v863_v13, %v862_v9  ;;  %v891_v15 = vpop.f32.mrf.mxu1 }
 0x117   : > { %v663_v16 = vadd.f32 %v655_v12, %v257_v10  ;;  %v892_v17 = vadd.f32 %v891_v15, %v890_v11 }
 0x119   : > { %667 = vst [vmem:[#allocation2 + $0x18] sm:$0xff] %v663_v16  ;;  %v658_v19 = vadd.f32 %v892_v17, %v864_v14  ;;  %672 = sbr.rel (%p831_p11) target bundleno = 294 (0x126), region = 59 }
 0x11b   : > { %v664_v20 = vadd.f32 %v658_v19, %v258_v18 }
 0x11d   : > { %668 = vst [vmem:[#allocation2 + $0x8] sm:$0xff] %v664_v20 }
 0x11e   : > { %v673_v21 = vld [vmem:[#allocation2 + $0x10] sm:$0xff]  ;;  %v674_v22 = vld [vmem:[#allocation2] sm:$0xff] }
 0x11f   : > { %677 = vst [vmem:[%s1159_s2] sm:$0xff] %v673_v21  ;;  %678 = vst [vmem:[%s1159_s2 + $0x8] sm:$0xff] %v674_v22 }
 0x120   : > { %v675_v23 = vld [vmem:[#allocation2 + $0x18] sm:$0xff] }
 0x121   : > { %679 = vst [vmem:[%s1159_s2 + $0x10] sm:$0xff] %v675_v23 }
 0x124   : > { %v676_v24 = vld [vmem:[#allocation2 + $0x8] sm:$0xff] }
 0x125   : > { %680 = vst [vmem:[%s1159_s2 + $0x18] sm:$0xff] %v676_v24 }
 0x126 PF: > { %s12_s13 = sadd.s32 1, %s1016_s13   ;;  %s1160_s9 = smov %s1004_s10 }
 0x127   : > { %p9_p12 = scmp.ge.s32.totalorder %s12_s13, 5   ;;  %s1161_s10 = smov %s1069_s17 }
 0x128   : > { %s1162_s11 = smov %s1012_s12  ;;  %s1163_s12 = smov %s1165_s14 }
 0x129   :  { %11 = sbr.rel (!%p9_p12) target bundleno = 3 (0x3), region = 97 }

// kernel: resnet34_forward.139
= control target key start
LH: loop header
LB: loop body
LE: loop exit
PB: predicated region body
PF: predicated region fallthrough
CT: control target
= control target key end

     0   :  { %s132_s0 = inlined_call_operand.vmem [shape: f32[32,128], index: 0, kind: input, shape index: {}]   ;;  %s133_s1 = inlined_call_operand.vmem [shape: f32[1,128], index: 1, kind: input, shape index: {}]   ;;  %s134_s2 = inlined_call_operand.vmem [shape: f32[1,128], index: 2, kind: input, shape index: {}]   ;;  %s135_s3 = inlined_call_operand.vmem [shape: f32[32,128], index: 3, kind: input, shape index: {}]   ;;  %s136_s4 = inlined_call_operand.vmem [shape: f32[32,128], index: 4, kind: output, shape index: {}]  }
   0x1   :  { %v17_v0 = vld [vmem:[%s132_s0] sm:$0xff]  ;;  %v18_v4 = vld [vmem:[%s132_s0 + $0x8] sm:$0xff]  ;;  %v19_v7 = vld [vmem:[%s132_s0 + $0x10] sm:$0xff] }
   0x2   :  { %v63_v1 = vld [vmem:[%s133_s1] ss:$0 sm:$0xff]  ;;  %v20_v8 = vld [vmem:[%s132_s0 + $0x18] sm:$0xff]  ;;  %v44_v10 = vld [vmem:[%s135_s3 + $0x8] sm:$0xff] }
   0x3   :  { %v64_v2 = vld [vmem:[%s134_s2] ss:$0 sm:$0xff]  ;;  %v28_v3 = vmul.f32 %v63_v1, %v17_v0  ;;  %v29_v6 = vmul.f32 %v63_v1, %v18_v4  ;;  %v30_v11 = vmul.f32 %v63_v1, %v19_v7  ;;  %v31_v12 = vmul.f32 %v63_v1, %v20_v8  ;;  %v45_v14 = vld [vmem:[%s135_s3 + $0x10] sm:$0xff]  ;;  %v46_v15 = vld [vmem:[%s135_s3 + $0x18] sm:$0xff] }
   0x4   :  { %v43_v5 = vld [vmem:[%s135_s3] sm:$0xff] }
   0x5   :  { %v39_v9 = vadd.f32 %v64_v2, %v28_v3  ;;  %v40_v13 = vadd.f32 %v64_v2, %v29_v6  ;;  %v41_v17 = vadd.f32 %v64_v2, %v30_v11  ;;  %v42_v18 = vadd.f32 %v64_v2, %v31_v12 }
   0x7   :  { %v47_v16 = vadd.f32 %v43_v5, %v39_v9  ;;  %v48_v19 = vadd.f32 %v44_v10, %v40_v13  ;;  %v49_v21 = vadd.f32 %v45_v14, %v41_v17  ;;  %v50_v22 = vadd.f32 %v46_v15, %v42_v18 }
   0x9   :  { %v51_v20 = vmax.f32 %v47_v16, 0.0  ;;  %v52_v23 = vmax.f32 %v48_v19, 0.0  ;;  %v53_v24 = vmax.f32 %v49_v21, 0.0  ;;  %v54_v25 = vmax.f32 %v50_v22, 0.0 }
   0xb   :  { %55 = vst [vmem:[%s136_s4] sm:$0xff] %v51_v20  ;;  %56 = vst [vmem:[%s136_s4 + $0x8] sm:$0xff] %v52_v23 }
   0xc   :  { %57 = vst [vmem:[%s136_s4 + $0x10] sm:$0xff] %v53_v24  ;;  %58 = vst [vmem:[%s136_s4 + $0x18] sm:$0xff] %v54_v25 }

// kernel: resnet34_forward.163
= control target key start
LH: loop header
LB: loop body
LE: loop exit
PB: predicated region body
PF: predicated region fallthrough
CT: control target
= control target key end

     0   :  { %v14_v0 = vlaneseq  ;;  %v104_v6 = vmov 0.0   ;;  %v105_v11 = vmov 1966171168   ;;  %s157_s0 = inlined_call_operand.vmem [shape: f32[8,256], index: 0, kind: input, shape index: {}]   ;;  %s158_s1 = inlined_call_operand.vmem [shape: f32[1,256], index: 1, kind: output, shape index: {0}]   ;;  %s159_s2 = inlined_call_operand.vmem [shape: f32[1,256], index: 2, kind: output, shape index: {1}]  }
   0x1   :  { %v20_v1 = vld [vmem:[%s157_s0] sm:$0xff]  ;;  %v21_v2 = vld [vmem:[%s157_s0 + $0x8] sm:$0xff]  ;;  %v39_v12 = vunpack.c.l.s4 %v105_v11 }
   0x2   :  { %vm127_vm0 = vcmp.lt.s32.totalorder %v14_v0, 256  ;;  %v23_v4 = vrot.slane %v20_v1, 4  ;;  %v29_v5 = vrot.slane %v21_v2, 4  ;;  %v60_v7 = vmul.f32 %v20_v1, %v20_v1 }
   0x3   :  { %18 = vst.msk [vmem:[%s158_s1] sm:$0x3] %vm127_vm0, %v104_v6  ;;  %19 = vst.msk [vmem:[%s159_s2] sm:$0x3] %vm127_vm0, %v104_v6  ;;  %v61_v8 = vmul.f32 %v21_v2, %v21_v2  ;;  %v40_v21 = vunpack.c.0.s8 %v39_v12  ;;  %v42_v22 = vshrl.u32 %v14_v0, 7 }
   0x4   :  { %v24_v9 = vadd.f32 %v23_v4, %v20_v1  ;;  %v30_v10 = vadd.f32 %v29_v5, %v21_v2  ;;  %v62_v13 = vrot.slane %v60_v7, 4 }
   0x5   :  { %v68_v14 = vrot.slane %v61_v8, 4  ;;  %v43_v31 = vsub.s32 %v40_v21, %v42_v22 }
   0x6   :  { %v25_v15 = vrot.slane %v24_v9, 2  ;;  %v31_v16 = vrot.slane %v30_v10, 2  ;;  %v63_v17 = vadd.f32 %v62_v13, %v60_v7 }
   0x7   :  { %v69_v18 = vadd.f32 %v68_v14, %v61_v8 }
   0x8   :  { %v26_v19 = vadd.f32 %v25_v15, %v24_v9  ;;  %v32_v20 = vadd.f32 %v31_v16, %v30_v10  ;;  %v64_v23 = vrot.slane %v63_v17, 2 }
   0x9   :  { %v70_v24 = vrot.slane %v69_v18, 2 }
   0xa   :  { %v27_v25 = vrot.slane %v26_v19, 1  ;;  %v33_v26 = vrot.slane %v32_v20, 1  ;;  %v65_v27 = vadd.f32 %v64_v23, %v63_v17  ;;  %v22_v38 = vld [vmem:[%s158_s1] sm:$0x3] }
   0xb   :  { %v71_v28 = vadd.f32 %v70_v24, %v69_v18  ;;  %v59_v43 = vld [vmem:[%s159_s2] sm:$0x3] }
   0xc   :  { %v28_v29 = vadd.f32 %v27_v25, %v26_v19  ;;  %v34_v30 = vadd.f32 %v33_v26, %v32_v20  ;;  %v66_v32 = vrot.slane %v65_v27, 1 }
   0xd   :  { %v72_v33 = vrot.slane %v71_v28, 1 }
   0xe   :  { %v37_v34 = vcombine.low %v28_v29, %v34_v30  ;;  %v67_v35 = vadd.f32 %v66_v32, %v65_v27 }
   0xf   :  { %v73_v36 = vadd.f32 %v72_v33, %v71_v28 }
  0x10   :  { %v44_v37 = vrot.slane %v37_v34, %v43_v31 }
  0x11   :  { %v76_v39 = vcombine.low %v67_v35, %v73_v36 }
  0x12   :  { %v51_v40 = vrot.slane %v44_v37, %v43_v31 }
  0x13   :  { %v83_v41 = vrot.slane %v76_v39, %v43_v31 }
  0x14   :  { %v53_v42 = vadd.f32 %v51_v40, %v22_v38 }
  0x15   :  { %v90_v44 = vrot.slane %v83_v41, %v43_v31 }
  0x16   :  { %58 = vst.msk [vmem:[%s158_s1] sm:$0x3] %vm127_vm0, %v53_v42 }
  0x17   :  { %v92_v45 = vadd.f32 %v90_v44, %v59_v43 }
  0x19   :  { %93 = vst.msk [vmem:[%s159_s2] sm:$0x3] %vm127_vm0, %v92_v45 }

// kernel: resnet34_forward.164
= control target key start
LH: loop header
LB: loop body
LE: loop exit
PB: predicated region body
PF: predicated region fallthrough
CT: control target
= control target key end

     0   :  { %v18_v0 = vlaneseq  ;;  %s88_s1 = inlined_call_operand.vmem [shape: f32[1,256], index: 1, kind: input, shape index: {}]   ;;  %s89_s2 = inlined_call_operand.vmem [shape: f32[1,256], index: 2, kind: input, shape index: {}]   ;;  %s90_s0 = inlined_call_operand.vmem [shape: f32[8,256], index: 0, kind: input, shape index: {}]   ;;  %s91_s3 = inlined_call_operand.vmem [shape: f32[8,256], index: 3, kind: output, shape index: {}]  }
   0x1   :  { %v16_v2 = vld [vmem:[%s88_s1] sm:$0x3]  ;;  %v15_v7 = vld [vmem:[%s90_s0 + $0x8] sm:$0xff] }
   0x2   :  { %v19_v1 = vshrl.u32 %v18_v0, 7  ;;  %v30_v3 = vld [vmem:[%s89_s2] sm:$0x3] }
   0x3   :  { %v14_v6 = vld [vmem:[%s90_s0] sm:$0xff] }
   0x4   :  { %v20_v4 = vsub.s32 0, %v19_v1  ;;  %v24_v5 = vsub.s32 1, %v19_v1 }
   0x6   :  { %v21_v8 = vrot.slane %v16_v2, %v20_v4  ;;  %v35_v9 = vrot.slane %v30_v3, %v20_v4  ;;  %v25_v10 = vrot.slane %v16_v2, %v24_v5  ;;  %v39_v11 = vrot.slane %v30_v3, %v24_v5 }
   0x8   :  { %v28_v12 = vmul.f32 %v21_v8, %v14_v6  ;;  %v29_v13 = vmul.f32 %v25_v10, %v15_v7 }
   0xa   :  { %v42_v14 = vadd.f32 %v35_v9, %v28_v12  ;;  %v43_v15 = vadd.f32 %v39_v11, %v29_v13 }
   0xc   :  { %44 = vst [vmem:[%s91_s3] sm:$0xff] %v42_v14  ;;  %45 = vst [vmem:[%s91_s3 + $0x8] sm:$0xff] %v43_v15 }

// kernel: resnet34_forward.160
= control target key start
LH: loop header
LB: loop body
LE: loop exit
PB: predicated region body
PF: predicated region fallthrough
CT: control target
= control target key end

     0   :  { %v18_v0 = vlaneseq  ;;  %s90_s1 = inlined_call_operand.vmem [shape: f32[1,256], index: 1, kind: input, shape index: {}]   ;;  %s91_s2 = inlined_call_operand.vmem [shape: f32[1,256], index: 2, kind: input, shape index: {}]   ;;  %s92_s0 = inlined_call_operand.vmem [shape: f32[8,256], index: 0, kind: input, shape index: {}]   ;;  %s93_s3 = inlined_call_operand.vmem [shape: f32[8,256], index: 3, kind: output, shape index: {}]  }
   0x1   :  { %v16_v2 = vld [vmem:[%s90_s1] sm:$0x3]  ;;  %v15_v7 = vld [vmem:[%s92_s0 + $0x8] sm:$0xff] }
   0x2   :  { %v19_v1 = vshrl.u32 %v18_v0, 7  ;;  %v30_v3 = vld [vmem:[%s91_s2] sm:$0x3] }
   0x3   :  { %v14_v6 = vld [vmem:[%s92_s0] sm:$0xff] }
   0x4   :  { %v20_v4 = vsub.s32 0, %v19_v1  ;;  %v24_v5 = vsub.s32 1, %v19_v1 }
   0x6   :  { %v21_v8 = vrot.slane %v16_v2, %v20_v4  ;;  %v35_v9 = vrot.slane %v30_v3, %v20_v4  ;;  %v25_v10 = vrot.slane %v16_v2, %v24_v5  ;;  %v39_v11 = vrot.slane %v30_v3, %v24_v5 }
   0x8   :  { %v28_v12 = vmul.f32 %v21_v8, %v14_v6  ;;  %v29_v13 = vmul.f32 %v25_v10, %v15_v7 }
   0xa   :  { %v42_v14 = vadd.f32 %v35_v9, %v28_v12  ;;  %v43_v15 = vadd.f32 %v39_v11, %v29_v13 }
   0xc   :  { %v44_v16 = vmax.f32 %v42_v14, 0.0  ;;  %v45_v17 = vmax.f32 %v43_v15, 0.0 }
   0xe   :  { %46 = vst [vmem:[%s93_s3] sm:$0xff] %v44_v16  ;;  %47 = vst [vmem:[%s93_s3 + $0x8] sm:$0xff] %v45_v17 }

// kernel: resnet34_forward.158
= control target key start
LH: loop header
LB: loop body
LE: loop exit
PB: predicated region body
PF: predicated region fallthrough
CT: control target
= control target key end

     0   :  { %s1087_s9 = smov 0   ;;  %s1089_s10 = smov 0   ;;  %s1202_s0 = inlined_call_operand.vmem [shape: bf16[8,1536], index: 0, kind: input, shape index: {}]   ;;  %s1203_s1 = inlined_call_operand.vmem [shape: bf16[1536,256], index: 1, kind: input, shape index: {}]   ;;  %s1204_s2 = inlined_call_operand.vmem [shape: f32[8,256], index: 2, kind: output, shape index: {}]  }
   0x1   :  { %s1091_s11 = smov 0  }
   0x2 LB: > { %s24_s12 = sadd.s32 1, %s1065_s10  ;;  %p841_p0 = scmp.ge.s32.totalorder %s1069_s11, 1  ;;  %s1069_s11 = sphi %s1091_s11, %s12_s11   ;;  %s1065_s10 = sphi %s1089_s10, %s1206_s10   ;;  %s1061_s9 = sphi %s1087_s9, %s1205_s9  }
   0x3   : > { %p25_p1 = scmp.ge.s32.totalorder %s24_s12, 3  ;;  %p159_p2 = scmp.lt.s32.totalorder %s1069_s11, 4 }
   0x5   : > { %s1208_s12 = smov (%p25_p1, %s24_s12), 0  ;;  %p160_p3 = pnand %p841_p0, %p159_p2 }
   0x6   : > { %s842_s13 = sshll.u32 (!%p160_p3), %s1061_s9, 2  ;;  %s844_s14 = sshll.u32 (!%p160_p3), %s1061_s9, 6 }
   0x7   : > { %163 = sbr.rel (%p160_p3) target bundleno = 296 (0x128), region = 28  ;;  %p202_p4 = scmp.lt.s32.totalorder (!%p160_p3), %s842_s13, 11 }
   0x8   : > { %p211_p5 = scmp.lt.s32.totalorder (!%p160_p3), %s844_s14, 191  ;;  %p847_p6 = scmp.ne.s32.totalorder (!%p160_p3), %s1061_s9, 0 }
   0xc   : > { %s1210_s13 = smov (!%p202_p4, %s842_s13), 11  ;;  %s1212_s14 = smov (!%p211_p5, %s844_s14), 191 }
   0xd   : > { %s843_s15 = sshll.u32 %s1210_s13, 2  ;;  %s921_s19 = sshll.u32 %s1212_s14, 3 }
   0xe   : > { %s1112_s18 = scalar_lea.vmem %s1202_s0, %s843_s15  ;;  %s1117_s22 = scalar_lea.vmem %s1203_s1, %s921_s19 }
   0xf   : > { %234 = sbr.rel (%p847_p6) target bundleno = 22 (0x16), region = 32 }
  0x14   : > { %v1071_v0 = vmov 0.0  }
  0x15   : > { %235 = vst [vmem:[#allocation2] sm:$0xff] %v1071_v0  ;;  %236 = vst [vmem:[#allocation2 + $0x8] sm:$0xff] %v1071_v0 }
  0x16 PF: > { %v947_v1 = vld [vmem:[%s1117_s22 + $0x74] ss:$8 sps:$4 sm:$0xff]   ;;  %v951_v3 = vld [vmem:[%s1117_s22 + $0x70] ss:$8 sps:$4 sm:$0xff]   ;;  %v953_v5 = vld [vmem:[%s1117_s22 + $0x64] ss:$8 sps:$4 sm:$0xff]  }
  0x17   : > { %v949_v2 = vld [vmem:[%s1117_s22 + $0x174] ss:$8 sps:$4 sm:$0xff]   ;;  %639 = vmatprep.subr.bf16.mxu0 %v947_v1  ;;  %v952_v4 = vld [vmem:[%s1117_s22 + $0x170] ss:$8 sps:$4 sm:$0xff]   ;;  %v955_v6 = vld [vmem:[%s1117_s22 + $0x164] ss:$8 sps:$4 sm:$0xff]  }
  0x18   : > { %680 = vmatprep.subr.bf16.mxu1 %v949_v2  ;;  %640 = vmatpush1.bf16.msra.mxu0 %v951_v3  ;;  %v957_v7 = vld [vmem:[%s1117_s22 + $0x60] ss:$8 sps:$4 sm:$0xff]   ;;  %v959_v9 = vld [vmem:[%s1117_s22 + $0x54] ss:$8 sps:$4 sm:$0xff]   ;;  %v963_v11 = vld [vmem:[%s1117_s22 + $0x50] ss:$8 sps:$4 sm:$0xff]  }
  0x19   : > { %681 = vmatpush1.bf16.msra.mxu1 %v952_v4  ;;  %641 = vmatprep.subr.bf16.mxu0 %v953_v5  ;;  %v958_v8 = vld [vmem:[%s1117_s22 + $0x160] ss:$8 sps:$4 sm:$0xff]   ;;  %v961_v10 = vld [vmem:[%s1117_s22 + $0x154] ss:$8 sps:$4 sm:$0xff]   ;;  %v964_v12 = vld [vmem:[%s1117_s22 + $0x150] ss:$8 sps:$4 sm:$0xff]  }
  0x1a   : > { %682 = vmatprep.subr.bf16.mxu1 %v955_v6  ;;  %v965_v13 = vld [vmem:[%s1117_s22 + $0x44] ss:$8 sps:$4 sm:$0xff]   ;;  %v969_v15 = vld [vmem:[%s1117_s22 + $0x40] ss:$8 sps:$4 sm:$0xff]   ;;  %v971_v17 = vld [vmem:[%s1117_s22 + $0x34] ss:$8 sps:$4 sm:$0xff]  }
  0x1b   : > { %v967_v14 = vld [vmem:[%s1117_s22 + $0x144] ss:$8 sps:$4 sm:$0xff]   ;;  %v970_v16 = vld [vmem:[%s1117_s22 + $0x140] ss:$8 sps:$4 sm:$0xff]   ;;  %v973_v18 = vld [vmem:[%s1117_s22 + $0x134] ss:$8 sps:$4 sm:$0xff]  }
  0x1c   : > { %642 = vmatpush1.bf16.msra.mxu0 %v957_v7  ;;  %v975_v19 = vld [vmem:[%s1117_s22 + $0x30] ss:$8 sps:$4 sm:$0xff]   ;;  %v977_v21 = vld [vmem:[%s1117_s22 + $0x24] ss:$8 sps:$4 sm:$0xff]   ;;  %v981_v23 = vld [vmem:[%s1117_s22 + $0x20] ss:$8 sps:$4 sm:$0xff]  }
  0x1d   : > { %683 = vmatpush1.bf16.msra.mxu1 %v958_v8  ;;  %643 = vmatprep.subr.bf16.mxu0 %v959_v9  ;;  %v976_v20 = vld [vmem:[%s1117_s22 + $0x130] ss:$8 sps:$4 sm:$0xff]   ;;  %v979_v22 = vld [vmem:[%s1117_s22 + $0x124] ss:$8 sps:$4 sm:$0xff]   ;;  %v982_v24 = vld [vmem:[%s1117_s22 + $0x120] ss:$8 sps:$4 sm:$0xff]  }
  0x1e   : > { %684 = vmatprep.subr.bf16.mxu1 %v961_v10  ;;  %v983_v25 = vld [vmem:[%s1117_s22 + $0x14] ss:$8 sps:$4 sm:$0xff]   ;;  %v987_v27 = vld [vmem:[%s1117_s22 + $0x10] ss:$8 sps:$4 sm:$0xff]   ;;  %v989_v29 = vld [vmem:[%s1117_s22 + $0x4] ss:$8 sps:$4 sm:$0xff]  }
  0x1f   : > { %v985_v26 = vld [vmem:[%s1117_s22 + $0x114] ss:$8 sps:$4 sm:$0xff]   ;;  %v988_v28 = vld [vmem:[%s1117_s22 + $0x110] ss:$8 sps:$4 sm:$0xff]   ;;  %v991_v30 = vld [vmem:[%s1117_s22 + $0x104] ss:$8 sps:$4 sm:$0xff]  }
  0x20   : > { %644 = vmatpush1.bf16.msra.mxu0 %v963_v11  ;;  %v993_v31 = vld [vmem:[%s1117_s22] ss:$8 sps:$4 sm:$0xff]   ;;  %v995_v33 = vld [vmem:[%s1117_s22 + $0xf4] ss:$8 sps:$4 sm:$0xff]   ;;  %v999_v35 = vld [vmem:[%s1117_s22 + $0xf0] ss:$8 sps:$4 sm:$0xff]  }
  0x21   : > { %685 = vmatpush1.bf16.msra.mxu1 %v964_v12  ;;  %645 = vmatprep.subr.bf16.mxu0 %v965_v13  ;;  %v994_v32 = vld [vmem:[%s1117_s22 + $0x100] ss:$8 sps:$4 sm:$0xff]   ;;  %v997_v34 = vld [vmem:[%s1117_s22 + $0x1f4] ss:$8 sps:$4 sm:$0xff]   ;;  %v1000_v36 = vld [vmem:[%s1117_s22 + $0x1f0] ss:$8 sps:$4 sm:$0xff]  }
  0x22   : > { %686 = vmatprep.subr.bf16.mxu1 %v967_v14  ;;  %v1001_v37 = vld [vmem:[%s1117_s22 + $0xe4] ss:$8 sps:$4 sm:$0xff]   ;;  %v1005_v39 = vld [vmem:[%s1117_s22 + $0xe0] ss:$8 sps:$4 sm:$0xff]   ;;  %v1007_v41 = vld [vmem:[%s1117_s22 + $0xd4] ss:$8 sps:$4 sm:$0xff]  }
  0x23   : > { %v1003_v38 = vld [vmem:[%s1117_s22 + $0x1e4] ss:$8 sps:$4 sm:$0xff]   ;;  %v1006_v40 = vld [vmem:[%s1117_s22 + $0x1e0] ss:$8 sps:$4 sm:$0xff]   ;;  %v1009_v42 = vld [vmem:[%s1117_s22 + $0x1d4] ss:$8 sps:$4 sm:$0xff]  }
  0x24   : > { %646 = vmatpush1.bf16.msra.mxu0 %v969_v15  ;;  %v1011_v43 = vld [vmem:[%s1117_s22 + $0xd0] ss:$8 sps:$4 sm:$0xff]   ;;  %v1013_v45 = vld [vmem:[%s1117_s22 + $0xc4] ss:$8 sps:$4 sm:$0xff]   ;;  %v1017_v50 = vld [vmem:[%s1117_s22 + $0xc0] ss:$8 sps:$4 sm:$0xff]  }
  0x25   : > { %687 = vmatpush1.bf16.msra.mxu1 %v970_v16  ;;  %647 = vmatprep.subr.bf16.mxu0 %v971_v17  ;;  %v1012_v44 = vld [vmem:[%s1117_s22 + $0x1d0] ss:$8 sps:$4 sm:$0xff]   ;;  %v1015_v46 = vld [vmem:[%s1117_s22 + $0x1c4] ss:$8 sps:$4 sm:$0xff]   ;;  %v1018_v51 = vld [vmem:[%s1117_s22 + $0x1c0] ss:$8 sps:$4 sm:$0xff]  }
  0x26   : > { %688 = vmatprep.subr.bf16.mxu1 %v973_v18  ;;  %v239_v47 = vld [vmem:[%s1112_s18] sm:$0xff]  ;;  %v240_v49 = vld [vmem:[%s1112_s18 + $0x8] sm:$0xff]  ;;  %v1019_v53 = vld [vmem:[%s1117_s22 + $0xb4] ss:$8 sps:$4 sm:$0xff]   ;;  %p916_p7 = scmp.ne.s32.totalorder %s1061_s9, 2 }
  0x27   : > { %v849_v48 = vcombine.high %v239_v47, %v239_v47  ;;  %v851_v52 = vcombine.high %v240_v49, %v240_v49  ;;  %v1021_v54 = vld [vmem:[%s1117_s22 + $0x1b4] ss:$8 sps:$4 sm:$0xff]   ;;  %v1023_v55 = vld [vmem:[%s1117_s22 + $0xb0] ss:$8 sps:$4 sm:$0xff]   ;;  %v1025_v57 = vld [vmem:[%s1117_s22 + $0xa4] ss:$8 sps:$4 sm:$0xff]   ;;  %v848_v5 = vcombine.low %v239_v47, %v239_v47  ;;  %v850_v6 = vcombine.low %v240_v49, %v240_v49 }
  0x28   : > { %648 = vmatpush1.bf16.msra.mxu0 %v975_v19  ;;  %v1024_v56 = vld [vmem:[%s1117_s22 + $0x1b0] ss:$8 sps:$4 sm:$0xff]   ;;  %v1027_v58 = vld [vmem:[%s1117_s22 + $0x1a4] ss:$8 sps:$4 sm:$0xff]   ;;  %v1029_v59 = vld [vmem:[%s1117_s22 + $0xa0] ss:$8 sps:$4 sm:$0xff]  }
  0x29   : > { %689 = vmatpush1.bf16.msra.mxu1 %v976_v20  ;;  %649 = vmatprep.subr.bf16.mxu0 %v977_v21  ;;  %v1030_v60 = vld [vmem:[%s1117_s22 + $0x1a0] ss:$8 sps:$4 sm:$0xff]   ;;  %v1031_v61 = vld [vmem:[%s1117_s22 + $0x94] ss:$8 sps:$4 sm:$0xff]   ;;  %v1035_v63 = vld [vmem:[%s1117_s22 + $0x90] ss:$8 sps:$4 sm:$0xff]  }
  0x2a   : > { %690 = vmatprep.subr.bf16.mxu1 %v979_v22  ;;  %671 = vmatprep.mubr.bf16.mxu0 %v849_v48  ;;  %v1033_v62 = vld [vmem:[%s1117_s22 + $0x194] ss:$8 sps:$4 sm:$0xff]   ;;  %v1036_v0 = vld [vmem:[%s1117_s22 + $0x190] ss:$8 sps:$4 sm:$0xff]   ;;  %v1037_v1 = vld [vmem:[%s1117_s22 + $0x84] ss:$8 sps:$4 sm:$0xff]  }
  0x2b   : > { %712 = vmatprep.mubr.bf16.mxu1 %v851_v52  ;;  %v1039_v2 = vld [vmem:[%s1117_s22 + $0x184] ss:$8 sps:$4 sm:$0xff]   ;;  %v1041_v3 = vld [vmem:[%s1117_s22 + $0x80] ss:$8 sps:$4 sm:$0xff]  }
  0x2c   : > { %650 = vmatpush1.bf16.msra.mxu0 %v981_v23  ;;  %v1042_v4 = vld [vmem:[%s1117_s22 + $0x180] ss:$8 sps:$4 sm:$0xff]  }
  0x2d   : > { %691 = vmatpush1.bf16.msra.mxu1 %v982_v24  ;;  %651 = vmatprep.subr.bf16.mxu0 %v983_v25  ;;  %v237_v8 = vld [vmem:[#allocation2] sm:$0xff]  ;;  %v238_v12 = vld [vmem:[#allocation2 + $0x8] sm:$0xff] }
  0x2e   : > { %692 = vmatprep.subr.bf16.mxu1 %v985_v26 }
  0x30   : > { %652 = vmatpush1.bf16.msra.mxu0 %v987_v27 }
  0x31   : > { %693 = vmatpush1.bf16.msra.mxu1 %v988_v28  ;;  %653 = vmatprep.subr.bf16.mxu0 %v989_v29 }
  0x32   : > { %694 = vmatprep.subr.bf16.mxu1 %v991_v30 }
  0x34   : > { %654 = vmatpush1.bf16.msra.mxu0 %v993_v31 }
  0x35   : > { %695 = vmatpush1.bf16.msra.mxu1 %v994_v32  ;;  %655 = vmatprep.subr.bf16.mxu0 %v995_v33 }
  0x36   : > { %696 = vmatprep.subr.bf16.mxu1 %v997_v34 }
  0x38   : > { %656 = vmatpush2.bf16.msra.mxu0 %v999_v35 }
  0x39   : > { %697 = vmatpush2.bf16.msra.mxu1 %v1000_v36  ;;  %657 = vmatprep.subr.bf16.mxu0 %v1001_v37 }
  0x3a   : > { %698 = vmatprep.subr.bf16.mxu1 %v1003_v38 }
  0x3c   : > { %658 = vmatpush2.bf16.msra.mxu0 %v1005_v39 }
  0x3d   : > { %699 = vmatpush2.bf16.msra.mxu1 %v1006_v40  ;;  %659 = vmatprep.subr.bf16.mxu0 %v1007_v41 }
  0x3e   : > { %700 = vmatprep.subr.bf16.mxu1 %v1009_v42 }
  0x40   : > { %660 = vmatpush2.bf16.msra.mxu0 %v1011_v43 }
  0x41   : > { %701 = vmatpush2.bf16.msra.mxu1 %v1012_v44  ;;  %661 = vmatprep.subr.bf16.mxu0 %v1013_v45 }
  0x42   : > { %702 = vmatprep.subr.bf16.mxu1 %v1015_v46 }
  0x44   : > { %662 = vmatpush2.bf16.msra.mxu0 %v1017_v50 }
  0x45   : > { %703 = vmatpush2.bf16.msra.mxu1 %v1018_v51  ;;  %663 = vmatprep.subr.bf16.mxu0 %v1019_v53 }
  0x46   : > { %704 = vmatprep.subr.bf16.mxu1 %v1021_v54 }
  0x48   : > { %664 = vmatpush2.bf16.msra.mxu0 %v1023_v55 }
  0x49   : > { %705 = vmatpush2.bf16.msra.mxu1 %v1024_v56  ;;  %665 = vmatprep.subr.bf16.mxu0 %v1025_v57 }
  0x4a   : > { %706 = vmatprep.subr.bf16.mxu1 %v1027_v58 }
  0x4c   : > { %666 = vmatpush2.bf16.msra.mxu0 %v1029_v59 }
  0x4d   : > { %707 = vmatpush2.bf16.msra.mxu1 %v1030_v60  ;;  %667 = vmatprep.subr.bf16.mxu0 %v1031_v61 }
  0x4e   : > { %708 = vmatprep.subr.bf16.mxu1 %v1033_v62 }
  0x50   : > { %668 = vmatpush2.bf16.msra.mxu0 %v1035_v63 }
  0x51   : > { %709 = vmatpush2.bf16.msra.mxu1 %v1036_v0  ;;  %669 = vmatprep.subr.bf16.mxu0 %v1037_v1 }
  0x52   : > { %710 = vmatprep.subr.bf16.mxu1 %v1039_v2 }
  0x54   : > { %670 = vmatpush2.bf16.msra.mxu0 %v1041_v3 }
  0x55   : > { %711 = vmatpush2.bf16.msra.mxu1 %v1042_v4 }
  0x57   : > { %672 = vmatmul.mubr.bf16.vlgmr.msra.gmra.mxu0 %v848_v5 }
  0x58   : > { %713 = vmatmul.mubr.bf16.vlgmr.msra.gmra.mxu1 %v850_v6 }
 0x117   : > { %v673_v7 = vpop.f32.mrf.mxu0 }
 0x118   : > { %v714_v9 = vpop.f32.mrf.mxu1 }
 0x119   : > { %v715_v10 = vadd.f32 %v714_v9, %v673_v7  ;;  %v675_v11 = vpop.f32.mrf.mxu0 }
 0x11a   : > { %v716_v13 = vpop.f32.mrf.mxu1 }
 0x11b   : > { %v721_v14 = vadd.f32 %v715_v10, %v237_v8  ;;  %v717_v15 = vadd.f32 %v716_v13, %v675_v11  ;;  %v677_v16 = vpop.f32.mrf.mxu0  ;;  %728 = sbr.rel (%p916_p7) target bundleno = 296 (0x128), region = 36 }
 0x11c   : > { %v718_v17 = vpop.f32.mrf.mxu1 }
 0x11d   : > { %723 = vst [vmem:[#allocation2] sm:$0xff] %v721_v14  ;;  %v722_v18 = vadd.f32 %v717_v15, %v238_v12  ;;  %v678_v19 = vpop.f32.mrf.mxu0 }
 0x11e   : > { %v719_v20 = vpop.f32.mrf.mxu1 }
 0x11f   : > { %724 = vst [vmem:[#allocation2 + $0x8] sm:$0xff] %v722_v18 }
 0x124   : > { %v729_v21 = vld [vmem:[#allocation2] sm:$0xff] }
 0x125   : > { %731 = vst [vmem:[%s1204_s2] sm:$0xff] %v729_v21 }
 0x126   : > { %v730_v22 = vld [vmem:[#allocation2 + $0x8] sm:$0xff] }
 0x127   : > { %732 = vst [vmem:[%s1204_s2 + $0x8] sm:$0xff] %v730_v22 }
 0x128 PF: > { %s12_s11 = sadd.s32 1, %s1069_s11   ;;  %s1205_s9 = smov %s1065_s10 }
 0x129   : > { %p9_p8 = scmp.ge.s32.totalorder %s12_s11, 5   ;;  %s1206_s10 = smov %s1208_s12 }
 0x12b   :  { %11 = sbr.rel (!%p9_p8) target bundleno = 2 (0x2), region = 69 }

// kernel: resnet34_forward.161
= control target key start
LH: loop header
LB: loop body
LE: loop exit
PB: predicated region body
PF: predicated region fallthrough
CT: control target
= control target key end

     0   :  { %s1087_s9 = smov 0   ;;  %s1089_s10 = smov 0   ;;  %s1202_s0 = inlined_call_operand.vmem [shape: bf16[8,2560], index: 0, kind: input, shape index: {}]   ;;  %s1203_s1 = inlined_call_operand.vmem [shape: bf16[2560,256], index: 1, kind: input, shape index: {}]   ;;  %s1204_s2 = inlined_call_operand.vmem [shape: f32[8,256], index: 2, kind: output, shape index: {}]  }
   0x1   :  { %s1091_s11 = smov 0  }
   0x2 LB: > { %s24_s12 = sadd.s32 1, %s1065_s10  ;;  %p841_p0 = scmp.ge.s32.totalorder %s1069_s11, 1  ;;  %s1069_s11 = sphi %s1091_s11, %s12_s11   ;;  %s1065_s10 = sphi %s1089_s10, %s1206_s10   ;;  %s1061_s9 = sphi %s1087_s9, %s1205_s9  }
   0x3   : > { %p25_p1 = scmp.ge.s32.totalorder %s24_s12, 5  ;;  %p159_p2 = scmp.lt.s32.totalorder %s1069_s11, 6 }
   0x5   : > { %s1208_s12 = smov (%p25_p1, %s24_s12), 0  ;;  %p160_p3 = pnand %p841_p0, %p159_p2 }
   0x6   : > { %s842_s13 = sshll.u32 (!%p160_p3), %s1061_s9, 2  ;;  %s844_s14 = sshll.u32 (!%p160_p3), %s1061_s9, 6 }
   0x7   : > { %163 = sbr.rel (%p160_p3) target bundleno = 296 (0x128), region = 28  ;;  %p202_p4 = scmp.lt.s32.totalorder (!%p160_p3), %s842_s13, 19 }
   0x8   : > { %p211_p5 = scmp.lt.s32.totalorder (!%p160_p3), %s844_s14, 319  ;;  %p847_p6 = scmp.ne.s32.totalorder (!%p160_p3), %s1061_s9, 0 }
   0xc   : > { %s1210_s13 = smov (!%p202_p4, %s842_s13), 19  ;;  %s1212_s14 = smov (!%p211_p5, %s844_s14), 319 }
   0xd   : > { %s843_s15 = sshll.u32 %s1210_s13, 2  ;;  %s921_s19 = sshll.u32 %s1212_s14, 3 }
   0xe   : > { %s1112_s18 = scalar_lea.vmem %s1202_s0, %s843_s15  ;;  %s1117_s22 = scalar_lea.vmem %s1203_s1, %s921_s19 }
   0xf   : > { %234 = sbr.rel (%p847_p6) target bundleno = 22 (0x16), region = 32 }
  0x14   : > { %v1071_v0 = vmov 0.0  }
  0x15   : > { %235 = vst [vmem:[#allocation2] sm:$0xff] %v1071_v0  ;;  %236 = vst [vmem:[#allocation2 + $0x8] sm:$0xff] %v1071_v0 }
  0x16 PF: > { %v947_v1 = vld [vmem:[%s1117_s22 + $0x74] ss:$8 sps:$4 sm:$0xff]   ;;  %v951_v3 = vld [vmem:[%s1117_s22 + $0x70] ss:$8 sps:$4 sm:$0xff]   ;;  %v953_v5 = vld [vmem:[%s1117_s22 + $0x64] ss:$8 sps:$4 sm:$0xff]  }
  0x17   : > { %v949_v2 = vld [vmem:[%s1117_s22 + $0x174] ss:$8 sps:$4 sm:$0xff]   ;;  %639 = vmatprep.subr.bf16.mxu0 %v947_v1  ;;  %v952_v4 = vld [vmem:[%s1117_s22 + $0x170] ss:$8 sps:$4 sm:$0xff]   ;;  %v955_v6 = vld [vmem:[%s1117_s22 + $0x164] ss:$8 sps:$4 sm:$0xff]  }
  0x18   : > { %680 = vmatprep.subr.bf16.mxu1 %v949_v2  ;;  %640 = vmatpush1.bf16.msra.mxu0 %v951_v3  ;;  %v957_v7 = vld [vmem:[%s1117_s22 + $0x60] ss:$8 sps:$4 sm:$0xff]   ;;  %v959_v9 = vld [vmem:[%s1117_s22 + $0x54] ss:$8 sps:$4 sm:$0xff]   ;;  %v963_v11 = vld [vmem:[%s1117_s22 + $0x50] ss:$8 sps:$4 sm:$0xff]  }
  0x19   : > { %681 = vmatpush1.bf16.msra.mxu1 %v952_v4  ;;  %641 = vmatprep.subr.bf16.mxu0 %v953_v5  ;;  %v958_v8 = vld [vmem:[%s1117_s22 + $0x160] ss:$8 sps:$4 sm:$0xff]   ;;  %v961_v10 = vld [vmem:[%s1117_s22 + $0x154] ss:$8 sps:$4 sm:$0xff]   ;;  %v964_v12 = vld [vmem:[%s1117_s22 + $0x150] ss:$8 sps:$4 sm:$0xff]  }
  0x1a   : > { %682 = vmatprep.subr.bf16.mxu1 %v955_v6  ;;  %v965_v13 = vld [vmem:[%s1117_s22 + $0x44] ss:$8 sps:$4 sm:$0xff]   ;;  %v969_v15 = vld [vmem:[%s1117_s22 + $0x40] ss:$8 sps:$4 sm:$0xff]   ;;  %v971_v17 = vld [vmem:[%s1117_s22 + $0x34] ss:$8 sps:$4 sm:$0xff]  }
  0x1b   : > { %v967_v14 = vld [vmem:[%s1117_s22 + $0x144] ss:$8 sps:$4 sm:$0xff]   ;;  %v970_v16 = vld [vmem:[%s1117_s22 + $0x140] ss:$8 sps:$4 sm:$0xff]   ;;  %v973_v18 = vld [vmem:[%s1117_s22 + $0x134] ss:$8 sps:$4 sm:$0xff]  }
  0x1c   : > { %642 = vmatpush1.bf16.msra.mxu0 %v957_v7  ;;  %v975_v19 = vld [vmem:[%s1117_s22 + $0x30] ss:$8 sps:$4 sm:$0xff]   ;;  %v977_v21 = vld [vmem:[%s1117_s22 + $0x24] ss:$8 sps:$4 sm:$0xff]   ;;  %v981_v23 = vld [vmem:[%s1117_s22 + $0x20] ss:$8 sps:$4 sm:$0xff]  }
  0x1d   : > { %683 = vmatpush1.bf16.msra.mxu1 %v958_v8  ;;  %643 = vmatprep.subr.bf16.mxu0 %v959_v9  ;;  %v976_v20 = vld [vmem:[%s1117_s22 + $0x130] ss:$8 sps:$4 sm:$0xff]   ;;  %v979_v22 = vld [vmem:[%s1117_s22 + $0x124] ss:$8 sps:$4 sm:$0xff]   ;;  %v982_v24 = vld [vmem:[%s1117_s22 + $0x120] ss:$8 sps:$4 sm:$0xff]  }
  0x1e   : > { %684 = vmatprep.subr.bf16.mxu1 %v961_v10  ;;  %v983_v25 = vld [vmem:[%s1117_s22 + $0x14] ss:$8 sps:$4 sm:$0xff]   ;;  %v987_v27 = vld [vmem:[%s1117_s22 + $0x10] ss:$8 sps:$4 sm:$0xff]   ;;  %v989_v29 = vld [vmem:[%s1117_s22 + $0x4] ss:$8 sps:$4 sm:$0xff]  }
  0x1f   : > { %v985_v26 = vld [vmem:[%s1117_s22 + $0x114] ss:$8 sps:$4 sm:$0xff]   ;;  %v988_v28 = vld [vmem:[%s1117_s22 + $0x110] ss:$8 sps:$4 sm:$0xff]   ;;  %v991_v30 = vld [vmem:[%s1117_s22 + $0x104] ss:$8 sps:$4 sm:$0xff]  }
  0x20   : > { %644 = vmatpush1.bf16.msra.mxu0 %v963_v11  ;;  %v993_v31 = vld [vmem:[%s1117_s22] ss:$8 sps:$4 sm:$0xff]   ;;  %v995_v33 = vld [vmem:[%s1117_s22 + $0xf4] ss:$8 sps:$4 sm:$0xff]   ;;  %v999_v35 = vld [vmem:[%s1117_s22 + $0xf0] ss:$8 sps:$4 sm:$0xff]  }
  0x21   : > { %685 = vmatpush1.bf16.msra.mxu1 %v964_v12  ;;  %645 = vmatprep.subr.bf16.mxu0 %v965_v13  ;;  %v994_v32 = vld [vmem:[%s1117_s22 + $0x100] ss:$8 sps:$4 sm:$0xff]   ;;  %v997_v34 = vld [vmem:[%s1117_s22 + $0x1f4] ss:$8 sps:$4 sm:$0xff]   ;;  %v1000_v36 = vld [vmem:[%s1117_s22 + $0x1f0] ss:$8 sps:$4 sm:$0xff]  }
  0x22   : > { %686 = vmatprep.subr.bf16.mxu1 %v967_v14  ;;  %v1001_v37 = vld [vmem:[%s1117_s22 + $0xe4] ss:$8 sps:$4 sm:$0xff]   ;;  %v1005_v39 = vld [vmem:[%s1117_s22 + $0xe0] ss:$8 sps:$4 sm:$0xff]   ;;  %v1007_v41 = vld [vmem:[%s1117_s22 + $0xd4] ss:$8 sps:$4 sm:$0xff]  }
  0x23   : > { %v1003_v38 = vld [vmem:[%s1117_s22 + $0x1e4] ss:$8 sps:$4 sm:$0xff]   ;;  %v1006_v40 = vld [vmem:[%s1117_s22 + $0x1e0] ss:$8 sps:$4 sm:$0xff]   ;;  %v1009_v42 = vld [vmem:[%s1117_s22 + $0x1d4] ss:$8 sps:$4 sm:$0xff]  }
  0x24   : > { %646 = vmatpush1.bf16.msra.mxu0 %v969_v15  ;;  %v1011_v43 = vld [vmem:[%s1117_s22 + $0xd0] ss:$8 sps:$4 sm:$0xff]   ;;  %v1013_v45 = vld [vmem:[%s1117_s22 + $0xc4] ss:$8 sps:$4 sm:$0xff]   ;;  %v1017_v50 = vld [vmem:[%s1117_s22 + $0xc0] ss:$8 sps:$4 sm:$0xff]  }
  0x25   : > { %687 = vmatpush1.bf16.msra.mxu1 %v970_v16  ;;  %647 = vmatprep.subr.bf16.mxu0 %v971_v17  ;;  %v1012_v44 = vld [vmem:[%s1117_s22 + $0x1d0] ss:$8 sps:$4 sm:$0xff]   ;;  %v1015_v46 = vld [vmem:[%s1117_s22 + $0x1c4] ss:$8 sps:$4 sm:$0xff]   ;;  %v1018_v51 = vld [vmem:[%s1117_s22 + $0x1c0] ss:$8 sps:$4 sm:$0xff]  }
  0x26   : > { %688 = vmatprep.subr.bf16.mxu1 %v973_v18  ;;  %v239_v47 = vld [vmem:[%s1112_s18] sm:$0xff]  ;;  %v240_v49 = vld [vmem:[%s1112_s18 + $0x8] sm:$0xff]  ;;  %v1019_v53 = vld [vmem:[%s1117_s22 + $0xb4] ss:$8 sps:$4 sm:$0xff]   ;;  %p916_p7 = scmp.ne.s32.totalorder %s1061_s9, 4 }
  0x27   : > { %v849_v48 = vcombine.high %v239_v47, %v239_v47  ;;  %v851_v52 = vcombine.high %v240_v49, %v240_v49  ;;  %v1021_v54 = vld [vmem:[%s1117_s22 + $0x1b4] ss:$8 sps:$4 sm:$0xff]   ;;  %v1023_v55 = vld [vmem:[%s1117_s22 + $0xb0] ss:$8 sps:$4 sm:$0xff]   ;;  %v1025_v57 = vld [vmem:[%s1117_s22 + $0xa4] ss:$8 sps:$4 sm:$0xff]   ;;  %v848_v5 = vcombine.low %v239_v47, %v239_v47  ;;  %v850_v6 = vcombine.low %v240_v49, %v240_v49 }
  0x28   : > { %648 = vmatpush1.bf16.msra.mxu0 %v975_v19  ;;  %v1024_v56 = vld [vmem:[%s1117_s22 + $0x1b0] ss:$8 sps:$4 sm:$0xff]   ;;  %v1027_v58 = vld [vmem:[%s1117_s22 + $0x1a4] ss:$8 sps:$4 sm:$0xff]   ;;  %v1029_v59 = vld [vmem:[%s1117_s22 + $0xa0] ss:$8 sps:$4 sm:$0xff]  }
  0x29   : > { %689 = vmatpush1.bf16.msra.mxu1 %v976_v20  ;;  %649 = vmatprep.subr.bf16.mxu0 %v977_v21  ;;  %v1030_v60 = vld [vmem:[%s1117_s22 + $0x1a0] ss:$8 sps:$4 sm:$0xff]   ;;  %v1031_v61 = vld [vmem:[%s1117_s22 + $0x94] ss:$8 sps:$4 sm:$0xff]   ;;  %v1035_v63 = vld [vmem:[%s1117_s22 + $0x90] ss:$8 sps:$4 sm:$0xff]  }
  0x2a   : > { %690 = vmatprep.subr.bf16.mxu1 %v979_v22  ;;  %671 = vmatprep.mubr.bf16.mxu0 %v849_v48  ;;  %v1033_v62 = vld [vmem:[%s1117_s22 + $0x194] ss:$8 sps:$4 sm:$0xff]   ;;  %v1036_v0 = vld [vmem:[%s1117_s22 + $0x190] ss:$8 sps:$4 sm:$0xff]   ;;  %v1037_v1 = vld [vmem:[%s1117_s22 + $0x84] ss:$8 sps:$4 sm:$0xff]  }
  0x2b   : > { %712 = vmatprep.mubr.bf16.mxu1 %v851_v52  ;;  %v1039_v2 = vld [vmem:[%s1117_s22 + $0x184] ss:$8 sps:$4 sm:$0xff]   ;;  %v1041_v3 = vld [vmem:[%s1117_s22 + $0x80] ss:$8 sps:$4 sm:$0xff]  }
  0x2c   : > { %650 = vmatpush1.bf16.msra.mxu0 %v981_v23  ;;  %v1042_v4 = vld [vmem:[%s1117_s22 + $0x180] ss:$8 sps:$4 sm:$0xff]  }
  0x2d   : > { %691 = vmatpush1.bf16.msra.mxu1 %v982_v24  ;;  %651 = vmatprep.subr.bf16.mxu0 %v983_v25  ;;  %v237_v8 = vld [vmem:[#allocation2] sm:$0xff]  ;;  %v238_v12 = vld [vmem:[#allocation2 + $0x8] sm:$0xff] }
  0x2e   : > { %692 = vmatprep.subr.bf16.mxu1 %v985_v26 }
  0x30   : > { %652 = vmatpush1.bf16.msra.mxu0 %v987_v27 }
  0x31   : > { %693 = vmatpush1.bf16.msra.mxu1 %v988_v28  ;;  %653 = vmatprep.subr.bf16.mxu0 %v989_v29 }
  0x32   : > { %694 = vmatprep.subr.bf16.mxu1 %v991_v30 }
  0x34   : > { %654 = vmatpush1.bf16.msra.mxu0 %v993_v31 }
  0x35   : > { %695 = vmatpush1.bf16.msra.mxu1 %v994_v32  ;;  %655 = vmatprep.subr.bf16.mxu0 %v995_v33 }
  0x36   : > { %696 = vmatprep.subr.bf16.mxu1 %v997_v34 }
  0x38   : > { %656 = vmatpush2.bf16.msra.mxu0 %v999_v35 }
  0x39   : > { %697 = vmatpush2.bf16.msra.mxu1 %v1000_v36  ;;  %657 = vmatprep.subr.bf16.mxu0 %v1001_v37 }
  0x3a   : > { %698 = vmatprep.subr.bf16.mxu1 %v1003_v38 }
  0x3c   : > { %658 = vmatpush2.bf16.msra.mxu0 %v1005_v39 }
  0x3d   : > { %699 = vmatpush2.bf16.msra.mxu1 %v1006_v40  ;;  %659 = vmatprep.subr.bf16.mxu0 %v1007_v41 }
  0x3e   : > { %700 = vmatprep.subr.bf16.mxu1 %v1009_v42 }
  0x40   : > { %660 = vmatpush2.bf16.msra.mxu0 %v1011_v43 }
  0x41   : > { %701 = vmatpush2.bf16.msra.mxu1 %v1012_v44  ;;  %661 = vmatprep.subr.bf16.mxu0 %v1013_v45 }
  0x42   : > { %702 = vmatprep.subr.bf16.mxu1 %v1015_v46 }
  0x44   : > { %662 = vmatpush2.bf16.msra.mxu0 %v1017_v50 }
  0x45   : > { %703 = vmatpush2.bf16.msra.mxu1 %v1018_v51  ;;  %663 = vmatprep.subr.bf16.mxu0 %v1019_v53 }
  0x46   : > { %704 = vmatprep.subr.bf16.mxu1 %v1021_v54 }
  0x48   : > { %664 = vmatpush2.bf16.msra.mxu0 %v1023_v55 }
  0x49   : > { %705 = vmatpush2.bf16.msra.mxu1 %v1024_v56  ;;  %665 = vmatprep.subr.bf16.mxu0 %v1025_v57 }
  0x4a   : > { %706 = vmatprep.subr.bf16.mxu1 %v1027_v58 }
  0x4c   : > { %666 = vmatpush2.bf16.msra.mxu0 %v1029_v59 }
  0x4d   : > { %707 = vmatpush2.bf16.msra.mxu1 %v1030_v60  ;;  %667 = vmatprep.subr.bf16.mxu0 %v1031_v61 }
  0x4e   : > { %708 = vmatprep.subr.bf16.mxu1 %v1033_v62 }
  0x50   : > { %668 = vmatpush2.bf16.msra.mxu0 %v1035_v63 }
  0x51   : > { %709 = vmatpush2.bf16.msra.mxu1 %v1036_v0  ;;  %669 = vmatprep.subr.bf16.mxu0 %v1037_v1 }
  0x52   : > { %710 = vmatprep.subr.bf16.mxu1 %v1039_v2 }
  0x54   : > { %670 = vmatpush2.bf16.msra.mxu0 %v1041_v3 }
  0x55   : > { %711 = vmatpush2.bf16.msra.mxu1 %v1042_v4 }
  0x57   : > { %672 = vmatmul.mubr.bf16.vlgmr.msra.gmra.mxu0 %v848_v5 }
  0x58   : > { %713 = vmatmul.mubr.bf16.vlgmr.msra.gmra.mxu1 %v850_v6 }
 0x117   : > { %v673_v7 = vpop.f32.mrf.mxu0 }
 0x118   : > { %v714_v9 = vpop.f32.mrf.mxu1 }
 0x119   : > { %v715_v10 = vadd.f32 %v714_v9, %v673_v7  ;;  %v675_v11 = vpop.f32.mrf.mxu0 }
 0x11a   : > { %v716_v13 = vpop.f32.mrf.mxu1 }
 0x11b   : > { %v721_v14 = vadd.f32 %v715_v10, %v237_v8  ;;  %v717_v15 = vadd.f32 %v716_v13, %v675_v11  ;;  %v677_v16 = vpop.f32.mrf.mxu0  ;;  %728 = sbr.rel (%p916_p7) target bundleno = 296 (0x128), region = 36 }
 0x11c   : > { %v718_v17 = vpop.f32.mrf.mxu1 }
 0x11d   : > { %723 = vst [vmem:[#allocation2] sm:$0xff] %v721_v14  ;;  %v722_v18 = vadd.f32 %v717_v15, %v238_v12  ;;  %v678_v19 = vpop.f32.mrf.mxu0 }
 0x11e   : > { %v719_v20 = vpop.f32.mrf.mxu1 }
 0x11f   : > { %724 = vst [vmem:[#allocation2 + $0x8] sm:$0xff] %v722_v18 }
 0x124   : > { %v729_v21 = vld [vmem:[#allocation2] sm:$0xff] }
 0x125   : > { %731 = vst [vmem:[%s1204_s2] sm:$0xff] %v729_v21 }
 0x126   : > { %v730_v22 = vld [vmem:[#allocation2 + $0x8] sm:$0xff] }
 0x127   : > { %732 = vst [vmem:[%s1204_s2 + $0x8] sm:$0xff] %v730_v22 }
 0x128 PF: > { %s12_s11 = sadd.s32 1, %s1069_s11   ;;  %s1205_s9 = smov %s1065_s10 }
 0x129   : > { %p9_p8 = scmp.ge.s32.totalorder %s12_s11, 7   ;;  %s1206_s10 = smov %s1208_s12 }
 0x12b   :  { %11 = sbr.rel (!%p9_p8) target bundleno = 2 (0x2), region = 69 }

// kernel: resnet34_forward.166
= control target key start
LH: loop header
LB: loop body
LE: loop exit
PB: predicated region body
PF: predicated region fallthrough
CT: control target
= control target key end

     0   :  { %v21_v0 = vlaneseq  ;;  %s108_s1 = inlined_call_operand.vmem [shape: f32[1,256], index: 1, kind: input, shape index: {}]   ;;  %s109_s2 = inlined_call_operand.vmem [shape: f32[1,256], index: 2, kind: input, shape index: {}]   ;;  %s110_s0 = inlined_call_operand.vmem [shape: f32[8,256], index: 0, kind: input, shape index: {}]   ;;  %s111_s3 = inlined_call_operand.vmem [shape: f32[8,256], index: 3, kind: input, shape index: {}]   ;;  %s112_s4 = inlined_call_operand.vmem [shape: f32[8,256], index: 4, kind: output, shape index: {}]  }
   0x1   :  { %v19_v2 = vld [vmem:[%s108_s1] sm:$0x3]  ;;  %v18_v7 = vld [vmem:[%s110_s0 + $0x8] sm:$0xff] }
   0x2   :  { %v22_v1 = vshrl.u32 %v21_v0, 7  ;;  %v33_v3 = vld [vmem:[%s109_s2] sm:$0x3]  ;;  %v48_v15 = vld [vmem:[%s111_s3 + $0x8] sm:$0xff] }
   0x3   :  { %v17_v6 = vld [vmem:[%s110_s0] sm:$0xff] }
   0x4   :  { %v23_v4 = vsub.s32 0, %v22_v1  ;;  %v27_v5 = vsub.s32 1, %v22_v1  ;;  %v47_v14 = vld [vmem:[%s111_s3] sm:$0xff] }
   0x6   :  { %v24_v8 = vrot.slane %v19_v2, %v23_v4  ;;  %v38_v9 = vrot.slane %v33_v3, %v23_v4  ;;  %v28_v10 = vrot.slane %v19_v2, %v27_v5  ;;  %v42_v11 = vrot.slane %v33_v3, %v27_v5 }
   0x8   :  { %v31_v12 = vmul.f32 %v24_v8, %v17_v6  ;;  %v32_v13 = vmul.f32 %v28_v10, %v18_v7 }
   0xa   :  { %v45_v16 = vadd.f32 %v38_v9, %v31_v12  ;;  %v46_v17 = vadd.f32 %v42_v11, %v32_v13 }
   0xc   :  { %v49_v18 = vadd.f32 %v47_v14, %v45_v16  ;;  %v50_v19 = vadd.f32 %v48_v15, %v46_v17 }
   0xe   :  { %v51_v20 = vmax.f32 %v49_v18, 0.0  ;;  %v52_v21 = vmax.f32 %v50_v19, 0.0 }
  0x10   :  { %53 = vst [vmem:[%s112_s4] sm:$0xff] %v51_v20  ;;  %54 = vst [vmem:[%s112_s4 + $0x8] sm:$0xff] %v52_v21 }

// kernel: resnet34_forward.197
= control target key start
LH: loop header
LB: loop body
LE: loop exit
PB: predicated region body
PF: predicated region fallthrough
CT: control target
= control target key end

     0   :  { %s1438_s9 = smov 0   ;;  %s1440_s10 = smov 0   ;;  %s1738_s0 = inlined_call_operand.vmem [shape: bf16[8,2560], index: 0, kind: input, shape index: {}]   ;;  %s1739_s1 = inlined_call_operand.vmem [shape: bf16[2560,512], index: 1, kind: input, shape index: {}]   ;;  %s1740_s2 = inlined_call_operand.vmem [shape: f32[8,512], index: 2, kind: output, shape index: {}]  }
   0x1   :  { %s1442_s11 = smov 0   ;;  %s1444_s12 = smov 0  }
   0x2   :  { %s1446_s13 = smov 0   ;;  %s1448_s14 = smov 0  }
   0x3   :  { %s1450_s15 = smov 0  }
   0x4 LB: > { %s24_s16 = sadd.s32 1, %s1412_s13  ;;  %s27_s17 = sadd.s32 1, %s1416_s14  ;;  %s1420_s15 = sphi %s1450_s15, %s12_s15   ;;  %s1416_s14 = sphi %s1448_s14, %s1746_s14   ;;  %s1412_s13 = sphi %s1446_s13, %s1745_s13   ;;  %s1408_s12 = sphi %s1444_s12, %s1744_s12   ;;  %s1404_s11 = sphi %s1442_s11, %s1743_s11   ;;  %s1400_s10 = sphi %s1440_s10, %s1742_s10   ;;  %s1396_s9 = sphi %s1438_s9, %s1741_s9  }
   0x5   : > { %p25_p0 = scmp.ge.s32.totalorder %s24_s16, 5  ;;  %p75_p1 = scmp.ne.s32.totalorder %s1400_s10, %s1396_s9 }
   0x6   : > { %p76_p2 = scmp.eq.s32.totalorder %s1420_s15, 0  ;;  %s68_s21 = sadd.s32 1, %s1400_s10 }
   0x7   : > { %s1748_s16 = smov (%p25_p0, %s24_s16), 0  ;;  %s1750_s17 = smov (!%p25_p0, %s27_s17), %s1416_s14 }
   0x8   : > { %p77_p3 = por %p76_p2, %p75_p1  ;;  %p29_p4 = scmp.ge.s32.totalorder %s1750_s17, 2 }
   0x9   : > { %s63_s18 = ssub.s32 %s1412_s13, %s1748_s16  ;;  %p1124_p6 = scmp.ge.s32.totalorder %s1420_s15, 10 }
   0xa   : > { %s1752_s17 = smov (%p29_p4, %s1750_s17), 0 }
   0xb   : > { %s64_s19 = ssub.s32 %s1416_s14, %s1752_s17  ;;  %129 = sbr.rel (%p1124_p6) target bundleno = 55 (0x37), region = 16 }
   0xc   : > { %s65_s20 = sor.u32 %s64_s19, %s63_s18 }
   0xd   : > { %p66_p5 = scmp.eq.s32.totalorder %s65_s20, 0 }
   0xf   : > { %s1489_s22 = scalar_select %p66_p5, %s1400_s10, %s68_s21  }
  0x10   : > { %145 = sbr.rel (!%p77_p3) target bundleno = 55 (0x37), region = 24  ;;  %s147_s23 = sand.u32 (%p77_p3), 1, %s1400_s10  }
  0x11   : > { %s1127_s24 = sshll.u32 (%p77_p3), %s1416_s14, 1  ;;  %s1125_s25 = sshll.u32 (%p77_p3), %s147_s23, 9 }
  0x12   : > { %s1208_s26 = sshll.u32 (%p77_p3), %s1412_s13, 8  ;;  %s1503_s4 = scalar_lea.vmem (%p77_p3), [#allocation3], %s1125_s25 }
  0x13   : > { %s153_s27 = sadd.s32 (%p77_p3), %s1208_s26, %s1127_s24 }
  0x14   : > { %s1129_s28 = sshll.u32 (%p77_p3), %s153_s27, 2 }
  0x15   : > { %s1498_s3 = scalar_lea.vmem %s1739_s1, %s1129_s28 }
  0x16   : > { %v310_v0 = vld [vmem:[%s1498_s3] sm:$0xff]  ;;  %v312_v1 = vld [vmem:[%s1498_s3 + $0x10] sm:$0xff] }
  0x17   : > { %v314_v2 = vld [vmem:[%s1498_s3 + $0x20] sm:$0xff]  ;;  %311 = vst [vmem:[%s1503_s4] sm:$0xff] %v310_v0  ;;  %313 = vst [vmem:[%s1503_s4 + $0x8] sm:$0xff] %v312_v1  ;;  %v316_v3 = vld [vmem:[%s1498_s3 + $0x30] sm:$0xff] }
  0x18   : > { %315 = vst [vmem:[%s1503_s4 + $0x10] sm:$0xff] %v314_v2  ;;  %v318_v4 = vld [vmem:[%s1498_s3 + $0x40] sm:$0xff]  ;;  %v320_v5 = vld [vmem:[%s1498_s3 + $0x50] sm:$0xff]  ;;  %317 = vst [vmem:[%s1503_s4 + $0x18] sm:$0xff] %v316_v3 }
  0x19   : > { %319 = vst [vmem:[%s1503_s4 + $0x20] sm:$0xff] %v318_v4  ;;  %321 = vst [vmem:[%s1503_s4 + $0x28] sm:$0xff] %v320_v5  ;;  %v322_v6 = vld [vmem:[%s1498_s3 + $0x60] sm:$0xff]  ;;  %v324_v7 = vld [vmem:[%s1498_s3 + $0x70] sm:$0xff] }
  0x1a   : > { %v326_v8 = vld [vmem:[%s1498_s3 + $0x80] sm:$0xff]  ;;  %323 = vst [vmem:[%s1503_s4 + $0x30] sm:$0xff] %v322_v6  ;;  %325 = vst [vmem:[%s1503_s4 + $0x38] sm:$0xff] %v324_v7  ;;  %v328_v9 = vld [vmem:[%s1498_s3 + $0x90] sm:$0xff] }
  0x1b   : > { %327 = vst [vmem:[%s1503_s4 + $0x40] sm:$0xff] %v326_v8  ;;  %v330_v10 = vld [vmem:[%s1498_s3 + $0xa0] sm:$0xff]  ;;  %v332_v11 = vld [vmem:[%s1498_s3 + $0xb0] sm:$0xff]  ;;  %329 = vst [vmem:[%s1503_s4 + $0x48] sm:$0xff] %v328_v9 }
  0x1c   : > { %331 = vst [vmem:[%s1503_s4 + $0x50] sm:$0xff] %v330_v10  ;;  %333 = vst [vmem:[%s1503_s4 + $0x58] sm:$0xff] %v332_v11  ;;  %v334_v12 = vld [vmem:[%s1498_s3 + $0xc0] sm:$0xff]  ;;  %v336_v13 = vld [vmem:[%s1498_s3 + $0xd0] sm:$0xff] }
  0x1d   : > { %v338_v14 = vld [vmem:[%s1498_s3 + $0xe0] sm:$0xff]  ;;  %335 = vst [vmem:[%s1503_s4 + $0x60] sm:$0xff] %v334_v12  ;;  %337 = vst [vmem:[%s1503_s4 + $0x68] sm:$0xff] %v336_v13  ;;  %v340_v15 = vld [vmem:[%s1498_s3 + $0xf0] sm:$0xff] }
  0x1e   : > { %339 = vst [vmem:[%s1503_s4 + $0x70] sm:$0xff] %v338_v14  ;;  %v342_v16 = vld [vmem:[%s1498_s3 + $0x100] sm:$0xff]  ;;  %v344_v17 = vld [vmem:[%s1498_s3 + $0x110] sm:$0xff]  ;;  %341 = vst [vmem:[%s1503_s4 + $0x78] sm:$0xff] %v340_v15 }
  0x1f   : > { %343 = vst [vmem:[%s1503_s4 + $0x80] sm:$0xff] %v342_v16  ;;  %345 = vst [vmem:[%s1503_s4 + $0x88] sm:$0xff] %v344_v17  ;;  %v346_v18 = vld [vmem:[%s1498_s3 + $0x120] sm:$0xff]  ;;  %v348_v19 = vld [vmem:[%s1498_s3 + $0x130] sm:$0xff] }
  0x20   : > { %v350_v20 = vld [vmem:[%s1498_s3 + $0x140] sm:$0xff]  ;;  %347 = vst [vmem:[%s1503_s4 + $0x90] sm:$0xff] %v346_v18  ;;  %349 = vst [vmem:[%s1503_s4 + $0x98] sm:$0xff] %v348_v19  ;;  %v352_v21 = vld [vmem:[%s1498_s3 + $0x150] sm:$0xff] }
  0x21   : > { %351 = vst [vmem:[%s1503_s4 + $0xa0] sm:$0xff] %v350_v20  ;;  %v354_v22 = vld [vmem:[%s1498_s3 + $0x160] sm:$0xff]  ;;  %v356_v23 = vld [vmem:[%s1498_s3 + $0x170] sm:$0xff]  ;;  %353 = vst [vmem:[%s1503_s4 + $0xa8] sm:$0xff] %v352_v21 }
  0x22   : > { %355 = vst [vmem:[%s1503_s4 + $0xb0] sm:$0xff] %v354_v22  ;;  %357 = vst [vmem:[%s1503_s4 + $0xb8] sm:$0xff] %v356_v23  ;;  %v358_v24 = vld [vmem:[%s1498_s3 + $0x180] sm:$0xff]  ;;  %v360_v25 = vld [vmem:[%s1498_s3 + $0x190] sm:$0xff] }
  0x23   : > { %v362_v26 = vld [vmem:[%s1498_s3 + $0x1a0] sm:$0xff]  ;;  %359 = vst [vmem:[%s1503_s4 + $0xc0] sm:$0xff] %v358_v24  ;;  %361 = vst [vmem:[%s1503_s4 + $0xc8] sm:$0xff] %v360_v25  ;;  %v364_v27 = vld [vmem:[%s1498_s3 + $0x1b0] sm:$0xff] }
  0x24   : > { %363 = vst [vmem:[%s1503_s4 + $0xd0] sm:$0xff] %v362_v26  ;;  %v366_v28 = vld [vmem:[%s1498_s3 + $0x1c0] sm:$0xff]  ;;  %v368_v29 = vld [vmem:[%s1498_s3 + $0x1d0] sm:$0xff]  ;;  %365 = vst [vmem:[%s1503_s4 + $0xd8] sm:$0xff] %v364_v27 }
  0x25   : > { %367 = vst [vmem:[%s1503_s4 + $0xe0] sm:$0xff] %v366_v28  ;;  %369 = vst [vmem:[%s1503_s4 + $0xe8] sm:$0xff] %v368_v29  ;;  %v370_v30 = vld [vmem:[%s1498_s3 + $0x1e0] sm:$0xff]  ;;  %v372_v31 = vld [vmem:[%s1498_s3 + $0x1f0] sm:$0xff] }
  0x26   : > { %v374_v32 = vld [vmem:[%s1498_s3 + $0x200] sm:$0xff]  ;;  %371 = vst [vmem:[%s1503_s4 + $0xf0] sm:$0xff] %v370_v30  ;;  %373 = vst [vmem:[%s1503_s4 + $0xf8] sm:$0xff] %v372_v31  ;;  %v376_v33 = vld [vmem:[%s1498_s3 + $0x210] sm:$0xff] }
  0x27   : > { %375 = vst [vmem:[%s1503_s4 + $0x100] sm:$0xff] %v374_v32  ;;  %v378_v34 = vld [vmem:[%s1498_s3 + $0x220] sm:$0xff]  ;;  %v380_v35 = vld [vmem:[%s1498_s3 + $0x230] sm:$0xff]  ;;  %377 = vst [vmem:[%s1503_s4 + $0x108] sm:$0xff] %v376_v33 }
  0x28   : > { %379 = vst [vmem:[%s1503_s4 + $0x110] sm:$0xff] %v378_v34  ;;  %381 = vst [vmem:[%s1503_s4 + $0x118] sm:$0xff] %v380_v35  ;;  %v382_v36 = vld [vmem:[%s1498_s3 + $0x240] sm:$0xff]  ;;  %v384_v37 = vld [vmem:[%s1498_s3 + $0x250] sm:$0xff] }
  0x29   : > { %v386_v38 = vld [vmem:[%s1498_s3 + $0x260] sm:$0xff]  ;;  %383 = vst [vmem:[%s1503_s4 + $0x120] sm:$0xff] %v382_v36  ;;  %385 = vst [vmem:[%s1503_s4 + $0x128] sm:$0xff] %v384_v37  ;;  %v388_v39 = vld [vmem:[%s1498_s3 + $0x270] sm:$0xff] }
  0x2a   : > { %387 = vst [vmem:[%s1503_s4 + $0x130] sm:$0xff] %v386_v38  ;;  %v390_v40 = vld [vmem:[%s1498_s3 + $0x280] sm:$0xff]  ;;  %v392_v41 = vld [vmem:[%s1498_s3 + $0x290] sm:$0xff]  ;;  %389 = vst [vmem:[%s1503_s4 + $0x138] sm:$0xff] %v388_v39 }
  0x2b   : > { %391 = vst [vmem:[%s1503_s4 + $0x140] sm:$0xff] %v390_v40  ;;  %393 = vst [vmem:[%s1503_s4 + $0x148] sm:$0xff] %v392_v41  ;;  %v394_v42 = vld [vmem:[%s1498_s3 + $0x2a0] sm:$0xff]  ;;  %v396_v43 = vld [vmem:[%s1498_s3 + $0x2b0] sm:$0xff] }
  0x2c   : > { %v398_v44 = vld [vmem:[%s1498_s3 + $0x2c0] sm:$0xff]  ;;  %395 = vst [vmem:[%s1503_s4 + $0x150] sm:$0xff] %v394_v42  ;;  %397 = vst [vmem:[%s1503_s4 + $0x158] sm:$0xff] %v396_v43  ;;  %v400_v45 = vld [vmem:[%s1498_s3 + $0x2d0] sm:$0xff] }
  0x2d   : > { %399 = vst [vmem:[%s1503_s4 + $0x160] sm:$0xff] %v398_v44  ;;  %v402_v46 = vld [vmem:[%s1498_s3 + $0x2e0] sm:$0xff]  ;;  %v404_v47 = vld [vmem:[%s1498_s3 + $0x2f0] sm:$0xff]  ;;  %401 = vst [vmem:[%s1503_s4 + $0x168] sm:$0xff] %v400_v45 }
  0x2e   : > { %403 = vst [vmem:[%s1503_s4 + $0x170] sm:$0xff] %v402_v46  ;;  %405 = vst [vmem:[%s1503_s4 + $0x178] sm:$0xff] %v404_v47  ;;  %v406_v48 = vld [vmem:[%s1498_s3 + $0x300] sm:$0xff]  ;;  %v408_v49 = vld [vmem:[%s1498_s3 + $0x310] sm:$0xff] }
  0x2f   : > { %v410_v50 = vld [vmem:[%s1498_s3 + $0x320] sm:$0xff]  ;;  %407 = vst [vmem:[%s1503_s4 + $0x180] sm:$0xff] %v406_v48  ;;  %409 = vst [vmem:[%s1503_s4 + $0x188] sm:$0xff] %v408_v49  ;;  %v412_v51 = vld [vmem:[%s1498_s3 + $0x330] sm:$0xff] }
  0x30   : > { %411 = vst [vmem:[%s1503_s4 + $0x190] sm:$0xff] %v410_v50  ;;  %v414_v52 = vld [vmem:[%s1498_s3 + $0x340] sm:$0xff]  ;;  %v416_v53 = vld [vmem:[%s1498_s3 + $0x350] sm:$0xff]  ;;  %413 = vst [vmem:[%s1503_s4 + $0x198] sm:$0xff] %v412_v51 }
  0x31   : > { %415 = vst [vmem:[%s1503_s4 + $0x1a0] sm:$0xff] %v414_v52  ;;  %417 = vst [vmem:[%s1503_s4 + $0x1a8] sm:$0xff] %v416_v53  ;;  %v418_v54 = vld [vmem:[%s1498_s3 + $0x360] sm:$0xff]  ;;  %v420_v55 = vld [vmem:[%s1498_s3 + $0x370] sm:$0xff] }
  0x32   : > { %v422_v56 = vld [vmem:[%s1498_s3 + $0x380] sm:$0xff]  ;;  %419 = vst [vmem:[%s1503_s4 + $0x1b0] sm:$0xff] %v418_v54  ;;  %421 = vst [vmem:[%s1503_s4 + $0x1b8] sm:$0xff] %v420_v55  ;;  %v424_v57 = vld [vmem:[%s1498_s3 + $0x390] sm:$0xff] }
  0x33   : > { %423 = vst [vmem:[%s1503_s4 + $0x1c0] sm:$0xff] %v422_v56  ;;  %v426_v58 = vld [vmem:[%s1498_s3 + $0x3a0] sm:$0xff]  ;;  %v428_v59 = vld [vmem:[%s1498_s3 + $0x3b0] sm:$0xff]  ;;  %425 = vst [vmem:[%s1503_s4 + $0x1c8] sm:$0xff] %v424_v57 }
  0x34   : > { %427 = vst [vmem:[%s1503_s4 + $0x1d0] sm:$0xff] %v426_v58  ;;  %429 = vst [vmem:[%s1503_s4 + $0x1d8] sm:$0xff] %v428_v59  ;;  %v430_v60 = vld [vmem:[%s1498_s3 + $0x3c0] sm:$0xff]  ;;  %v432_v61 = vld [vmem:[%s1498_s3 + $0x3d0] sm:$0xff] }
  0x35   : > { %v434_v62 = vld [vmem:[%s1498_s3 + $0x3e0] sm:$0xff]  ;;  %431 = vst [vmem:[%s1503_s4 + $0x1e0] sm:$0xff] %v430_v60  ;;  %433 = vst [vmem:[%s1503_s4 + $0x1e8] sm:$0xff] %v432_v61  ;;  %v436_v63 = vld [vmem:[%s1498_s3 + $0x3f0] sm:$0xff] }
  0x36   : > { %435 = vst [vmem:[%s1503_s4 + $0x1f0] sm:$0xff] %v434_v62  ;;  %437 = vst [vmem:[%s1503_s4 + $0x1f8] sm:$0xff] %v436_v63 }
  0x37 PF: > { %p1130_p7 = scmp.ge.s32.totalorder %s1420_s15, 1  ;;  %p442_p8 = scmp.lt.s32.totalorder %s1420_s15, 11 }
  0x39   : > { %p443_p9 = pnand %p1130_p7, %p442_p8 }
  0x3a   : > { %s449_s5 = sand.u32 (!%p443_p9), 1, %s1396_s9   ;;  %s1132_s6 = sshll.u32 (!%p443_p9), %s1404_s11, 2 }
  0x3b   : > { %446 = sbr.rel (%p443_p9) target bundleno = 348 (0x15c), region = 62  ;;  %s1131_s7 = sshll.u32 (!%p443_p9), %s449_s5, 9 }
  0x3c   : > { %p486_p10 = scmp.lt.s32.totalorder (!%p443_p9), %s1132_s6, 19  ;;  %s1134_s8 = sshll.u32 (!%p443_p9), %s1408_s12, 1 }
  0x3d   : > { %p498_p11 = scmp.lt.s32.totalorder (!%p443_p9), %s1134_s8, 3  ;;  %s1645_s9 = scalar_lea.vmem (!%p443_p9), [#allocation3], %s1131_s7 }
  0x3e   : > { %p1136_p12 = scmp.ne.s32.totalorder (!%p443_p9), %s1404_s11, 0 }
  0x40   : > { %s1754_s6 = smov (!%p486_p10, %s1132_s6), 19  ;;  %s1756_s8 = smov (!%p498_p11, %s1134_s8), 3 }
  0x41   : > { %s1133_s18 = sshll.u32 %s1754_s6, 2  ;;  %s1135_s23 = sshll.u32 %s1756_s8, 3 }
  0x42   : > { %s1638_s21 = scalar_lea.vmem %s1738_s0, %s1133_s18  ;;  %s1643_s26 = scalar_lea.vmem %s1740_s2, %s1135_s23 }
  0x43   : > { %508 = sbr.rel (%p1136_p12) target bundleno = 74 (0x4a), region = 70 }
  0x48   : > { %v1422_v0 = vmov 0.0  }
  0x49   : > { %509 = vst [vmem:[#allocation2] sm:$0xff] %v1422_v0  ;;  %510 = vst [vmem:[#allocation2 + $0x8] sm:$0xff] %v1422_v0 }
  0x4a PF: > { %v1266_v1 = vld [vmem:[%s1645_s9 + $0x74] ss:$8 sps:$4 sm:$0xff]   ;;  %v1270_v3 = vld [vmem:[%s1645_s9 + $0x70] ss:$8 sps:$4 sm:$0xff]   ;;  %v1272_v5 = vld [vmem:[%s1645_s9 + $0x64] ss:$8 sps:$4 sm:$0xff]  }
  0x4b   : > { %v1268_v2 = vld [vmem:[%s1645_s9 + $0x174] ss:$8 sps:$4 sm:$0xff]   ;;  %913 = vmatprep.subr.bf16.mxu0 %v1266_v1  ;;  %v1271_v4 = vld [vmem:[%s1645_s9 + $0x170] ss:$8 sps:$4 sm:$0xff]   ;;  %v1274_v6 = vld [vmem:[%s1645_s9 + $0x164] ss:$8 sps:$4 sm:$0xff]  }
  0x4c   : > { %954 = vmatprep.subr.bf16.mxu1 %v1268_v2  ;;  %914 = vmatpush1.bf16.msra.mxu0 %v1270_v3  ;;  %v1276_v7 = vld [vmem:[%s1645_s9 + $0x60] ss:$8 sps:$4 sm:$0xff]   ;;  %v1278_v9 = vld [vmem:[%s1645_s9 + $0x54] ss:$8 sps:$4 sm:$0xff]   ;;  %v1282_v11 = vld [vmem:[%s1645_s9 + $0x50] ss:$8 sps:$4 sm:$0xff]  }
  0x4d   : > { %955 = vmatpush1.bf16.msra.mxu1 %v1271_v4  ;;  %915 = vmatprep.subr.bf16.mxu0 %v1272_v5  ;;  %v1277_v8 = vld [vmem:[%s1645_s9 + $0x160] ss:$8 sps:$4 sm:$0xff]   ;;  %v1280_v10 = vld [vmem:[%s1645_s9 + $0x154] ss:$8 sps:$4 sm:$0xff]   ;;  %v1283_v12 = vld [vmem:[%s1645_s9 + $0x150] ss:$8 sps:$4 sm:$0xff]  }
  0x4e   : > { %956 = vmatprep.subr.bf16.mxu1 %v1274_v6  ;;  %v1284_v13 = vld [vmem:[%s1645_s9 + $0x44] ss:$8 sps:$4 sm:$0xff]   ;;  %v1288_v15 = vld [vmem:[%s1645_s9 + $0x40] ss:$8 sps:$4 sm:$0xff]   ;;  %v1290_v17 = vld [vmem:[%s1645_s9 + $0x34] ss:$8 sps:$4 sm:$0xff]  }
  0x4f   : > { %v1286_v14 = vld [vmem:[%s1645_s9 + $0x144] ss:$8 sps:$4 sm:$0xff]   ;;  %v1289_v16 = vld [vmem:[%s1645_s9 + $0x140] ss:$8 sps:$4 sm:$0xff]   ;;  %v1292_v18 = vld [vmem:[%s1645_s9 + $0x134] ss:$8 sps:$4 sm:$0xff]  }
  0x50   : > { %916 = vmatpush1.bf16.msra.mxu0 %v1276_v7  ;;  %v1294_v19 = vld [vmem:[%s1645_s9 + $0x30] ss:$8 sps:$4 sm:$0xff]   ;;  %v1296_v21 = vld [vmem:[%s1645_s9 + $0x24] ss:$8 sps:$4 sm:$0xff]   ;;  %v1300_v23 = vld [vmem:[%s1645_s9 + $0x20] ss:$8 sps:$4 sm:$0xff]  }
  0x51   : > { %957 = vmatpush1.bf16.msra.mxu1 %v1277_v8  ;;  %917 = vmatprep.subr.bf16.mxu0 %v1278_v9  ;;  %v1295_v20 = vld [vmem:[%s1645_s9 + $0x130] ss:$8 sps:$4 sm:$0xff]   ;;  %v1298_v22 = vld [vmem:[%s1645_s9 + $0x124] ss:$8 sps:$4 sm:$0xff]   ;;  %v1301_v24 = vld [vmem:[%s1645_s9 + $0x120] ss:$8 sps:$4 sm:$0xff]  }
  0x52   : > { %958 = vmatprep.subr.bf16.mxu1 %v1280_v10  ;;  %v1302_v25 = vld [vmem:[%s1645_s9 + $0x14] ss:$8 sps:$4 sm:$0xff]   ;;  %v1306_v27 = vld [vmem:[%s1645_s9 + $0x10] ss:$8 sps:$4 sm:$0xff]   ;;  %v1308_v29 = vld [vmem:[%s1645_s9 + $0x4] ss:$8 sps:$4 sm:$0xff]  }
  0x53   : > { %v1304_v26 = vld [vmem:[%s1645_s9 + $0x114] ss:$8 sps:$4 sm:$0xff]   ;;  %v1307_v28 = vld [vmem:[%s1645_s9 + $0x110] ss:$8 sps:$4 sm:$0xff]   ;;  %v1310_v30 = vld [vmem:[%s1645_s9 + $0x104] ss:$8 sps:$4 sm:$0xff]  }
  0x54   : > { %918 = vmatpush1.bf16.msra.mxu0 %v1282_v11  ;;  %v1312_v31 = vld [vmem:[%s1645_s9] ss:$8 sps:$4 sm:$0xff]   ;;  %v1314_v33 = vld [vmem:[%s1645_s9 + $0xf4] ss:$8 sps:$4 sm:$0xff]   ;;  %v1318_v35 = vld [vmem:[%s1645_s9 + $0xf0] ss:$8 sps:$4 sm:$0xff]  }
  0x55   : > { %959 = vmatpush1.bf16.msra.mxu1 %v1283_v12  ;;  %919 = vmatprep.subr.bf16.mxu0 %v1284_v13  ;;  %v1313_v32 = vld [vmem:[%s1645_s9 + $0x100] ss:$8 sps:$4 sm:$0xff]   ;;  %v1316_v34 = vld [vmem:[%s1645_s9 + $0x1f4] ss:$8 sps:$4 sm:$0xff]   ;;  %v1319_v36 = vld [vmem:[%s1645_s9 + $0x1f0] ss:$8 sps:$4 sm:$0xff]  }
  0x56   : > { %960 = vmatprep.subr.bf16.mxu1 %v1286_v14  ;;  %v1320_v37 = vld [vmem:[%s1645_s9 + $0xe4] ss:$8 sps:$4 sm:$0xff]   ;;  %v1324_v39 = vld [vmem:[%s1645_s9 + $0xe0] ss:$8 sps:$4 sm:$0xff]   ;;  %v1326_v41 = vld [vmem:[%s1645_s9 + $0xd4] ss:$8 sps:$4 sm:$0xff]  }
  0x57   : > { %v1322_v38 = vld [vmem:[%s1645_s9 + $0x1e4] ss:$8 sps:$4 sm:$0xff]   ;;  %v1325_v40 = vld [vmem:[%s1645_s9 + $0x1e0] ss:$8 sps:$4 sm:$0xff]   ;;  %v1328_v42 = vld [vmem:[%s1645_s9 + $0x1d4] ss:$8 sps:$4 sm:$0xff]  }
  0x58   : > { %920 = vmatpush1.bf16.msra.mxu0 %v1288_v15  ;;  %v1330_v43 = vld [vmem:[%s1645_s9 + $0xd0] ss:$8 sps:$4 sm:$0xff]   ;;  %v1332_v45 = vld [vmem:[%s1645_s9 + $0xc4] ss:$8 sps:$4 sm:$0xff]   ;;  %v1336_v50 = vld [vmem:[%s1645_s9 + $0xc0] ss:$8 sps:$4 sm:$0xff]  }
  0x59   : > { %961 = vmatpush1.bf16.msra.mxu1 %v1289_v16  ;;  %921 = vmatprep.subr.bf16.mxu0 %v1290_v17  ;;  %v1331_v44 = vld [vmem:[%s1645_s9 + $0x1d0] ss:$8 sps:$4 sm:$0xff]   ;;  %v1334_v46 = vld [vmem:[%s1645_s9 + $0x1c4] ss:$8 sps:$4 sm:$0xff]   ;;  %v1337_v51 = vld [vmem:[%s1645_s9 + $0x1c0] ss:$8 sps:$4 sm:$0xff]  }
  0x5a   : > { %962 = vmatprep.subr.bf16.mxu1 %v1292_v18  ;;  %v513_v47 = vld [vmem:[%s1638_s21] sm:$0xff]  ;;  %v514_v49 = vld [vmem:[%s1638_s21 + $0x8] sm:$0xff]  ;;  %v1344_v57 = vld [vmem:[%s1645_s9 + $0xa4] ss:$8 sps:$4 sm:$0xff]   ;;  %p1205_p13 = scmp.ne.s32.totalorder %s1404_s11, 4 }
  0x5b   : > { %v1138_v48 = vcombine.high %v513_v47, %v513_v47  ;;  %v1140_v52 = vcombine.high %v514_v49, %v514_v49  ;;  %v1338_v53 = vld [vmem:[%s1645_s9 + $0xb4] ss:$8 sps:$4 sm:$0xff]   ;;  %v1342_v55 = vld [vmem:[%s1645_s9 + $0xb0] ss:$8 sps:$4 sm:$0xff]   ;;  %v1346_v58 = vld [vmem:[%s1645_s9 + $0x1a4] ss:$8 sps:$4 sm:$0xff]   ;;  %v1137_v5 = vcombine.low %v513_v47, %v513_v47  ;;  %v1139_v6 = vcombine.low %v514_v49, %v514_v49 }
  0x5c   : > { %922 = vmatpush1.bf16.msra.mxu0 %v1294_v19  ;;  %v1340_v54 = vld [vmem:[%s1645_s9 + $0x1b4] ss:$8 sps:$4 sm:$0xff]   ;;  %v1343_v56 = vld [vmem:[%s1645_s9 + $0x1b0] ss:$8 sps:$4 sm:$0xff]   ;;  %v1348_v59 = vld [vmem:[%s1645_s9 + $0xa0] ss:$8 sps:$4 sm:$0xff]  }
  0x5d   : > { %963 = vmatpush1.bf16.msra.mxu1 %v1295_v20  ;;  %923 = vmatprep.subr.bf16.mxu0 %v1296_v21  ;;  %v1349_v60 = vld [vmem:[%s1645_s9 + $0x1a0] ss:$8 sps:$4 sm:$0xff]   ;;  %v1350_v61 = vld [vmem:[%s1645_s9 + $0x94] ss:$8 sps:$4 sm:$0xff]   ;;  %v1354_v63 = vld [vmem:[%s1645_s9 + $0x90] ss:$8 sps:$4 sm:$0xff]  }
  0x5e   : > { %964 = vmatprep.subr.bf16.mxu1 %v1298_v22  ;;  %945 = vmatprep.mubr.bf16.mxu0 %v1138_v48  ;;  %v1352_v62 = vld [vmem:[%s1645_s9 + $0x194] ss:$8 sps:$4 sm:$0xff]   ;;  %v1355_v0 = vld [vmem:[%s1645_s9 + $0x190] ss:$8 sps:$4 sm:$0xff]   ;;  %v1356_v1 = vld [vmem:[%s1645_s9 + $0x84] ss:$8 sps:$4 sm:$0xff]  }
  0x5f   : > { %986 = vmatprep.mubr.bf16.mxu1 %v1140_v52  ;;  %v1358_v2 = vld [vmem:[%s1645_s9 + $0x184] ss:$8 sps:$4 sm:$0xff]   ;;  %v1360_v3 = vld [vmem:[%s1645_s9 + $0x80] ss:$8 sps:$4 sm:$0xff]   ;;  %v511_v8 = vld [vmem:[#allocation2] sm:$0xff] }
  0x60   : > { %924 = vmatpush1.bf16.msra.mxu0 %v1300_v23  ;;  %v1361_v4 = vld [vmem:[%s1645_s9 + $0x180] ss:$8 sps:$4 sm:$0xff]   ;;  %v512_v12 = vld [vmem:[#allocation2 + $0x8] sm:$0xff] }
  0x61   : > { %965 = vmatpush1.bf16.msra.mxu1 %v1301_v24  ;;  %925 = vmatprep.subr.bf16.mxu0 %v1302_v25 }
  0x62   : > { %966 = vmatprep.subr.bf16.mxu1 %v1304_v26 }
  0x64   : > { %926 = vmatpush1.bf16.msra.mxu0 %v1306_v27 }
  0x65   : > { %967 = vmatpush1.bf16.msra.mxu1 %v1307_v28  ;;  %927 = vmatprep.subr.bf16.mxu0 %v1308_v29 }
  0x66   : > { %968 = vmatprep.subr.bf16.mxu1 %v1310_v30 }
  0x68   : > { %928 = vmatpush1.bf16.msra.mxu0 %v1312_v31 }
  0x69   : > { %969 = vmatpush1.bf16.msra.mxu1 %v1313_v32  ;;  %929 = vmatprep.subr.bf16.mxu0 %v1314_v33 }
  0x6a   : > { %970 = vmatprep.subr.bf16.mxu1 %v1316_v34 }
  0x6c   : > { %930 = vmatpush2.bf16.msra.mxu0 %v1318_v35 }
  0x6d   : > { %971 = vmatpush2.bf16.msra.mxu1 %v1319_v36  ;;  %931 = vmatprep.subr.bf16.mxu0 %v1320_v37 }
  0x6e   : > { %972 = vmatprep.subr.bf16.mxu1 %v1322_v38 }
  0x70   : > { %932 = vmatpush2.bf16.msra.mxu0 %v1324_v39 }
  0x71   : > { %973 = vmatpush2.bf16.msra.mxu1 %v1325_v40  ;;  %933 = vmatprep.subr.bf16.mxu0 %v1326_v41 }
  0x72   : > { %974 = vmatprep.subr.bf16.mxu1 %v1328_v42 }
  0x74   : > { %934 = vmatpush2.bf16.msra.mxu0 %v1330_v43 }
  0x75   : > { %975 = vmatpush2.bf16.msra.mxu1 %v1331_v44  ;;  %935 = vmatprep.subr.bf16.mxu0 %v1332_v45 }
  0x76   : > { %976 = vmatprep.subr.bf16.mxu1 %v1334_v46 }
  0x78   : > { %936 = vmatpush2.bf16.msra.mxu0 %v1336_v50 }
  0x79   : > { %977 = vmatpush2.bf16.msra.mxu1 %v1337_v51  ;;  %937 = vmatprep.subr.bf16.mxu0 %v1338_v53 }
  0x7a   : > { %978 = vmatprep.subr.bf16.mxu1 %v1340_v54 }
  0x7c   : > { %938 = vmatpush2.bf16.msra.mxu0 %v1342_v55 }
  0x7d   : > { %979 = vmatpush2.bf16.msra.mxu1 %v1343_v56  ;;  %939 = vmatprep.subr.bf16.mxu0 %v1344_v57 }
  0x7e   : > { %980 = vmatprep.subr.bf16.mxu1 %v1346_v58 }
  0x80   : > { %940 = vmatpush2.bf16.msra.mxu0 %v1348_v59 }
  0x81   : > { %981 = vmatpush2.bf16.msra.mxu1 %v1349_v60  ;;  %941 = vmatprep.subr.bf16.mxu0 %v1350_v61 }
  0x82   : > { %982 = vmatprep.subr.bf16.mxu1 %v1352_v62 }
  0x84   : > { %942 = vmatpush2.bf16.msra.mxu0 %v1354_v63 }
  0x85   : > { %983 = vmatpush2.bf16.msra.mxu1 %v1355_v0  ;;  %943 = vmatprep.subr.bf16.mxu0 %v1356_v1 }
  0x86   : > { %984 = vmatprep.subr.bf16.mxu1 %v1358_v2 }
  0x88   : > { %944 = vmatpush2.bf16.msra.mxu0 %v1360_v3 }
  0x89   : > { %985 = vmatpush2.bf16.msra.mxu1 %v1361_v4 }
  0x8b   : > { %946 = vmatmul.mubr.bf16.vlgmr.msra.gmra.mxu0 %v1137_v5 }
  0x8c   : > { %987 = vmatmul.mubr.bf16.vlgmr.msra.gmra.mxu1 %v1139_v6 }
 0x14b   : > { %v947_v7 = vpop.f32.mrf.mxu0 }
 0x14c   : > { %v988_v9 = vpop.f32.mrf.mxu1 }
 0x14d   : > { %v989_v10 = vadd.f32 %v988_v9, %v947_v7  ;;  %v949_v11 = vpop.f32.mrf.mxu0 }
 0x14e   : > { %v990_v13 = vpop.f32.mrf.mxu1 }
 0x14f   : > { %v995_v14 = vadd.f32 %v989_v10, %v511_v8  ;;  %v991_v15 = vadd.f32 %v990_v13, %v949_v11  ;;  %v951_v16 = vpop.f32.mrf.mxu0  ;;  %1002 = sbr.rel (%p1205_p13) target bundleno = 348 (0x15c), region = 74 }
 0x150   : > { %v992_v17 = vpop.f32.mrf.mxu1 }
 0x151   : > { %997 = vst [vmem:[#allocation2] sm:$0xff] %v995_v14  ;;  %v996_v18 = vadd.f32 %v991_v15, %v512_v12  ;;  %v952_v19 = vpop.f32.mrf.mxu0 }
 0x152   : > { %v993_v20 = vpop.f32.mrf.mxu1 }
 0x153   : > { %998 = vst [vmem:[#allocation2 + $0x8] sm:$0xff] %v996_v18 }
 0x158   : > { %v1003_v21 = vld [vmem:[#allocation2] sm:$0xff] }
 0x159   : > { %1005 = vst [vmem:[%s1643_s26] sm:$0xff] %v1003_v21 }
 0x15a   : > { %v1004_v22 = vld [vmem:[#allocation2 + $0x8] sm:$0xff] }
 0x15b   : > { %1006 = vst [vmem:[%s1643_s26 + $0x8] sm:$0xff] %v1004_v22 }
 0x15c PF: > { %s12_s15 = sadd.s32 1, %s1420_s15   ;;  %s1741_s9 = smov %s1400_s10 }
 0x15d   : > { %p9_p0 = scmp.ge.s32.totalorder %s12_s15, 12   ;;  %s1742_s10 = smov %s1489_s22 }
 0x15e   : > { %s1743_s11 = smov %s1412_s13  ;;  %s1744_s12 = smov %s1416_s14 }
 0x15f   : > { %s1745_s13 = smov %s1748_s16  ;;  %s1746_s14 = smov %s1752_s17 }
 0x160   :  { %11 = sbr.rel (!%p9_p0) target bundleno = 4 (0x4), region = 112 }

// kernel: resnet34_forward.198
= control target key start
LH: loop header
LB: loop body
LE: loop exit
PB: predicated region body
PF: predicated region fallthrough
CT: control target
= control target key end

     0   :  { %v14_v0 = vlaneseq  ;;  %v154_v4 = vmov 1966171168   ;;  %v155_v11 = vmov 0.0   ;;  %s213_s0 = inlined_call_operand.vmem [shape: f32[8,512], index: 0, kind: input, shape index: {}]   ;;  %s214_s1 = inlined_call_operand.vmem [shape: f32[1,512], index: 1, kind: output, shape index: {0}]   ;;  %s215_s2 = inlined_call_operand.vmem [shape: f32[1,512], index: 2, kind: output, shape index: {1}]  }
   0x1   :  { %v20_v1 = vld [vmem:[%s213_s0] sm:$0xff]  ;;  %v21_v2 = vld [vmem:[%s213_s0 + $0x8] sm:$0xff]  ;;  %v22_v3 = vld [vmem:[%s213_s0 + $0x10] sm:$0xff]  ;;  %v56_v5 = vunpack.c.l.s4 %v154_v4 }
   0x2   :  { %vm180_vm0 = vcmp.lt.s32.totalorder %v14_v0, 512  ;;  %v23_v7 = vld [vmem:[%s213_s0 + $0x18] sm:$0xff]  ;;  %v25_v8 = vrot.slane %v20_v1, 4  ;;  %v31_v9 = vrot.slane %v21_v2, 4  ;;  %v37_v10 = vrot.slane %v22_v3, 4 }
   0x3   :  { %18 = vst.msk [vmem:[%s214_s1] sm:$0xf] %vm180_vm0, %v155_v11  ;;  %v43_v12 = vrot.slane %v23_v7, 4  ;;  %v57_v13 = vunpack.c.0.s8 %v56_v5  ;;  %v59_v14 = vshrl.u32 %v14_v0, 7  ;;  %19 = vst.msk [vmem:[%s215_s2] sm:$0xf] %vm180_vm0, %v155_v11  ;;  %v85_v15 = vmul.f32 %v20_v1, %v20_v1 }
   0x4   :  { %v26_v16 = vadd.f32 %v25_v8, %v20_v1  ;;  %v32_v17 = vadd.f32 %v31_v9, %v21_v2  ;;  %v38_v18 = vadd.f32 %v37_v10, %v22_v3  ;;  %v86_v19 = vmul.f32 %v21_v2, %v21_v2 }
   0x5   :  { %v44_v20 = vadd.f32 %v43_v12, %v23_v7  ;;  %v60_v21 = vsub.s32 %v57_v13, %v59_v14  ;;  %v87_v22 = vmul.f32 %v22_v3, %v22_v3  ;;  %v88_v23 = vmul.f32 %v23_v7, %v23_v7 }
   0x6   :  { %v27_v24 = vrot.slane %v26_v16, 2  ;;  %v33_v25 = vrot.slane %v32_v17, 2  ;;  %v39_v26 = vrot.slane %v38_v18, 2  ;;  %v89_v27 = vrot.slane %v85_v15, 4 }
   0x7   :  { %v45_v28 = vrot.slane %v44_v20, 2  ;;  %v95_v29 = vrot.slane %v86_v19, 4  ;;  %v101_v30 = vrot.slane %v87_v22, 4  ;;  %v107_v31 = vrot.slane %v88_v23, 4 }
   0x8   :  { %v28_v32 = vadd.f32 %v27_v24, %v26_v16  ;;  %v34_v33 = vadd.f32 %v33_v25, %v32_v17  ;;  %v40_v34 = vadd.f32 %v39_v26, %v38_v18  ;;  %v90_v35 = vadd.f32 %v89_v27, %v85_v15 }
   0x9   :  { %v46_v36 = vadd.f32 %v45_v28, %v44_v20  ;;  %v96_v37 = vadd.f32 %v95_v29, %v86_v19  ;;  %v102_v38 = vadd.f32 %v101_v30, %v87_v22  ;;  %v108_v39 = vadd.f32 %v107_v31, %v88_v23 }
   0xa   :  { %v29_v40 = vrot.slane %v28_v32, 1  ;;  %v35_v41 = vrot.slane %v34_v33, 1  ;;  %v41_v42 = vrot.slane %v40_v34, 1  ;;  %v91_v43 = vrot.slane %v90_v35, 2  ;;  %v24_v8 = vld [vmem:[%s214_s1] sm:$0xf] }
   0xb   :  { %v47_v44 = vrot.slane %v46_v36, 1  ;;  %v97_v45 = vrot.slane %v96_v37, 2  ;;  %v103_v46 = vrot.slane %v102_v38, 2  ;;  %v109_v47 = vrot.slane %v108_v39, 2  ;;  %v84_v14 = vld [vmem:[%s215_s2] sm:$0xf] }
   0xc   :  { %v30_v48 = vadd.f32 %v29_v40, %v28_v32  ;;  %v36_v49 = vadd.f32 %v35_v41, %v34_v33  ;;  %v42_v50 = vadd.f32 %v41_v42, %v40_v34  ;;  %v92_v51 = vadd.f32 %v91_v43, %v90_v35 }
   0xd   :  { %v48_v52 = vadd.f32 %v47_v44, %v46_v36  ;;  %v98_v53 = vadd.f32 %v97_v45, %v96_v37  ;;  %v104_v54 = vadd.f32 %v103_v46, %v102_v38  ;;  %v110_v55 = vadd.f32 %v109_v47, %v108_v39 }
   0xe   :  { %v53_v56 = vcombine.low %v30_v48, %v36_v49  ;;  %v93_v57 = vrot.slane %v92_v51, 1 }
   0xf   :  { %v54_v58 = vcombine.low %v42_v50, %v48_v52  ;;  %v99_v59 = vrot.slane %v98_v53, 1  ;;  %v105_v60 = vrot.slane %v104_v54, 1  ;;  %v111_v61 = vrot.slane %v110_v55, 1 }
  0x10   :  { %v61_v62 = vrot.slane %v53_v56, %v60_v21  ;;  %v94_v63 = vadd.f32 %v93_v57, %v92_v51 }
  0x11   :  { %v68_v0 = vrot.slane %v54_v58, %v60_v21  ;;  %v100_v1 = vadd.f32 %v99_v59, %v98_v53  ;;  %v106_v2 = vadd.f32 %v105_v60, %v104_v54  ;;  %v112_v3 = vadd.f32 %v111_v61, %v110_v55 }
  0x13   :  { %v69_v4 = vcombine.low %v61_v62, %v68_v0  ;;  %v117_v5 = vcombine.low %v94_v63, %v100_v1  ;;  %v118_v7 = vcombine.low %v106_v2, %v112_v3 }
  0x15   :  { %v76_v9 = vrot.slane %v69_v4, %v60_v21  ;;  %v125_v10 = vrot.slane %v117_v5, %v60_v21  ;;  %v132_v11 = vrot.slane %v118_v7, %v60_v21 }
  0x17   :  { %v78_v12 = vadd.f32 %v76_v9, %v24_v8  ;;  %v133_v13 = vcombine.low %v125_v10, %v132_v11 }
  0x19   :  { %83 = vst.msk [vmem:[%s214_s1] sm:$0xf] %vm180_vm0, %v78_v12  ;;  %v140_v15 = vrot.slane %v133_v13, %v60_v21 }
  0x1b   :  { %v142_v16 = vadd.f32 %v140_v15, %v84_v14 }
  0x1d   :  { %143 = vst.msk [vmem:[%s215_s2] sm:$0xf] %vm180_vm0, %v142_v16 }

// kernel: resnet34_forward.201
= control target key start
LH: loop header
LB: loop body
LE: loop exit
PB: predicated region body
PF: predicated region fallthrough
CT: control target
= control target key end

     0   :  { %s945_s9 = smov 0   ;;  %s947_s10 = smov 0   ;;  %s1121_s0 = inlined_call_operand.vmem [shape: bf16[8,256], index: 0, kind: input, shape index: {}]   ;;  %s1122_s1 = inlined_call_operand.vmem [shape: bf16[256,512], index: 1, kind: input, shape index: {}]   ;;  %s1123_s2 = inlined_call_operand.vmem [shape: f32[8,512], index: 2, kind: output, shape index: {}]  }
   0x1   :  { %s949_s11 = smov 0   ;;  %s951_s12 = smov 0  }
   0x2   :  { %s953_s13 = smov 0  }
   0x3 LB: > { %s27_s14 = sadd.s32 1, %s924_s12  ;;  %p75_p1 = scmp.ne.s32.totalorder %s916_s10, %s912_s9  ;;  %s928_s13 = sphi %s953_s13, %s12_s13   ;;  %s924_s12 = sphi %s951_s12, %s1127_s12   ;;  %s920_s11 = sphi %s949_s11, %s1126_s11   ;;  %s916_s10 = sphi %s947_s10, %s1125_s10   ;;  %s912_s9 = sphi %s945_s9, %s1124_s9  }
   0x4   : > { %p29_p0 = scmp.ge.s32.totalorder %s27_s14, 2  ;;  %p76_p2 = scmp.eq.s32.totalorder %s928_s13, 0 }
   0x5   : > { %s68_s16 = sadd.s32 1, %s916_s10  ;;  %p755_p5 = scmp.ge.s32.totalorder %s928_s13, 2 }
   0x6   : > { %s1129_s14 = smov (%p29_p0, %s27_s14), 0  ;;  %p77_p3 = por %p76_p2, %p75_p1 }
   0x7   : > { %s64_s15 = ssub.s32 %s924_s12, %s1129_s14  ;;  %142 = sbr.rel (%p755_p5) target bundleno = 32 (0x20), region = 20 }
   0x8   : > { %p66_p4 = scmp.eq.s32.totalorder %s64_s15, 0 }
   0xa   : > { %s980_s17 = scalar_select %p66_p4, %s916_s10, %s68_s16  }
   0xc   : > { %145 = sbr.rel (!%p77_p3) target bundleno = 32 (0x20), region = 24  ;;  %s147_s18 = sand.u32 (%p77_p3), 1, %s916_s10  }
   0xd   : > { %s799_s19 = sshll.u32 (%p77_p3), %s924_s12, 3  ;;  %s756_s20 = sshll.u32 (%p77_p3), %s147_s18, 8 }
   0xe   : > { %s988_s23 = scalar_lea.vmem (%p77_p3), %s1122_s1, %s799_s19  ;;  %s993_s24 = scalar_lea.vmem (%p77_p3), [#allocation3], %s756_s20 }
   0xf   : > { %v246_v0 = vld [vmem:[%s988_s23] sm:$0xff] (%p77_p3)  ;;  %v248_v1 = vld [vmem:[%s988_s23 + $0x10] sm:$0xff] (%p77_p3) }
  0x10   : > { %v250_v2 = vld [vmem:[%s988_s23 + $0x20] sm:$0xff] (%p77_p3)  ;;  %247 = vst [vmem:[%s993_s24] sm:$0xff] (%p77_p3), %v246_v0  ;;  %249 = vst [vmem:[%s993_s24 + $0x8] sm:$0xff] (%p77_p3), %v248_v1  ;;  %v252_v3 = vld [vmem:[%s988_s23 + $0x30] sm:$0xff] (%p77_p3) }
  0x11   : > { %251 = vst [vmem:[%s993_s24 + $0x10] sm:$0xff] %v250_v2  ;;  %v254_v4 = vld [vmem:[%s988_s23 + $0x40] sm:$0xff]  ;;  %v256_v5 = vld [vmem:[%s988_s23 + $0x50] sm:$0xff]  ;;  %253 = vst [vmem:[%s993_s24 + $0x18] sm:$0xff] %v252_v3 }
  0x12   : > { %255 = vst [vmem:[%s993_s24 + $0x20] sm:$0xff] %v254_v4  ;;  %257 = vst [vmem:[%s993_s24 + $0x28] sm:$0xff] %v256_v5  ;;  %v258_v6 = vld [vmem:[%s988_s23 + $0x60] sm:$0xff]  ;;  %v260_v7 = vld [vmem:[%s988_s23 + $0x70] sm:$0xff] }
  0x13   : > { %v262_v8 = vld [vmem:[%s988_s23 + $0x80] sm:$0xff]  ;;  %259 = vst [vmem:[%s993_s24 + $0x30] sm:$0xff] %v258_v6  ;;  %261 = vst [vmem:[%s993_s24 + $0x38] sm:$0xff] %v260_v7  ;;  %v264_v9 = vld [vmem:[%s988_s23 + $0x90] sm:$0xff] }
  0x14   : > { %263 = vst [vmem:[%s993_s24 + $0x40] sm:$0xff] %v262_v8  ;;  %v266_v10 = vld [vmem:[%s988_s23 + $0xa0] sm:$0xff]  ;;  %v268_v11 = vld [vmem:[%s988_s23 + $0xb0] sm:$0xff]  ;;  %265 = vst [vmem:[%s993_s24 + $0x48] sm:$0xff] %v264_v9 }
  0x15   : > { %267 = vst [vmem:[%s993_s24 + $0x50] sm:$0xff] %v266_v10  ;;  %269 = vst [vmem:[%s993_s24 + $0x58] sm:$0xff] %v268_v11  ;;  %v270_v12 = vld [vmem:[%s988_s23 + $0xc0] sm:$0xff]  ;;  %v272_v13 = vld [vmem:[%s988_s23 + $0xd0] sm:$0xff] }
  0x16   : > { %v274_v14 = vld [vmem:[%s988_s23 + $0xe0] sm:$0xff]  ;;  %271 = vst [vmem:[%s993_s24 + $0x60] sm:$0xff] %v270_v12  ;;  %273 = vst [vmem:[%s993_s24 + $0x68] sm:$0xff] %v272_v13  ;;  %v276_v15 = vld [vmem:[%s988_s23 + $0xf0] sm:$0xff] }
  0x17   : > { %275 = vst [vmem:[%s993_s24 + $0x70] sm:$0xff] %v274_v14  ;;  %v278_v16 = vld [vmem:[%s988_s23 + $0x100] sm:$0xff]  ;;  %v280_v17 = vld [vmem:[%s988_s23 + $0x110] sm:$0xff]  ;;  %277 = vst [vmem:[%s993_s24 + $0x78] sm:$0xff] %v276_v15 }
  0x18   : > { %279 = vst [vmem:[%s993_s24 + $0x80] sm:$0xff] %v278_v16  ;;  %281 = vst [vmem:[%s993_s24 + $0x88] sm:$0xff] %v280_v17  ;;  %v282_v18 = vld [vmem:[%s988_s23 + $0x120] sm:$0xff]  ;;  %v284_v19 = vld [vmem:[%s988_s23 + $0x130] sm:$0xff] }
  0x19   : > { %v286_v20 = vld [vmem:[%s988_s23 + $0x140] sm:$0xff]  ;;  %283 = vst [vmem:[%s993_s24 + $0x90] sm:$0xff] %v282_v18  ;;  %285 = vst [vmem:[%s993_s24 + $0x98] sm:$0xff] %v284_v19  ;;  %v288_v21 = vld [vmem:[%s988_s23 + $0x150] sm:$0xff] }
  0x1a   : > { %287 = vst [vmem:[%s993_s24 + $0xa0] sm:$0xff] %v286_v20  ;;  %v290_v22 = vld [vmem:[%s988_s23 + $0x160] sm:$0xff]  ;;  %v292_v23 = vld [vmem:[%s988_s23 + $0x170] sm:$0xff]  ;;  %289 = vst [vmem:[%s993_s24 + $0xa8] sm:$0xff] %v288_v21 }
  0x1b   : > { %291 = vst [vmem:[%s993_s24 + $0xb0] sm:$0xff] %v290_v22  ;;  %293 = vst [vmem:[%s993_s24 + $0xb8] sm:$0xff] %v292_v23  ;;  %v294_v24 = vld [vmem:[%s988_s23 + $0x180] sm:$0xff]  ;;  %v296_v25 = vld [vmem:[%s988_s23 + $0x190] sm:$0xff] }
  0x1c   : > { %v298_v26 = vld [vmem:[%s988_s23 + $0x1a0] sm:$0xff]  ;;  %295 = vst [vmem:[%s993_s24 + $0xc0] sm:$0xff] %v294_v24  ;;  %297 = vst [vmem:[%s993_s24 + $0xc8] sm:$0xff] %v296_v25  ;;  %v300_v27 = vld [vmem:[%s988_s23 + $0x1b0] sm:$0xff] }
  0x1d   : > { %299 = vst [vmem:[%s993_s24 + $0xd0] sm:$0xff] %v298_v26  ;;  %v302_v28 = vld [vmem:[%s988_s23 + $0x1c0] sm:$0xff]  ;;  %v304_v29 = vld [vmem:[%s988_s23 + $0x1d0] sm:$0xff]  ;;  %301 = vst [vmem:[%s993_s24 + $0xd8] sm:$0xff] %v300_v27 }
  0x1e   : > { %303 = vst [vmem:[%s993_s24 + $0xe0] sm:$0xff] %v302_v28  ;;  %305 = vst [vmem:[%s993_s24 + $0xe8] sm:$0xff] %v304_v29  ;;  %v306_v30 = vld [vmem:[%s988_s23 + $0x1e0] sm:$0xff]  ;;  %v308_v31 = vld [vmem:[%s988_s23 + $0x1f0] sm:$0xff] }
  0x1f   : > { %307 = vst [vmem:[%s993_s24 + $0xf0] sm:$0xff] %v306_v30  ;;  %309 = vst [vmem:[%s993_s24 + $0xf8] sm:$0xff] %v308_v31 }
  0x20 PF: > { %p759_p6 = scmp.ge.s32.totalorder %s928_s13, 1  ;;  %p314_p7 = scmp.lt.s32.totalorder %s928_s13, 3 }
  0x22   : > { %p315_p8 = pnand %p759_p6, %p314_p7 }
  0x23   : > { %s321_s25 = sand.u32 (!%p315_p8), 1, %s912_s9   ;;  %s761_s30 = sshll.u32 (!%p315_p8), %s920_s11, 1 }
  0x24   : > { %318 = sbr.rel (%p315_p8) target bundleno = 305 (0x131), region = 62  ;;  %s760_s28 = sshll.u32 (!%p315_p8), %s321_s25, 8 }
  0x25   : > { %s1066_s29 = scalar_lea.vmem (!%p315_p8), [#allocation3], %s760_s28  ;;  %p370_p9 = scmp.lt.s32.totalorder (!%p315_p8), %s761_s30, 3 }
  0x29   : > { %v1062_v32 = vld [vmem:[%s1121_s0] sm:$0xff]  ;;  %v840_v34 = vld [vmem:[%s1066_s29 + $0x74] ss:$8 sps:$4 sm:$0xff]   ;;  %v842_v35 = vld [vmem:[%s1066_s29 + $0x70] ss:$8 sps:$4 sm:$0xff]   ;;  %s1131_s30 = smov (!%p370_p9, %s761_s30), 3 }
  0x2a   : > { %v764_v33 = vcombine.high %v1062_v32, %v1062_v32  ;;  %585 = vmatprep.subr.bf16.mxu0 %v840_v34  ;;  %v843_v36 = vld [vmem:[%s1066_s29 + $0x64] ss:$8 sps:$4 sm:$0xff]   ;;  %v845_v37 = vld [vmem:[%s1066_s29 + $0x60] ss:$8 sps:$4 sm:$0xff]   ;;  %v846_v38 = vld [vmem:[%s1066_s29 + $0x54] ss:$8 sps:$4 sm:$0xff]   ;;  %v763_v2 = vcombine.low %v1062_v32, %v1062_v32 }
  0x2b   : > { %586 = vmatpush1.bf16.msra.mxu0 %v842_v35  ;;  %v848_v39 = vld [vmem:[%s1066_s29 + $0x50] ss:$8 sps:$4 sm:$0xff]   ;;  %v849_v40 = vld [vmem:[%s1066_s29 + $0x44] ss:$8 sps:$4 sm:$0xff]   ;;  %v851_v41 = vld [vmem:[%s1066_s29 + $0x40] ss:$8 sps:$4 sm:$0xff]  }
  0x2c   : > { %617 = vmatprep.mubr.bf16.mxu0 %v764_v33  ;;  %587 = vmatprep.subr.bf16.mxu0 %v843_v36  ;;  %v852_v42 = vld [vmem:[%s1066_s29 + $0x34] ss:$8 sps:$4 sm:$0xff]   ;;  %v854_v43 = vld [vmem:[%s1066_s29 + $0x30] ss:$8 sps:$4 sm:$0xff]   ;;  %v855_v44 = vld [vmem:[%s1066_s29 + $0x24] ss:$8 sps:$4 sm:$0xff]  }
  0x2d   : > { %v857_v45 = vld [vmem:[%s1066_s29 + $0x20] ss:$8 sps:$4 sm:$0xff]   ;;  %v858_v46 = vld [vmem:[%s1066_s29 + $0x14] ss:$8 sps:$4 sm:$0xff]   ;;  %v860_v47 = vld [vmem:[%s1066_s29 + $0x10] ss:$8 sps:$4 sm:$0xff]  }
  0x2e   : > { %v861_v48 = vld [vmem:[%s1066_s29 + $0x4] ss:$8 sps:$4 sm:$0xff]   ;;  %v863_v49 = vld [vmem:[%s1066_s29] ss:$8 sps:$4 sm:$0xff]   ;;  %v864_v50 = vld [vmem:[%s1066_s29 + $0xf4] ss:$8 sps:$4 sm:$0xff]  }
  0x2f   : > { %588 = vmatpush1.bf16.msra.mxu0 %v845_v37  ;;  %v866_v51 = vld [vmem:[%s1066_s29 + $0xf0] ss:$8 sps:$4 sm:$0xff]   ;;  %v867_v52 = vld [vmem:[%s1066_s29 + $0xe4] ss:$8 sps:$4 sm:$0xff]   ;;  %v869_v53 = vld [vmem:[%s1066_s29 + $0xe0] ss:$8 sps:$4 sm:$0xff]  }
  0x30   : > { %589 = vmatprep.subr.bf16.mxu0 %v846_v38  ;;  %v870_v54 = vld [vmem:[%s1066_s29 + $0xd4] ss:$8 sps:$4 sm:$0xff]   ;;  %v872_v55 = vld [vmem:[%s1066_s29 + $0xd0] ss:$8 sps:$4 sm:$0xff]   ;;  %v873_v56 = vld [vmem:[%s1066_s29 + $0xc4] ss:$8 sps:$4 sm:$0xff]  }
  0x31   : > { %v875_v57 = vld [vmem:[%s1066_s29 + $0xc0] ss:$8 sps:$4 sm:$0xff]   ;;  %v876_v58 = vld [vmem:[%s1066_s29 + $0xb4] ss:$8 sps:$4 sm:$0xff]   ;;  %v878_v59 = vld [vmem:[%s1066_s29 + $0xb0] ss:$8 sps:$4 sm:$0xff]  }
  0x32   : > { %v879_v60 = vld [vmem:[%s1066_s29 + $0xa4] ss:$8 sps:$4 sm:$0xff]   ;;  %v881_v61 = vld [vmem:[%s1066_s29 + $0xa0] ss:$8 sps:$4 sm:$0xff]   ;;  %v882_v62 = vld [vmem:[%s1066_s29 + $0x94] ss:$8 sps:$4 sm:$0xff]  }
  0x33   : > { %590 = vmatpush1.bf16.msra.mxu0 %v848_v39  ;;  %v884_v63 = vld [vmem:[%s1066_s29 + $0x90] ss:$8 sps:$4 sm:$0xff]   ;;  %v885_v0 = vld [vmem:[%s1066_s29 + $0x84] ss:$8 sps:$4 sm:$0xff]   ;;  %v887_v1 = vld [vmem:[%s1066_s29 + $0x80] ss:$8 sps:$4 sm:$0xff]  }
  0x34   : > { %591 = vmatprep.subr.bf16.mxu0 %v849_v40  ;;  %s762_s3 = sshll.u32 %s1131_s30, 3 }
  0x35   : > { %s375_s6 = scalar_lea.vmem %s1123_s2, %s762_s3 }
  0x37   : > { %592 = vmatpush1.bf16.msra.mxu0 %v851_v41 }
  0x38   : > { %593 = vmatprep.subr.bf16.mxu0 %v852_v42 }
  0x3b   : > { %594 = vmatpush1.bf16.msra.mxu0 %v854_v43 }
  0x3c   : > { %595 = vmatprep.subr.bf16.mxu0 %v855_v44 }
  0x3f   : > { %596 = vmatpush1.bf16.msra.mxu0 %v857_v45 }
  0x40   : > { %597 = vmatprep.subr.bf16.mxu0 %v858_v46 }
  0x43   : > { %598 = vmatpush1.bf16.msra.mxu0 %v860_v47 }
  0x44   : > { %599 = vmatprep.subr.bf16.mxu0 %v861_v48 }
  0x47   : > { %600 = vmatpush1.bf16.msra.mxu0 %v863_v49 }
  0x48   : > { %601 = vmatprep.subr.bf16.mxu0 %v864_v50 }
  0x4b   : > { %602 = vmatpush2.bf16.msra.mxu0 %v866_v51 }
  0x4c   : > { %603 = vmatprep.subr.bf16.mxu0 %v867_v52 }
  0x4f   : > { %604 = vmatpush2.bf16.msra.mxu0 %v869_v53 }
  0x50   : > { %605 = vmatprep.subr.bf16.mxu0 %v870_v54 }
  0x53   : > { %606 = vmatpush2.bf16.msra.mxu0 %v872_v55 }
  0x54   : > { %607 = vmatprep.subr.bf16.mxu0 %v873_v56 }
  0x57   : > { %608 = vmatpush2.bf16.msra.mxu0 %v875_v57 }
  0x58   : > { %609 = vmatprep.subr.bf16.mxu0 %v876_v58 }
  0x5b   : > { %610 = vmatpush2.bf16.msra.mxu0 %v878_v59 }
  0x5c   : > { %611 = vmatprep.subr.bf16.mxu0 %v879_v60 }
  0x5f   : > { %612 = vmatpush2.bf16.msra.mxu0 %v881_v61 }
  0x60   : > { %613 = vmatprep.subr.bf16.mxu0 %v882_v62 }
  0x63   : > { %614 = vmatpush2.bf16.msra.mxu0 %v884_v63 }
  0x64   : > { %615 = vmatprep.subr.bf16.mxu0 %v885_v0 }
  0x67   : > { %616 = vmatpush2.bf16.msra.mxu0 %v887_v1 }
  0x6a   : > { %618 = vmatmul.mubr.bf16.vlgmr.msra.gmra.mxu0 %v763_v2 }
 0x12a   : > { %v619_v3 = vpop.f32.mrf.mxu0 }
 0x12b   : > { %635 = vst [vmem:[%s375_s6] sm:$0xff] %v619_v3 }
 0x12c   : > { %v621_v4 = vpop.f32.mrf.mxu0 }
 0x12d   : > { %636 = vst [vmem:[%s375_s6 + $0x8] sm:$0xff] %v621_v4 }
 0x12e   : > { %v623_v5 = vpop.f32.mrf.mxu0 }
 0x130   : > { %v624_v6 = vpop.f32.mrf.mxu0 }
 0x131 PF: > { %s12_s13 = sadd.s32 1, %s928_s13   ;;  %s1124_s9 = smov %s916_s10 }
 0x132   : > { %p9_p10 = scmp.ge.s32.totalorder %s12_s13, 4   ;;  %s1125_s10 = smov %s980_s17 }
 0x133   : > { %s1126_s11 = smov %s924_s12  ;;  %s1127_s12 = smov %s1129_s14 }
 0x134   :  { %11 = sbr.rel (!%p9_p10) target bundleno = 3 (0x3), region = 112 }

// kernel: resnet34_forward.199
= control target key start
LH: loop header
LB: loop body
LE: loop exit
PB: predicated region body
PF: predicated region fallthrough
CT: control target
= control target key end

     0   :  { %v20_v0 = vlaneseq  ;;  %s132_s1 = inlined_call_operand.vmem [shape: f32[1,512], index: 1, kind: input, shape index: {}]   ;;  %s133_s2 = inlined_call_operand.vmem [shape: f32[1,512], index: 2, kind: input, shape index: {}]   ;;  %s134_s0 = inlined_call_operand.vmem [shape: f32[8,512], index: 0, kind: input, shape index: {}]   ;;  %s135_s3 = inlined_call_operand.vmem [shape: f32[8,512], index: 3, kind: output, shape index: {}]  }
   0x1   :  { %v18_v2 = vld [vmem:[%s132_s1] sm:$0xf]  ;;  %v15_v9 = vld [vmem:[%s134_s0 + $0x8] sm:$0xff]  ;;  %v16_v14 = vld [vmem:[%s134_s0 + $0x10] sm:$0xff] }
   0x2   :  { %v21_v1 = vshrl.u32 %v20_v0, 7  ;;  %v44_v3 = vld [vmem:[%s133_s2] sm:$0xf]  ;;  %v17_v15 = vld [vmem:[%s134_s0 + $0x18] sm:$0xff] }
   0x3   :  { %v14_v8 = vld [vmem:[%s134_s0] sm:$0xff] }
   0x4   :  { %v22_v4 = vsub.s32 0, %v21_v1  ;;  %v26_v5 = vsub.s32 1, %v21_v1  ;;  %v30_v6 = vsub.s32 2, %v21_v1  ;;  %v34_v7 = vsub.s32 3, %v21_v1 }
   0x6   :  { %v23_v10 = vrot.slane %v18_v2, %v22_v4  ;;  %v49_v11 = vrot.slane %v44_v3, %v22_v4  ;;  %v27_v12 = vrot.slane %v18_v2, %v26_v5  ;;  %v53_v13 = vrot.slane %v44_v3, %v26_v5 }
   0x7   :  { %v31_v16 = vrot.slane %v18_v2, %v30_v6  ;;  %v57_v17 = vrot.slane %v44_v3, %v30_v6  ;;  %v35_v18 = vrot.slane %v18_v2, %v34_v7  ;;  %v61_v19 = vrot.slane %v44_v3, %v34_v7 }
   0x8   :  { %v40_v20 = vmul.f32 %v23_v10, %v14_v8  ;;  %v41_v21 = vmul.f32 %v27_v12, %v15_v9 }
   0x9   :  { %v42_v22 = vmul.f32 %v31_v16, %v16_v14  ;;  %v43_v23 = vmul.f32 %v35_v18, %v17_v15 }
   0xa   :  { %v66_v24 = vadd.f32 %v49_v11, %v40_v20  ;;  %v67_v25 = vadd.f32 %v53_v13, %v41_v21 }
   0xb   :  { %v68_v26 = vadd.f32 %v57_v17, %v42_v22  ;;  %v69_v27 = vadd.f32 %v61_v19, %v43_v23 }
   0xc   :  { %v70_v28 = vmax.f32 %v66_v24, 0.0  ;;  %v71_v29 = vmax.f32 %v67_v25, 0.0 }
   0xd   :  { %v72_v30 = vmax.f32 %v68_v26, 0.0  ;;  %v73_v31 = vmax.f32 %v69_v27, 0.0 }
   0xe   :  { %74 = vst [vmem:[%s135_s3] sm:$0xff] %v70_v28  ;;  %75 = vst [vmem:[%s135_s3 + $0x8] sm:$0xff] %v71_v29 }
   0xf   :  { %76 = vst [vmem:[%s135_s3 + $0x10] sm:$0xff] %v72_v30  ;;  %77 = vst [vmem:[%s135_s3 + $0x18] sm:$0xff] %v73_v31 }

// kernel: resnet34_forward.203
= control target key start
LH: loop header
LB: loop body
LE: loop exit
PB: predicated region body
PF: predicated region fallthrough
CT: control target
= control target key end

     0   :  { %v20_v0 = vlaneseq  ;;  %s128_s1 = inlined_call_operand.vmem [shape: f32[1,512], index: 1, kind: input, shape index: {}]   ;;  %s129_s2 = inlined_call_operand.vmem [shape: f32[1,512], index: 2, kind: input, shape index: {}]   ;;  %s130_s0 = inlined_call_operand.vmem [shape: f32[8,512], index: 0, kind: input, shape index: {}]   ;;  %s131_s3 = inlined_call_operand.vmem [shape: f32[8,512], index: 3, kind: output, shape index: {}]  }
   0x1   :  { %v18_v2 = vld [vmem:[%s128_s1] sm:$0xf]  ;;  %v15_v9 = vld [vmem:[%s130_s0 + $0x8] sm:$0xff]  ;;  %v16_v14 = vld [vmem:[%s130_s0 + $0x10] sm:$0xff] }
   0x2   :  { %v21_v1 = vshrl.u32 %v20_v0, 7  ;;  %v44_v3 = vld [vmem:[%s129_s2] sm:$0xf]  ;;  %v17_v15 = vld [vmem:[%s130_s0 + $0x18] sm:$0xff] }
   0x3   :  { %v14_v8 = vld [vmem:[%s130_s0] sm:$0xff] }
   0x4   :  { %v22_v4 = vsub.s32 0, %v21_v1  ;;  %v26_v5 = vsub.s32 1, %v21_v1  ;;  %v30_v6 = vsub.s32 2, %v21_v1  ;;  %v34_v7 = vsub.s32 3, %v21_v1 }
   0x6   :  { %v23_v10 = vrot.slane %v18_v2, %v22_v4  ;;  %v49_v11 = vrot.slane %v44_v3, %v22_v4  ;;  %v27_v12 = vrot.slane %v18_v2, %v26_v5  ;;  %v53_v13 = vrot.slane %v44_v3, %v26_v5 }
   0x7   :  { %v31_v16 = vrot.slane %v18_v2, %v30_v6  ;;  %v57_v17 = vrot.slane %v44_v3, %v30_v6  ;;  %v35_v18 = vrot.slane %v18_v2, %v34_v7  ;;  %v61_v19 = vrot.slane %v44_v3, %v34_v7 }
   0x8   :  { %v40_v20 = vmul.f32 %v23_v10, %v14_v8  ;;  %v41_v21 = vmul.f32 %v27_v12, %v15_v9 }
   0x9   :  { %v42_v22 = vmul.f32 %v31_v16, %v16_v14  ;;  %v43_v23 = vmul.f32 %v35_v18, %v17_v15 }
   0xa   :  { %v66_v24 = vadd.f32 %v49_v11, %v40_v20  ;;  %v67_v25 = vadd.f32 %v53_v13, %v41_v21 }
   0xb   :  { %v68_v26 = vadd.f32 %v57_v17, %v42_v22  ;;  %v69_v27 = vadd.f32 %v61_v19, %v43_v23 }
   0xc   :  { %70 = vst [vmem:[%s131_s3] sm:$0xff] %v66_v24  ;;  %71 = vst [vmem:[%s131_s3 + $0x8] sm:$0xff] %v67_v25 }
   0xd   :  { %72 = vst [vmem:[%s131_s3 + $0x10] sm:$0xff] %v68_v26  ;;  %73 = vst [vmem:[%s131_s3 + $0x18] sm:$0xff] %v69_v27 }

// kernel: resnet34_forward.218
= control target key start
LH: loop header
LB: loop body
LE: loop exit
PB: predicated region body
PF: predicated region fallthrough
CT: control target
= control target key end

     0   :  { %s46_s0 = inlined_call_operand.vmem [shape: f32[2,1,512], index: 0, kind: input, shape index: {}]   ;;  %s47_s1 = inlined_call_operand.vmem [shape: f32[2,512], index: 1, kind: output, shape index: {}]  }
   0x1   :  { %v29_v0 = vld [vmem:[%s46_s0] sm:$0xff]  }
   0x2   :  { %28 = vst.sshfl [vmem:[%s47_s1] sm:$0xff pattern:$0x75316420] %v29_v0 }

// kernel: resnet34_forward.205
= control target key start
LH: loop header
LB: loop body
LE: loop exit
PB: predicated region body
PF: predicated region fallthrough
CT: control target
= control target key end

     0   :  { %v23_v0 = vlaneseq  ;;  %s160_s1 = inlined_call_operand.vmem [shape: f32[1,512], index: 1, kind: input, shape index: {}]   ;;  %s161_s2 = inlined_call_operand.vmem [shape: f32[1,512], index: 2, kind: input, shape index: {}]   ;;  %s162_s0 = inlined_call_operand.vmem [shape: f32[8,512], index: 0, kind: input, shape index: {}]   ;;  %s163_s3 = inlined_call_operand.vmem [shape: f32[8,512], index: 3, kind: input, shape index: {}]   ;;  %s164_s4 = inlined_call_operand.vmem [shape: f32[8,512], index: 4, kind: output, shape index: {}]  }
   0x1   :  { %v21_v2 = vld [vmem:[%s160_s1] sm:$0xf]  ;;  %v18_v9 = vld [vmem:[%s162_s0 + $0x8] sm:$0xff]  ;;  %v19_v14 = vld [vmem:[%s162_s0 + $0x10] sm:$0xff] }
   0x2   :  { %v24_v1 = vshrl.u32 %v23_v0, 7  ;;  %v47_v3 = vld [vmem:[%s161_s2] sm:$0xf]  ;;  %v20_v15 = vld [vmem:[%s162_s0 + $0x18] sm:$0xff]  ;;  %v74_v23 = vld [vmem:[%s163_s3 + $0x8] sm:$0xff] }
   0x3   :  { %v17_v8 = vld [vmem:[%s162_s0] sm:$0xff]  ;;  %v75_v28 = vld [vmem:[%s163_s3 + $0x10] sm:$0xff]  ;;  %v76_v29 = vld [vmem:[%s163_s3 + $0x18] sm:$0xff] }
   0x4   :  { %v25_v4 = vsub.s32 0, %v24_v1  ;;  %v29_v5 = vsub.s32 1, %v24_v1  ;;  %v33_v6 = vsub.s32 2, %v24_v1  ;;  %v37_v7 = vsub.s32 3, %v24_v1  ;;  %v73_v22 = vld [vmem:[%s163_s3] sm:$0xff] }
   0x6   :  { %v26_v10 = vrot.slane %v21_v2, %v25_v4  ;;  %v52_v11 = vrot.slane %v47_v3, %v25_v4  ;;  %v30_v12 = vrot.slane %v21_v2, %v29_v5  ;;  %v56_v13 = vrot.slane %v47_v3, %v29_v5 }
   0x7   :  { %v34_v16 = vrot.slane %v21_v2, %v33_v6  ;;  %v60_v17 = vrot.slane %v47_v3, %v33_v6  ;;  %v38_v18 = vrot.slane %v21_v2, %v37_v7  ;;  %v64_v19 = vrot.slane %v47_v3, %v37_v7 }
   0x8   :  { %v43_v20 = vmul.f32 %v26_v10, %v17_v8  ;;  %v44_v21 = vmul.f32 %v30_v12, %v18_v9 }
   0x9   :  { %v45_v24 = vmul.f32 %v34_v16, %v19_v14  ;;  %v46_v25 = vmul.f32 %v38_v18, %v20_v15 }
   0xa   :  { %v69_v26 = vadd.f32 %v52_v11, %v43_v20  ;;  %v70_v27 = vadd.f32 %v56_v13, %v44_v21 }
   0xb   :  { %v71_v30 = vadd.f32 %v60_v17, %v45_v24  ;;  %v72_v31 = vadd.f32 %v64_v19, %v46_v25 }
   0xc   :  { %v77_v32 = vadd.f32 %v73_v22, %v69_v26  ;;  %v78_v33 = vadd.f32 %v74_v23, %v70_v27 }
   0xd   :  { %v79_v34 = vadd.f32 %v75_v28, %v71_v30  ;;  %v80_v35 = vadd.f32 %v76_v29, %v72_v31 }
   0xe   :  { %v81_v36 = vmax.f32 %v77_v32, 0.0  ;;  %v82_v37 = vmax.f32 %v78_v33, 0.0 }
   0xf   :  { %v83_v38 = vmax.f32 %v79_v34, 0.0  ;;  %v84_v39 = vmax.f32 %v80_v35, 0.0 }
  0x10   :  { %85 = vst [vmem:[%s164_s4] sm:$0xff] %v81_v36  ;;  %86 = vst [vmem:[%s164_s4 + $0x8] sm:$0xff] %v82_v37 }
  0x11   :  { %87 = vst [vmem:[%s164_s4 + $0x10] sm:$0xff] %v83_v38  ;;  %88 = vst [vmem:[%s164_s4 + $0x18] sm:$0xff] %v84_v39 }

// kernel: resnet34_forward.200
= control target key start
LH: loop header
LB: loop body
LE: loop exit
PB: predicated region body
PF: predicated region fallthrough
CT: control target
= control target key end

     0   :  { %s1438_s9 = smov 0   ;;  %s1440_s10 = smov 0   ;;  %s1738_s0 = inlined_call_operand.vmem [shape: bf16[8,4608], index: 0, kind: input, shape index: {}]   ;;  %s1739_s1 = inlined_call_operand.vmem [shape: bf16[4608,512], index: 1, kind: input, shape index: {}]   ;;  %s1740_s2 = inlined_call_operand.vmem [shape: f32[8,512], index: 2, kind: output, shape index: {}]  }
   0x1   :  { %s1442_s11 = smov 0   ;;  %s1444_s12 = smov 0  }
   0x2   :  { %s1446_s13 = smov 0   ;;  %s1448_s14 = smov 0  }
   0x3   :  { %s1450_s15 = smov 0  }
   0x4 LB: > { %s24_s16 = sadd.s32 1, %s1412_s13  ;;  %s27_s17 = sadd.s32 1, %s1416_s14  ;;  %s1420_s15 = sphi %s1450_s15, %s12_s15   ;;  %s1416_s14 = sphi %s1448_s14, %s1746_s14   ;;  %s1412_s13 = sphi %s1446_s13, %s1745_s13   ;;  %s1408_s12 = sphi %s1444_s12, %s1744_s12   ;;  %s1404_s11 = sphi %s1442_s11, %s1743_s11   ;;  %s1400_s10 = sphi %s1440_s10, %s1742_s10   ;;  %s1396_s9 = sphi %s1438_s9, %s1741_s9  }
   0x5   : > { %p25_p0 = scmp.ge.s32.totalorder %s24_s16, 9  ;;  %p75_p1 = scmp.ne.s32.totalorder %s1400_s10, %s1396_s9 }
   0x6   : > { %p76_p2 = scmp.eq.s32.totalorder %s1420_s15, 0  ;;  %s68_s21 = sadd.s32 1, %s1400_s10 }
   0x7   : > { %s1748_s16 = smov (%p25_p0, %s24_s16), 0  ;;  %s1750_s17 = smov (!%p25_p0, %s27_s17), %s1416_s14 }
   0x8   : > { %p77_p3 = por %p76_p2, %p75_p1  ;;  %p29_p4 = scmp.ge.s32.totalorder %s1750_s17, 2 }
   0x9   : > { %s63_s18 = ssub.s32 %s1412_s13, %s1748_s16  ;;  %p1124_p6 = scmp.ge.s32.totalorder %s1420_s15, 18 }
   0xa   : > { %s1752_s17 = smov (%p29_p4, %s1750_s17), 0 }
   0xb   : > { %s64_s19 = ssub.s32 %s1416_s14, %s1752_s17  ;;  %129 = sbr.rel (%p1124_p6) target bundleno = 55 (0x37), region = 16 }
   0xc   : > { %s65_s20 = sor.u32 %s64_s19, %s63_s18 }
   0xd   : > { %p66_p5 = scmp.eq.s32.totalorder %s65_s20, 0 }
   0xf   : > { %s1489_s22 = scalar_select %p66_p5, %s1400_s10, %s68_s21  }
  0x10   : > { %145 = sbr.rel (!%p77_p3) target bundleno = 55 (0x37), region = 24  ;;  %s147_s23 = sand.u32 (%p77_p3), 1, %s1400_s10  }
  0x11   : > { %s1127_s24 = sshll.u32 (%p77_p3), %s1416_s14, 1  ;;  %s1125_s25 = sshll.u32 (%p77_p3), %s147_s23, 9 }
  0x12   : > { %s1208_s26 = sshll.u32 (%p77_p3), %s1412_s13, 8  ;;  %s1503_s4 = scalar_lea.vmem (%p77_p3), [#allocation3], %s1125_s25 }
  0x13   : > { %s153_s27 = sadd.s32 (%p77_p3), %s1208_s26, %s1127_s24 }
  0x14   : > { %s1129_s28 = sshll.u32 (%p77_p3), %s153_s27, 2 }
  0x15   : > { %s1498_s3 = scalar_lea.vmem %s1739_s1, %s1129_s28 }
  0x16   : > { %v310_v0 = vld [vmem:[%s1498_s3] sm:$0xff]  ;;  %v312_v1 = vld [vmem:[%s1498_s3 + $0x10] sm:$0xff] }
  0x17   : > { %v314_v2 = vld [vmem:[%s1498_s3 + $0x20] sm:$0xff]  ;;  %311 = vst [vmem:[%s1503_s4] sm:$0xff] %v310_v0  ;;  %313 = vst [vmem:[%s1503_s4 + $0x8] sm:$0xff] %v312_v1  ;;  %v316_v3 = vld [vmem:[%s1498_s3 + $0x30] sm:$0xff] }
  0x18   : > { %315 = vst [vmem:[%s1503_s4 + $0x10] sm:$0xff] %v314_v2  ;;  %v318_v4 = vld [vmem:[%s1498_s3 + $0x40] sm:$0xff]  ;;  %v320_v5 = vld [vmem:[%s1498_s3 + $0x50] sm:$0xff]  ;;  %317 = vst [vmem:[%s1503_s4 + $0x18] sm:$0xff] %v316_v3 }
  0x19   : > { %319 = vst [vmem:[%s1503_s4 + $0x20] sm:$0xff] %v318_v4  ;;  %321 = vst [vmem:[%s1503_s4 + $0x28] sm:$0xff] %v320_v5  ;;  %v322_v6 = vld [vmem:[%s1498_s3 + $0x60] sm:$0xff]  ;;  %v324_v7 = vld [vmem:[%s1498_s3 + $0x70] sm:$0xff] }
  0x1a   : > { %v326_v8 = vld [vmem:[%s1498_s3 + $0x80] sm:$0xff]  ;;  %323 = vst [vmem:[%s1503_s4 + $0x30] sm:$0xff] %v322_v6  ;;  %325 = vst [vmem:[%s1503_s4 + $0x38] sm:$0xff] %v324_v7  ;;  %v328_v9 = vld [vmem:[%s1498_s3 + $0x90] sm:$0xff] }
  0x1b   : > { %327 = vst [vmem:[%s1503_s4 + $0x40] sm:$0xff] %v326_v8  ;;  %v330_v10 = vld [vmem:[%s1498_s3 + $0xa0] sm:$0xff]  ;;  %v332_v11 = vld [vmem:[%s1498_s3 + $0xb0] sm:$0xff]  ;;  %329 = vst [vmem:[%s1503_s4 + $0x48] sm:$0xff] %v328_v9 }
  0x1c   : > { %331 = vst [vmem:[%s1503_s4 + $0x50] sm:$0xff] %v330_v10  ;;  %333 = vst [vmem:[%s1503_s4 + $0x58] sm:$0xff] %v332_v11  ;;  %v334_v12 = vld [vmem:[%s1498_s3 + $0xc0] sm:$0xff]  ;;  %v336_v13 = vld [vmem:[%s1498_s3 + $0xd0] sm:$0xff] }
  0x1d   : > { %v338_v14 = vld [vmem:[%s1498_s3 + $0xe0] sm:$0xff]  ;;  %335 = vst [vmem:[%s1503_s4 + $0x60] sm:$0xff] %v334_v12  ;;  %337 = vst [vmem:[%s1503_s4 + $0x68] sm:$0xff] %v336_v13  ;;  %v340_v15 = vld [vmem:[%s1498_s3 + $0xf0] sm:$0xff] }
  0x1e   : > { %339 = vst [vmem:[%s1503_s4 + $0x70] sm:$0xff] %v338_v14  ;;  %v342_v16 = vld [vmem:[%s1498_s3 + $0x100] sm:$0xff]  ;;  %v344_v17 = vld [vmem:[%s1498_s3 + $0x110] sm:$0xff]  ;;  %341 = vst [vmem:[%s1503_s4 + $0x78] sm:$0xff] %v340_v15 }
  0x1f   : > { %343 = vst [vmem:[%s1503_s4 + $0x80] sm:$0xff] %v342_v16  ;;  %345 = vst [vmem:[%s1503_s4 + $0x88] sm:$0xff] %v344_v17  ;;  %v346_v18 = vld [vmem:[%s1498_s3 + $0x120] sm:$0xff]  ;;  %v348_v19 = vld [vmem:[%s1498_s3 + $0x130] sm:$0xff] }
  0x20   : > { %v350_v20 = vld [vmem:[%s1498_s3 + $0x140] sm:$0xff]  ;;  %347 = vst [vmem:[%s1503_s4 + $0x90] sm:$0xff] %v346_v18  ;;  %349 = vst [vmem:[%s1503_s4 + $0x98] sm:$0xff] %v348_v19  ;;  %v352_v21 = vld [vmem:[%s1498_s3 + $0x150] sm:$0xff] }
  0x21   : > { %351 = vst [vmem:[%s1503_s4 + $0xa0] sm:$0xff] %v350_v20  ;;  %v354_v22 = vld [vmem:[%s1498_s3 + $0x160] sm:$0xff]  ;;  %v356_v23 = vld [vmem:[%s1498_s3 + $0x170] sm:$0xff]  ;;  %353 = vst [vmem:[%s1503_s4 + $0xa8] sm:$0xff] %v352_v21 }
  0x22   : > { %355 = vst [vmem:[%s1503_s4 + $0xb0] sm:$0xff] %v354_v22  ;;  %357 = vst [vmem:[%s1503_s4 + $0xb8] sm:$0xff] %v356_v23  ;;  %v358_v24 = vld [vmem:[%s1498_s3 + $0x180] sm:$0xff]  ;;  %v360_v25 = vld [vmem:[%s1498_s3 + $0x190] sm:$0xff] }
  0x23   : > { %v362_v26 = vld [vmem:[%s1498_s3 + $0x1a0] sm:$0xff]  ;;  %359 = vst [vmem:[%s1503_s4 + $0xc0] sm:$0xff] %v358_v24  ;;  %361 = vst [vmem:[%s1503_s4 + $0xc8] sm:$0xff] %v360_v25  ;;  %v364_v27 = vld [vmem:[%s1498_s3 + $0x1b0] sm:$0xff] }
  0x24   : > { %363 = vst [vmem:[%s1503_s4 + $0xd0] sm:$0xff] %v362_v26  ;;  %v366_v28 = vld [vmem:[%s1498_s3 + $0x1c0] sm:$0xff]  ;;  %v368_v29 = vld [vmem:[%s1498_s3 + $0x1d0] sm:$0xff]  ;;  %365 = vst [vmem:[%s1503_s4 + $0xd8] sm:$0xff] %v364_v27 }
  0x25   : > { %367 = vst [vmem:[%s1503_s4 + $0xe0] sm:$0xff] %v366_v28  ;;  %369 = vst [vmem:[%s1503_s4 + $0xe8] sm:$0xff] %v368_v29  ;;  %v370_v30 = vld [vmem:[%s1498_s3 + $0x1e0] sm:$0xff]  ;;  %v372_v31 = vld [vmem:[%s1498_s3 + $0x1f0] sm:$0xff] }
  0x26   : > { %v374_v32 = vld [vmem:[%s1498_s3 + $0x200] sm:$0xff]  ;;  %371 = vst [vmem:[%s1503_s4 + $0xf0] sm:$0xff] %v370_v30  ;;  %373 = vst [vmem:[%s1503_s4 + $0xf8] sm:$0xff] %v372_v31  ;;  %v376_v33 = vld [vmem:[%s1498_s3 + $0x210] sm:$0xff] }
  0x27   : > { %375 = vst [vmem:[%s1503_s4 + $0x100] sm:$0xff] %v374_v32  ;;  %v378_v34 = vld [vmem:[%s1498_s3 + $0x220] sm:$0xff]  ;;  %v380_v35 = vld [vmem:[%s1498_s3 + $0x230] sm:$0xff]  ;;  %377 = vst [vmem:[%s1503_s4 + $0x108] sm:$0xff] %v376_v33 }
  0x28   : > { %379 = vst [vmem:[%s1503_s4 + $0x110] sm:$0xff] %v378_v34  ;;  %381 = vst [vmem:[%s1503_s4 + $0x118] sm:$0xff] %v380_v35  ;;  %v382_v36 = vld [vmem:[%s1498_s3 + $0x240] sm:$0xff]  ;;  %v384_v37 = vld [vmem:[%s1498_s3 + $0x250] sm:$0xff] }
  0x29   : > { %v386_v38 = vld [vmem:[%s1498_s3 + $0x260] sm:$0xff]  ;;  %383 = vst [vmem:[%s1503_s4 + $0x120] sm:$0xff] %v382_v36  ;;  %385 = vst [vmem:[%s1503_s4 + $0x128] sm:$0xff] %v384_v37  ;;  %v388_v39 = vld [vmem:[%s1498_s3 + $0x270] sm:$0xff] }
  0x2a   : > { %387 = vst [vmem:[%s1503_s4 + $0x130] sm:$0xff] %v386_v38  ;;  %v390_v40 = vld [vmem:[%s1498_s3 + $0x280] sm:$0xff]  ;;  %v392_v41 = vld [vmem:[%s1498_s3 + $0x290] sm:$0xff]  ;;  %389 = vst [vmem:[%s1503_s4 + $0x138] sm:$0xff] %v388_v39 }
  0x2b   : > { %391 = vst [vmem:[%s1503_s4 + $0x140] sm:$0xff] %v390_v40  ;;  %393 = vst [vmem:[%s1503_s4 + $0x148] sm:$0xff] %v392_v41  ;;  %v394_v42 = vld [vmem:[%s1498_s3 + $0x2a0] sm:$0xff]  ;;  %v396_v43 = vld [vmem:[%s1498_s3 + $0x2b0] sm:$0xff] }
  0x2c   : > { %v398_v44 = vld [vmem:[%s1498_s3 + $0x2c0] sm:$0xff]  ;;  %395 = vst [vmem:[%s1503_s4 + $0x150] sm:$0xff] %v394_v42  ;;  %397 = vst [vmem:[%s1503_s4 + $0x158] sm:$0xff] %v396_v43  ;;  %v400_v45 = vld [vmem:[%s1498_s3 + $0x2d0] sm:$0xff] }
  0x2d   : > { %399 = vst [vmem:[%s1503_s4 + $0x160] sm:$0xff] %v398_v44  ;;  %v402_v46 = vld [vmem:[%s1498_s3 + $0x2e0] sm:$0xff]  ;;  %v404_v47 = vld [vmem:[%s1498_s3 + $0x2f0] sm:$0xff]  ;;  %401 = vst [vmem:[%s1503_s4 + $0x168] sm:$0xff] %v400_v45 }
  0x2e   : > { %403 = vst [vmem:[%s1503_s4 + $0x170] sm:$0xff] %v402_v46  ;;  %405 = vst [vmem:[%s1503_s4 + $0x178] sm:$0xff] %v404_v47  ;;  %v406_v48 = vld [vmem:[%s1498_s3 + $0x300] sm:$0xff]  ;;  %v408_v49 = vld [vmem:[%s1498_s3 + $0x310] sm:$0xff] }
  0x2f   : > { %v410_v50 = vld [vmem:[%s1498_s3 + $0x320] sm:$0xff]  ;;  %407 = vst [vmem:[%s1503_s4 + $0x180] sm:$0xff] %v406_v48  ;;  %409 = vst [vmem:[%s1503_s4 + $0x188] sm:$0xff] %v408_v49  ;;  %v412_v51 = vld [vmem:[%s1498_s3 + $0x330] sm:$0xff] }
  0x30   : > { %411 = vst [vmem:[%s1503_s4 + $0x190] sm:$0xff] %v410_v50  ;;  %v414_v52 = vld [vmem:[%s1498_s3 + $0x340] sm:$0xff]  ;;  %v416_v53 = vld [vmem:[%s1498_s3 + $0x350] sm:$0xff]  ;;  %413 = vst [vmem:[%s1503_s4 + $0x198] sm:$0xff] %v412_v51 }
  0x31   : > { %415 = vst [vmem:[%s1503_s4 + $0x1a0] sm:$0xff] %v414_v52  ;;  %417 = vst [vmem:[%s1503_s4 + $0x1a8] sm:$0xff] %v416_v53  ;;  %v418_v54 = vld [vmem:[%s1498_s3 + $0x360] sm:$0xff]  ;;  %v420_v55 = vld [vmem:[%s1498_s3 + $0x370] sm:$0xff] }
  0x32   : > { %v422_v56 = vld [vmem:[%s1498_s3 + $0x380] sm:$0xff]  ;;  %419 = vst [vmem:[%s1503_s4 + $0x1b0] sm:$0xff] %v418_v54  ;;  %421 = vst [vmem:[%s1503_s4 + $0x1b8] sm:$0xff] %v420_v55  ;;  %v424_v57 = vld [vmem:[%s1498_s3 + $0x390] sm:$0xff] }
  0x33   : > { %423 = vst [vmem:[%s1503_s4 + $0x1c0] sm:$0xff] %v422_v56  ;;  %v426_v58 = vld [vmem:[%s1498_s3 + $0x3a0] sm:$0xff]  ;;  %v428_v59 = vld [vmem:[%s1498_s3 + $0x3b0] sm:$0xff]  ;;  %425 = vst [vmem:[%s1503_s4 + $0x1c8] sm:$0xff] %v424_v57 }
  0x34   : > { %427 = vst [vmem:[%s1503_s4 + $0x1d0] sm:$0xff] %v426_v58  ;;  %429 = vst [vmem:[%s1503_s4 + $0x1d8] sm:$0xff] %v428_v59  ;;  %v430_v60 = vld [vmem:[%s1498_s3 + $0x3c0] sm:$0xff]  ;;  %v432_v61 = vld [vmem:[%s1498_s3 + $0x3d0] sm:$0xff] }
  0x35   : > { %v434_v62 = vld [vmem:[%s1498_s3 + $0x3e0] sm:$0xff]  ;;  %431 = vst [vmem:[%s1503_s4 + $0x1e0] sm:$0xff] %v430_v60  ;;  %433 = vst [vmem:[%s1503_s4 + $0x1e8] sm:$0xff] %v432_v61  ;;  %v436_v63 = vld [vmem:[%s1498_s3 + $0x3f0] sm:$0xff] }
  0x36   : > { %435 = vst [vmem:[%s1503_s4 + $0x1f0] sm:$0xff] %v434_v62  ;;  %437 = vst [vmem:[%s1503_s4 + $0x1f8] sm:$0xff] %v436_v63 }
  0x37 PF: > { %p1130_p7 = scmp.ge.s32.totalorder %s1420_s15, 1  ;;  %p442_p8 = scmp.lt.s32.totalorder %s1420_s15, 19 }
  0x39   : > { %p443_p9 = pnand %p1130_p7, %p442_p8 }
  0x3a   : > { %s449_s5 = sand.u32 (!%p443_p9), 1, %s1396_s9   ;;  %s1132_s6 = sshll.u32 (!%p443_p9), %s1404_s11, 2 }
  0x3b   : > { %446 = sbr.rel (%p443_p9) target bundleno = 348 (0x15c), region = 62  ;;  %s1131_s7 = sshll.u32 (!%p443_p9), %s449_s5, 9 }
  0x3c   : > { %p486_p10 = scmp.lt.s32.totalorder (!%p443_p9), %s1132_s6, 35  ;;  %s1134_s8 = sshll.u32 (!%p443_p9), %s1408_s12, 1 }
  0x3d   : > { %p498_p11 = scmp.lt.s32.totalorder (!%p443_p9), %s1134_s8, 3  ;;  %s1645_s9 = scalar_lea.vmem (!%p443_p9), [#allocation3], %s1131_s7 }
  0x3e   : > { %p1136_p12 = scmp.ne.s32.totalorder (!%p443_p9), %s1404_s11, 0 }
  0x40   : > { %s1754_s6 = smov (!%p486_p10, %s1132_s6), 35  ;;  %s1756_s8 = smov (!%p498_p11, %s1134_s8), 3 }
  0x41   : > { %s1133_s18 = sshll.u32 %s1754_s6, 2  ;;  %s1135_s23 = sshll.u32 %s1756_s8, 3 }
  0x42   : > { %s1638_s21 = scalar_lea.vmem %s1738_s0, %s1133_s18  ;;  %s1643_s26 = scalar_lea.vmem %s1740_s2, %s1135_s23 }
  0x43   : > { %508 = sbr.rel (%p1136_p12) target bundleno = 74 (0x4a), region = 70 }
  0x48   : > { %v1422_v0 = vmov 0.0  }
  0x49   : > { %509 = vst [vmem:[#allocation2] sm:$0xff] %v1422_v0  ;;  %510 = vst [vmem:[#allocation2 + $0x8] sm:$0xff] %v1422_v0 }
  0x4a PF: > { %v1266_v1 = vld [vmem:[%s1645_s9 + $0x74] ss:$8 sps:$4 sm:$0xff]   ;;  %v1270_v3 = vld [vmem:[%s1645_s9 + $0x70] ss:$8 sps:$4 sm:$0xff]   ;;  %v1272_v5 = vld [vmem:[%s1645_s9 + $0x64] ss:$8 sps:$4 sm:$0xff]  }
  0x4b   : > { %v1268_v2 = vld [vmem:[%s1645_s9 + $0x174] ss:$8 sps:$4 sm:$0xff]   ;;  %913 = vmatprep.subr.bf16.mxu0 %v1266_v1  ;;  %v1271_v4 = vld [vmem:[%s1645_s9 + $0x170] ss:$8 sps:$4 sm:$0xff]   ;;  %v1274_v6 = vld [vmem:[%s1645_s9 + $0x164] ss:$8 sps:$4 sm:$0xff]  }
  0x4c   : > { %954 = vmatprep.subr.bf16.mxu1 %v1268_v2  ;;  %914 = vmatpush1.bf16.msra.mxu0 %v1270_v3  ;;  %v1276_v7 = vld [vmem:[%s1645_s9 + $0x60] ss:$8 sps:$4 sm:$0xff]   ;;  %v1278_v9 = vld [vmem:[%s1645_s9 + $0x54] ss:$8 sps:$4 sm:$0xff]   ;;  %v1282_v11 = vld [vmem:[%s1645_s9 + $0x50] ss:$8 sps:$4 sm:$0xff]  }
  0x4d   : > { %955 = vmatpush1.bf16.msra.mxu1 %v1271_v4  ;;  %915 = vmatprep.subr.bf16.mxu0 %v1272_v5  ;;  %v1277_v8 = vld [vmem:[%s1645_s9 + $0x160] ss:$8 sps:$4 sm:$0xff]   ;;  %v1280_v10 = vld [vmem:[%s1645_s9 + $0x154] ss:$8 sps:$4 sm:$0xff]   ;;  %v1283_v12 = vld [vmem:[%s1645_s9 + $0x150] ss:$8 sps:$4 sm:$0xff]  }
  0x4e   : > { %956 = vmatprep.subr.bf16.mxu1 %v1274_v6  ;;  %v1284_v13 = vld [vmem:[%s1645_s9 + $0x44] ss:$8 sps:$4 sm:$0xff]   ;;  %v1288_v15 = vld [vmem:[%s1645_s9 + $0x40] ss:$8 sps:$4 sm:$0xff]   ;;  %v1290_v17 = vld [vmem:[%s1645_s9 + $0x34] ss:$8 sps:$4 sm:$0xff]  }
  0x4f   : > { %v1286_v14 = vld [vmem:[%s1645_s9 + $0x144] ss:$8 sps:$4 sm:$0xff]   ;;  %v1289_v16 = vld [vmem:[%s1645_s9 + $0x140] ss:$8 sps:$4 sm:$0xff]   ;;  %v1292_v18 = vld [vmem:[%s1645_s9 + $0x134] ss:$8 sps:$4 sm:$0xff]  }
  0x50   : > { %916 = vmatpush1.bf16.msra.mxu0 %v1276_v7  ;;  %v1294_v19 = vld [vmem:[%s1645_s9 + $0x30] ss:$8 sps:$4 sm:$0xff]   ;;  %v1296_v21 = vld [vmem:[%s1645_s9 + $0x24] ss:$8 sps:$4 sm:$0xff]   ;;  %v1300_v23 = vld [vmem:[%s1645_s9 + $0x20] ss:$8 sps:$4 sm:$0xff]  }
  0x51   : > { %957 = vmatpush1.bf16.msra.mxu1 %v1277_v8  ;;  %917 = vmatprep.subr.bf16.mxu0 %v1278_v9  ;;  %v1295_v20 = vld [vmem:[%s1645_s9 + $0x130] ss:$8 sps:$4 sm:$0xff]   ;;  %v1298_v22 = vld [vmem:[%s1645_s9 + $0x124] ss:$8 sps:$4 sm:$0xff]   ;;  %v1301_v24 = vld [vmem:[%s1645_s9 + $0x120] ss:$8 sps:$4 sm:$0xff]  }
  0x52   : > { %958 = vmatprep.subr.bf16.mxu1 %v1280_v10  ;;  %v1302_v25 = vld [vmem:[%s1645_s9 + $0x14] ss:$8 sps:$4 sm:$0xff]   ;;  %v1306_v27 = vld [vmem:[%s1645_s9 + $0x10] ss:$8 sps:$4 sm:$0xff]   ;;  %v1308_v29 = vld [vmem:[%s1645_s9 + $0x4] ss:$8 sps:$4 sm:$0xff]  }
  0x53   : > { %v1304_v26 = vld [vmem:[%s1645_s9 + $0x114] ss:$8 sps:$4 sm:$0xff]   ;;  %v1307_v28 = vld [vmem:[%s1645_s9 + $0x110] ss:$8 sps:$4 sm:$0xff]   ;;  %v1310_v30 = vld [vmem:[%s1645_s9 + $0x104] ss:$8 sps:$4 sm:$0xff]  }
  0x54   : > { %918 = vmatpush1.bf16.msra.mxu0 %v1282_v11  ;;  %v1312_v31 = vld [vmem:[%s1645_s9] ss:$8 sps:$4 sm:$0xff]   ;;  %v1314_v33 = vld [vmem:[%s1645_s9 + $0xf4] ss:$8 sps:$4 sm:$0xff]   ;;  %v1318_v35 = vld [vmem:[%s1645_s9 + $0xf0] ss:$8 sps:$4 sm:$0xff]  }
  0x55   : > { %959 = vmatpush1.bf16.msra.mxu1 %v1283_v12  ;;  %919 = vmatprep.subr.bf16.mxu0 %v1284_v13  ;;  %v1313_v32 = vld [vmem:[%s1645_s9 + $0x100] ss:$8 sps:$4 sm:$0xff]   ;;  %v1316_v34 = vld [vmem:[%s1645_s9 + $0x1f4] ss:$8 sps:$4 sm:$0xff]   ;;  %v1319_v36 = vld [vmem:[%s1645_s9 + $0x1f0] ss:$8 sps:$4 sm:$0xff]  }
  0x56   : > { %960 = vmatprep.subr.bf16.mxu1 %v1286_v14  ;;  %v1320_v37 = vld [vmem:[%s1645_s9 + $0xe4] ss:$8 sps:$4 sm:$0xff]   ;;  %v1324_v39 = vld [vmem:[%s1645_s9 + $0xe0] ss:$8 sps:$4 sm:$0xff]   ;;  %v1326_v41 = vld [vmem:[%s1645_s9 + $0xd4] ss:$8 sps:$4 sm:$0xff]  }
  0x57   : > { %v1322_v38 = vld [vmem:[%s1645_s9 + $0x1e4] ss:$8 sps:$4 sm:$0xff]   ;;  %v1325_v40 = vld [vmem:[%s1645_s9 + $0x1e0] ss:$8 sps:$4 sm:$0xff]   ;;  %v1328_v42 = vld [vmem:[%s1645_s9 + $0x1d4] ss:$8 sps:$4 sm:$0xff]  }
  0x58   : > { %920 = vmatpush1.bf16.msra.mxu0 %v1288_v15  ;;  %v1330_v43 = vld [vmem:[%s1645_s9 + $0xd0] ss:$8 sps:$4 sm:$0xff]   ;;  %v1332_v45 = vld [vmem:[%s1645_s9 + $0xc4] ss:$8 sps:$4 sm:$0xff]   ;;  %v1336_v50 = vld [vmem:[%s1645_s9 + $0xc0] ss:$8 sps:$4 sm:$0xff]  }
  0x59   : > { %961 = vmatpush1.bf16.msra.mxu1 %v1289_v16  ;;  %921 = vmatprep.subr.bf16.mxu0 %v1290_v17  ;;  %v1331_v44 = vld [vmem:[%s1645_s9 + $0x1d0] ss:$8 sps:$4 sm:$0xff]   ;;  %v1334_v46 = vld [vmem:[%s1645_s9 + $0x1c4] ss:$8 sps:$4 sm:$0xff]   ;;  %v1337_v51 = vld [vmem:[%s1645_s9 + $0x1c0] ss:$8 sps:$4 sm:$0xff]  }
  0x5a   : > { %962 = vmatprep.subr.bf16.mxu1 %v1292_v18  ;;  %v513_v47 = vld [vmem:[%s1638_s21] sm:$0xff]  ;;  %v514_v49 = vld [vmem:[%s1638_s21 + $0x8] sm:$0xff]  ;;  %v1344_v57 = vld [vmem:[%s1645_s9 + $0xa4] ss:$8 sps:$4 sm:$0xff]   ;;  %p1205_p13 = scmp.ne.s32.totalorder %s1404_s11, 8 }
  0x5b   : > { %v1138_v48 = vcombine.high %v513_v47, %v513_v47  ;;  %v1140_v52 = vcombine.high %v514_v49, %v514_v49  ;;  %v1338_v53 = vld [vmem:[%s1645_s9 + $0xb4] ss:$8 sps:$4 sm:$0xff]   ;;  %v1342_v55 = vld [vmem:[%s1645_s9 + $0xb0] ss:$8 sps:$4 sm:$0xff]   ;;  %v1346_v58 = vld [vmem:[%s1645_s9 + $0x1a4] ss:$8 sps:$4 sm:$0xff]   ;;  %v1137_v5 = vcombine.low %v513_v47, %v513_v47  ;;  %v1139_v6 = vcombine.low %v514_v49, %v514_v49 }
  0x5c   : > { %922 = vmatpush1.bf16.msra.mxu0 %v1294_v19  ;;  %v1340_v54 = vld [vmem:[%s1645_s9 + $0x1b4] ss:$8 sps:$4 sm:$0xff]   ;;  %v1343_v56 = vld [vmem:[%s1645_s9 + $0x1b0] ss:$8 sps:$4 sm:$0xff]   ;;  %v1348_v59 = vld [vmem:[%s1645_s9 + $0xa0] ss:$8 sps:$4 sm:$0xff]  }
  0x5d   : > { %963 = vmatpush1.bf16.msra.mxu1 %v1295_v20  ;;  %923 = vmatprep.subr.bf16.mxu0 %v1296_v21  ;;  %v1349_v60 = vld [vmem:[%s1645_s9 + $0x1a0] ss:$8 sps:$4 sm:$0xff]   ;;  %v1350_v61 = vld [vmem:[%s1645_s9 + $0x94] ss:$8 sps:$4 sm:$0xff]   ;;  %v1354_v63 = vld [vmem:[%s1645_s9 + $0x90] ss:$8 sps:$4 sm:$0xff]  }
  0x5e   : > { %964 = vmatprep.subr.bf16.mxu1 %v1298_v22  ;;  %945 = vmatprep.mubr.bf16.mxu0 %v1138_v48  ;;  %v1352_v62 = vld [vmem:[%s1645_s9 + $0x194] ss:$8 sps:$4 sm:$0xff]   ;;  %v1355_v0 = vld [vmem:[%s1645_s9 + $0x190] ss:$8 sps:$4 sm:$0xff]   ;;  %v1356_v1 = vld [vmem:[%s1645_s9 + $0x84] ss:$8 sps:$4 sm:$0xff]  }
  0x5f   : > { %986 = vmatprep.mubr.bf16.mxu1 %v1140_v52  ;;  %v1358_v2 = vld [vmem:[%s1645_s9 + $0x184] ss:$8 sps:$4 sm:$0xff]   ;;  %v1360_v3 = vld [vmem:[%s1645_s9 + $0x80] ss:$8 sps:$4 sm:$0xff]   ;;  %v511_v8 = vld [vmem:[#allocation2] sm:$0xff] }
  0x60   : > { %924 = vmatpush1.bf16.msra.mxu0 %v1300_v23  ;;  %v1361_v4 = vld [vmem:[%s1645_s9 + $0x180] ss:$8 sps:$4 sm:$0xff]   ;;  %v512_v12 = vld [vmem:[#allocation2 + $0x8] sm:$0xff] }
  0x61   : > { %965 = vmatpush1.bf16.msra.mxu1 %v1301_v24  ;;  %925 = vmatprep.subr.bf16.mxu0 %v1302_v25 }
  0x62   : > { %966 = vmatprep.subr.bf16.mxu1 %v1304_v26 }
  0x64   : > { %926 = vmatpush1.bf16.msra.mxu0 %v1306_v27 }
  0x65   : > { %967 = vmatpush1.bf16.msra.mxu1 %v1307_v28  ;;  %927 = vmatprep.subr.bf16.mxu0 %v1308_v29 }
  0x66   : > { %968 = vmatprep.subr.bf16.mxu1 %v1310_v30 }
  0x68   : > { %928 = vmatpush1.bf16.msra.mxu0 %v1312_v31 }
  0x69   : > { %969 = vmatpush1.bf16.msra.mxu1 %v1313_v32  ;;  %929 = vmatprep.subr.bf16.mxu0 %v1314_v33 }
  0x6a   : > { %970 = vmatprep.subr.bf16.mxu1 %v1316_v34 }
  0x6c   : > { %930 = vmatpush2.bf16.msra.mxu0 %v1318_v35 }
  0x6d   : > { %971 = vmatpush2.bf16.msra.mxu1 %v1319_v36  ;;  %931 = vmatprep.subr.bf16.mxu0 %v1320_v37 }
  0x6e   : > { %972 = vmatprep.subr.bf16.mxu1 %v1322_v38 }
  0x70   : > { %932 = vmatpush2.bf16.msra.mxu0 %v1324_v39 }
  0x71   : > { %973 = vmatpush2.bf16.msra.mxu1 %v1325_v40  ;;  %933 = vmatprep.subr.bf16.mxu0 %v1326_v41 }
  0x72   : > { %974 = vmatprep.subr.bf16.mxu1 %v1328_v42 }
  0x74   : > { %934 = vmatpush2.bf16.msra.mxu0 %v1330_v43 }
  0x75   : > { %975 = vmatpush2.bf16.msra.mxu1 %v1331_v44  ;;  %935 = vmatprep.subr.bf16.mxu0 %v1332_v45 }
  0x76   : > { %976 = vmatprep.subr.bf16.mxu1 %v1334_v46 }
  0x78   : > { %936 = vmatpush2.bf16.msra.mxu0 %v1336_v50 }
  0x79   : > { %977 = vmatpush2.bf16.msra.mxu1 %v1337_v51  ;;  %937 = vmatprep.subr.bf16.mxu0 %v1338_v53 }
  0x7a   : > { %978 = vmatprep.subr.bf16.mxu1 %v1340_v54 }
  0x7c   : > { %938 = vmatpush2.bf16.msra.mxu0 %v1342_v55 }
  0x7d   : > { %979 = vmatpush2.bf16.msra.mxu1 %v1343_v56  ;;  %939 = vmatprep.subr.bf16.mxu0 %v1344_v57 }
  0x7e   : > { %980 = vmatprep.subr.bf16.mxu1 %v1346_v58 }
  0x80   : > { %940 = vmatpush2.bf16.msra.mxu0 %v1348_v59 }
  0x81   : > { %981 = vmatpush2.bf16.msra.mxu1 %v1349_v60  ;;  %941 = vmatprep.subr.bf16.mxu0 %v1350_v61 }
  0x82   : > { %982 = vmatprep.subr.bf16.mxu1 %v1352_v62 }
  0x84   : > { %942 = vmatpush2.bf16.msra.mxu0 %v1354_v63 }
  0x85   : > { %983 = vmatpush2.bf16.msra.mxu1 %v1355_v0  ;;  %943 = vmatprep.subr.bf16.mxu0 %v1356_v1 }
  0x86   : > { %984 = vmatprep.subr.bf16.mxu1 %v1358_v2 }
  0x88   : > { %944 = vmatpush2.bf16.msra.mxu0 %v1360_v3 }
  0x89   : > { %985 = vmatpush2.bf16.msra.mxu1 %v1361_v4 }
  0x8b   : > { %946 = vmatmul.mubr.bf16.vlgmr.msra.gmra.mxu0 %v1137_v5 }
  0x8c   : > { %987 = vmatmul.mubr.bf16.vlgmr.msra.gmra.mxu1 %v1139_v6 }
 0x14b   : > { %v947_v7 = vpop.f32.mrf.mxu0 }
 0x14c   : > { %v988_v9 = vpop.f32.mrf.mxu1 }
 0x14d   : > { %v989_v10 = vadd.f32 %v988_v9, %v947_v7  ;;  %v949_v11 = vpop.f32.mrf.mxu0 }
 0x14e   : > { %v990_v13 = vpop.f32.mrf.mxu1 }
 0x14f   : > { %v995_v14 = vadd.f32 %v989_v10, %v511_v8  ;;  %v991_v15 = vadd.f32 %v990_v13, %v949_v11  ;;  %v951_v16 = vpop.f32.mrf.mxu0  ;;  %1002 = sbr.rel (%p1205_p13) target bundleno = 348 (0x15c), region = 74 }
 0x150   : > { %v992_v17 = vpop.f32.mrf.mxu1 }
 0x151   : > { %997 = vst [vmem:[#allocation2] sm:$0xff] %v995_v14  ;;  %v996_v18 = vadd.f32 %v991_v15, %v512_v12  ;;  %v952_v19 = vpop.f32.mrf.mxu0 }
 0x152   : > { %v993_v20 = vpop.f32.mrf.mxu1 }
 0x153   : > { %998 = vst [vmem:[#allocation2 + $0x8] sm:$0xff] %v996_v18 }
 0x158   : > { %v1003_v21 = vld [vmem:[#allocation2] sm:$0xff] }
 0x159   : > { %1005 = vst [vmem:[%s1643_s26] sm:$0xff] %v1003_v21 }
 0x15a   : > { %v1004_v22 = vld [vmem:[#allocation2 + $0x8] sm:$0xff] }
 0x15b   : > { %1006 = vst [vmem:[%s1643_s26 + $0x8] sm:$0xff] %v1004_v22 }
 0x15c PF: > { %s12_s15 = sadd.s32 1, %s1420_s15   ;;  %s1741_s9 = smov %s1400_s10 }
 0x15d   : > { %p9_p0 = scmp.ge.s32.totalorder %s12_s15, 20   ;;  %s1742_s10 = smov %s1489_s22 }
 0x15e   : > { %s1743_s11 = smov %s1412_s13  ;;  %s1744_s12 = smov %s1416_s14 }
 0x15f   : > { %s1745_s13 = smov %s1748_s16  ;;  %s1746_s14 = smov %s1752_s17 }
 0x160   :  { %11 = sbr.rel (!%p9_p0) target bundleno = 4 (0x4), region = 112 }

// kernel: resnet34_forward.219
= control target key start
LH: loop header
LB: loop body
LE: loop exit
PB: predicated region body
PF: predicated region fallthrough
CT: control target
= control target key end

     0   :  { %s637_s1 = inlined_call_operand.vmem [shape: bf16[512,128], index: 1, kind: input, shape index: {}]   ;;  %s638_s0 = inlined_call_operand.vmem [shape: bf16[8,512], index: 0, kind: input, shape index: {}]   ;;  %s639_s2 = inlined_call_operand.vmem [shape: f32[1,128], index: 2, kind: input, shape index: {}]   ;;  %s640_s3 = inlined_call_operand.vmem [shape: f32[8,128], index: 3, kind: output, shape index: {}]  }
   0x1   :  { %v473_v0 = vld [vmem:[%s637_s1 + $0x78] sm:$0xff]   ;;  %v477_v4 = vld [vmem:[%s637_s1 + $0x70] sm:$0xff]   ;;  %v481_v8 = vld [vmem:[%s637_s1 + $0x68] sm:$0xff]  }
   0x2   :  { %v474_v1 = vld [vmem:[%s637_s1 + $0xf8] sm:$0xff]   ;;  %429 = vmatprep.subr.bf16.mxu0 %v473_v0  ;;  %v478_v5 = vld [vmem:[%s637_s1 + $0xf0] sm:$0xff]   ;;  %v482_v9 = vld [vmem:[%s637_s1 + $0xe8] sm:$0xff]  }
   0x3   :  { %v475_v2 = vld [vmem:[%s637_s1 + $0x38] sm:$0xff]   ;;  %451 = vmatprep.subr.bf16.mxu1 %v474_v1  ;;  %v479_v6 = vld [vmem:[%s637_s1 + $0x30] sm:$0xff]   ;;  %v483_v10 = vld [vmem:[%s637_s1 + $0x28] sm:$0xff]  }
   0x4   :  { %v476_v3 = vld [vmem:[%s637_s1 + $0xb8] sm:$0xff]   ;;  %430 = vmatpush3.bf16.msra.mxu0 %v475_v2  ;;  %v480_v7 = vld [vmem:[%s637_s1 + $0xb0] sm:$0xff]   ;;  %v484_v11 = vld [vmem:[%s637_s1 + $0xa8] sm:$0xff]  }
   0x5   :  { %452 = vmatpush3.bf16.msra.mxu1 %v476_v3  ;;  %431 = vmatprep.subr.bf16.mxu0 %v477_v4  ;;  %v485_v12 = vld [vmem:[%s637_s1 + $0x60] sm:$0xff]   ;;  %v489_v16 = vld [vmem:[%s637_s1 + $0x58] sm:$0xff]   ;;  %v493_v20 = vld [vmem:[%s637_s1 + $0x50] sm:$0xff]  }
   0x6   :  { %453 = vmatprep.subr.bf16.mxu1 %v478_v5  ;;  %v486_v13 = vld [vmem:[%s637_s1 + $0xe0] sm:$0xff]   ;;  %v490_v17 = vld [vmem:[%s637_s1 + $0xd8] sm:$0xff]   ;;  %v494_v21 = vld [vmem:[%s637_s1 + $0xd0] sm:$0xff]  }
   0x7   :  { %v487_v14 = vld [vmem:[%s637_s1 + $0x20] sm:$0xff]   ;;  %v491_v18 = vld [vmem:[%s637_s1 + $0x18] sm:$0xff]   ;;  %v495_v22 = vld [vmem:[%s637_s1 + $0x10] sm:$0xff]  }
   0x8   :  { %432 = vmatpush3.bf16.msra.mxu0 %v479_v6  ;;  %v488_v15 = vld [vmem:[%s637_s1 + $0xa0] sm:$0xff]   ;;  %v492_v19 = vld [vmem:[%s637_s1 + $0x98] sm:$0xff]   ;;  %v496_v23 = vld [vmem:[%s637_s1 + $0x90] sm:$0xff]  }
   0x9   :  { %454 = vmatpush3.bf16.msra.mxu1 %v480_v7  ;;  %433 = vmatprep.subr.bf16.mxu0 %v481_v8  ;;  %v497_v24 = vld [vmem:[%s637_s1 + $0x48] sm:$0xff]   ;;  %v501_v28 = vld [vmem:[%s637_s1 + $0x40] sm:$0xff]  }
   0xa   :  { %455 = vmatprep.subr.bf16.mxu1 %v482_v9  ;;  %v498_v25 = vld [vmem:[%s637_s1 + $0xc8] sm:$0xff]   ;;  %v502_v29 = vld [vmem:[%s637_s1 + $0xc0] sm:$0xff]  }
   0xb   :  { %v499_v26 = vld [vmem:[%s637_s1 + $0x8] sm:$0xff]   ;;  %v503_v30 = vld [vmem:[%s637_s1] sm:$0xff]  }
   0xc   :  { %434 = vmatpush3.bf16.msra.mxu0 %v483_v10  ;;  %v500_v27 = vld [vmem:[%s637_s1 + $0x88] sm:$0xff]   ;;  %v504_v31 = vld [vmem:[%s637_s1 + $0x80] sm:$0xff]  }
   0xd   :  { %456 = vmatpush3.bf16.msra.mxu1 %v484_v11  ;;  %435 = vmatprep.subr.bf16.mxu0 %v485_v12  ;;  %v21_v32 = vld [vmem:[%s638_s0] sm:$0xff]  ;;  %v22_v33 = vld [vmem:[%s638_s0 + $0x8] sm:$0xff] }
   0xe   :  { %457 = vmatprep.subr.bf16.mxu1 %v486_v13  ;;  %v392_v34 = vcombine.low %v21_v32, %v21_v32  ;;  %v393_v35 = vcombine.high %v21_v32, %v21_v32  ;;  %v394_v36 = vcombine.low %v22_v33, %v22_v33  ;;  %v395_v37 = vcombine.high %v22_v33, %v22_v33  ;;  %v428_v44 = vld [vmem:[%s639_s2] ss:$0 sm:$0xff] }
  0x10   :  { %436 = vmatpush3.bf16.msra.mxu0 %v487_v14  ;;  %325 = vmatprep.mubr.bf16.mxu0 %v393_v35 }
  0x11   :  { %458 = vmatpush3.bf16.msra.mxu1 %v488_v15  ;;  %437 = vmatprep.subr.bf16.mxu0 %v489_v16 }
  0x12   :  { %459 = vmatprep.subr.bf16.mxu1 %v490_v17  ;;  %365 = vmatprep.mubr.bf16.mxu1 %v395_v37 }
  0x14   :  { %438 = vmatpush3.bf16.msra.mxu0 %v491_v18 }
  0x15   :  { %460 = vmatpush3.bf16.msra.mxu1 %v492_v19  ;;  %439 = vmatprep.subr.bf16.mxu0 %v493_v20 }
  0x16   :  { %461 = vmatprep.subr.bf16.mxu1 %v494_v21 }
  0x18   :  { %440 = vmatpush3.bf16.msra.mxu0 %v495_v22 }
  0x19   :  { %462 = vmatpush3.bf16.msra.mxu1 %v496_v23  ;;  %441 = vmatprep.subr.bf16.mxu0 %v497_v24 }
  0x1a   :  { %463 = vmatprep.subr.bf16.mxu1 %v498_v25 }
  0x1c   :  { %442 = vmatpush3.bf16.msra.mxu0 %v499_v26 }
  0x1d   :  { %464 = vmatpush3.bf16.msra.mxu1 %v500_v27  ;;  %443 = vmatprep.subr.bf16.mxu0 %v501_v28 }
  0x1e   :  { %465 = vmatprep.subr.bf16.mxu1 %v502_v29 }
  0x20   :  { %444 = vmatpush3.bf16.msra.mxu0 %v503_v30 }
  0x21   :  { %466 = vmatpush3.bf16.msra.mxu1 %v504_v31 }
  0x23   :  { %326 = vmatmul.mubr.bf16.vlgmr.msra.gmra.mxu0 %v392_v34 }
  0x24   :  { %366 = vmatmul.mubr.bf16.vlgmr.msra.gmra.mxu1 %v394_v36 }
  0xe3   :  { %v445_v38 = vpop.f32.mrf.mxu0 }
  0xe4   :  { %v467_v39 = vpop.f32.mrf.mxu1 }
  0xe5   :  { %v446_v40 = vpop.f32.mrf.mxu0 }
  0xe6   :  { %v468_v41 = vpop.f32.mrf.mxu1  ;;  %v447_v42 = vadd.f32 %v446_v40, %v445_v38 }
  0xe7   :  { %v469_v43 = vadd.f32 %v468_v41, %v467_v39  ;;  %v448_v45 = vpop.f32.mrf.mxu0 }
  0xe8   :  { %v470_v46 = vpop.f32.mrf.mxu1 }
  0xe9   :  { %v368_v47 = vadd.f32 %v469_v43, %v447_v42  ;;  %v449_v48 = vpop.f32.mrf.mxu0 }
  0xea   :  { %v471_v49 = vpop.f32.mrf.mxu1 }
  0xeb   :  { %v386_v50 = vadd.f32 %v428_v44, %v368_v47 }
  0xed   :  { %387 = vst [vmem:[%s640_s3] sm:$0xff] %v386_v50 }

</bundles_post_ra>
